<compile_context>
chip_gen: v5e
topology: v5e:2x2
jax: 0.10.0
libtpu: 0.0.40
codegen_flags: <defaults>
</compile_context>

<pallas_src>
import jax
import jax.numpy as jnp
from jax.experimental import pallas as pl
from jax.experimental.pallas import tpu as pltpu


# ---------------------------------------------------------------------------
# Per-generation VMEM scoped limit (v5e/v6e: 128 MiB physical, v7x: 64 MiB/TC)
# ---------------------------------------------------------------------------
_VMEM_LIMIT_CACHE = []


def _vmem_limit_bytes():
    if not _VMEM_LIMIT_CACHE:
        try:
            cap = pltpu.get_tpu_info().vmem_capacity_bytes
            # ~75% of physical, capped at 100 MiB, floored at the v7x-safe 48 MiB.
            lim = max(48 * 1024 * 1024, min(100 * 1024 * 1024, (cap * 3) // 4))
        except Exception:  # pragma: no cover - conservative fallback
            lim = 48 * 1024 * 1024
        _VMEM_LIMIT_CACHE.append(int(lim))
    return _VMEM_LIMIT_CACHE[0]


# ---------------------------------------------------------------------------
# Pallas kernels
# ---------------------------------------------------------------------------
def _conv_block_kernel(x_ref, w_ref, b_ref, scale_ref, shift_ref, o_ref):
    """One M-tile of: im2col-matmul + bias + LeakyReLU(0.2) + BN(eval) affine.

    x_ref: (TM, K) bf16 im2col rows; w_ref: (K, Cout) bf16; epilogue params f32.
    MXU accumulates in f32; the stored activation is bf16 for the next layer.
    """
    y = jnp.dot(x_ref[...], w_ref[...], preferred_element_type=jnp.float32)
    y = y + b_ref[...]                               # conv bias
    y = jnp.maximum(y, 0.2 * y)                      # LeakyReLU(0.2): mul + max
    # TODO(synk): Dropout2d(0.25) is eval-mode identity here (no RNG masking).
    y = y * scale_ref[...] + shift_ref[...]          # BatchNorm2d(eps=0.8) folded affine
    o_ref[...] = y.astype(o_ref.dtype)


def _head_kernel(x_ref, w_ref, b_ref, o_ref):
    """Linear(feat -> 1) + Sigmoid in a single grid step.

    Avoids driving the MXU with a single output column: a VPU multiply + lane
    reduce, then EUP exp + exact reciprocal for the sigmoid.
    """
    x = x_ref[...].astype(jnp.float32)               # (B, feat)
    w = w_ref[...]                                   # (1, feat) f32
    y = jnp.sum(x * w, axis=-1, keepdims=True) + b_ref[...]
    o_ref[...] = pl.reciprocal(1.0 + jnp.exp(-y), approx=False)


# ---------------------------------------------------------------------------
# Tile selection: big tiles (amortize ~0.35 us/step), but keep megacore busy
# ---------------------------------------------------------------------------
def _pick_tile_m(M, *, tm_max=8192, min_steps=4):
    """Largest M-tile <= tm_max that still leaves >= min_steps grid steps
    (so the 'parallel' M axis shards across both v7x TensorCores), rounded to
    a multiple of 256.  Tiny problems collapse to a single full-extent step."""
    if M <= 1024:
        return M
    tm = min(tm_max, max(256, M // min_steps))
    tm = max(256, (tm // 256) * 256)
    return min(tm, M)


# ---------------------------------------------------------------------------
# Conv block wrapper: bf16 im2col (XLA glue) + fused M-tiled Pallas matmul
# ---------------------------------------------------------------------------
def conv_block(x_nhwc, blk, *, tm_max=8192):
    """Conv2d(k=3, s=2, p=1) + LeakyReLU + (Dropout eval) + BN affine.

    x_nhwc: (N, H, W, Cin) bf16 activations
    blk:    pre-prepared params: w2d (9*Cin, Cout) bf16, b2d/scale2d/shift2d (1, Cout) f32
    """
    N, H, W, Cin = x_nhwc.shape
    Cout = blk["w2d"].shape[-1]
    OH, OW = H // 2, W // 2

    # im2col in bf16 (XLA glue).
    # TODO(synk): fuse this im2col into the kernel (per-sample parity-split
    # input blocks + a 9-tap accumulation axis) to remove the patch-blowup HBM
    # traffic on blocks 2-4; deferred because the required in-kernel stride-2 /
    # sublane-offset extraction is a lowering risk we could not validate.
    xp = jnp.pad(x_nhwc, ((0, 0), (1, 1), (1, 1), (0, 0)))
    patches = [xp[:, kh:kh + 2 * OH:2, kw:kw + 2 * OW:2, :]
               for kh in range(3) for kw in range(3)]
    cols = jnp.concatenate(patches, axis=-1)          # (N, OH, OW, 9*Cin) bf16

    M, K = N * OH * OW, 9 * Cin
    x2d = cols.reshape(M, K)

    tm = _pick_tile_m(M, tm_max=tm_max)
    grid = (pl.cdiv(M, tm),)

    out = pl.pallas_call(
        _conv_block_kernel,
        out_shape=jax.ShapeDtypeStruct((M, Cout), jnp.bfloat16),
        grid=grid,
        in_specs=[
            pl.BlockSpec((tm, K), lambda i: (i, 0)),       # streamed over M
            pl.BlockSpec((K, Cout), lambda i: (0, 0)),     # VMEM-resident weights
            pl.BlockSpec((1, Cout), lambda i: (0, 0)),     # bias
            pl.BlockSpec((1, Cout), lambda i: (0, 0)),     # BN scale
            pl.BlockSpec((1, Cout), lambda i: (0, 0)),     # BN shift
        ],
        out_specs=pl.BlockSpec((tm, Cout), lambda i: (i, 0)),
        compiler_params=pltpu.CompilerParams(
            dimension_semantics=("parallel",),             # megacore shardable
            vmem_limit_bytes=_vmem_limit_bytes(),          # per-generation limit
        ),
    )(x2d, blk["w2d"], blk["b2d"], blk["scale2d"], blk["shift2d"])
    return out.reshape(N, OH, OW, Cout)


# ---------------------------------------------------------------------------
# Parameter construction (deterministic, synthetic)
# ---------------------------------------------------------------------------
_BLOCK_CFG = [  # (in_filters, out_filters, normalize)
    (1, 16, False),
    (16, 32, True),
    (32, 64, True),
    (64, 128, True),
]
_BN_EPS = 0.8   # nn.BatchNorm2d(out_filters, 0.8) -> eps = 0.8 (positional-arg quirk)


def init_params(key, img_hw):
    params = {"blocks": []}
    for (cin, cout, normalize) in _BLOCK_CFG:
        key, kw_, kb_, kg_, kbeta_ = jax.random.split(key, 5)
        w = 0.05 * jax.random.normal(kw_, (3, 3, cin, cout), jnp.float32)
        b = 0.01 * jax.random.normal(kb_, (cout,), jnp.float32)
        if normalize:
            gamma = 1.0 + 0.1 * jax.random.normal(kg_, (cout,), jnp.float32)
            beta = 0.05 * jax.random.normal(kbeta_, (cout,), jnp.float32)
            run_mean = jnp.zeros((cout,), jnp.float32)
            run_var = jnp.ones((cout,), jnp.float32)
            scale = gamma / jnp.sqrt(run_var + _BN_EPS)
            shift = beta - run_mean * scale
        else:
            scale = jnp.ones((cout,), jnp.float32)
            shift = jnp.zeros((cout,), jnp.float32)
        params["blocks"].append({
            # Pre-cast / pre-reshape ONCE: bf16 (9*Cin, Cout) in the exact
            # (kh, kw, cin) row order the im2col concatenation emits.
            "w2d": w.reshape(9 * cin, cout).astype(jnp.bfloat16),
            "b2d": b.reshape(1, cout),
            "scale2d": scale.reshape(1, cout),
            "shift2d": shift.reshape(1, cout),
        })

    ds = img_hw // 2 ** 4
    cfin = _BLOCK_CFG[-1][1]
    feat = cfin * ds * ds
    key, kw_, kb_ = jax.random.split(key, 3)
    # Linear weight in PyTorch's channel-major (NCHW .view) row order ...
    head_w_pt = 0.02 * jax.random.normal(kw_, (feat, 1), jnp.float32)
    # ... permuted ONCE into the NHWC flatten order the kernels produce, so the
    # forward pass never transposes the activation tensor.
    params["head_w_nhwc"] = (head_w_pt.reshape(cfin, ds, ds)
                             .transpose(1, 2, 0)
                             .reshape(1, feat))
    params["head_b2d"] = jnp.zeros((1, 1), jnp.float32)
    return params


# ---------------------------------------------------------------------------
# Full forward
# ---------------------------------------------------------------------------
def discriminator_forward(img_nchw, params):
    # NCHW -> NHWC once; bf16 activations on the memory-bound data path.
    x = jnp.transpose(img_nchw, (0, 2, 3, 1)).astype(jnp.bfloat16)
    for blk in params["blocks"]:
        x = conv_block(x, blk)

    # PyTorch's .view flattens NCHW; that permutation was folded into
    # head_w_nhwc at init, so here we only reshape (no activation transpose).
    N = x.shape[0]
    x2d = x.reshape(N, -1)                        # (B, feat) bf16, NHWC order
    feat = x2d.shape[1]

    # Single grid step: the whole (B, feat) slab fits comfortably in VMEM on
    # every generation (2 MB bf16 even at B=8, feat=131072), so there is no K
    # loop, no accumulator scratch and no init/finalize branching.
    validity = pl.pallas_call(
        _head_kernel,
        out_shape=jax.ShapeDtypeStruct((N, 1), jnp.float32),
        grid=(1,),
        in_specs=[
            pl.BlockSpec((N, feat), lambda i: (0, 0)),     # activations
            pl.BlockSpec((1, feat), lambda i: (0, 0)),     # head weight (NHWC order)
            pl.BlockSpec((1, 1), lambda i: (0, 0)),        # bias
        ],
        out_specs=pl.BlockSpec((N, 1), lambda i: (0, 0)),
        compiler_params=pltpu.CompilerParams(
            dimension_semantics=("arbitrary",),
            vmem_limit_bytes=_vmem_limit_bytes(),
        ),
    )(x2d, params["head_w_nhwc"], params["head_b2d"])
    return validity                                        # (B, 1)


if __name__ == "__main__":
    key = jax.random.PRNGKey(0)
    k_img, k_par = jax.random.split(key)

    # Small stand-in for the module's [8, 1, 512, 512]; 128 keeps every
    # intermediate spatial dim >= 8 (clean (8,128) layouts) and ds_size = 8.
    B, C, H, W = 2, 1, 128, 128
    img = jax.random.normal(k_img, (B, C, H, W), jnp.float32)
    params = init_params(k_par, H)

    fwd = jax.jit(discriminator_forward)
    out = jax.block_until_ready(fwd(img, params))

    assert out.shape == (B, 1), out.shape
    assert bool(jnp.all((out >= 0.0) & (out <= 1.0)))
    print("KERNEL_OK")
</pallas_src>

<mosaic_0001>
module attributes {stable_mosaic.version = 11 : i64} {
  func.func @_conv_block_kernel(%arg0: i32, %arg1: memref<2048x9xbf16, #tpu.memory_space<vmem>>, %arg2: memref<9x16xbf16, #tpu.memory_space<vmem>>, %arg3: memref<1x16xf32, #tpu.memory_space<vmem>>, %arg4: memref<1x16xf32, #tpu.memory_space<vmem>>, %arg5: memref<1x16xf32, #tpu.memory_space<vmem>>, %arg6: memref<2048x16xbf16, #tpu.memory_space<vmem>>) attributes {dimension_semantics = [#tpu.dimension_semantics<parallel>], iteration_bounds = array<i64: 4>, scalar_prefetch = 0 : i64, scratch_operands = 0 : i64, tpu.core_type = #tpu.core_type<tc>, window_params = [{transform_indices = @transform_0, window_bounds = array<i64: 2048, 9>}, {pipeline_mode = #tpu.pipeline_mode<synchronous>, transform_indices = @transform_1, window_bounds = array<i64: 9, 16>}, {pipeline_mode = #tpu.pipeline_mode<synchronous>, transform_indices = @transform_2, window_bounds = array<i64: 1, 16>}, {pipeline_mode = #tpu.pipeline_mode<synchronous>, transform_indices = @transform_3, window_bounds = array<i64: 1, 16>}, {pipeline_mode = #tpu.pipeline_mode<synchronous>, transform_indices = @transform_4, window_bounds = array<i64: 1, 16>}, {transform_indices = @transform_5, window_bounds = array<i64: 2048, 16>}]} {
    %c0 = arith.constant 0 : index
    %c0_0 = arith.constant 0 : index
    %0 = vector.load %arg1[%c0, %c0_0] : memref<2048x9xbf16, #tpu.memory_space<vmem>>, vector<2048x9xbf16>
    %c0_1 = arith.constant 0 : index
    %c0_2 = arith.constant 0 : index
    %1 = vector.load %arg2[%c0_1, %c0_2] : memref<9x16xbf16, #tpu.memory_space<vmem>>, vector<9x16xbf16>
    %cst = arith.constant dense<0.000000e+00> : vector<2048x16xf32>
    %2 = tpu.matmul %0, %1, %cst {dimension_numbers = #tpu.dot_dimension_numbers<[1], [0], [0], [1], [0, 0, 1, 1], [], []>} : vector<2048x9xbf16>, vector<9x16xbf16>, vector<2048x16xf32> -> vector<2048x16xf32>
    %c0_3 = arith.constant 0 : index
    %c0_4 = arith.constant 0 : index
    %3 = vector.load %arg3[%c0_3, %c0_4] : memref<1x16xf32, #tpu.memory_space<vmem>>, vector<1x16xf32>
    %4 = vector.broadcast %3 : vector<1x16xf32> to vector<2048x16xf32>
    %5 = arith.addf %2, %4 : vector<2048x16xf32>
    %cst_5 = arith.constant 2.000000e-01 : f32
    %6 = vector.broadcast %cst_5 : f32 to vector<2048x16xf32>
    %7 = arith.mulf %6, %5 : vector<2048x16xf32>
    %8 = arith.maximumf %5, %7 : vector<2048x16xf32>
    %c0_6 = arith.constant 0 : index
    %c0_7 = arith.constant 0 : index
    %9 = vector.load %arg4[%c0_6, %c0_7] : memref<1x16xf32, #tpu.memory_space<vmem>>, vector<1x16xf32>
    %10 = vector.broadcast %9 : vector<1x16xf32> to vector<2048x16xf32>
    %11 = arith.mulf %8, %10 : vector<2048x16xf32>
    %c0_8 = arith.constant 0 : index
    %c0_9 = arith.constant 0 : index
    %12 = vector.load %arg5[%c0_8, %c0_9] : memref<1x16xf32, #tpu.memory_space<vmem>>, vector<1x16xf32>
    %13 = vector.broadcast %12 : vector<1x16xf32> to vector<2048x16xf32>
    %14 = arith.addf %11, %13 : vector<2048x16xf32>
    %15 = arith.truncf %14 : vector<2048x16xf32> to vector<2048x16xbf16>
    %c0_10 = arith.constant 0 : index
    %c0_11 = arith.constant 0 : index
    %16 = vector.load %arg6[%c0_10, %c0_11] : memref<2048x16xbf16, #tpu.memory_space<vmem>>, vector<2048x16xbf16>
    tpu.vector_store %arg6[%c0_10, %c0_11], %15 {strides = array<i32>} : memref<2048x16xbf16, #tpu.memory_space<vmem>>, vector<2048x16xbf16>,
    return
  }
  func.func @transform_0(%arg0: i32) -> (i32, i32) {
    %c0_i32 = arith.constant 0 : i32
    %c0_i32_0 = arith.constant 0 : i32
    return %arg0, %c0_i32 : i32, i32
  }
  func.func @transform_1(%arg0: i32) -> (i32, i32) {
    %c0_i32 = arith.constant 0 : i32
    %c0_i32_0 = arith.constant 0 : i32
    %c0_i32_1 = arith.constant 0 : i32
    return %c0_i32, %c0_i32_0 : i32, i32
  }
  func.func @transform_2(%arg0: i32) -> (i32, i32) {
    %c0_i32 = arith.constant 0 : i32
    %c0_i32_0 = arith.constant 0 : i32
    %c0_i32_1 = arith.constant 0 : i32
    return %c0_i32, %c0_i32_0 : i32, i32
  }
  func.func @transform_3(%arg0: i32) -> (i32, i32) {
    %c0_i32 = arith.constant 0 : i32
    %c0_i32_0 = arith.constant 0 : i32
    %c0_i32_1 = arith.constant 0 : i32
    return %c0_i32, %c0_i32_0 : i32, i32
  }
  func.func @transform_4(%arg0: i32) -> (i32, i32) {
    %c0_i32 = arith.constant 0 : i32
    %c0_i32_0 = arith.constant 0 : i32
    %c0_i32_1 = arith.constant 0 : i32
    return %c0_i32, %c0_i32_0 : i32, i32
  }
  func.func @transform_5(%arg0: i32) -> (i32, i32) {
    %c0_i32 = arith.constant 0 : i32
    %c0_i32_0 = arith.constant 0 : i32
    return %arg0, %c0_i32 : i32, i32
  }
}

module attributes {stable_mosaic.version = 11 : i64} {
  func.func @_conv_block_kernel(%arg0: i32, %arg1: memref<512x144xbf16, #tpu.memory_space<vmem>>, %arg2: memref<144x32xbf16, #tpu.memory_space<vmem>>, %arg3: memref<1x32xf32, #tpu.memory_space<vmem>>, %arg4: memref<1x32xf32, #tpu.memory_space<vmem>>, %arg5: memref<1x32xf32, #tpu.memory_space<vmem>>, %arg6: memref<512x32xbf16, #tpu.memory_space<vmem>>) attributes {dimension_semantics = [#tpu.dimension_semantics<parallel>], iteration_bounds = array<i64: 4>, scalar_prefetch = 0 : i64, scratch_operands = 0 : i64, tpu.core_type = #tpu.core_type<tc>, window_params = [{transform_indices = @transform_0, window_bounds = array<i64: 512, 144>}, {pipeline_mode = #tpu.pipeline_mode<synchronous>, transform_indices = @transform_1, window_bounds = array<i64: 144, 32>}, {pipeline_mode = #tpu.pipeline_mode<synchronous>, transform_indices = @transform_2, window_bounds = array<i64: 1, 32>}, {pipeline_mode = #tpu.pipeline_mode<synchronous>, transform_indices = @transform_3, window_bounds = array<i64: 1, 32>}, {pipeline_mode = #tpu.pipeline_mode<synchronous>, transform_indices = @transform_4, window_bounds = array<i64: 1, 32>}, {transform_indices = @transform_5, window_bounds = array<i64: 512, 32>}]} {
    %c0 = arith.constant 0 : index
    %c0_0 = arith.constant 0 : index
    %0 = vector.load %arg1[%c0, %c0_0] : memref<512x144xbf16, #tpu.memory_space<vmem>>, vector<512x144xbf16>
    %c0_1 = arith.constant 0 : index
    %c0_2 = arith.constant 0 : index
    %1 = vector.load %arg2[%c0_1, %c0_2] : memref<144x32xbf16, #tpu.memory_space<vmem>>, vector<144x32xbf16>
    %cst = arith.constant dense<0.000000e+00> : vector<512x32xf32>
    %2 = tpu.matmul %0, %1, %cst {dimension_numbers = #tpu.dot_dimension_numbers<[1], [0], [0], [1], [0, 0, 1, 1], [], []>} : vector<512x144xbf16>, vector<144x32xbf16>, vector<512x32xf32> -> vector<512x32xf32>
    %c0_3 = arith.constant 0 : index
    %c0_4 = arith.constant 0 : index
    %3 = vector.load %arg3[%c0_3, %c0_4] : memref<1x32xf32, #tpu.memory_space<vmem>>, vector<1x32xf32>
    %4 = vector.broadcast %3 : vector<1x32xf32> to vector<512x32xf32>
    %5 = arith.addf %2, %4 : vector<512x32xf32>
    %cst_5 = arith.constant 2.000000e-01 : f32
    %6 = vector.broadcast %cst_5 : f32 to vector<512x32xf32>
    %7 = arith.mulf %6, %5 : vector<512x32xf32>
    %8 = arith.maximumf %5, %7 : vector<512x32xf32>
    %c0_6 = arith.constant 0 : index
    %c0_7 = arith.constant 0 : index
    %9 = vector.load %arg4[%c0_6, %c0_7] : memref<1x32xf32, #tpu.memory_space<vmem>>, vector<1x32xf32>
    %10 = vector.broadcast %9 : vector<1x32xf32> to vector<512x32xf32>
    %11 = arith.mulf %8, %10 : vector<512x32xf32>
    %c0_8 = arith.constant 0 : index
    %c0_9 = arith.constant 0 : index
    %12 = vector.load %arg5[%c0_8, %c0_9] : memref<1x32xf32, #tpu.memory_space<vmem>>, vector<1x32xf32>
    %13 = vector.broadcast %12 : vector<1x32xf32> to vector<512x32xf32>
    %14 = arith.addf %11, %13 : vector<512x32xf32>
    %15 = arith.truncf %14 : vector<512x32xf32> to vector<512x32xbf16>
    %c0_10 = arith.constant 0 : index
    %c0_11 = arith.constant 0 : index
    %16 = vector.load %arg6[%c0_10, %c0_11] : memref<512x32xbf16, #tpu.memory_space<vmem>>, vector<512x32xbf16>
    tpu.vector_store %arg6[%c0_10, %c0_11], %15 {strides = array<i32>} : memref<512x32xbf16, #tpu.memory_space<vmem>>, vector<512x32xbf16>,
    return
  }
  func.func @transform_0(%arg0: i32) -> (i32, i32) {
    %c0_i32 = arith.constant 0 : i32
    %c0_i32_0 = arith.constant 0 : i32
    return %arg0, %c0_i32 : i32, i32
  }
  func.func @transform_1(%arg0: i32) -> (i32, i32) {
    %c0_i32 = arith.constant 0 : i32
    %c0_i32_0 = arith.constant 0 : i32
    %c0_i32_1 = arith.constant 0 : i32
    return %c0_i32, %c0_i32_0 : i32, i32
  }
  func.func @transform_2(%arg0: i32) -> (i32, i32) {
    %c0_i32 = arith.constant 0 : i32
    %c0_i32_0 = arith.constant 0 : i32
    %c0_i32_1 = arith.constant 0 : i32
    return %c0_i32, %c0_i32_0 : i32, i32
  }
  func.func @transform_3(%arg0: i32) -> (i32, i32) {
    %c0_i32 = arith.constant 0 : i32
    %c0_i32_0 = arith.constant 0 : i32
    %c0_i32_1 = arith.constant 0 : i32
    return %c0_i32, %c0_i32_0 : i32, i32
  }
  func.func @transform_4(%arg0: i32) -> (i32, i32) {
    %c0_i32 = arith.constant 0 : i32
    %c0_i32_0 = arith.constant 0 : i32
    %c0_i32_1 = arith.constant 0 : i32
    return %c0_i32, %c0_i32_0 : i32, i32
  }
  func.func @transform_5(%arg0: i32) -> (i32, i32) {
    %c0_i32 = arith.constant 0 : i32
    %c0_i32_0 = arith.constant 0 : i32
    return %arg0, %c0_i32 : i32, i32
  }
}

module attributes {stable_mosaic.version = 11 : i64} {
  func.func @_conv_block_kernel(%arg0: i32, %arg1: memref<512x288xbf16, #tpu.memory_space<vmem>>, %arg2: memref<288x64xbf16, #tpu.memory_space<vmem>>, %arg3: memref<1x64xf32, #tpu.memory_space<vmem>>, %arg4: memref<1x64xf32, #tpu.memory_space<vmem>>, %arg5: memref<1x64xf32, #tpu.memory_space<vmem>>, %arg6: memref<512x64xbf16, #tpu.memory_space<vmem>>) attributes {dimension_semantics = [#tpu.dimension_semantics<parallel>], iteration_bounds = array<i64: 1>, scalar_prefetch = 0 : i64, scratch_operands = 0 : i64, tpu.core_type = #tpu.core_type<tc>, window_params = [{transform_indices = @transform_0, window_bounds = array<i64: 512, 288>}, {pipeline_mode = #tpu.pipeline_mode<synchronous>, transform_indices = @transform_1, window_bounds = array<i64: 288, 64>}, {pipeline_mode = #tpu.pipeline_mode<synchronous>, transform_indices = @transform_2, window_bounds = array<i64: 1, 64>}, {pipeline_mode = #tpu.pipeline_mode<synchronous>, transform_indices = @transform_3, window_bounds = array<i64: 1, 64>}, {pipeline_mode = #tpu.pipeline_mode<synchronous>, transform_indices = @transform_4, window_bounds = array<i64: 1, 64>}, {transform_indices = @transform_5, window_bounds = array<i64: 512, 64>}]} {
    %c0 = arith.constant 0 : index
    %c0_0 = arith.constant 0 : index
    %0 = vector.load %arg1[%c0, %c0_0] : memref<512x288xbf16, #tpu.memory_space<vmem>>, vector<512x288xbf16>
    %c0_1 = arith.constant 0 : index
    %c0_2 = arith.constant 0 : index
    %1 = vector.load %arg2[%c0_1, %c0_2] : memref<288x64xbf16, #tpu.memory_space<vmem>>, vector<288x64xbf16>
    %cst = arith.constant dense<0.000000e+00> : vector<512x64xf32>
    %2 = tpu.matmul %0, %1, %cst {dimension_numbers = #tpu.dot_dimension_numbers<[1], [0], [0], [1], [0, 0, 1, 1], [], []>} : vector<512x288xbf16>, vector<288x64xbf16>, vector<512x64xf32> -> vector<512x64xf32>
    %c0_3 = arith.constant 0 : index
    %c0_4 = arith.constant 0 : index
    %3 = vector.load %arg3[%c0_3, %c0_4] : memref<1x64xf32, #tpu.memory_space<vmem>>, vector<1x64xf32>
    %4 = vector.broadcast %3 : vector<1x64xf32> to vector<512x64xf32>
    %5 = arith.addf %2, %4 : vector<512x64xf32>
    %cst_5 = arith.constant 2.000000e-01 : f32
    %6 = vector.broadcast %cst_5 : f32 to vector<512x64xf32>
    %7 = arith.mulf %6, %5 : vector<512x64xf32>
    %8 = arith.maximumf %5, %7 : vector<512x64xf32>
    %c0_6 = arith.constant 0 : index
    %c0_7 = arith.constant 0 : index
    %9 = vector.load %arg4[%c0_6, %c0_7] : memref<1x64xf32, #tpu.memory_space<vmem>>, vector<1x64xf32>
    %10 = vector.broadcast %9 : vector<1x64xf32> to vector<512x64xf32>
    %11 = arith.mulf %8, %10 : vector<512x64xf32>
    %c0_8 = arith.constant 0 : index
    %c0_9 = arith.constant 0 : index
    %12 = vector.load %arg5[%c0_8, %c0_9] : memref<1x64xf32, #tpu.memory_space<vmem>>, vector<1x64xf32>
    %13 = vector.broadcast %12 : vector<1x64xf32> to vector<512x64xf32>
    %14 = arith.addf %11, %13 : vector<512x64xf32>
    %15 = arith.truncf %14 : vector<512x64xf32> to vector<512x64xbf16>
    %c0_10 = arith.constant 0 : index
    %c0_11 = arith.constant 0 : index
    %16 = vector.load %arg6[%c0_10, %c0_11] : memref<512x64xbf16, #tpu.memory_space<vmem>>, vector<512x64xbf16>
    tpu.vector_store %arg6[%c0_10, %c0_11], %15 {strides = array<i32>} : memref<512x64xbf16, #tpu.memory_space<vmem>>, vector<512x64xbf16>,
    return
  }
  func.func @transform_0(%arg0: i32) -> (i32, i32) {
    %c0_i32 = arith.constant 0 : i32
    %c0_i32_0 = arith.constant 0 : i32
    return %arg0, %c0_i32 : i32, i32
  }
  func.func @transform_1(%arg0: i32) -> (i32, i32) {
    %c0_i32 = arith.constant 0 : i32
    %c0_i32_0 = arith.constant 0 : i32
    %c0_i32_1 = arith.constant 0 : i32
    return %c0_i32, %c0_i32_0 : i32, i32
  }
  func.func @transform_2(%arg0: i32) -> (i32, i32) {
    %c0_i32 = arith.constant 0 : i32
    %c0_i32_0 = arith.constant 0 : i32
    %c0_i32_1 = arith.constant 0 : i32
    return %c0_i32, %c0_i32_0 : i32, i32
  }
  func.func @transform_3(%arg0: i32) -> (i32, i32) {
    %c0_i32 = arith.constant 0 : i32
    %c0_i32_0 = arith.constant 0 : i32
    %c0_i32_1 = arith.constant 0 : i32
    return %c0_i32, %c0_i32_0 : i32, i32
  }
  func.func @transform_4(%arg0: i32) -> (i32, i32) {
    %c0_i32 = arith.constant 0 : i32
    %c0_i32_0 = arith.constant 0 : i32
    %c0_i32_1 = arith.constant 0 : i32
    return %c0_i32, %c0_i32_0 : i32, i32
  }
  func.func @transform_5(%arg0: i32) -> (i32, i32) {
    %c0_i32 = arith.constant 0 : i32
    %c0_i32_0 = arith.constant 0 : i32
    return %arg0, %c0_i32 : i32, i32
  }
}

module attributes {stable_mosaic.version = 11 : i64} {
  func.func @_conv_block_kernel(%arg0: i32, %arg1: memref<128x576xbf16, #tpu.memory_space<vmem>>, %arg2: memref<576x128xbf16, #tpu.memory_space<vmem>>, %arg3: memref<1x128xf32, #tpu.memory_space<vmem>>, %arg4: memref<1x128xf32, #tpu.memory_space<vmem>>, %arg5: memref<1x128xf32, #tpu.memory_space<vmem>>, %arg6: memref<128x128xbf16, #tpu.memory_space<vmem>>) attributes {dimension_semantics = [#tpu.dimension_semantics<parallel>], iteration_bounds = array<i64: 1>, scalar_prefetch = 0 : i64, scratch_operands = 0 : i64, tpu.core_type = #tpu.core_type<tc>, window_params = [{transform_indices = @transform_0, window_bounds = array<i64: 128, 576>}, {pipeline_mode = #tpu.pipeline_mode<synchronous>, transform_indices = @transform_1, window_bounds = array<i64: 576, 128>}, {pipeline_mode = #tpu.pipeline_mode<synchronous>, transform_indices = @transform_2, window_bounds = array<i64: 1, 128>}, {pipeline_mode = #tpu.pipeline_mode<synchronous>, transform_indices = @transform_3, window_bounds = array<i64: 1, 128>}, {pipeline_mode = #tpu.pipeline_mode<synchronous>, transform_indices = @transform_4, window_bounds = array<i64: 1, 128>}, {transform_indices = @transform_5, window_bounds = array<i64: 128, 128>}]} {
    %c0 = arith.constant 0 : index
    %c0_0 = arith.constant 0 : index
    %0 = vector.load %arg1[%c0, %c0_0] : memref<128x576xbf16, #tpu.memory_space<vmem>>, vector<128x576xbf16>
    %c0_1 = arith.constant 0 : index
    %c0_2 = arith.constant 0 : index
    %1 = vector.load %arg2[%c0_1, %c0_2] : memref<576x128xbf16, #tpu.memory_space<vmem>>, vector<576x128xbf16>
    %cst = arith.constant dense<0.000000e+00> : vector<128x128xf32>
    %2 = tpu.matmul %0, %1, %cst {dimension_numbers = #tpu.dot_dimension_numbers<[1], [0], [0], [1], [0, 0, 1, 1], [], []>} : vector<128x576xbf16>, vector<576x128xbf16>, vector<128x128xf32> -> vector<128x128xf32>
    %c0_3 = arith.constant 0 : index
    %c0_4 = arith.constant 0 : index
    %3 = vector.load %arg3[%c0_3, %c0_4] : memref<1x128xf32, #tpu.memory_space<vmem>>, vector<1x128xf32>
    %4 = vector.broadcast %3 : vector<1x128xf32> to vector<128x128xf32>
    %5 = arith.addf %2, %4 : vector<128x128xf32>
    %cst_5 = arith.constant 2.000000e-01 : f32
    %6 = vector.broadcast %cst_5 : f32 to vector<128x128xf32>
    %7 = arith.mulf %6, %5 : vector<128x128xf32>
    %8 = arith.maximumf %5, %7 : vector<128x128xf32>
    %c0_6 = arith.constant 0 : index
    %c0_7 = arith.constant 0 : index
    %9 = vector.load %arg4[%c0_6, %c0_7] : memref<1x128xf32, #tpu.memory_space<vmem>>, vector<1x128xf32>
    %10 = vector.broadcast %9 : vector<1x128xf32> to vector<128x128xf32>
    %11 = arith.mulf %8, %10 : vector<128x128xf32>
    %c0_8 = arith.constant 0 : index
    %c0_9 = arith.constant 0 : index
    %12 = vector.load %arg5[%c0_8, %c0_9] : memref<1x128xf32, #tpu.memory_space<vmem>>, vector<1x128xf32>
    %13 = vector.broadcast %12 : vector<1x128xf32> to vector<128x128xf32>
    %14 = arith.addf %11, %13 : vector<128x128xf32>
    %15 = arith.truncf %14 : vector<128x128xf32> to vector<128x128xbf16>
    %c0_10 = arith.constant 0 : index
    %c0_11 = arith.constant 0 : index
    %16 = vector.load %arg6[%c0_10, %c0_11] : memref<128x128xbf16, #tpu.memory_space<vmem>>, vector<128x128xbf16>
    tpu.vector_store %arg6[%c0_10, %c0_11], %15 {strides = array<i32>} : memref<128x128xbf16, #tpu.memory_space<vmem>>, vector<128x128xbf16>,
    return
  }
  func.func @transform_0(%arg0: i32) -> (i32, i32) {
    %c0_i32 = arith.constant 0 : i32
    %c0_i32_0 = arith.constant 0 : i32
    return %arg0, %c0_i32 : i32, i32
  }
  func.func @transform_1(%arg0: i32) -> (i32, i32) {
    %c0_i32 = arith.constant 0 : i32
    %c0_i32_0 = arith.constant 0 : i32
    %c0_i32_1 = arith.constant 0 : i32
    return %c0_i32, %c0_i32_0 : i32, i32
  }
  func.func @transform_2(%arg0: i32) -> (i32, i32) {
    %c0_i32 = arith.constant 0 : i32
    %c0_i32_0 = arith.constant 0 : i32
    %c0_i32_1 = arith.constant 0 : i32
    return %c0_i32, %c0_i32_0 : i32, i32
  }
  func.func @transform_3(%arg0: i32) -> (i32, i32) {
    %c0_i32 = arith.constant 0 : i32
    %c0_i32_0 = arith.constant 0 : i32
    %c0_i32_1 = arith.constant 0 : i32
    return %c0_i32, %c0_i32_0 : i32, i32
  }
  func.func @transform_4(%arg0: i32) -> (i32, i32) {
    %c0_i32 = arith.constant 0 : i32
    %c0_i32_0 = arith.constant 0 : i32
    %c0_i32_1 = arith.constant 0 : i32
    return %c0_i32, %c0_i32_0 : i32, i32
  }
  func.func @transform_5(%arg0: i32) -> (i32, i32) {
    %c0_i32 = arith.constant 0 : i32
    %c0_i32_0 = arith.constant 0 : i32
    return %arg0, %c0_i32 : i32, i32
  }
}

module attributes {stable_mosaic.version = 11 : i64} {
  func.func @_head_kernel(%arg0: i32, %arg1: memref<2x8192xbf16, #tpu.memory_space<vmem>>, %arg2: memref<1x8192xf32, #tpu.memory_space<vmem>>, %arg3: memref<1x1xf32, #tpu.memory_space<vmem>>, %arg4: memref<2x1xf32, #tpu.memory_space<vmem>>) attributes {dimension_semantics = [#tpu.dimension_semantics<arbitrary>], iteration_bounds = array<i64: 1>, scalar_prefetch = 0 : i64, scratch_operands = 0 : i64, tpu.core_type = #tpu.core_type<tc>, window_params = [{pipeline_mode = #tpu.pipeline_mode<synchronous>, transform_indices = @transform_0, window_bounds = array<i64: 2, 8192>}, {pipeline_mode = #tpu.pipeline_mode<synchronous>, transform_indices = @transform_1, window_bounds = array<i64: 1, 8192>}, {pipeline_mode = #tpu.pipeline_mode<synchronous>, transform_indices = @transform_2, window_bounds = array<i64: 1, 1>}, {pipeline_mode = #tpu.pipeline_mode<synchronous>, transform_indices = @transform_3, window_bounds = array<i64: 2, 1>}]} {
    %c0 = arith.constant 0 : index
    %c0_0 = arith.constant 0 : index
    %0 = vector.load %arg1[%c0, %c0_0] : memref<2x8192xbf16, #tpu.memory_space<vmem>>, vector<2x8192xbf16>
    %1 = arith.extf %0 : vector<2x8192xbf16> to vector<2x8192xf32>
    %c0_1 = arith.constant 0 : index
    %c0_2 = arith.constant 0 : index
    %2 = vector.load %arg2[%c0_1, %c0_2] : memref<1x8192xf32, #tpu.memory_space<vmem>>, vector<1x8192xf32>
    %3 = vector.broadcast %2 : vector<1x8192xf32> to vector<2x8192xf32>
    %4 = arith.mulf %1, %3 : vector<2x8192xf32>
    %cst = arith.constant dense<0.000000e+00> : vector<2xf32>
    %5 = vector.multi_reduction <add>, %4, %cst [1] : vector<2x8192xf32> to vector<2xf32>
    %6 = vector.shape_cast %5 : vector<2xf32> to vector<2x1xf32>
    %c0_3 = arith.constant 0 : index
    %c0_4 = arith.constant 0 : index
    %7 = vector.load %arg3[%c0_3, %c0_4] : memref<1x1xf32, #tpu.memory_space<vmem>>, vector<1x1xf32>
    %8 = vector.broadcast %7 : vector<1x1xf32> to vector<2x1xf32>
    %9 = arith.addf %6, %8 : vector<2x1xf32>
    %cst_5 = arith.constant 0.000000e+00 : f32
    %10 = vector.broadcast %cst_5 : f32 to vector<2x1xf32>
    %11 = arith.subf %10, %9 : vector<2x1xf32>
    %12 = math.exp %11 : vector<2x1xf32>
    %cst_6 = arith.constant 1.000000e+00 : f32
    %13 = vector.broadcast %cst_6 : f32 to vector<2x1xf32>
    %14 = arith.addf %13, %12 : vector<2x1xf32>
    %15 = tpu.reciprocal %14 : vector<2x1xf32> -> vector<2x1xf32>
    %c0_7 = arith.constant 0 : index
    %c0_8 = arith.constant 0 : index
    %16 = vector.load %arg4[%c0_7, %c0_8] : memref<2x1xf32, #tpu.memory_space<vmem>>, vector<2x1xf32>
    tpu.vector_store %arg4[%c0_7, %c0_8], %15 {strides = array<i32>} : memref<2x1xf32, #tpu.memory_space<vmem>>, vector<2x1xf32>,
    return
  }
  func.func @transform_0(%arg0: i32) -> (i32, i32) {
    %c0_i32 = arith.constant 0 : i32
    %c0_i32_0 = arith.constant 0 : i32
    %c0_i32_1 = arith.constant 0 : i32
    return %c0_i32, %c0_i32_0 : i32, i32
  }
  func.func @transform_1(%arg0: i32) -> (i32, i32) {
    %c0_i32 = arith.constant 0 : i32
    %c0_i32_0 = arith.constant 0 : i32
    %c0_i32_1 = arith.constant 0 : i32
    return %c0_i32, %c0_i32_0 : i32, i32
  }
  func.func @transform_2(%arg0: i32) -> (i32, i32) {
    %c0_i32 = arith.constant 0 : i32
    %c0_i32_0 = arith.constant 0 : i32
    %c0_i32_1 = arith.constant 0 : i32
    return %c0_i32, %c0_i32_0 : i32, i32
  }
  func.func @transform_3(%arg0: i32) -> (i32, i32) {
    %c0_i32 = arith.constant 0 : i32
    %c0_i32_0 = arith.constant 0 : i32
    %c0_i32_1 = arith.constant 0 : i32
    return %c0_i32, %c0_i32_0 : i32, i32
  }
}

</mosaic_0001>

<bundles_post_ra>
// kernel: discriminator_forward.5
= control target key start
LH: loop header
LB: loop body
LE: loop exit
PB: predicated region body
PF: predicated region fallthrough
CT: control target
= control target key end

     0   :  { %s4628_s18 = smov 0   ;;  %s6273_s0 = inlined_call_operand.vmem [shape: bf16[8192,9], index: 0, kind: input, shape index: {}]   ;;  %s6274_s1 = inlined_call_operand.vmem [shape: bf16[9,16], index: 1, kind: input, shape index: {}]   ;;  %s6275_s2 = inlined_call_operand.vmem [shape: f32[1,16], index: 2, kind: input, shape index: {}]   ;;  %s6276_s3 = inlined_call_operand.vmem [shape: f32[1,16], index: 3, kind: input, shape index: {}]   ;;  %s6277_s4 = inlined_call_operand.vmem [shape: f32[1,16], index: 4, kind: input, shape index: {}]   ;;  %s6278_s5 = inlined_call_operand.vmem [shape: bf16[8192,16], index: 5, kind: output, shape index: {}]  }
   0x1 LB: > { %s3778_s19 = sadd.s32 4294967295, %s4595_s18   ;;  %p3782_p0 = scmp.ge.s32.totalorder %s4595_s18, 1  ;;  %s4595_s18 = sphi %s4628_s18, %s15_s18  }
   0x2   : > { %p188_p1 = scmp.lt.s32.totalorder %s4595_s18, 5 }
   0x4   : > { %p189_p2 = pnand %p3782_p0, %p188_p1 }
   0x5   : > { %s3783_s24 = sshll.u32 (!%p189_p2), %s3778_s19, 8 }
   0x6   : > { %192 = sbr.rel (%p189_p2) target bundleno = 671 (0x29f), region = 40  ;;  %p217_p3 = scmp.lt.s32.totalorder (!%p189_p2), %s3783_s24, 1023 }
   0xb   : > { %v4301_v0 = vld [vmem:[%s6274_s1] sm:$0xf]  ;;  %v4561_v1 = vld [vmem:[%s6274_s1] sm:$0x10]  ;;  %vm1521_vm0 = vcmask 1043456   ;;  %vm1522_vm1 = vcmask 1044480  }
   0xc   : > { %v4302_v2 = vor.u32 %v4561_v1, %v4301_v0  ;;  %v4597_v3 = vmov 65535   ;;  %s6280_s24 = smov (!%p217_p3, %s3783_s24), 1023  ;;  %vm1136_vm2 = vcmask 72704   ;;  %v4719_v39 = vld [vmem:[%s6275_s2] ss:$0 sm:$0xff]  ;;  %vm3465_vm3 = vcmask 125952  }
   0xd   : > { %v1523_v4 = vsel %vm1521_vm0, 4294967295, %v4597_v3  ;;  %s3784_s25 = sshll.u32 %s6280_s24, 2  ;;  %v4730_v49 = vld [vmem:[%s6276_s3] ss:$0 sm:$0xff] }
   0xe   : > { %v1524_v5 = vsel %vm1522_vm1, %v1523_v4, 0  ;;  %s4650_s28 = scalar_lea.vmem %s6273_s0, %s3784_s25  ;;  %v4739_v52 = vld [vmem:[%s6277_s4] ss:$0 sm:$0xff]  ;;  %s4754_s12 = scalar_lea.vmem %s6278_s5, %s3784_s25 }
   0xf   : > { %v1526_v6 = vand.u32 %v4302_v2, %v1524_v5  ;;  %v4433_v7 = vld [vmem:[%s4650_s28] sm:$0xff]  ;;  %v4434_v11 = vld [vmem:[%s4650_s28 + $0x8] sm:$0xff]  ;;  %v4435_v15 = vld [vmem:[%s4650_s28 + $0x10] sm:$0xff] }
  0x10   : > { %v4465_v8 = vld [vmem:[%s4650_s28 + $0x100] sm:$0xff]  ;;  %v4466_v12 = vld [vmem:[%s4650_s28 + $0x108] sm:$0xff]  ;;  %v4467_v16 = vld [vmem:[%s4650_s28 + $0x110] sm:$0xff] }
  0x11   : > { %1535 = vmatpush.bf16.msra.mxu0 %v1526_v6  ;;  %4562 = vmatpush.bf16.msra.mxu1 %v1526_v6  ;;  %v4497_v9 = vld [vmem:[%s4650_s28 + $0x200] sm:$0xff]  ;;  %v4498_v13 = vld [vmem:[%s4650_s28 + $0x208] sm:$0xff]  ;;  %v4499_v17 = vld [vmem:[%s4650_s28 + $0x210] sm:$0xff] }
  0x12   : > { %4563 = vmatpush.bf16.msra.mxu2 %v1526_v6  ;;  %4564 = vmatpush.bf16.msra.mxu3 %v1526_v6  ;;  %v4529_v10 = vld [vmem:[%s4650_s28 + $0x300] sm:$0xff]  ;;  %v4530_v14 = vld [vmem:[%s4650_s28 + $0x308] sm:$0xff]  ;;  %v4531_v18 = vld [vmem:[%s4650_s28 + $0x310] sm:$0xff] }
  0x13   : > { %v4436_v19 = vld [vmem:[%s4650_s28 + $0x18] sm:$0xff]  ;;  %v4437_v23 = vld [vmem:[%s4650_s28 + $0x20] sm:$0xff]  ;;  %v4438_v27 = vld [vmem:[%s4650_s28 + $0x28] sm:$0xff] }
  0x14   : > { %4303 = vmatmul.msk.bf16.vlgmr.msra.gmra.mxu0 %vm1136_vm2, %v4433_v7  ;;  %4335 = vmatmul.msk.bf16.vlgmr.msra.gmra.mxu1 %vm1136_vm2, %v4465_v8  ;;  %v4468_v20 = vld [vmem:[%s4650_s28 + $0x118] sm:$0xff]  ;;  %v4469_v24 = vld [vmem:[%s4650_s28 + $0x120] sm:$0xff]  ;;  %v4470_v28 = vld [vmem:[%s4650_s28 + $0x128] sm:$0xff] }
  0x15   : > { %4367 = vmatmul.msk.bf16.vlgmr.msra.gmra.mxu2 %vm1136_vm2, %v4497_v9  ;;  %4399 = vmatmul.msk.bf16.vlgmr.msra.gmra.mxu3 %vm1136_vm2, %v4529_v10  ;;  %v4500_v21 = vld [vmem:[%s4650_s28 + $0x218] sm:$0xff]  ;;  %v4501_v25 = vld [vmem:[%s4650_s28 + $0x220] sm:$0xff]  ;;  %v4502_v29 = vld [vmem:[%s4650_s28 + $0x228] sm:$0xff] }
  0x16   : > { %v4532_v22 = vld [vmem:[%s4650_s28 + $0x318] sm:$0xff]  ;;  %v4533_v26 = vld [vmem:[%s4650_s28 + $0x320] sm:$0xff]  ;;  %v4534_v30 = vld [vmem:[%s4650_s28 + $0x328] sm:$0xff] }
  0x17   : > { %v4439_v31 = vld [vmem:[%s4650_s28 + $0x30] sm:$0xff]  ;;  %v4440_v35 = vld [vmem:[%s4650_s28 + $0x38] sm:$0xff]  ;;  %v4441_v40 = vld [vmem:[%s4650_s28 + $0x40] sm:$0xff] }
  0x18   : > { %v4471_v32 = vld [vmem:[%s4650_s28 + $0x130] sm:$0xff]  ;;  %v4472_v36 = vld [vmem:[%s4650_s28 + $0x138] sm:$0xff]  ;;  %v4473_v41 = vld [vmem:[%s4650_s28 + $0x140] sm:$0xff] }
  0x19   : > { %v4503_v33 = vld [vmem:[%s4650_s28 + $0x230] sm:$0xff]  ;;  %v4504_v37 = vld [vmem:[%s4650_s28 + $0x238] sm:$0xff]  ;;  %v4505_v44 = vld [vmem:[%s4650_s28 + $0x240] sm:$0xff] }
  0x1a   : > { %v4535_v34 = vld [vmem:[%s4650_s28 + $0x330] sm:$0xff]  ;;  %v4536_v38 = vld [vmem:[%s4650_s28 + $0x338] sm:$0xff]  ;;  %v4537_v45 = vld [vmem:[%s4650_s28 + $0x340] sm:$0xff] }
  0x24   : > { %4304 = vmatmul.msk.bf16.gmra.mxu0 %vm1136_vm2, %v4434_v11  ;;  %4336 = vmatmul.msk.bf16.gmra.mxu1 %vm1136_vm2, %v4466_v12 }
  0x25   : > { %4368 = vmatmul.msk.bf16.gmra.mxu2 %vm1136_vm2, %v4498_v13  ;;  %4400 = vmatmul.msk.bf16.gmra.mxu3 %vm1136_vm2, %v4530_v14 }
  0x34   : > { %4305 = vmatmul.msk.bf16.gmra.mxu0 %vm1136_vm2, %v4435_v15  ;;  %4337 = vmatmul.msk.bf16.gmra.mxu1 %vm1136_vm2, %v4467_v16 }
  0x35   : > { %4369 = vmatmul.msk.bf16.gmra.mxu2 %vm1136_vm2, %v4499_v17  ;;  %4401 = vmatmul.msk.bf16.gmra.mxu3 %vm1136_vm2, %v4531_v18  ;;  %v4442_v18 = vld [vmem:[%s4650_s28 + $0x48] sm:$0xff] }
  0x44   : > { %4306 = vmatmul.msk.bf16.gmra.mxu0 %vm1136_vm2, %v4436_v19  ;;  %4338 = vmatmul.msk.bf16.gmra.mxu1 %vm1136_vm2, %v4468_v20  ;;  %v4474_v19 = vld [vmem:[%s4650_s28 + $0x148] sm:$0xff] }
  0x45   : > { %4370 = vmatmul.msk.bf16.gmra.mxu2 %vm1136_vm2, %v4500_v21  ;;  %4402 = vmatmul.msk.bf16.gmra.mxu3 %vm1136_vm2, %v4532_v22 }
  0x54   : > { %4307 = vmatmul.msk.bf16.gmra.mxu0 %vm1136_vm2, %v4437_v23  ;;  %4339 = vmatmul.msk.bf16.gmra.mxu1 %vm1136_vm2, %v4469_v24 }
  0x55   : > { %4371 = vmatmul.msk.bf16.gmra.mxu2 %vm1136_vm2, %v4501_v25  ;;  %4403 = vmatmul.msk.bf16.gmra.mxu3 %vm1136_vm2, %v4533_v26  ;;  %v4506_v26 = vld [vmem:[%s4650_s28 + $0x248] sm:$0xff] }
  0x64   : > { %4308 = vmatmul.msk.bf16.gmra.mxu0 %vm1136_vm2, %v4438_v27  ;;  %4340 = vmatmul.msk.bf16.gmra.mxu1 %vm1136_vm2, %v4470_v28  ;;  %v4538_v27 = vld [vmem:[%s4650_s28 + $0x348] sm:$0xff] }
  0x65   : > { %4372 = vmatmul.msk.bf16.gmra.mxu2 %vm1136_vm2, %v4502_v29  ;;  %4404 = vmatmul.msk.bf16.gmra.mxu3 %vm1136_vm2, %v4534_v30 }
  0x74   : > { %4309 = vmatmul.msk.bf16.gmra.mxu0 %vm1136_vm2, %v4439_v31  ;;  %4341 = vmatmul.msk.bf16.gmra.mxu1 %vm1136_vm2, %v4471_v32 }
  0x75   : > { %4373 = vmatmul.msk.bf16.gmra.mxu2 %vm1136_vm2, %v4503_v33  ;;  %4405 = vmatmul.msk.bf16.gmra.mxu3 %vm1136_vm2, %v4535_v34 }
  0x84   : > { %4310 = vmatmul.msk.bf16.gmra.mxu0 %vm1136_vm2, %v4440_v35  ;;  %4342 = vmatmul.msk.bf16.gmra.mxu1 %vm1136_vm2, %v4472_v36 }
  0x85   : > { %4374 = vmatmul.msk.bf16.gmra.mxu2 %vm1136_vm2, %v4504_v37  ;;  %4406 = vmatmul.msk.bf16.gmra.mxu3 %vm1136_vm2, %v4536_v38 }
  0x91   : > { %v1537_v42 = vpop.f32.mrf.mxu0  ;;  %v1697_v43 = vpop.f32.mrf.mxu1 }
  0x92   : > { %v1538_v46 = vadd.f32 %v4719_v39, %v1537_v42  ;;  %v1698_v47 = vadd.f32 %v4719_v39, %v1697_v43 }
  0x94   : > { %v2177_v48 = vmul.f32 0.2, %v1538_v46  ;;  %v2241_v50 = vmul.f32 0.2, %v1698_v47  ;;  %4311 = vmatmul.msk.bf16.gmra.mxu0 %vm1136_vm2, %v4441_v40  ;;  %4343 = vmatmul.msk.bf16.gmra.mxu1 %vm1136_vm2, %v4473_v41 }
  0x95   : > { %4375 = vmatmul.msk.bf16.gmra.mxu2 %vm1136_vm2, %v4505_v44  ;;  %4407 = vmatmul.msk.bf16.gmra.mxu3 %vm1136_vm2, %v4537_v45 }
  0x96   : > { %v2433_v51 = vmax.f32 %v1538_v46, %v2177_v48  ;;  %v2497_v53 = vmax.f32 %v1698_v47, %v2241_v50 }
  0x98   : > { %v2693_v54 = vmul.f32 %v4730_v49, %v2433_v51  ;;  %v2757_v55 = vmul.f32 %v4730_v49, %v2497_v53  ;;  %v1857_v56 = vpop.f32.mrf.mxu2  ;;  %v2017_v57 = vpop.f32.mrf.mxu3 }
  0x99   : > { %v1858_v58 = vadd.f32 %v4719_v39, %v1857_v56  ;;  %v2018_v59 = vadd.f32 %v4719_v39, %v2017_v57  ;;  %v1539_v60 = vpop.f32.mrf.mxu0  ;;  %v1699_v61 = vpop.f32.mrf.mxu1 }
  0x9a   : > { %v2953_v62 = vadd.f32 %v4739_v52, %v2693_v54  ;;  %v3017_v63 = vadd.f32 %v4739_v52, %v2757_v55  ;;  %v1540_v0 = vadd.f32 %v4719_v39, %v1539_v60  ;;  %v1700_v1 = vadd.f32 %v4719_v39, %v1699_v61 }
  0x9b   : > { %v2305_v2 = vmul.f32 0.2, %v1858_v58  ;;  %v2369_v3 = vmul.f32 0.2, %v2018_v59 }
  0x9c   : > { %v3209_v4 = vpack.c.bf16 %v2953_v62, %v2953_v62  ;;  %v3273_v5 = vpack.c.bf16 %v3017_v63, %v3017_v63  ;;  %v2178_v6 = vmul.f32 0.2, %v1540_v0  ;;  %v2242_v7 = vmul.f32 0.2, %v1700_v1 }
  0x9d   : > { %v2561_v8 = vmax.f32 %v1858_v58, %v2305_v2  ;;  %v2625_v9 = vmax.f32 %v2018_v59, %v2369_v3 }
  0x9e   : > { %3466 = vst.msk [vmem:[%s4754_s12] sm:$0xf] %vm3465_vm3, %v3209_v4  ;;  %v2434_v10 = vmax.f32 %v1540_v0, %v2178_v6  ;;  %v2498_v11 = vmax.f32 %v1700_v1, %v2242_v7 }
  0x9f   : > { %3530 = vst.msk [vmem:[%s4754_s12 + $0x100] sm:$0xf] %vm3465_vm3, %v3273_v5  ;;  %v2821_v12 = vmul.f32 %v4730_v49, %v2561_v8  ;;  %v2885_v13 = vmul.f32 %v4730_v49, %v2625_v9 }
  0xa0   : > { %v2694_v14 = vmul.f32 %v4730_v49, %v2434_v10  ;;  %v2758_v15 = vmul.f32 %v4730_v49, %v2498_v11  ;;  %v1859_v16 = vpop.f32.mrf.mxu2  ;;  %v2019_v17 = vpop.f32.mrf.mxu3 }
  0xa1   : > { %v3081_v20 = vadd.f32 %v4739_v52, %v2821_v12  ;;  %v3145_v21 = vadd.f32 %v4739_v52, %v2885_v13  ;;  %v1860_v22 = vadd.f32 %v4719_v39, %v1859_v16  ;;  %v2020_v23 = vadd.f32 %v4719_v39, %v2019_v17  ;;  %v1542_v24 = vpop.f32.mrf.mxu0  ;;  %v1702_v25 = vpop.f32.mrf.mxu1  ;;  %v4443_v17 = vld [vmem:[%s4650_s28 + $0x50] sm:$0xff] }
  0xa2   : > { %v2954_v28 = vadd.f32 %v4739_v52, %v2694_v14  ;;  %v3018_v29 = vadd.f32 %v4739_v52, %v2758_v15  ;;  %v1543_v30 = vadd.f32 %v4719_v39, %v1542_v24  ;;  %v1703_v31 = vadd.f32 %v4719_v39, %v1702_v25  ;;  %v4507_v25 = vld [vmem:[%s4650_s28 + $0x250] sm:$0xff] }
  0xa3   : > { %v3337_v32 = vpack.c.bf16 %v3081_v20, %v3081_v20  ;;  %v3401_v33 = vpack.c.bf16 %v3145_v21, %v3145_v21  ;;  %v2306_v34 = vmul.f32 0.2, %v1860_v22  ;;  %v2370_v35 = vmul.f32 0.2, %v2020_v23 }
  0xa4   : > { %v3210_v36 = vpack.c.bf16 %v2954_v28, %v2954_v28  ;;  %v3274_v37 = vpack.c.bf16 %v3018_v29, %v3018_v29  ;;  %v2179_v38 = vmul.f32 0.2, %v1543_v30  ;;  %v2243_v40 = vmul.f32 0.2, %v1703_v31  ;;  %4312 = vmatmul.msk.bf16.gmra.mxu0 %vm1136_vm2, %v4442_v18  ;;  %4344 = vmatmul.msk.bf16.gmra.mxu1 %vm1136_vm2, %v4474_v19  ;;  %v4475_v18 = vld [vmem:[%s4650_s28 + $0x150] sm:$0xff] }
  0xa5   : > { %3594 = vst.msk [vmem:[%s4754_s12 + $0x200] sm:$0xf] %vm3465_vm3, %v3337_v32  ;;  %v2562_v41 = vmax.f32 %v1860_v22, %v2306_v34  ;;  %v2626_v42 = vmax.f32 %v2020_v23, %v2370_v35  ;;  %4376 = vmatmul.msk.bf16.gmra.mxu2 %vm1136_vm2, %v4506_v26  ;;  %4408 = vmatmul.msk.bf16.gmra.mxu3 %vm1136_vm2, %v4538_v27  ;;  %v4539_v26 = vld [vmem:[%s4650_s28 + $0x350] sm:$0xff] }
  0xa6   : > { %3658 = vst.msk [vmem:[%s4754_s12 + $0x300] sm:$0xf] %vm3465_vm3, %v3401_v33  ;;  %v2435_v43 = vmax.f32 %v1543_v30, %v2179_v38  ;;  %v2499_v44 = vmax.f32 %v1703_v31, %v2243_v40 }
  0xa7   : > { %3467 = vst.msk [vmem:[%s4754_s12 + $0x4] sm:$0xf] %vm3465_vm3, %v3210_v36  ;;  %v2822_v45 = vmul.f32 %v4730_v49, %v2562_v41  ;;  %v2886_v46 = vmul.f32 %v4730_v49, %v2626_v42 }
  0xa8   : > { %3531 = vst.msk [vmem:[%s4754_s12 + $0x104] sm:$0xf] %vm3465_vm3, %v3274_v37  ;;  %v2695_v47 = vmul.f32 %v4730_v49, %v2435_v43  ;;  %v2759_v48 = vmul.f32 %v4730_v49, %v2499_v44  ;;  %v1862_v50 = vpop.f32.mrf.mxu2  ;;  %v2022_v51 = vpop.f32.mrf.mxu3 }
  0xa9   : > { %v3082_v53 = vadd.f32 %v4739_v52, %v2822_v45  ;;  %v3146_v54 = vadd.f32 %v4739_v52, %v2886_v46  ;;  %v1863_v55 = vadd.f32 %v4719_v39, %v1862_v50  ;;  %v2023_v56 = vadd.f32 %v4719_v39, %v2022_v51  ;;  %v1544_v57 = vpop.f32.mrf.mxu0  ;;  %v1704_v58 = vpop.f32.mrf.mxu1 }
  0xaa   : > { %v2955_v59 = vadd.f32 %v4739_v52, %v2695_v47  ;;  %v3019_v60 = vadd.f32 %v4739_v52, %v2759_v48  ;;  %v1545_v61 = vadd.f32 %v4719_v39, %v1544_v57  ;;  %v1705_v62 = vadd.f32 %v4719_v39, %v1704_v58 }
  0xab   : > { %v3338_v63 = vpack.c.bf16 %v3082_v53, %v3082_v53  ;;  %v3402_v0 = vpack.c.bf16 %v3146_v54, %v3146_v54  ;;  %v2307_v1 = vmul.f32 0.2, %v1863_v55  ;;  %v2371_v2 = vmul.f32 0.2, %v2023_v56 }
  0xac   : > { %v3211_v3 = vpack.c.bf16 %v2955_v59, %v2955_v59  ;;  %v3275_v4 = vpack.c.bf16 %v3019_v60, %v3019_v60  ;;  %v2180_v5 = vmul.f32 0.2, %v1545_v61  ;;  %v2244_v6 = vmul.f32 0.2, %v1705_v62 }
  0xad   : > { %3595 = vst.msk [vmem:[%s4754_s12 + $0x204] sm:$0xf] %vm3465_vm3, %v3338_v63  ;;  %v2563_v7 = vmax.f32 %v1863_v55, %v2307_v1  ;;  %v2627_v8 = vmax.f32 %v2023_v56, %v2371_v2 }
  0xae   : > { %3659 = vst.msk [vmem:[%s4754_s12 + $0x304] sm:$0xf] %vm3465_vm3, %v3402_v0  ;;  %v2436_v9 = vmax.f32 %v1545_v61, %v2180_v5  ;;  %v2500_v10 = vmax.f32 %v1705_v62, %v2244_v6 }
  0xaf   : > { %3468 = vst.msk [vmem:[%s4754_s12 + $0x8] sm:$0xf] %vm3465_vm3, %v3211_v3  ;;  %v2823_v11 = vmul.f32 %v4730_v49, %v2563_v7  ;;  %v2887_v12 = vmul.f32 %v4730_v49, %v2627_v8 }
  0xb0   : > { %3532 = vst.msk [vmem:[%s4754_s12 + $0x108] sm:$0xf] %vm3465_vm3, %v3275_v4  ;;  %v2696_v13 = vmul.f32 %v4730_v49, %v2436_v9  ;;  %v2760_v14 = vmul.f32 %v4730_v49, %v2500_v10  ;;  %v1864_v15 = vpop.f32.mrf.mxu2  ;;  %v2024_v16 = vpop.f32.mrf.mxu3 }
  0xb1   : > { %v3083_v19 = vadd.f32 %v4739_v52, %v2823_v11  ;;  %v3147_v20 = vadd.f32 %v4739_v52, %v2887_v12  ;;  %v1865_v21 = vadd.f32 %v4719_v39, %v1864_v15  ;;  %v2025_v22 = vadd.f32 %v4719_v39, %v2024_v16  ;;  %v1547_v23 = vpop.f32.mrf.mxu0  ;;  %v1707_v24 = vpop.f32.mrf.mxu1  ;;  %v4444_v16 = vld [vmem:[%s4650_s28 + $0x58] sm:$0xff] }
  0xb2   : > { %v2956_v27 = vadd.f32 %v4739_v52, %v2696_v13  ;;  %v3020_v28 = vadd.f32 %v4739_v52, %v2760_v14  ;;  %v1548_v29 = vadd.f32 %v4719_v39, %v1547_v23  ;;  %v1708_v30 = vadd.f32 %v4719_v39, %v1707_v24  ;;  %v4508_v24 = vld [vmem:[%s4650_s28 + $0x258] sm:$0xff] }
  0xb3   : > { %v3339_v31 = vpack.c.bf16 %v3083_v19, %v3083_v19  ;;  %v3403_v32 = vpack.c.bf16 %v3147_v20, %v3147_v20  ;;  %v2308_v33 = vmul.f32 0.2, %v1865_v21  ;;  %v2372_v34 = vmul.f32 0.2, %v2025_v22 }
  0xb4   : > { %v3212_v35 = vpack.c.bf16 %v2956_v27, %v2956_v27  ;;  %v3276_v36 = vpack.c.bf16 %v3020_v28, %v3020_v28  ;;  %v2181_v37 = vmul.f32 0.2, %v1548_v29  ;;  %v2245_v38 = vmul.f32 0.2, %v1708_v30  ;;  %4313 = vmatmul.msk.bf16.gmra.mxu0 %vm1136_vm2, %v4443_v17  ;;  %4345 = vmatmul.msk.bf16.gmra.mxu1 %vm1136_vm2, %v4475_v18  ;;  %v4476_v17 = vld [vmem:[%s4650_s28 + $0x158] sm:$0xff] }
  0xb5   : > { %3596 = vst.msk [vmem:[%s4754_s12 + $0x208] sm:$0xf] %vm3465_vm3, %v3339_v31  ;;  %v2564_v40 = vmax.f32 %v1865_v21, %v2308_v33  ;;  %v2628_v41 = vmax.f32 %v2025_v22, %v2372_v34  ;;  %4377 = vmatmul.msk.bf16.gmra.mxu2 %vm1136_vm2, %v4507_v25  ;;  %4409 = vmatmul.msk.bf16.gmra.mxu3 %vm1136_vm2, %v4539_v26  ;;  %v4540_v25 = vld [vmem:[%s4650_s28 + $0x358] sm:$0xff] }
  0xb6   : > { %3660 = vst.msk [vmem:[%s4754_s12 + $0x308] sm:$0xf] %vm3465_vm3, %v3403_v32  ;;  %v2437_v42 = vmax.f32 %v1548_v29, %v2181_v37  ;;  %v2501_v43 = vmax.f32 %v1708_v30, %v2245_v38 }
  0xb7   : > { %3469 = vst.msk [vmem:[%s4754_s12 + $0xc] sm:$0xf] %vm3465_vm3, %v3212_v35  ;;  %v2824_v44 = vmul.f32 %v4730_v49, %v2564_v40  ;;  %v2888_v45 = vmul.f32 %v4730_v49, %v2628_v41 }
  0xb8   : > { %3533 = vst.msk [vmem:[%s4754_s12 + $0x10c] sm:$0xf] %vm3465_vm3, %v3276_v36  ;;  %v2697_v46 = vmul.f32 %v4730_v49, %v2437_v42  ;;  %v2761_v47 = vmul.f32 %v4730_v49, %v2501_v43  ;;  %v1867_v48 = vpop.f32.mrf.mxu2  ;;  %v2027_v50 = vpop.f32.mrf.mxu3 }
  0xb9   : > { %v3084_v51 = vadd.f32 %v4739_v52, %v2824_v44  ;;  %v3148_v53 = vadd.f32 %v4739_v52, %v2888_v45  ;;  %v1868_v54 = vadd.f32 %v4719_v39, %v1867_v48  ;;  %v2028_v55 = vadd.f32 %v4719_v39, %v2027_v50  ;;  %v1549_v56 = vpop.f32.mrf.mxu0  ;;  %v1709_v57 = vpop.f32.mrf.mxu1 }
  0xba   : > { %v2957_v58 = vadd.f32 %v4739_v52, %v2697_v46  ;;  %v3021_v59 = vadd.f32 %v4739_v52, %v2761_v47  ;;  %v1550_v60 = vadd.f32 %v4719_v39, %v1549_v56  ;;  %v1710_v61 = vadd.f32 %v4719_v39, %v1709_v57 }
  0xbb   : > { %v3340_v62 = vpack.c.bf16 %v3084_v51, %v3084_v51  ;;  %v3404_v63 = vpack.c.bf16 %v3148_v53, %v3148_v53  ;;  %v2309_v0 = vmul.f32 0.2, %v1868_v54  ;;  %v2373_v1 = vmul.f32 0.2, %v2028_v55 }
  0xbc   : > { %v3213_v2 = vpack.c.bf16 %v2957_v58, %v2957_v58  ;;  %v3277_v3 = vpack.c.bf16 %v3021_v59, %v3021_v59  ;;  %v2182_v4 = vmul.f32 0.2, %v1550_v60  ;;  %v2246_v5 = vmul.f32 0.2, %v1710_v61 }
  0xbd   : > { %3597 = vst.msk [vmem:[%s4754_s12 + $0x20c] sm:$0xf] %vm3465_vm3, %v3340_v62  ;;  %v2565_v6 = vmax.f32 %v1868_v54, %v2309_v0  ;;  %v2629_v7 = vmax.f32 %v2028_v55, %v2373_v1 }
  0xbe   : > { %3661 = vst.msk [vmem:[%s4754_s12 + $0x30c] sm:$0xf] %vm3465_vm3, %v3404_v63  ;;  %v2438_v8 = vmax.f32 %v1550_v60, %v2182_v4  ;;  %v2502_v9 = vmax.f32 %v1710_v61, %v2246_v5 }
  0xbf   : > { %3470 = vst.msk [vmem:[%s4754_s12 + $0x10] sm:$0xf] %vm3465_vm3, %v3213_v2  ;;  %v2825_v10 = vmul.f32 %v4730_v49, %v2565_v6  ;;  %v2889_v11 = vmul.f32 %v4730_v49, %v2629_v7 }
  0xc0   : > { %3534 = vst.msk [vmem:[%s4754_s12 + $0x110] sm:$0xf] %vm3465_vm3, %v3277_v3  ;;  %v2698_v12 = vmul.f32 %v4730_v49, %v2438_v8  ;;  %v2762_v13 = vmul.f32 %v4730_v49, %v2502_v9  ;;  %v1869_v14 = vpop.f32.mrf.mxu2  ;;  %v2029_v15 = vpop.f32.mrf.mxu3 }
  0xc1   : > { %v3085_v18 = vadd.f32 %v4739_v52, %v2825_v10  ;;  %v3149_v19 = vadd.f32 %v4739_v52, %v2889_v11  ;;  %v1870_v20 = vadd.f32 %v4719_v39, %v1869_v14  ;;  %v2030_v21 = vadd.f32 %v4719_v39, %v2029_v15  ;;  %v1552_v22 = vpop.f32.mrf.mxu0  ;;  %v1712_v23 = vpop.f32.mrf.mxu1  ;;  %v4445_v15 = vld [vmem:[%s4650_s28 + $0x60] sm:$0xff] }
  0xc2   : > { %v2958_v26 = vadd.f32 %v4739_v52, %v2698_v12  ;;  %v3022_v27 = vadd.f32 %v4739_v52, %v2762_v13  ;;  %v1553_v28 = vadd.f32 %v4719_v39, %v1552_v22  ;;  %v1713_v29 = vadd.f32 %v4719_v39, %v1712_v23  ;;  %v4509_v23 = vld [vmem:[%s4650_s28 + $0x260] sm:$0xff] }
  0xc3   : > { %v3341_v30 = vpack.c.bf16 %v3085_v18, %v3085_v18  ;;  %v3405_v31 = vpack.c.bf16 %v3149_v19, %v3149_v19  ;;  %v2310_v32 = vmul.f32 0.2, %v1870_v20  ;;  %v2374_v33 = vmul.f32 0.2, %v2030_v21 }
  0xc4   : > { %v3214_v34 = vpack.c.bf16 %v2958_v26, %v2958_v26  ;;  %v3278_v35 = vpack.c.bf16 %v3022_v27, %v3022_v27  ;;  %v2183_v36 = vmul.f32 0.2, %v1553_v28  ;;  %v2247_v37 = vmul.f32 0.2, %v1713_v29  ;;  %4314 = vmatmul.msk.bf16.gmra.mxu0 %vm1136_vm2, %v4444_v16  ;;  %4346 = vmatmul.msk.bf16.gmra.mxu1 %vm1136_vm2, %v4476_v17  ;;  %v4477_v16 = vld [vmem:[%s4650_s28 + $0x160] sm:$0xff] }
  0xc5   : > { %3598 = vst.msk [vmem:[%s4754_s12 + $0x210] sm:$0xf] %vm3465_vm3, %v3341_v30  ;;  %v2566_v38 = vmax.f32 %v1870_v20, %v2310_v32  ;;  %v2630_v40 = vmax.f32 %v2030_v21, %v2374_v33  ;;  %4378 = vmatmul.msk.bf16.gmra.mxu2 %vm1136_vm2, %v4508_v24  ;;  %4410 = vmatmul.msk.bf16.gmra.mxu3 %vm1136_vm2, %v4540_v25  ;;  %v4541_v24 = vld [vmem:[%s4650_s28 + $0x360] sm:$0xff] }
  0xc6   : > { %3662 = vst.msk [vmem:[%s4754_s12 + $0x310] sm:$0xf] %vm3465_vm3, %v3405_v31  ;;  %v2439_v41 = vmax.f32 %v1553_v28, %v2183_v36  ;;  %v2503_v42 = vmax.f32 %v1713_v29, %v2247_v37 }
  0xc7   : > { %3471 = vst.msk [vmem:[%s4754_s12 + $0x14] sm:$0xf] %vm3465_vm3, %v3214_v34  ;;  %v2826_v43 = vmul.f32 %v4730_v49, %v2566_v38  ;;  %v2890_v44 = vmul.f32 %v4730_v49, %v2630_v40 }
  0xc8   : > { %3535 = vst.msk [vmem:[%s4754_s12 + $0x114] sm:$0xf] %vm3465_vm3, %v3278_v35  ;;  %v2699_v45 = vmul.f32 %v4730_v49, %v2439_v41  ;;  %v2763_v46 = vmul.f32 %v4730_v49, %v2503_v42  ;;  %v1872_v47 = vpop.f32.mrf.mxu2  ;;  %v2032_v48 = vpop.f32.mrf.mxu3 }
  0xc9   : > { %v3086_v50 = vadd.f32 %v4739_v52, %v2826_v43  ;;  %v3150_v51 = vadd.f32 %v4739_v52, %v2890_v44  ;;  %v1873_v53 = vadd.f32 %v4719_v39, %v1872_v47  ;;  %v2033_v54 = vadd.f32 %v4719_v39, %v2032_v48  ;;  %v1554_v55 = vpop.f32.mrf.mxu0  ;;  %v1714_v56 = vpop.f32.mrf.mxu1 }
  0xca   : > { %v2959_v57 = vadd.f32 %v4739_v52, %v2699_v45  ;;  %v3023_v58 = vadd.f32 %v4739_v52, %v2763_v46  ;;  %v1555_v59 = vadd.f32 %v4719_v39, %v1554_v55  ;;  %v1715_v60 = vadd.f32 %v4719_v39, %v1714_v56 }
  0xcb   : > { %v3342_v61 = vpack.c.bf16 %v3086_v50, %v3086_v50  ;;  %v3406_v62 = vpack.c.bf16 %v3150_v51, %v3150_v51  ;;  %v2311_v63 = vmul.f32 0.2, %v1873_v53  ;;  %v2375_v0 = vmul.f32 0.2, %v2033_v54 }
  0xcc   : > { %v3215_v1 = vpack.c.bf16 %v2959_v57, %v2959_v57  ;;  %v3279_v2 = vpack.c.bf16 %v3023_v58, %v3023_v58  ;;  %v2184_v3 = vmul.f32 0.2, %v1555_v59  ;;  %v2248_v4 = vmul.f32 0.2, %v1715_v60 }
  0xcd   : > { %3599 = vst.msk [vmem:[%s4754_s12 + $0x214] sm:$0xf] %vm3465_vm3, %v3342_v61  ;;  %v2567_v5 = vmax.f32 %v1873_v53, %v2311_v63  ;;  %v2631_v6 = vmax.f32 %v2033_v54, %v2375_v0 }
  0xce   : > { %3663 = vst.msk [vmem:[%s4754_s12 + $0x314] sm:$0xf] %vm3465_vm3, %v3406_v62  ;;  %v2440_v7 = vmax.f32 %v1555_v59, %v2184_v3  ;;  %v2504_v8 = vmax.f32 %v1715_v60, %v2248_v4 }
  0xcf   : > { %3472 = vst.msk [vmem:[%s4754_s12 + $0x18] sm:$0xf] %vm3465_vm3, %v3215_v1  ;;  %v2827_v9 = vmul.f32 %v4730_v49, %v2567_v5  ;;  %v2891_v10 = vmul.f32 %v4730_v49, %v2631_v6 }
  0xd0   : > { %3536 = vst.msk [vmem:[%s4754_s12 + $0x118] sm:$0xf] %vm3465_vm3, %v3279_v2  ;;  %v2700_v11 = vmul.f32 %v4730_v49, %v2440_v7  ;;  %v2764_v12 = vmul.f32 %v4730_v49, %v2504_v8  ;;  %v1874_v13 = vpop.f32.mrf.mxu2  ;;  %v2034_v14 = vpop.f32.mrf.mxu3 }
  0xd1   : > { %v3087_v17 = vadd.f32 %v4739_v52, %v2827_v9  ;;  %v3151_v18 = vadd.f32 %v4739_v52, %v2891_v10  ;;  %v1875_v19 = vadd.f32 %v4719_v39, %v1874_v13  ;;  %v2035_v20 = vadd.f32 %v4719_v39, %v2034_v14  ;;  %v1557_v21 = vpop.f32.mrf.mxu0  ;;  %v1717_v22 = vpop.f32.mrf.mxu1  ;;  %v4446_v14 = vld [vmem:[%s4650_s28 + $0x68] sm:$0xff] }
  0xd2   : > { %v2960_v25 = vadd.f32 %v4739_v52, %v2700_v11  ;;  %v3024_v26 = vadd.f32 %v4739_v52, %v2764_v12  ;;  %v1558_v27 = vadd.f32 %v4719_v39, %v1557_v21  ;;  %v1718_v28 = vadd.f32 %v4719_v39, %v1717_v22  ;;  %v4510_v22 = vld [vmem:[%s4650_s28 + $0x268] sm:$0xff] }
  0xd3   : > { %v3343_v29 = vpack.c.bf16 %v3087_v17, %v3087_v17  ;;  %v3407_v30 = vpack.c.bf16 %v3151_v18, %v3151_v18  ;;  %v2312_v31 = vmul.f32 0.2, %v1875_v19  ;;  %v2376_v32 = vmul.f32 0.2, %v2035_v20 }
  0xd4   : > { %v3216_v33 = vpack.c.bf16 %v2960_v25, %v2960_v25  ;;  %v3280_v34 = vpack.c.bf16 %v3024_v26, %v3024_v26  ;;  %v2185_v35 = vmul.f32 0.2, %v1558_v27  ;;  %v2249_v36 = vmul.f32 0.2, %v1718_v28  ;;  %4315 = vmatmul.msk.bf16.gmra.mxu0 %vm1136_vm2, %v4445_v15  ;;  %4347 = vmatmul.msk.bf16.gmra.mxu1 %vm1136_vm2, %v4477_v16  ;;  %v4478_v15 = vld [vmem:[%s4650_s28 + $0x168] sm:$0xff] }
  0xd5   : > { %3600 = vst.msk [vmem:[%s4754_s12 + $0x218] sm:$0xf] %vm3465_vm3, %v3343_v29  ;;  %v2568_v37 = vmax.f32 %v1875_v19, %v2312_v31  ;;  %v2632_v38 = vmax.f32 %v2035_v20, %v2376_v32  ;;  %4379 = vmatmul.msk.bf16.gmra.mxu2 %vm1136_vm2, %v4509_v23  ;;  %4411 = vmatmul.msk.bf16.gmra.mxu3 %vm1136_vm2, %v4541_v24  ;;  %v4542_v23 = vld [vmem:[%s4650_s28 + $0x368] sm:$0xff] }
  0xd6   : > { %3664 = vst.msk [vmem:[%s4754_s12 + $0x318] sm:$0xf] %vm3465_vm3, %v3407_v30  ;;  %v2441_v40 = vmax.f32 %v1558_v27, %v2185_v35  ;;  %v2505_v41 = vmax.f32 %v1718_v28, %v2249_v36 }
  0xd7   : > { %3473 = vst.msk [vmem:[%s4754_s12 + $0x1c] sm:$0xf] %vm3465_vm3, %v3216_v33  ;;  %v2828_v42 = vmul.f32 %v4730_v49, %v2568_v37  ;;  %v2892_v43 = vmul.f32 %v4730_v49, %v2632_v38 }
  0xd8   : > { %3537 = vst.msk [vmem:[%s4754_s12 + $0x11c] sm:$0xf] %vm3465_vm3, %v3280_v34  ;;  %v2701_v44 = vmul.f32 %v4730_v49, %v2441_v40  ;;  %v2765_v45 = vmul.f32 %v4730_v49, %v2505_v41  ;;  %v1877_v46 = vpop.f32.mrf.mxu2  ;;  %v2037_v47 = vpop.f32.mrf.mxu3 }
  0xd9   : > { %v3088_v48 = vadd.f32 %v4739_v52, %v2828_v42  ;;  %v3152_v50 = vadd.f32 %v4739_v52, %v2892_v43  ;;  %v1878_v51 = vadd.f32 %v4719_v39, %v1877_v46  ;;  %v2038_v53 = vadd.f32 %v4719_v39, %v2037_v47  ;;  %v1559_v54 = vpop.f32.mrf.mxu0  ;;  %v1719_v55 = vpop.f32.mrf.mxu1 }
  0xda   : > { %v2961_v56 = vadd.f32 %v4739_v52, %v2701_v44  ;;  %v3025_v57 = vadd.f32 %v4739_v52, %v2765_v45  ;;  %v1560_v58 = vadd.f32 %v4719_v39, %v1559_v54  ;;  %v1720_v59 = vadd.f32 %v4719_v39, %v1719_v55 }
  0xdb   : > { %v3344_v60 = vpack.c.bf16 %v3088_v48, %v3088_v48  ;;  %v3408_v61 = vpack.c.bf16 %v3152_v50, %v3152_v50  ;;  %v2313_v62 = vmul.f32 0.2, %v1878_v51  ;;  %v2377_v63 = vmul.f32 0.2, %v2038_v53 }
  0xdc   : > { %v3217_v0 = vpack.c.bf16 %v2961_v56, %v2961_v56  ;;  %v3281_v1 = vpack.c.bf16 %v3025_v57, %v3025_v57  ;;  %v2186_v2 = vmul.f32 0.2, %v1560_v58  ;;  %v2250_v3 = vmul.f32 0.2, %v1720_v59 }
  0xdd   : > { %3601 = vst.msk [vmem:[%s4754_s12 + $0x21c] sm:$0xf] %vm3465_vm3, %v3344_v60  ;;  %v2569_v4 = vmax.f32 %v1878_v51, %v2313_v62  ;;  %v2633_v5 = vmax.f32 %v2038_v53, %v2377_v63 }
  0xde   : > { %3665 = vst.msk [vmem:[%s4754_s12 + $0x31c] sm:$0xf] %vm3465_vm3, %v3408_v61  ;;  %v2442_v6 = vmax.f32 %v1560_v58, %v2186_v2  ;;  %v2506_v7 = vmax.f32 %v1720_v59, %v2250_v3 }
  0xdf   : > { %3474 = vst.msk [vmem:[%s4754_s12 + $0x20] sm:$0xf] %vm3465_vm3, %v3217_v0  ;;  %v2829_v8 = vmul.f32 %v4730_v49, %v2569_v4  ;;  %v2893_v9 = vmul.f32 %v4730_v49, %v2633_v5 }
  0xe0   : > { %3538 = vst.msk [vmem:[%s4754_s12 + $0x120] sm:$0xf] %vm3465_vm3, %v3281_v1  ;;  %v2702_v10 = vmul.f32 %v4730_v49, %v2442_v6  ;;  %v2766_v11 = vmul.f32 %v4730_v49, %v2506_v7  ;;  %v1879_v12 = vpop.f32.mrf.mxu2  ;;  %v2039_v13 = vpop.f32.mrf.mxu3 }
  0xe1   : > { %v3089_v16 = vadd.f32 %v4739_v52, %v2829_v8  ;;  %v3153_v17 = vadd.f32 %v4739_v52, %v2893_v9  ;;  %v1880_v18 = vadd.f32 %v4719_v39, %v1879_v12  ;;  %v2040_v19 = vadd.f32 %v4719_v39, %v2039_v13  ;;  %v1562_v20 = vpop.f32.mrf.mxu0  ;;  %v1722_v21 = vpop.f32.mrf.mxu1  ;;  %v4447_v13 = vld [vmem:[%s4650_s28 + $0x70] sm:$0xff] }
  0xe2   : > { %v2962_v24 = vadd.f32 %v4739_v52, %v2702_v10  ;;  %v3026_v25 = vadd.f32 %v4739_v52, %v2766_v11  ;;  %v1563_v26 = vadd.f32 %v4719_v39, %v1562_v20  ;;  %v1723_v27 = vadd.f32 %v4719_v39, %v1722_v21  ;;  %v4511_v21 = vld [vmem:[%s4650_s28 + $0x270] sm:$0xff] }
  0xe3   : > { %v3345_v28 = vpack.c.bf16 %v3089_v16, %v3089_v16  ;;  %v3409_v29 = vpack.c.bf16 %v3153_v17, %v3153_v17  ;;  %v2314_v30 = vmul.f32 0.2, %v1880_v18  ;;  %v2378_v31 = vmul.f32 0.2, %v2040_v19 }
  0xe4   : > { %v3218_v32 = vpack.c.bf16 %v2962_v24, %v2962_v24  ;;  %v3282_v33 = vpack.c.bf16 %v3026_v25, %v3026_v25  ;;  %v2187_v34 = vmul.f32 0.2, %v1563_v26  ;;  %v2251_v35 = vmul.f32 0.2, %v1723_v27  ;;  %4316 = vmatmul.msk.bf16.gmra.mxu0 %vm1136_vm2, %v4446_v14  ;;  %4348 = vmatmul.msk.bf16.gmra.mxu1 %vm1136_vm2, %v4478_v15  ;;  %v4479_v14 = vld [vmem:[%s4650_s28 + $0x170] sm:$0xff] }
  0xe5   : > { %3602 = vst.msk [vmem:[%s4754_s12 + $0x220] sm:$0xf] %vm3465_vm3, %v3345_v28  ;;  %v2570_v36 = vmax.f32 %v1880_v18, %v2314_v30  ;;  %v2634_v37 = vmax.f32 %v2040_v19, %v2378_v31  ;;  %4380 = vmatmul.msk.bf16.gmra.mxu2 %vm1136_vm2, %v4510_v22  ;;  %4412 = vmatmul.msk.bf16.gmra.mxu3 %vm1136_vm2, %v4542_v23  ;;  %v4543_v22 = vld [vmem:[%s4650_s28 + $0x370] sm:$0xff] }
  0xe6   : > { %3666 = vst.msk [vmem:[%s4754_s12 + $0x320] sm:$0xf] %vm3465_vm3, %v3409_v29  ;;  %v2443_v38 = vmax.f32 %v1563_v26, %v2187_v34  ;;  %v2507_v40 = vmax.f32 %v1723_v27, %v2251_v35 }
  0xe7   : > { %3475 = vst.msk [vmem:[%s4754_s12 + $0x24] sm:$0xf] %vm3465_vm3, %v3218_v32  ;;  %v2830_v41 = vmul.f32 %v4730_v49, %v2570_v36  ;;  %v2894_v42 = vmul.f32 %v4730_v49, %v2634_v37 }
  0xe8   : > { %3539 = vst.msk [vmem:[%s4754_s12 + $0x124] sm:$0xf] %vm3465_vm3, %v3282_v33  ;;  %v2703_v43 = vmul.f32 %v4730_v49, %v2443_v38  ;;  %v2767_v44 = vmul.f32 %v4730_v49, %v2507_v40  ;;  %v1882_v45 = vpop.f32.mrf.mxu2  ;;  %v2042_v46 = vpop.f32.mrf.mxu3 }
  0xe9   : > { %v3090_v47 = vadd.f32 %v4739_v52, %v2830_v41  ;;  %v3154_v48 = vadd.f32 %v4739_v52, %v2894_v42  ;;  %v1883_v50 = vadd.f32 %v4719_v39, %v1882_v45  ;;  %v2043_v51 = vadd.f32 %v4719_v39, %v2042_v46  ;;  %v1564_v53 = vpop.f32.mrf.mxu0  ;;  %v1724_v54 = vpop.f32.mrf.mxu1 }
  0xea   : > { %v2963_v55 = vadd.f32 %v4739_v52, %v2703_v43  ;;  %v3027_v56 = vadd.f32 %v4739_v52, %v2767_v44  ;;  %v1565_v57 = vadd.f32 %v4719_v39, %v1564_v53  ;;  %v1725_v58 = vadd.f32 %v4719_v39, %v1724_v54 }
  0xeb   : > { %v3346_v59 = vpack.c.bf16 %v3090_v47, %v3090_v47  ;;  %v3410_v60 = vpack.c.bf16 %v3154_v48, %v3154_v48  ;;  %v2315_v61 = vmul.f32 0.2, %v1883_v50  ;;  %v2379_v62 = vmul.f32 0.2, %v2043_v51 }
  0xec   : > { %v3219_v63 = vpack.c.bf16 %v2963_v55, %v2963_v55  ;;  %v3283_v0 = vpack.c.bf16 %v3027_v56, %v3027_v56  ;;  %v2188_v1 = vmul.f32 0.2, %v1565_v57  ;;  %v2252_v2 = vmul.f32 0.2, %v1725_v58 }
  0xed   : > { %3603 = vst.msk [vmem:[%s4754_s12 + $0x224] sm:$0xf] %vm3465_vm3, %v3346_v59  ;;  %v2571_v3 = vmax.f32 %v1883_v50, %v2315_v61  ;;  %v2635_v4 = vmax.f32 %v2043_v51, %v2379_v62 }
  0xee   : > { %3667 = vst.msk [vmem:[%s4754_s12 + $0x324] sm:$0xf] %vm3465_vm3, %v3410_v60  ;;  %v2444_v5 = vmax.f32 %v1565_v57, %v2188_v1  ;;  %v2508_v6 = vmax.f32 %v1725_v58, %v2252_v2 }
  0xef   : > { %3476 = vst.msk [vmem:[%s4754_s12 + $0x28] sm:$0xf] %vm3465_vm3, %v3219_v63  ;;  %v2831_v7 = vmul.f32 %v4730_v49, %v2571_v3  ;;  %v2895_v8 = vmul.f32 %v4730_v49, %v2635_v4 }
  0xf0   : > { %3540 = vst.msk [vmem:[%s4754_s12 + $0x128] sm:$0xf] %vm3465_vm3, %v3283_v0  ;;  %v2704_v9 = vmul.f32 %v4730_v49, %v2444_v5  ;;  %v2768_v10 = vmul.f32 %v4730_v49, %v2508_v6  ;;  %v1884_v11 = vpop.f32.mrf.mxu2  ;;  %v2044_v12 = vpop.f32.mrf.mxu3 }
  0xf1   : > { %v3091_v15 = vadd.f32 %v4739_v52, %v2831_v7  ;;  %v3155_v16 = vadd.f32 %v4739_v52, %v2895_v8  ;;  %v1885_v17 = vadd.f32 %v4719_v39, %v1884_v11  ;;  %v2045_v18 = vadd.f32 %v4719_v39, %v2044_v12  ;;  %v1567_v19 = vpop.f32.mrf.mxu0  ;;  %v1727_v20 = vpop.f32.mrf.mxu1  ;;  %v4448_v12 = vld [vmem:[%s4650_s28 + $0x78] sm:$0xff] }
  0xf2   : > { %v2964_v23 = vadd.f32 %v4739_v52, %v2704_v9  ;;  %v3028_v24 = vadd.f32 %v4739_v52, %v2768_v10  ;;  %v1568_v25 = vadd.f32 %v4719_v39, %v1567_v19  ;;  %v1728_v26 = vadd.f32 %v4719_v39, %v1727_v20  ;;  %v4512_v20 = vld [vmem:[%s4650_s28 + $0x278] sm:$0xff] }
  0xf3   : > { %v3347_v27 = vpack.c.bf16 %v3091_v15, %v3091_v15  ;;  %v3411_v28 = vpack.c.bf16 %v3155_v16, %v3155_v16  ;;  %v2316_v29 = vmul.f32 0.2, %v1885_v17  ;;  %v2380_v30 = vmul.f32 0.2, %v2045_v18 }
  0xf4   : > { %v3220_v31 = vpack.c.bf16 %v2964_v23, %v2964_v23  ;;  %v3284_v32 = vpack.c.bf16 %v3028_v24, %v3028_v24  ;;  %v2189_v33 = vmul.f32 0.2, %v1568_v25  ;;  %v2253_v34 = vmul.f32 0.2, %v1728_v26  ;;  %4317 = vmatmul.msk.bf16.gmra.mxu0 %vm1136_vm2, %v4447_v13  ;;  %4349 = vmatmul.msk.bf16.gmra.mxu1 %vm1136_vm2, %v4479_v14  ;;  %v4480_v13 = vld [vmem:[%s4650_s28 + $0x178] sm:$0xff] }
  0xf5   : > { %3604 = vst.msk [vmem:[%s4754_s12 + $0x228] sm:$0xf] %vm3465_vm3, %v3347_v27  ;;  %v2572_v35 = vmax.f32 %v1885_v17, %v2316_v29  ;;  %v2636_v36 = vmax.f32 %v2045_v18, %v2380_v30  ;;  %4381 = vmatmul.msk.bf16.gmra.mxu2 %vm1136_vm2, %v4511_v21  ;;  %4413 = vmatmul.msk.bf16.gmra.mxu3 %vm1136_vm2, %v4543_v22  ;;  %v4544_v21 = vld [vmem:[%s4650_s28 + $0x378] sm:$0xff] }
  0xf6   : > { %3668 = vst.msk [vmem:[%s4754_s12 + $0x328] sm:$0xf] %vm3465_vm3, %v3411_v28  ;;  %v2445_v37 = vmax.f32 %v1568_v25, %v2189_v33  ;;  %v2509_v38 = vmax.f32 %v1728_v26, %v2253_v34 }
  0xf7   : > { %3477 = vst.msk [vmem:[%s4754_s12 + $0x2c] sm:$0xf] %vm3465_vm3, %v3220_v31  ;;  %v2832_v40 = vmul.f32 %v4730_v49, %v2572_v35  ;;  %v2896_v41 = vmul.f32 %v4730_v49, %v2636_v36 }
  0xf8   : > { %3541 = vst.msk [vmem:[%s4754_s12 + $0x12c] sm:$0xf] %vm3465_vm3, %v3284_v32  ;;  %v2705_v42 = vmul.f32 %v4730_v49, %v2445_v37  ;;  %v2769_v43 = vmul.f32 %v4730_v49, %v2509_v38  ;;  %v1887_v44 = vpop.f32.mrf.mxu2  ;;  %v2047_v45 = vpop.f32.mrf.mxu3 }
  0xf9   : > { %v3092_v46 = vadd.f32 %v4739_v52, %v2832_v40  ;;  %v3156_v47 = vadd.f32 %v4739_v52, %v2896_v41  ;;  %v1888_v48 = vadd.f32 %v4719_v39, %v1887_v44  ;;  %v2048_v50 = vadd.f32 %v4719_v39, %v2047_v45  ;;  %v1569_v51 = vpop.f32.mrf.mxu0  ;;  %v1729_v53 = vpop.f32.mrf.mxu1 }
  0xfa   : > { %v2965_v54 = vadd.f32 %v4739_v52, %v2705_v42  ;;  %v3029_v55 = vadd.f32 %v4739_v52, %v2769_v43  ;;  %v1570_v56 = vadd.f32 %v4719_v39, %v1569_v51  ;;  %v1730_v57 = vadd.f32 %v4719_v39, %v1729_v53 }
  0xfb   : > { %v3348_v58 = vpack.c.bf16 %v3092_v46, %v3092_v46  ;;  %v3412_v59 = vpack.c.bf16 %v3156_v47, %v3156_v47  ;;  %v2317_v60 = vmul.f32 0.2, %v1888_v48  ;;  %v2381_v61 = vmul.f32 0.2, %v2048_v50  ;;  %v5085_v46 = vld [vmem:[%s6275_s2] ss:$0 sm:$0xff] }
  0xfc   : > { %v3221_v62 = vpack.c.bf16 %v2965_v54, %v2965_v54  ;;  %v3285_v63 = vpack.c.bf16 %v3029_v55, %v3029_v55  ;;  %v2190_v0 = vmul.f32 0.2, %v1570_v56  ;;  %v2254_v1 = vmul.f32 0.2, %v1730_v57 }
  0xfd   : > { %3605 = vst.msk [vmem:[%s4754_s12 + $0x22c] sm:$0xf] %vm3465_vm3, %v3348_v58  ;;  %v2573_v2 = vmax.f32 %v1888_v48, %v2317_v60  ;;  %v2637_v3 = vmax.f32 %v2048_v50, %v2381_v61 }
  0xfe   : > { %3669 = vst.msk [vmem:[%s4754_s12 + $0x32c] sm:$0xf] %vm3465_vm3, %v3412_v59  ;;  %v2446_v4 = vmax.f32 %v1570_v56, %v2190_v0  ;;  %v2510_v5 = vmax.f32 %v1730_v57, %v2254_v1 }
  0xff   : > { %3478 = vst.msk [vmem:[%s4754_s12 + $0x30] sm:$0xf] %vm3465_vm3, %v3221_v62  ;;  %v2833_v6 = vmul.f32 %v4730_v49, %v2573_v2  ;;  %v2897_v7 = vmul.f32 %v4730_v49, %v2637_v3 }
 0x100   : > { %3542 = vst.msk [vmem:[%s4754_s12 + $0x130] sm:$0xf] %vm3465_vm3, %v3285_v63  ;;  %v2706_v8 = vmul.f32 %v4730_v49, %v2446_v4  ;;  %v2770_v9 = vmul.f32 %v4730_v49, %v2510_v5  ;;  %v1889_v10 = vpop.f32.mrf.mxu2  ;;  %v2049_v11 = vpop.f32.mrf.mxu3  ;;  %v5107_v4 = vld [vmem:[%s6276_s3] ss:$0 sm:$0xff] }
 0x101   : > { %v3093_v14 = vadd.f32 %v4739_v52, %v2833_v6  ;;  %v3157_v15 = vadd.f32 %v4739_v52, %v2897_v7  ;;  %v1890_v16 = vadd.f32 %v4719_v39, %v1889_v10  ;;  %v2050_v17 = vadd.f32 %v4719_v39, %v2049_v11  ;;  %v1572_v18 = vpop.f32.mrf.mxu0  ;;  %v1732_v19 = vpop.f32.mrf.mxu1  ;;  %v4449_v11 = vld [vmem:[%s4650_s28 + $0x80] sm:$0xff] }
 0x102   : > { %v2966_v22 = vadd.f32 %v4739_v52, %v2706_v8  ;;  %v3030_v23 = vadd.f32 %v4739_v52, %v2770_v9  ;;  %v1573_v24 = vadd.f32 %v4719_v39, %v1572_v18  ;;  %v1733_v25 = vadd.f32 %v4719_v39, %v1732_v19  ;;  %v4513_v19 = vld [vmem:[%s4650_s28 + $0x280] sm:$0xff] }
 0x103   : > { %v3349_v26 = vpack.c.bf16 %v3093_v14, %v3093_v14  ;;  %v3413_v27 = vpack.c.bf16 %v3157_v15, %v3157_v15  ;;  %v2318_v28 = vmul.f32 0.2, %v1890_v16  ;;  %v2382_v29 = vmul.f32 0.2, %v2050_v17 }
 0x104   : > { %v3222_v30 = vpack.c.bf16 %v2966_v22, %v2966_v22  ;;  %v3286_v31 = vpack.c.bf16 %v3030_v23, %v3030_v23  ;;  %v2191_v32 = vmul.f32 0.2, %v1573_v24  ;;  %v2255_v33 = vmul.f32 0.2, %v1733_v25  ;;  %4318 = vmatmul.msk.bf16.gmra.mxu0 %vm1136_vm2, %v4448_v12  ;;  %4350 = vmatmul.msk.bf16.gmra.mxu1 %vm1136_vm2, %v4480_v13  ;;  %v4481_v12 = vld [vmem:[%s4650_s28 + $0x180] sm:$0xff] }
 0x105   : > { %3606 = vst.msk [vmem:[%s4754_s12 + $0x230] sm:$0xf] %vm3465_vm3, %v3349_v26  ;;  %v2574_v34 = vmax.f32 %v1890_v16, %v2318_v28  ;;  %v2638_v35 = vmax.f32 %v2050_v17, %v2382_v29  ;;  %4382 = vmatmul.msk.bf16.gmra.mxu2 %vm1136_vm2, %v4512_v20  ;;  %4414 = vmatmul.msk.bf16.gmra.mxu3 %vm1136_vm2, %v4544_v21  ;;  %v4545_v20 = vld [vmem:[%s4650_s28 + $0x380] sm:$0xff] }
 0x106   : > { %3670 = vst.msk [vmem:[%s4754_s12 + $0x330] sm:$0xf] %vm3465_vm3, %v3413_v27  ;;  %v2447_v39 = vmax.f32 %v1573_v24, %v2191_v32  ;;  %v2511_v36 = vmax.f32 %v1733_v25, %v2255_v33 }
 0x107   : > { %3479 = vst.msk [vmem:[%s4754_s12 + $0x34] sm:$0xf] %vm3465_vm3, %v3222_v30  ;;  %v2834_v37 = vmul.f32 %v4730_v49, %v2574_v34  ;;  %v2898_v38 = vmul.f32 %v4730_v49, %v2638_v35 }
 0x108   : > { %3543 = vst.msk [vmem:[%s4754_s12 + $0x134] sm:$0xf] %vm3465_vm3, %v3286_v31  ;;  %v2707_v40 = vmul.f32 %v4730_v49, %v2447_v39  ;;  %v2771_v41 = vmul.f32 %v4730_v49, %v2511_v36  ;;  %v1892_v42 = vpop.f32.mrf.mxu2  ;;  %v2052_v43 = vpop.f32.mrf.mxu3  ;;  %v5092_v49 = vld [vmem:[%s6277_s4] ss:$0 sm:$0xff] }
 0x109   : > { %v3094_v44 = vadd.f32 %v4739_v52, %v2834_v37  ;;  %v3158_v45 = vadd.f32 %v4739_v52, %v2898_v38  ;;  %v1893_v47 = vadd.f32 %v5085_v46, %v1892_v42  ;;  %v2053_v48 = vadd.f32 %v5085_v46, %v2052_v43  ;;  %v1574_v50 = vpop.f32.mrf.mxu0  ;;  %v1734_v51 = vpop.f32.mrf.mxu1 }
 0x10a   : > { %v2967_v52 = vadd.f32 %v5092_v49, %v2707_v40  ;;  %v3031_v53 = vadd.f32 %v5092_v49, %v2771_v41  ;;  %v1575_v54 = vadd.f32 %v5085_v46, %v1574_v50  ;;  %v1735_v55 = vadd.f32 %v5085_v46, %v1734_v51 }
 0x10b   : > { %v3350_v56 = vpack.c.bf16 %v3094_v44, %v3094_v44  ;;  %v3414_v57 = vpack.c.bf16 %v3158_v45, %v3158_v45  ;;  %v2319_v58 = vmul.f32 0.2, %v1893_v47  ;;  %v2383_v59 = vmul.f32 0.2, %v2053_v48 }
 0x10c   : > { %v3223_v60 = vpack.c.bf16 %v2967_v52, %v2967_v52  ;;  %v3287_v61 = vpack.c.bf16 %v3031_v53, %v3031_v53  ;;  %v2192_v62 = vmul.f32 0.2, %v1575_v54  ;;  %v2256_v63 = vmul.f32 0.2, %v1735_v55 }
 0x10d   : > { %3607 = vst.msk [vmem:[%s4754_s12 + $0x234] sm:$0xf] %vm3465_vm3, %v3350_v56  ;;  %v2575_v0 = vmax.f32 %v1893_v47, %v2319_v58  ;;  %v2639_v1 = vmax.f32 %v2053_v48, %v2383_v59 }
 0x10e   : > { %3671 = vst.msk [vmem:[%s4754_s12 + $0x334] sm:$0xf] %vm3465_vm3, %v3414_v57  ;;  %v2448_v2 = vmax.f32 %v1575_v54, %v2192_v62  ;;  %v2512_v3 = vmax.f32 %v1735_v55, %v2256_v63 }
 0x10f   : > { %3480 = vst.msk [vmem:[%s4754_s12 + $0x38] sm:$0xf] %vm3465_vm3, %v3223_v60  ;;  %v2835_v5 = vmul.f32 %v5107_v4, %v2575_v0  ;;  %v2899_v6 = vmul.f32 %v5107_v4, %v2639_v1 }
 0x110   : > { %3544 = vst.msk [vmem:[%s4754_s12 + $0x138] sm:$0xf] %vm3465_vm3, %v3287_v61  ;;  %v2708_v7 = vmul.f32 %v5107_v4, %v2448_v2  ;;  %v2772_v8 = vmul.f32 %v5107_v4, %v2512_v3  ;;  %v1894_v9 = vpop.f32.mrf.mxu2  ;;  %v2054_v10 = vpop.f32.mrf.mxu3 }
 0x111   : > { %v3095_v13 = vadd.f32 %v5092_v49, %v2835_v5  ;;  %v3159_v14 = vadd.f32 %v5092_v49, %v2899_v6  ;;  %v1895_v15 = vadd.f32 %v5085_v46, %v1894_v9  ;;  %v2055_v16 = vadd.f32 %v5085_v46, %v2054_v10  ;;  %v1577_v17 = vpop.f32.mrf.mxu0  ;;  %v1737_v18 = vpop.f32.mrf.mxu1  ;;  %v4450_v10 = vld [vmem:[%s4650_s28 + $0x88] sm:$0xff] }
 0x112   : > { %v2968_v21 = vadd.f32 %v5092_v49, %v2708_v7  ;;  %v3032_v22 = vadd.f32 %v5092_v49, %v2772_v8  ;;  %v1578_v23 = vadd.f32 %v5085_v46, %v1577_v17  ;;  %v1738_v24 = vadd.f32 %v5085_v46, %v1737_v18  ;;  %v4514_v18 = vld [vmem:[%s4650_s28 + $0x288] sm:$0xff] }
 0x113   : > { %v3351_v25 = vpack.c.bf16 %v3095_v13, %v3095_v13  ;;  %v3415_v26 = vpack.c.bf16 %v3159_v14, %v3159_v14  ;;  %v2320_v27 = vmul.f32 0.2, %v1895_v15  ;;  %v2384_v28 = vmul.f32 0.2, %v2055_v16 }
 0x114   : > { %v3224_v29 = vpack.c.bf16 %v2968_v21, %v2968_v21  ;;  %v3288_v30 = vpack.c.bf16 %v3032_v22, %v3032_v22  ;;  %v2193_v31 = vmul.f32 0.2, %v1578_v23  ;;  %v2257_v32 = vmul.f32 0.2, %v1738_v24  ;;  %4319 = vmatmul.msk.bf16.gmra.mxu0 %vm1136_vm2, %v4449_v11  ;;  %4351 = vmatmul.msk.bf16.gmra.mxu1 %vm1136_vm2, %v4481_v12  ;;  %v4482_v11 = vld [vmem:[%s4650_s28 + $0x188] sm:$0xff] }
 0x115   : > { %3608 = vst.msk [vmem:[%s4754_s12 + $0x238] sm:$0xf] %vm3465_vm3, %v3351_v25  ;;  %v2576_v33 = vmax.f32 %v1895_v15, %v2320_v27  ;;  %v2640_v34 = vmax.f32 %v2055_v16, %v2384_v28  ;;  %4383 = vmatmul.msk.bf16.gmra.mxu2 %vm1136_vm2, %v4513_v19  ;;  %4415 = vmatmul.msk.bf16.gmra.mxu3 %vm1136_vm2, %v4545_v20  ;;  %v4546_v19 = vld [vmem:[%s4650_s28 + $0x388] sm:$0xff] }
 0x116   : > { %3672 = vst.msk [vmem:[%s4754_s12 + $0x338] sm:$0xf] %vm3465_vm3, %v3415_v26  ;;  %v2449_v35 = vmax.f32 %v1578_v23, %v2193_v31  ;;  %v2513_v39 = vmax.f32 %v1738_v24, %v2257_v32 }
 0x117   : > { %3481 = vst.msk [vmem:[%s4754_s12 + $0x3c] sm:$0xf] %vm3465_vm3, %v3224_v29  ;;  %v2836_v36 = vmul.f32 %v5107_v4, %v2576_v33  ;;  %v2900_v37 = vmul.f32 %v5107_v4, %v2640_v34 }
 0x118   : > { %3545 = vst.msk [vmem:[%s4754_s12 + $0x13c] sm:$0xf] %vm3465_vm3, %v3288_v30  ;;  %v2709_v38 = vmul.f32 %v5107_v4, %v2449_v35  ;;  %v2773_v40 = vmul.f32 %v5107_v4, %v2513_v39  ;;  %v1897_v41 = vpop.f32.mrf.mxu2  ;;  %v2057_v42 = vpop.f32.mrf.mxu3 }
 0x119   : > { %v3096_v43 = vadd.f32 %v5092_v49, %v2836_v36  ;;  %v3160_v44 = vadd.f32 %v5092_v49, %v2900_v37  ;;  %v1898_v45 = vadd.f32 %v5085_v46, %v1897_v41  ;;  %v2058_v47 = vadd.f32 %v5085_v46, %v2057_v42  ;;  %v1579_v48 = vpop.f32.mrf.mxu0  ;;  %v1739_v50 = vpop.f32.mrf.mxu1 }
 0x11a   : > { %v2969_v51 = vadd.f32 %v5092_v49, %v2709_v38  ;;  %v3033_v52 = vadd.f32 %v5092_v49, %v2773_v40  ;;  %v1580_v53 = vadd.f32 %v5085_v46, %v1579_v48  ;;  %v1740_v54 = vadd.f32 %v5085_v46, %v1739_v50 }
 0x11b   : > { %v3352_v55 = vpack.c.bf16 %v3096_v43, %v3096_v43  ;;  %v3416_v56 = vpack.c.bf16 %v3160_v44, %v3160_v44  ;;  %v2321_v57 = vmul.f32 0.2, %v1898_v45  ;;  %v2385_v58 = vmul.f32 0.2, %v2058_v47 }
 0x11c   : > { %v3225_v59 = vpack.c.bf16 %v2969_v51, %v2969_v51  ;;  %v3289_v60 = vpack.c.bf16 %v3033_v52, %v3033_v52  ;;  %v2194_v61 = vmul.f32 0.2, %v1580_v53  ;;  %v2258_v62 = vmul.f32 0.2, %v1740_v54 }
 0x11d   : > { %3609 = vst.msk [vmem:[%s4754_s12 + $0x23c] sm:$0xf] %vm3465_vm3, %v3352_v55  ;;  %v2577_v63 = vmax.f32 %v1898_v45, %v2321_v57  ;;  %v2641_v0 = vmax.f32 %v2058_v47, %v2385_v58 }
 0x11e   : > { %3673 = vst.msk [vmem:[%s4754_s12 + $0x33c] sm:$0xf] %vm3465_vm3, %v3416_v56  ;;  %v2450_v1 = vmax.f32 %v1580_v53, %v2194_v61  ;;  %v2514_v2 = vmax.f32 %v1740_v54, %v2258_v62 }
 0x11f   : > { %3482 = vst.msk [vmem:[%s4754_s12 + $0x40] sm:$0xf] %vm3465_vm3, %v3225_v59  ;;  %v2837_v3 = vmul.f32 %v5107_v4, %v2577_v63  ;;  %v2901_v5 = vmul.f32 %v5107_v4, %v2641_v0 }
 0x120   : > { %3546 = vst.msk [vmem:[%s4754_s12 + $0x140] sm:$0xf] %vm3465_vm3, %v3289_v60  ;;  %v2710_v6 = vmul.f32 %v5107_v4, %v2450_v1  ;;  %v2774_v7 = vmul.f32 %v5107_v4, %v2514_v2  ;;  %v1899_v8 = vpop.f32.mrf.mxu2  ;;  %v2059_v9 = vpop.f32.mrf.mxu3 }
 0x121   : > { %v3097_v12 = vadd.f32 %v5092_v49, %v2837_v3  ;;  %v3161_v13 = vadd.f32 %v5092_v49, %v2901_v5  ;;  %v1900_v14 = vadd.f32 %v5085_v46, %v1899_v8  ;;  %v2060_v15 = vadd.f32 %v5085_v46, %v2059_v9  ;;  %v1582_v16 = vpop.f32.mrf.mxu0  ;;  %v1742_v17 = vpop.f32.mrf.mxu1  ;;  %v4451_v9 = vld [vmem:[%s4650_s28 + $0x90] sm:$0xff] }
 0x122   : > { %v2970_v20 = vadd.f32 %v5092_v49, %v2710_v6  ;;  %v3034_v21 = vadd.f32 %v5092_v49, %v2774_v7  ;;  %v1583_v22 = vadd.f32 %v5085_v46, %v1582_v16  ;;  %v1743_v23 = vadd.f32 %v5085_v46, %v1742_v17  ;;  %v4515_v17 = vld [vmem:[%s4650_s28 + $0x290] sm:$0xff] }
 0x123   : > { %v3353_v24 = vpack.c.bf16 %v3097_v12, %v3097_v12  ;;  %v3417_v25 = vpack.c.bf16 %v3161_v13, %v3161_v13  ;;  %v2322_v26 = vmul.f32 0.2, %v1900_v14  ;;  %v2386_v27 = vmul.f32 0.2, %v2060_v15 }
 0x124   : > { %v3226_v28 = vpack.c.bf16 %v2970_v20, %v2970_v20  ;;  %v3290_v29 = vpack.c.bf16 %v3034_v21, %v3034_v21  ;;  %v2195_v30 = vmul.f32 0.2, %v1583_v22  ;;  %v2259_v31 = vmul.f32 0.2, %v1743_v23  ;;  %4320 = vmatmul.msk.bf16.gmra.mxu0 %vm1136_vm2, %v4450_v10  ;;  %4352 = vmatmul.msk.bf16.gmra.mxu1 %vm1136_vm2, %v4482_v11  ;;  %v4483_v10 = vld [vmem:[%s4650_s28 + $0x190] sm:$0xff] }
 0x125   : > { %3610 = vst.msk [vmem:[%s4754_s12 + $0x240] sm:$0xf] %vm3465_vm3, %v3353_v24  ;;  %v2578_v32 = vmax.f32 %v1900_v14, %v2322_v26  ;;  %v2642_v33 = vmax.f32 %v2060_v15, %v2386_v27  ;;  %4384 = vmatmul.msk.bf16.gmra.mxu2 %vm1136_vm2, %v4514_v18  ;;  %4416 = vmatmul.msk.bf16.gmra.mxu3 %vm1136_vm2, %v4546_v19  ;;  %v4547_v18 = vld [vmem:[%s4650_s28 + $0x390] sm:$0xff] }
 0x126   : > { %3674 = vst.msk [vmem:[%s4754_s12 + $0x340] sm:$0xf] %vm3465_vm3, %v3417_v25  ;;  %v2451_v34 = vmax.f32 %v1583_v22, %v2195_v30  ;;  %v2515_v35 = vmax.f32 %v1743_v23, %v2259_v31 }
 0x127   : > { %3483 = vst.msk [vmem:[%s4754_s12 + $0x44] sm:$0xf] %vm3465_vm3, %v3226_v28  ;;  %v2838_v39 = vmul.f32 %v5107_v4, %v2578_v32  ;;  %v2902_v36 = vmul.f32 %v5107_v4, %v2642_v33 }
 0x128   : > { %3547 = vst.msk [vmem:[%s4754_s12 + $0x144] sm:$0xf] %vm3465_vm3, %v3290_v29  ;;  %v2711_v37 = vmul.f32 %v5107_v4, %v2451_v34  ;;  %v2775_v38 = vmul.f32 %v5107_v4, %v2515_v35  ;;  %v1902_v40 = vpop.f32.mrf.mxu2  ;;  %v2062_v41 = vpop.f32.mrf.mxu3 }
 0x129   : > { %v3098_v42 = vadd.f32 %v5092_v49, %v2838_v39  ;;  %v3162_v43 = vadd.f32 %v5092_v49, %v2902_v36  ;;  %v1903_v44 = vadd.f32 %v5085_v46, %v1902_v40  ;;  %v2063_v45 = vadd.f32 %v5085_v46, %v2062_v41  ;;  %v1584_v47 = vpop.f32.mrf.mxu0  ;;  %v1744_v48 = vpop.f32.mrf.mxu1 }
 0x12a   : > { %v2971_v50 = vadd.f32 %v5092_v49, %v2711_v37  ;;  %v3035_v51 = vadd.f32 %v5092_v49, %v2775_v38  ;;  %v1585_v52 = vadd.f32 %v5085_v46, %v1584_v47  ;;  %v1745_v53 = vadd.f32 %v5085_v46, %v1744_v48 }
 0x12b   : > { %v3354_v54 = vpack.c.bf16 %v3098_v42, %v3098_v42  ;;  %v3418_v55 = vpack.c.bf16 %v3162_v43, %v3162_v43  ;;  %v2323_v56 = vmul.f32 0.2, %v1903_v44  ;;  %v2387_v57 = vmul.f32 0.2, %v2063_v45 }
 0x12c   : > { %v3227_v58 = vpack.c.bf16 %v2971_v50, %v2971_v50  ;;  %v3291_v59 = vpack.c.bf16 %v3035_v51, %v3035_v51  ;;  %v2196_v60 = vmul.f32 0.2, %v1585_v52  ;;  %v2260_v61 = vmul.f32 0.2, %v1745_v53 }
 0x12d   : > { %3611 = vst.msk [vmem:[%s4754_s12 + $0x244] sm:$0xf] %vm3465_vm3, %v3354_v54  ;;  %v2579_v62 = vmax.f32 %v1903_v44, %v2323_v56  ;;  %v2643_v63 = vmax.f32 %v2063_v45, %v2387_v57 }
 0x12e   : > { %3675 = vst.msk [vmem:[%s4754_s12 + $0x344] sm:$0xf] %vm3465_vm3, %v3418_v55  ;;  %v2452_v0 = vmax.f32 %v1585_v52, %v2196_v60  ;;  %v2516_v1 = vmax.f32 %v1745_v53, %v2260_v61 }
 0x12f   : > { %3484 = vst.msk [vmem:[%s4754_s12 + $0x48] sm:$0xf] %vm3465_vm3, %v3227_v58  ;;  %v2839_v2 = vmul.f32 %v5107_v4, %v2579_v62  ;;  %v2903_v3 = vmul.f32 %v5107_v4, %v2643_v63 }
 0x130   : > { %3548 = vst.msk [vmem:[%s4754_s12 + $0x148] sm:$0xf] %vm3465_vm3, %v3291_v59  ;;  %v2712_v5 = vmul.f32 %v5107_v4, %v2452_v0  ;;  %v2776_v6 = vmul.f32 %v5107_v4, %v2516_v1  ;;  %v1904_v7 = vpop.f32.mrf.mxu2  ;;  %v2064_v8 = vpop.f32.mrf.mxu3 }
 0x131   : > { %v3099_v11 = vadd.f32 %v5092_v49, %v2839_v2  ;;  %v3163_v12 = vadd.f32 %v5092_v49, %v2903_v3  ;;  %v1905_v13 = vadd.f32 %v5085_v46, %v1904_v7  ;;  %v2065_v14 = vadd.f32 %v5085_v46, %v2064_v8  ;;  %v1587_v15 = vpop.f32.mrf.mxu0  ;;  %v1747_v16 = vpop.f32.mrf.mxu1  ;;  %v4452_v8 = vld [vmem:[%s4650_s28 + $0x98] sm:$0xff] }
 0x132   : > { %v2972_v19 = vadd.f32 %v5092_v49, %v2712_v5  ;;  %v3036_v20 = vadd.f32 %v5092_v49, %v2776_v6  ;;  %v1588_v21 = vadd.f32 %v5085_v46, %v1587_v15  ;;  %v1748_v22 = vadd.f32 %v5085_v46, %v1747_v16  ;;  %v4516_v16 = vld [vmem:[%s4650_s28 + $0x298] sm:$0xff] }
 0x133   : > { %v3355_v23 = vpack.c.bf16 %v3099_v11, %v3099_v11  ;;  %v3419_v24 = vpack.c.bf16 %v3163_v12, %v3163_v12  ;;  %v2324_v25 = vmul.f32 0.2, %v1905_v13  ;;  %v2388_v26 = vmul.f32 0.2, %v2065_v14 }
 0x134   : > { %v3228_v27 = vpack.c.bf16 %v2972_v19, %v2972_v19  ;;  %v3292_v28 = vpack.c.bf16 %v3036_v20, %v3036_v20  ;;  %v2197_v29 = vmul.f32 0.2, %v1588_v21  ;;  %v2261_v30 = vmul.f32 0.2, %v1748_v22  ;;  %4321 = vmatmul.msk.bf16.gmra.mxu0 %vm1136_vm2, %v4451_v9  ;;  %4353 = vmatmul.msk.bf16.gmra.mxu1 %vm1136_vm2, %v4483_v10  ;;  %v4484_v9 = vld [vmem:[%s4650_s28 + $0x198] sm:$0xff] }
 0x135   : > { %3612 = vst.msk [vmem:[%s4754_s12 + $0x248] sm:$0xf] %vm3465_vm3, %v3355_v23  ;;  %v2580_v31 = vmax.f32 %v1905_v13, %v2324_v25  ;;  %v2644_v32 = vmax.f32 %v2065_v14, %v2388_v26  ;;  %4385 = vmatmul.msk.bf16.gmra.mxu2 %vm1136_vm2, %v4515_v17  ;;  %4417 = vmatmul.msk.bf16.gmra.mxu3 %vm1136_vm2, %v4547_v18  ;;  %v4548_v17 = vld [vmem:[%s4650_s28 + $0x398] sm:$0xff] }
 0x136   : > { %3676 = vst.msk [vmem:[%s4754_s12 + $0x348] sm:$0xf] %vm3465_vm3, %v3419_v24  ;;  %v2453_v33 = vmax.f32 %v1588_v21, %v2197_v29  ;;  %v2517_v34 = vmax.f32 %v1748_v22, %v2261_v30 }
 0x137   : > { %3485 = vst.msk [vmem:[%s4754_s12 + $0x4c] sm:$0xf] %vm3465_vm3, %v3228_v27  ;;  %v2840_v35 = vmul.f32 %v5107_v4, %v2580_v31  ;;  %v2904_v39 = vmul.f32 %v5107_v4, %v2644_v32 }
 0x138   : > { %3549 = vst.msk [vmem:[%s4754_s12 + $0x14c] sm:$0xf] %vm3465_vm3, %v3292_v28  ;;  %v2713_v36 = vmul.f32 %v5107_v4, %v2453_v33  ;;  %v2777_v37 = vmul.f32 %v5107_v4, %v2517_v34  ;;  %v1907_v38 = vpop.f32.mrf.mxu2  ;;  %v2067_v40 = vpop.f32.mrf.mxu3 }
 0x139   : > { %v3100_v41 = vadd.f32 %v5092_v49, %v2840_v35  ;;  %v3164_v42 = vadd.f32 %v5092_v49, %v2904_v39  ;;  %v1908_v43 = vadd.f32 %v5085_v46, %v1907_v38  ;;  %v2068_v44 = vadd.f32 %v5085_v46, %v2067_v40  ;;  %v1589_v45 = vpop.f32.mrf.mxu0  ;;  %v1749_v47 = vpop.f32.mrf.mxu1 }
 0x13a   : > { %v2973_v48 = vadd.f32 %v5092_v49, %v2713_v36  ;;  %v3037_v50 = vadd.f32 %v5092_v49, %v2777_v37  ;;  %v1590_v51 = vadd.f32 %v5085_v46, %v1589_v45  ;;  %v1750_v52 = vadd.f32 %v5085_v46, %v1749_v47 }
 0x13b   : > { %v3356_v53 = vpack.c.bf16 %v3100_v41, %v3100_v41  ;;  %v3420_v54 = vpack.c.bf16 %v3164_v42, %v3164_v42  ;;  %v2325_v55 = vmul.f32 0.2, %v1908_v43  ;;  %v2389_v56 = vmul.f32 0.2, %v2068_v44 }
 0x13c   : > { %v3229_v57 = vpack.c.bf16 %v2973_v48, %v2973_v48  ;;  %v3293_v58 = vpack.c.bf16 %v3037_v50, %v3037_v50  ;;  %v2198_v59 = vmul.f32 0.2, %v1590_v51  ;;  %v2262_v60 = vmul.f32 0.2, %v1750_v52 }
 0x13d   : > { %3613 = vst.msk [vmem:[%s4754_s12 + $0x24c] sm:$0xf] %vm3465_vm3, %v3356_v53  ;;  %v2581_v61 = vmax.f32 %v1908_v43, %v2325_v55  ;;  %v2645_v62 = vmax.f32 %v2068_v44, %v2389_v56 }
 0x13e   : > { %3677 = vst.msk [vmem:[%s4754_s12 + $0x34c] sm:$0xf] %vm3465_vm3, %v3420_v54  ;;  %v2454_v63 = vmax.f32 %v1590_v51, %v2198_v59  ;;  %v2518_v0 = vmax.f32 %v1750_v52, %v2262_v60 }
 0x13f   : > { %3486 = vst.msk [vmem:[%s4754_s12 + $0x50] sm:$0xf] %vm3465_vm3, %v3229_v57  ;;  %v2841_v1 = vmul.f32 %v5107_v4, %v2581_v61  ;;  %v2905_v2 = vmul.f32 %v5107_v4, %v2645_v62 }
 0x140   : > { %3550 = vst.msk [vmem:[%s4754_s12 + $0x150] sm:$0xf] %vm3465_vm3, %v3293_v58  ;;  %v2714_v3 = vmul.f32 %v5107_v4, %v2454_v63  ;;  %v2778_v5 = vmul.f32 %v5107_v4, %v2518_v0  ;;  %v1909_v6 = vpop.f32.mrf.mxu2  ;;  %v2069_v7 = vpop.f32.mrf.mxu3 }
 0x141   : > { %v3101_v10 = vadd.f32 %v5092_v49, %v2841_v1  ;;  %v3165_v11 = vadd.f32 %v5092_v49, %v2905_v2  ;;  %v1910_v12 = vadd.f32 %v5085_v46, %v1909_v6  ;;  %v2070_v13 = vadd.f32 %v5085_v46, %v2069_v7  ;;  %v1592_v14 = vpop.f32.mrf.mxu0  ;;  %v1752_v15 = vpop.f32.mrf.mxu1  ;;  %v4453_v7 = vld [vmem:[%s4650_s28 + $0xa0] sm:$0xff] }
 0x142   : > { %v2974_v18 = vadd.f32 %v5092_v49, %v2714_v3  ;;  %v3038_v19 = vadd.f32 %v5092_v49, %v2778_v5  ;;  %v1593_v20 = vadd.f32 %v5085_v46, %v1592_v14  ;;  %v1753_v21 = vadd.f32 %v5085_v46, %v1752_v15  ;;  %v4517_v15 = vld [vmem:[%s4650_s28 + $0x2a0] sm:$0xff] }
 0x143   : > { %v3357_v22 = vpack.c.bf16 %v3101_v10, %v3101_v10  ;;  %v3421_v23 = vpack.c.bf16 %v3165_v11, %v3165_v11  ;;  %v2326_v24 = vmul.f32 0.2, %v1910_v12  ;;  %v2390_v25 = vmul.f32 0.2, %v2070_v13 }
 0x144   : > { %v3230_v26 = vpack.c.bf16 %v2974_v18, %v2974_v18  ;;  %v3294_v27 = vpack.c.bf16 %v3038_v19, %v3038_v19  ;;  %v2199_v28 = vmul.f32 0.2, %v1593_v20  ;;  %v2263_v29 = vmul.f32 0.2, %v1753_v21  ;;  %4322 = vmatmul.msk.bf16.gmra.mxu0 %vm1136_vm2, %v4452_v8  ;;  %4354 = vmatmul.msk.bf16.gmra.mxu1 %vm1136_vm2, %v4484_v9  ;;  %v4485_v8 = vld [vmem:[%s4650_s28 + $0x1a0] sm:$0xff] }
 0x145   : > { %3614 = vst.msk [vmem:[%s4754_s12 + $0x250] sm:$0xf] %vm3465_vm3, %v3357_v22  ;;  %v2582_v30 = vmax.f32 %v1910_v12, %v2326_v24  ;;  %v2646_v31 = vmax.f32 %v2070_v13, %v2390_v25  ;;  %4386 = vmatmul.msk.bf16.gmra.mxu2 %vm1136_vm2, %v4516_v16  ;;  %4418 = vmatmul.msk.bf16.gmra.mxu3 %vm1136_vm2, %v4548_v17  ;;  %v4549_v16 = vld [vmem:[%s4650_s28 + $0x3a0] sm:$0xff] }
 0x146   : > { %3678 = vst.msk [vmem:[%s4754_s12 + $0x350] sm:$0xf] %vm3465_vm3, %v3421_v23  ;;  %v2455_v32 = vmax.f32 %v1593_v20, %v2199_v28  ;;  %v2519_v33 = vmax.f32 %v1753_v21, %v2263_v29 }
 0x147   : > { %3487 = vst.msk [vmem:[%s4754_s12 + $0x54] sm:$0xf] %vm3465_vm3, %v3230_v26  ;;  %v2842_v34 = vmul.f32 %v5107_v4, %v2582_v30  ;;  %v2906_v35 = vmul.f32 %v5107_v4, %v2646_v31 }
 0x148   : > { %3551 = vst.msk [vmem:[%s4754_s12 + $0x154] sm:$0xf] %vm3465_vm3, %v3294_v27  ;;  %v2715_v39 = vmul.f32 %v5107_v4, %v2455_v32  ;;  %v2779_v36 = vmul.f32 %v5107_v4, %v2519_v33  ;;  %v1912_v37 = vpop.f32.mrf.mxu2  ;;  %v2072_v38 = vpop.f32.mrf.mxu3 }
 0x149   : > { %v3102_v40 = vadd.f32 %v5092_v49, %v2842_v34  ;;  %v3166_v41 = vadd.f32 %v5092_v49, %v2906_v35  ;;  %v1913_v42 = vadd.f32 %v5085_v46, %v1912_v37  ;;  %v2073_v43 = vadd.f32 %v5085_v46, %v2072_v38  ;;  %v1594_v44 = vpop.f32.mrf.mxu0  ;;  %v1754_v45 = vpop.f32.mrf.mxu1 }
 0x14a   : > { %v2975_v47 = vadd.f32 %v5092_v49, %v2715_v39  ;;  %v3039_v48 = vadd.f32 %v5092_v49, %v2779_v36  ;;  %v1595_v50 = vadd.f32 %v5085_v46, %v1594_v44  ;;  %v1755_v51 = vadd.f32 %v5085_v46, %v1754_v45 }
 0x14b   : > { %v3358_v52 = vpack.c.bf16 %v3102_v40, %v3102_v40  ;;  %v3422_v53 = vpack.c.bf16 %v3166_v41, %v3166_v41  ;;  %v2327_v54 = vmul.f32 0.2, %v1913_v42  ;;  %v2391_v55 = vmul.f32 0.2, %v2073_v43 }
 0x14c   : > { %v3231_v56 = vpack.c.bf16 %v2975_v47, %v2975_v47  ;;  %v3295_v57 = vpack.c.bf16 %v3039_v48, %v3039_v48  ;;  %v2200_v58 = vmul.f32 0.2, %v1595_v50  ;;  %v2264_v59 = vmul.f32 0.2, %v1755_v51 }
 0x14d   : > { %3615 = vst.msk [vmem:[%s4754_s12 + $0x254] sm:$0xf] %vm3465_vm3, %v3358_v52  ;;  %v2583_v60 = vmax.f32 %v1913_v42, %v2327_v54  ;;  %v2647_v61 = vmax.f32 %v2073_v43, %v2391_v55 }
 0x14e   : > { %3679 = vst.msk [vmem:[%s4754_s12 + $0x354] sm:$0xf] %vm3465_vm3, %v3422_v53  ;;  %v2456_v62 = vmax.f32 %v1595_v50, %v2200_v58  ;;  %v2520_v63 = vmax.f32 %v1755_v51, %v2264_v59 }
 0x14f   : > { %3488 = vst.msk [vmem:[%s4754_s12 + $0x58] sm:$0xf] %vm3465_vm3, %v3231_v56  ;;  %v2843_v0 = vmul.f32 %v5107_v4, %v2583_v60  ;;  %v2907_v1 = vmul.f32 %v5107_v4, %v2647_v61 }
 0x150   : > { %3552 = vst.msk [vmem:[%s4754_s12 + $0x158] sm:$0xf] %vm3465_vm3, %v3295_v57  ;;  %v2716_v2 = vmul.f32 %v5107_v4, %v2456_v62  ;;  %v2780_v3 = vmul.f32 %v5107_v4, %v2520_v63  ;;  %v1914_v5 = vpop.f32.mrf.mxu2  ;;  %v2074_v6 = vpop.f32.mrf.mxu3 }
 0x151   : > { %v3103_v9 = vadd.f32 %v5092_v49, %v2843_v0  ;;  %v3167_v10 = vadd.f32 %v5092_v49, %v2907_v1  ;;  %v1915_v11 = vadd.f32 %v5085_v46, %v1914_v5  ;;  %v2075_v12 = vadd.f32 %v5085_v46, %v2074_v6  ;;  %v1597_v13 = vpop.f32.mrf.mxu0  ;;  %v1757_v14 = vpop.f32.mrf.mxu1  ;;  %v4454_v6 = vld [vmem:[%s4650_s28 + $0xa8] sm:$0xff] }
 0x152   : > { %v2976_v17 = vadd.f32 %v5092_v49, %v2716_v2  ;;  %v3040_v18 = vadd.f32 %v5092_v49, %v2780_v3  ;;  %v1598_v19 = vadd.f32 %v5085_v46, %v1597_v13  ;;  %v1758_v20 = vadd.f32 %v5085_v46, %v1757_v14  ;;  %v4518_v14 = vld [vmem:[%s4650_s28 + $0x2a8] sm:$0xff] }
 0x153   : > { %v3359_v21 = vpack.c.bf16 %v3103_v9, %v3103_v9  ;;  %v3423_v22 = vpack.c.bf16 %v3167_v10, %v3167_v10  ;;  %v2328_v23 = vmul.f32 0.2, %v1915_v11  ;;  %v2392_v24 = vmul.f32 0.2, %v2075_v12 }
 0x154   : > { %v3232_v25 = vpack.c.bf16 %v2976_v17, %v2976_v17  ;;  %v3296_v26 = vpack.c.bf16 %v3040_v18, %v3040_v18  ;;  %v2201_v27 = vmul.f32 0.2, %v1598_v19  ;;  %v2265_v28 = vmul.f32 0.2, %v1758_v20  ;;  %4323 = vmatmul.msk.bf16.gmra.mxu0 %vm1136_vm2, %v4453_v7  ;;  %4355 = vmatmul.msk.bf16.gmra.mxu1 %vm1136_vm2, %v4485_v8  ;;  %v4486_v7 = vld [vmem:[%s4650_s28 + $0x1a8] sm:$0xff] }
 0x155   : > { %3616 = vst.msk [vmem:[%s4754_s12 + $0x258] sm:$0xf] %vm3465_vm3, %v3359_v21  ;;  %v2584_v29 = vmax.f32 %v1915_v11, %v2328_v23  ;;  %v2648_v30 = vmax.f32 %v2075_v12, %v2392_v24  ;;  %4387 = vmatmul.msk.bf16.gmra.mxu2 %vm1136_vm2, %v4517_v15  ;;  %4419 = vmatmul.msk.bf16.gmra.mxu3 %vm1136_vm2, %v4549_v16  ;;  %v4550_v15 = vld [vmem:[%s4650_s28 + $0x3a8] sm:$0xff] }
 0x156   : > { %3680 = vst.msk [vmem:[%s4754_s12 + $0x358] sm:$0xf] %vm3465_vm3, %v3423_v22  ;;  %v2457_v31 = vmax.f32 %v1598_v19, %v2201_v27  ;;  %v2521_v32 = vmax.f32 %v1758_v20, %v2265_v28 }
 0x157   : > { %3489 = vst.msk [vmem:[%s4754_s12 + $0x5c] sm:$0xf] %vm3465_vm3, %v3232_v25  ;;  %v2844_v33 = vmul.f32 %v5107_v4, %v2584_v29  ;;  %v2908_v34 = vmul.f32 %v5107_v4, %v2648_v30 }
 0x158   : > { %3553 = vst.msk [vmem:[%s4754_s12 + $0x15c] sm:$0xf] %vm3465_vm3, %v3296_v26  ;;  %v2717_v35 = vmul.f32 %v5107_v4, %v2457_v31  ;;  %v2781_v39 = vmul.f32 %v5107_v4, %v2521_v32  ;;  %v1917_v36 = vpop.f32.mrf.mxu2  ;;  %v2077_v37 = vpop.f32.mrf.mxu3 }
 0x159   : > { %v3104_v38 = vadd.f32 %v5092_v49, %v2844_v33  ;;  %v3168_v40 = vadd.f32 %v5092_v49, %v2908_v34  ;;  %v1918_v41 = vadd.f32 %v5085_v46, %v1917_v36  ;;  %v2078_v42 = vadd.f32 %v5085_v46, %v2077_v37  ;;  %v1599_v43 = vpop.f32.mrf.mxu0  ;;  %v1759_v44 = vpop.f32.mrf.mxu1 }
 0x15a   : > { %v2977_v45 = vadd.f32 %v5092_v49, %v2717_v35  ;;  %v3041_v47 = vadd.f32 %v5092_v49, %v2781_v39  ;;  %v1600_v48 = vadd.f32 %v5085_v46, %v1599_v43  ;;  %v1760_v50 = vadd.f32 %v5085_v46, %v1759_v44 }
 0x15b   : > { %v3360_v51 = vpack.c.bf16 %v3104_v38, %v3104_v38  ;;  %v3424_v52 = vpack.c.bf16 %v3168_v40, %v3168_v40  ;;  %v2329_v53 = vmul.f32 0.2, %v1918_v41  ;;  %v2393_v54 = vmul.f32 0.2, %v2078_v42 }
 0x15c   : > { %v3233_v55 = vpack.c.bf16 %v2977_v45, %v2977_v45  ;;  %v3297_v56 = vpack.c.bf16 %v3041_v47, %v3041_v47  ;;  %v2202_v57 = vmul.f32 0.2, %v1600_v48  ;;  %v2266_v58 = vmul.f32 0.2, %v1760_v50 }
 0x15d   : > { %3617 = vst.msk [vmem:[%s4754_s12 + $0x25c] sm:$0xf] %vm3465_vm3, %v3360_v51  ;;  %v2585_v59 = vmax.f32 %v1918_v41, %v2329_v53  ;;  %v2649_v60 = vmax.f32 %v2078_v42, %v2393_v54 }
 0x15e   : > { %3681 = vst.msk [vmem:[%s4754_s12 + $0x35c] sm:$0xf] %vm3465_vm3, %v3424_v52  ;;  %v2458_v61 = vmax.f32 %v1600_v48, %v2202_v57  ;;  %v2522_v62 = vmax.f32 %v1760_v50, %v2266_v58 }
 0x15f   : > { %3490 = vst.msk [vmem:[%s4754_s12 + $0x60] sm:$0xf] %vm3465_vm3, %v3233_v55  ;;  %v2845_v63 = vmul.f32 %v5107_v4, %v2585_v59  ;;  %v2909_v0 = vmul.f32 %v5107_v4, %v2649_v60 }
 0x160   : > { %3554 = vst.msk [vmem:[%s4754_s12 + $0x160] sm:$0xf] %vm3465_vm3, %v3297_v56  ;;  %v2718_v1 = vmul.f32 %v5107_v4, %v2458_v61  ;;  %v2782_v2 = vmul.f32 %v5107_v4, %v2522_v62  ;;  %v1919_v3 = vpop.f32.mrf.mxu2  ;;  %v2079_v5 = vpop.f32.mrf.mxu3 }
 0x161   : > { %v3105_v8 = vadd.f32 %v5092_v49, %v2845_v63  ;;  %v3169_v9 = vadd.f32 %v5092_v49, %v2909_v0  ;;  %v1920_v10 = vadd.f32 %v5085_v46, %v1919_v3  ;;  %v2080_v11 = vadd.f32 %v5085_v46, %v2079_v5  ;;  %v1602_v12 = vpop.f32.mrf.mxu0  ;;  %v1762_v13 = vpop.f32.mrf.mxu1  ;;  %v4455_v5 = vld [vmem:[%s4650_s28 + $0xb0] sm:$0xff] }
 0x162   : > { %v2978_v16 = vadd.f32 %v5092_v49, %v2718_v1  ;;  %v3042_v17 = vadd.f32 %v5092_v49, %v2782_v2  ;;  %v1603_v18 = vadd.f32 %v5085_v46, %v1602_v12  ;;  %v1763_v19 = vadd.f32 %v5085_v46, %v1762_v13  ;;  %v4519_v13 = vld [vmem:[%s4650_s28 + $0x2b0] sm:$0xff] }
 0x163   : > { %v3361_v20 = vpack.c.bf16 %v3105_v8, %v3105_v8  ;;  %v3425_v21 = vpack.c.bf16 %v3169_v9, %v3169_v9  ;;  %v2330_v22 = vmul.f32 0.2, %v1920_v10  ;;  %v2394_v23 = vmul.f32 0.2, %v2080_v11 }
 0x164   : > { %v3234_v24 = vpack.c.bf16 %v2978_v16, %v2978_v16  ;;  %v3298_v25 = vpack.c.bf16 %v3042_v17, %v3042_v17  ;;  %v2203_v26 = vmul.f32 0.2, %v1603_v18  ;;  %v2267_v27 = vmul.f32 0.2, %v1763_v19  ;;  %4324 = vmatmul.msk.bf16.gmra.mxu0 %vm1136_vm2, %v4454_v6  ;;  %4356 = vmatmul.msk.bf16.gmra.mxu1 %vm1136_vm2, %v4486_v7  ;;  %v4487_v6 = vld [vmem:[%s4650_s28 + $0x1b0] sm:$0xff] }
 0x165   : > { %3618 = vst.msk [vmem:[%s4754_s12 + $0x260] sm:$0xf] %vm3465_vm3, %v3361_v20  ;;  %v2586_v28 = vmax.f32 %v1920_v10, %v2330_v22  ;;  %v2650_v29 = vmax.f32 %v2080_v11, %v2394_v23  ;;  %4388 = vmatmul.msk.bf16.gmra.mxu2 %vm1136_vm2, %v4518_v14  ;;  %4420 = vmatmul.msk.bf16.gmra.mxu3 %vm1136_vm2, %v4550_v15  ;;  %v4551_v14 = vld [vmem:[%s4650_s28 + $0x3b0] sm:$0xff] }
 0x166   : > { %3682 = vst.msk [vmem:[%s4754_s12 + $0x360] sm:$0xf] %vm3465_vm3, %v3425_v21  ;;  %v2459_v30 = vmax.f32 %v1603_v18, %v2203_v26  ;;  %v2523_v31 = vmax.f32 %v1763_v19, %v2267_v27 }
 0x167   : > { %3491 = vst.msk [vmem:[%s4754_s12 + $0x64] sm:$0xf] %vm3465_vm3, %v3234_v24  ;;  %v2846_v32 = vmul.f32 %v5107_v4, %v2586_v28  ;;  %v2910_v33 = vmul.f32 %v5107_v4, %v2650_v29 }
 0x168   : > { %3555 = vst.msk [vmem:[%s4754_s12 + $0x164] sm:$0xf] %vm3465_vm3, %v3298_v25  ;;  %v2719_v34 = vmul.f32 %v5107_v4, %v2459_v30  ;;  %v2783_v35 = vmul.f32 %v5107_v4, %v2523_v31  ;;  %v1922_v39 = vpop.f32.mrf.mxu2  ;;  %v2082_v36 = vpop.f32.mrf.mxu3 }
 0x169   : > { %v3106_v37 = vadd.f32 %v5092_v49, %v2846_v32  ;;  %v3170_v38 = vadd.f32 %v5092_v49, %v2910_v33  ;;  %v1923_v40 = vadd.f32 %v5085_v46, %v1922_v39  ;;  %v2083_v41 = vadd.f32 %v5085_v46, %v2082_v36  ;;  %v1604_v42 = vpop.f32.mrf.mxu0  ;;  %v1764_v43 = vpop.f32.mrf.mxu1 }
 0x16a   : > { %v2979_v44 = vadd.f32 %v5092_v49, %v2719_v34  ;;  %v3043_v45 = vadd.f32 %v5092_v49, %v2783_v35  ;;  %v1605_v47 = vadd.f32 %v5085_v46, %v1604_v42  ;;  %v1765_v48 = vadd.f32 %v5085_v46, %v1764_v43 }
 0x16b   : > { %v3362_v50 = vpack.c.bf16 %v3106_v37, %v3106_v37  ;;  %v3426_v51 = vpack.c.bf16 %v3170_v38, %v3170_v38  ;;  %v2331_v52 = vmul.f32 0.2, %v1923_v40  ;;  %v2395_v53 = vmul.f32 0.2, %v2083_v41 }
 0x16c   : > { %v3235_v54 = vpack.c.bf16 %v2979_v44, %v2979_v44  ;;  %v3299_v55 = vpack.c.bf16 %v3043_v45, %v3043_v45  ;;  %v2204_v56 = vmul.f32 0.2, %v1605_v47  ;;  %v2268_v57 = vmul.f32 0.2, %v1765_v48 }
 0x16d   : > { %3619 = vst.msk [vmem:[%s4754_s12 + $0x264] sm:$0xf] %vm3465_vm3, %v3362_v50  ;;  %v2587_v58 = vmax.f32 %v1923_v40, %v2331_v52  ;;  %v2651_v59 = vmax.f32 %v2083_v41, %v2395_v53 }
 0x16e   : > { %3683 = vst.msk [vmem:[%s4754_s12 + $0x364] sm:$0xf] %vm3465_vm3, %v3426_v51  ;;  %v2460_v60 = vmax.f32 %v1605_v47, %v2204_v56  ;;  %v2524_v61 = vmax.f32 %v1765_v48, %v2268_v57 }
 0x16f   : > { %3492 = vst.msk [vmem:[%s4754_s12 + $0x68] sm:$0xf] %vm3465_vm3, %v3235_v54  ;;  %v2847_v62 = vmul.f32 %v5107_v4, %v2587_v58  ;;  %v2911_v63 = vmul.f32 %v5107_v4, %v2651_v59 }
 0x170   : > { %3556 = vst.msk [vmem:[%s4754_s12 + $0x168] sm:$0xf] %vm3465_vm3, %v3299_v55  ;;  %v2720_v0 = vmul.f32 %v5107_v4, %v2460_v60  ;;  %v2784_v1 = vmul.f32 %v5107_v4, %v2524_v61  ;;  %v1924_v2 = vpop.f32.mrf.mxu2  ;;  %v2084_v3 = vpop.f32.mrf.mxu3 }
 0x171   : > { %v3107_v7 = vadd.f32 %v5092_v49, %v2847_v62  ;;  %v3171_v8 = vadd.f32 %v5092_v49, %v2911_v63  ;;  %v1925_v9 = vadd.f32 %v5085_v46, %v1924_v2  ;;  %v2085_v10 = vadd.f32 %v5085_v46, %v2084_v3  ;;  %v1607_v11 = vpop.f32.mrf.mxu0  ;;  %v1767_v12 = vpop.f32.mrf.mxu1  ;;  %v4488_v2 = vld [vmem:[%s4650_s28 + $0x1b8] sm:$0xff]  ;;  %v5456_v3 = vld [vmem:[%s6277_s4] ss:$0 sm:$0xff] }
 0x172   : > { %v2980_v15 = vadd.f32 %v5092_v49, %v2720_v0  ;;  %v3044_v16 = vadd.f32 %v5092_v49, %v2784_v1  ;;  %v1608_v17 = vadd.f32 %v5085_v46, %v1607_v11  ;;  %v1768_v18 = vadd.f32 %v5085_v46, %v1767_v12  ;;  %v4456_v1 = vld [vmem:[%s4650_s28 + $0xb8] sm:$0xff] }
 0x173   : > { %v3363_v19 = vpack.c.bf16 %v3107_v7, %v3107_v7  ;;  %v3427_v20 = vpack.c.bf16 %v3171_v8, %v3171_v8  ;;  %v2332_v21 = vmul.f32 0.2, %v1925_v9  ;;  %v2396_v22 = vmul.f32 0.2, %v2085_v10  ;;  %v5463_v7 = vld [vmem:[%s6275_s2] ss:$0 sm:$0xff] }
 0x174   : > { %v3236_v23 = vpack.c.bf16 %v2980_v15, %v2980_v15  ;;  %v3300_v24 = vpack.c.bf16 %v3044_v16, %v3044_v16  ;;  %v2205_v25 = vmul.f32 0.2, %v1608_v17  ;;  %v2269_v26 = vmul.f32 0.2, %v1768_v18  ;;  %4325 = vmatmul.msk.bf16.gmra.mxu0 %vm1136_vm2, %v4455_v5  ;;  %4357 = vmatmul.msk.bf16.gmra.mxu1 %vm1136_vm2, %v4487_v6  ;;  %v4520_v11 = vld [vmem:[%s4650_s28 + $0x2b8] sm:$0xff] }
 0x175   : > { %3620 = vst.msk [vmem:[%s4754_s12 + $0x268] sm:$0xf] %vm3465_vm3, %v3363_v19  ;;  %v2588_v27 = vmax.f32 %v1925_v9, %v2332_v21  ;;  %v2652_v28 = vmax.f32 %v2085_v10, %v2396_v22  ;;  %4389 = vmatmul.msk.bf16.gmra.mxu2 %vm1136_vm2, %v4519_v13  ;;  %4421 = vmatmul.msk.bf16.gmra.mxu3 %vm1136_vm2, %v4551_v14  ;;  %v4552_v12 = vld [vmem:[%s4650_s28 + $0x3b8] sm:$0xff] }
 0x176   : > { %3684 = vst.msk [vmem:[%s4754_s12 + $0x368] sm:$0xf] %vm3465_vm3, %v3427_v20  ;;  %v2461_v29 = vmax.f32 %v1608_v17, %v2205_v25  ;;  %v2525_v30 = vmax.f32 %v1768_v18, %v2269_v26 }
 0x177   : > { %3493 = vst.msk [vmem:[%s4754_s12 + $0x6c] sm:$0xf] %vm3465_vm3, %v3236_v23  ;;  %v2848_v31 = vmul.f32 %v5107_v4, %v2588_v27  ;;  %v2912_v32 = vmul.f32 %v5107_v4, %v2652_v28 }
 0x178   : > { %3557 = vst.msk [vmem:[%s4754_s12 + $0x16c] sm:$0xf] %vm3465_vm3, %v3300_v24  ;;  %v2721_v33 = vmul.f32 %v5107_v4, %v2461_v29  ;;  %v2785_v34 = vmul.f32 %v5107_v4, %v2525_v30  ;;  %v1927_v35 = vpop.f32.mrf.mxu2  ;;  %v2087_v39 = vpop.f32.mrf.mxu3  ;;  %v5486_v29 = vld [vmem:[%s6276_s3] ss:$0 sm:$0xff] }
 0x179   : > { %v3108_v36 = vadd.f32 %v5092_v49, %v2848_v31  ;;  %v3172_v37 = vadd.f32 %v5092_v49, %v2912_v32  ;;  %v1928_v38 = vadd.f32 %v5085_v46, %v1927_v35  ;;  %v2088_v40 = vadd.f32 %v5085_v46, %v2087_v39  ;;  %v1609_v41 = vpop.f32.mrf.mxu0  ;;  %v1769_v42 = vpop.f32.mrf.mxu1 }
 0x17a   : > { %v2981_v43 = vadd.f32 %v5092_v49, %v2721_v33  ;;  %v3045_v44 = vadd.f32 %v5092_v49, %v2785_v34  ;;  %v1610_v45 = vadd.f32 %v5085_v46, %v1609_v41  ;;  %v1770_v47 = vadd.f32 %v5085_v46, %v1769_v42 }
 0x17b   : > { %v3364_v48 = vpack.c.bf16 %v3108_v36, %v3108_v36  ;;  %v3428_v50 = vpack.c.bf16 %v3172_v37, %v3172_v37  ;;  %v2333_v51 = vmul.f32 0.2, %v1928_v38  ;;  %v2397_v52 = vmul.f32 0.2, %v2088_v40 }
 0x17c   : > { %v3237_v53 = vpack.c.bf16 %v2981_v43, %v2981_v43  ;;  %v3301_v54 = vpack.c.bf16 %v3045_v44, %v3045_v44  ;;  %v2206_v55 = vmul.f32 0.2, %v1610_v45  ;;  %v2270_v56 = vmul.f32 0.2, %v1770_v47 }
 0x17d   : > { %3621 = vst.msk [vmem:[%s4754_s12 + $0x26c] sm:$0xf] %vm3465_vm3, %v3364_v48  ;;  %v2589_v57 = vmax.f32 %v1928_v38, %v2333_v51  ;;  %v2653_v49 = vmax.f32 %v2088_v40, %v2397_v52 }
 0x17e   : > { %3685 = vst.msk [vmem:[%s4754_s12 + $0x36c] sm:$0xf] %vm3465_vm3, %v3428_v50  ;;  %v2462_v58 = vmax.f32 %v1610_v45, %v2206_v55  ;;  %v2526_v59 = vmax.f32 %v1770_v47, %v2270_v56 }
 0x17f   : > { %3494 = vst.msk [vmem:[%s4754_s12 + $0x70] sm:$0xf] %vm3465_vm3, %v3237_v53  ;;  %v2849_v46 = vmul.f32 %v5107_v4, %v2589_v57  ;;  %v2913_v60 = vmul.f32 %v5107_v4, %v2653_v49 }
 0x180   : > { %3558 = vst.msk [vmem:[%s4754_s12 + $0x170] sm:$0xf] %vm3465_vm3, %v3301_v54  ;;  %v2722_v61 = vmul.f32 %v5107_v4, %v2462_v58  ;;  %v2786_v62 = vmul.f32 %v5107_v4, %v2526_v59  ;;  %v1929_v63 = vpop.f32.mrf.mxu2  ;;  %v2089_v0 = vpop.f32.mrf.mxu3 }
 0x181   : > { %v3109_v5 = vadd.f32 %v5456_v3, %v2849_v46  ;;  %v3173_v6 = vadd.f32 %v5456_v3, %v2913_v60  ;;  %v1930_v4 = vadd.f32 %v5463_v7, %v1929_v63  ;;  %v2090_v8 = vadd.f32 %v5463_v7, %v2089_v0  ;;  %v1612_v9 = vpop.f32.mrf.mxu0  ;;  %v1772_v10 = vpop.f32.mrf.mxu1  ;;  %v4457_v0 = vld [vmem:[%s4650_s28 + $0xc0] sm:$0xff] }
 0x182   : > { %v2982_v13 = vadd.f32 %v5456_v3, %v2722_v61  ;;  %v3046_v14 = vadd.f32 %v5456_v3, %v2786_v62  ;;  %v1613_v15 = vadd.f32 %v5463_v7, %v1612_v9  ;;  %v1773_v16 = vadd.f32 %v5463_v7, %v1772_v10  ;;  %v4521_v10 = vld [vmem:[%s4650_s28 + $0x2c0] sm:$0xff] }
 0x183   : > { %v3365_v17 = vpack.c.bf16 %v3109_v5, %v3109_v5  ;;  %v3429_v18 = vpack.c.bf16 %v3173_v6, %v3173_v6  ;;  %v2334_v19 = vmul.f32 0.2, %v1930_v4  ;;  %v2398_v20 = vmul.f32 0.2, %v2090_v8 }
 0x184   : > { %v3238_v21 = vpack.c.bf16 %v2982_v13, %v2982_v13  ;;  %v3302_v22 = vpack.c.bf16 %v3046_v14, %v3046_v14  ;;  %v2207_v23 = vmul.f32 0.2, %v1613_v15  ;;  %v2271_v24 = vmul.f32 0.2, %v1773_v16  ;;  %4326 = vmatmul.msk.bf16.gmra.mxu0 %vm1136_vm2, %v4456_v1  ;;  %4358 = vmatmul.msk.bf16.gmra.mxu1 %vm1136_vm2, %v4488_v2  ;;  %v4489_v1 = vld [vmem:[%s4650_s28 + $0x1c0] sm:$0xff] }
 0x185   : > { %3622 = vst.msk [vmem:[%s4754_s12 + $0x270] sm:$0xf] %vm3465_vm3, %v3365_v17  ;;  %v2590_v25 = vmax.f32 %v1930_v4, %v2334_v19  ;;  %v2654_v26 = vmax.f32 %v2090_v8, %v2398_v20  ;;  %4390 = vmatmul.msk.bf16.gmra.mxu2 %vm1136_vm2, %v4520_v11  ;;  %4422 = vmatmul.msk.bf16.gmra.mxu3 %vm1136_vm2, %v4552_v12  ;;  %v4553_v11 = vld [vmem:[%s4650_s28 + $0x3c0] sm:$0xff] }
 0x186   : > { %3686 = vst.msk [vmem:[%s4754_s12 + $0x370] sm:$0xf] %vm3465_vm3, %v3429_v18  ;;  %v2463_v27 = vmax.f32 %v1613_v15, %v2207_v23  ;;  %v2527_v28 = vmax.f32 %v1773_v16, %v2271_v24 }
 0x187   : > { %3495 = vst.msk [vmem:[%s4754_s12 + $0x74] sm:$0xf] %vm3465_vm3, %v3238_v21  ;;  %v2850_v30 = vmul.f32 %v5486_v29, %v2590_v25  ;;  %v2914_v31 = vmul.f32 %v5486_v29, %v2654_v26 }
 0x188   : > { %3559 = vst.msk [vmem:[%s4754_s12 + $0x174] sm:$0xf] %vm3465_vm3, %v3302_v22  ;;  %v2723_v32 = vmul.f32 %v5486_v29, %v2463_v27  ;;  %v2787_v33 = vmul.f32 %v5486_v29, %v2527_v28  ;;  %v1932_v34 = vpop.f32.mrf.mxu2  ;;  %v2092_v35 = vpop.f32.mrf.mxu3 }
 0x189   : > { %v3110_v39 = vadd.f32 %v5456_v3, %v2850_v30  ;;  %v3174_v36 = vadd.f32 %v5456_v3, %v2914_v31  ;;  %v1933_v37 = vadd.f32 %v5463_v7, %v1932_v34  ;;  %v2093_v38 = vadd.f32 %v5463_v7, %v2092_v35  ;;  %v1614_v40 = vpop.f32.mrf.mxu0  ;;  %v1774_v41 = vpop.f32.mrf.mxu1 }
 0x18a   : > { %v2983_v42 = vadd.f32 %v5456_v3, %v2723_v32  ;;  %v3047_v43 = vadd.f32 %v5456_v3, %v2787_v33  ;;  %v1615_v44 = vadd.f32 %v5463_v7, %v1614_v40  ;;  %v1775_v45 = vadd.f32 %v5463_v7, %v1774_v41 }
 0x18b   : > { %v3366_v47 = vpack.c.bf16 %v3110_v39, %v3110_v39  ;;  %v3430_v48 = vpack.c.bf16 %v3174_v36, %v3174_v36  ;;  %v2335_v50 = vmul.f32 0.2, %v1933_v37  ;;  %v2399_v51 = vmul.f32 0.2, %v2093_v38 }
 0x18c   : > { %v3239_v52 = vpack.c.bf16 %v2983_v42, %v2983_v42  ;;  %v3303_v53 = vpack.c.bf16 %v3047_v43, %v3047_v43  ;;  %v2208_v54 = vmul.f32 0.2, %v1615_v44  ;;  %v2272_v55 = vmul.f32 0.2, %v1775_v45 }
 0x18d   : > { %3623 = vst.msk [vmem:[%s4754_s12 + $0x274] sm:$0xf] %vm3465_vm3, %v3366_v47  ;;  %v2591_v56 = vmax.f32 %v1933_v37, %v2335_v50  ;;  %v2655_v57 = vmax.f32 %v2093_v38, %v2399_v51 }
 0x18e   : > { %3687 = vst.msk [vmem:[%s4754_s12 + $0x374] sm:$0xf] %vm3465_vm3, %v3430_v48  ;;  %v2464_v49 = vmax.f32 %v1615_v44, %v2208_v54  ;;  %v2528_v58 = vmax.f32 %v1775_v45, %v2272_v55 }
 0x18f   : > { %3496 = vst.msk [vmem:[%s4754_s12 + $0x78] sm:$0xf] %vm3465_vm3, %v3239_v52  ;;  %v2851_v59 = vmul.f32 %v5486_v29, %v2591_v56  ;;  %v2915_v46 = vmul.f32 %v5486_v29, %v2655_v57 }
 0x190   : > { %3560 = vst.msk [vmem:[%s4754_s12 + $0x178] sm:$0xf] %vm3465_vm3, %v3303_v53  ;;  %v2724_v60 = vmul.f32 %v5486_v29, %v2464_v49  ;;  %v2788_v61 = vmul.f32 %v5486_v29, %v2528_v58  ;;  %v1934_v62 = vpop.f32.mrf.mxu2  ;;  %v2094_v63 = vpop.f32.mrf.mxu3 }
 0x191   : > { %v3111_v2 = vadd.f32 %v5456_v3, %v2851_v59  ;;  %v3175_v5 = vadd.f32 %v5456_v3, %v2915_v46  ;;  %v1935_v6 = vadd.f32 %v5463_v7, %v1934_v62  ;;  %v2095_v4 = vadd.f32 %v5463_v7, %v2094_v63  ;;  %v1617_v8 = vpop.f32.mrf.mxu0  ;;  %v1777_v9 = vpop.f32.mrf.mxu1  ;;  %v4458_v63 = vld [vmem:[%s4650_s28 + $0xc8] sm:$0xff] }
 0x192   : > { %v2984_v12 = vadd.f32 %v5456_v3, %v2724_v60  ;;  %v3048_v13 = vadd.f32 %v5456_v3, %v2788_v61  ;;  %v1618_v14 = vadd.f32 %v5463_v7, %v1617_v8  ;;  %v1778_v15 = vadd.f32 %v5463_v7, %v1777_v9  ;;  %v4522_v9 = vld [vmem:[%s4650_s28 + $0x2c8] sm:$0xff] }
 0x193   : > { %v3367_v16 = vpack.c.bf16 %v3111_v2, %v3111_v2  ;;  %v3431_v17 = vpack.c.bf16 %v3175_v5, %v3175_v5  ;;  %v2336_v18 = vmul.f32 0.2, %v1935_v6  ;;  %v2400_v19 = vmul.f32 0.2, %v2095_v4 }
 0x194   : > { %v3240_v20 = vpack.c.bf16 %v2984_v12, %v2984_v12  ;;  %v3304_v21 = vpack.c.bf16 %v3048_v13, %v3048_v13  ;;  %v2209_v22 = vmul.f32 0.2, %v1618_v14  ;;  %v2273_v23 = vmul.f32 0.2, %v1778_v15  ;;  %4327 = vmatmul.msk.bf16.gmra.mxu0 %vm1136_vm2, %v4457_v0  ;;  %4359 = vmatmul.msk.bf16.gmra.mxu1 %vm1136_vm2, %v4489_v1  ;;  %v4490_v0 = vld [vmem:[%s4650_s28 + $0x1c8] sm:$0xff] }
 0x195   : > { %3624 = vst.msk [vmem:[%s4754_s12 + $0x278] sm:$0xf] %vm3465_vm3, %v3367_v16  ;;  %v2592_v24 = vmax.f32 %v1935_v6, %v2336_v18  ;;  %v2656_v25 = vmax.f32 %v2095_v4, %v2400_v19  ;;  %4391 = vmatmul.msk.bf16.gmra.mxu2 %vm1136_vm2, %v4521_v10  ;;  %4423 = vmatmul.msk.bf16.gmra.mxu3 %vm1136_vm2, %v4553_v11  ;;  %v4554_v10 = vld [vmem:[%s4650_s28 + $0x3c8] sm:$0xff] }
 0x196   : > { %3688 = vst.msk [vmem:[%s4754_s12 + $0x378] sm:$0xf] %vm3465_vm3, %v3431_v17  ;;  %v2465_v26 = vmax.f32 %v1618_v14, %v2209_v22  ;;  %v2529_v27 = vmax.f32 %v1778_v15, %v2273_v23 }
 0x197   : > { %3497 = vst.msk [vmem:[%s4754_s12 + $0x7c] sm:$0xf] %vm3465_vm3, %v3240_v20  ;;  %v2852_v28 = vmul.f32 %v5486_v29, %v2592_v24  ;;  %v2916_v30 = vmul.f32 %v5486_v29, %v2656_v25 }
 0x198   : > { %3561 = vst.msk [vmem:[%s4754_s12 + $0x17c] sm:$0xf] %vm3465_vm3, %v3304_v21  ;;  %v2725_v31 = vmul.f32 %v5486_v29, %v2465_v26  ;;  %v2789_v32 = vmul.f32 %v5486_v29, %v2529_v27  ;;  %v1937_v33 = vpop.f32.mrf.mxu2  ;;  %v2097_v34 = vpop.f32.mrf.mxu3 }
 0x199   : > { %v3112_v35 = vadd.f32 %v5456_v3, %v2852_v28  ;;  %v3176_v39 = vadd.f32 %v5456_v3, %v2916_v30  ;;  %v1938_v36 = vadd.f32 %v5463_v7, %v1937_v33  ;;  %v2098_v37 = vadd.f32 %v5463_v7, %v2097_v34  ;;  %v1619_v38 = vpop.f32.mrf.mxu0  ;;  %v1779_v40 = vpop.f32.mrf.mxu1 }
 0x19a   : > { %v2985_v41 = vadd.f32 %v5456_v3, %v2725_v31  ;;  %v3049_v42 = vadd.f32 %v5456_v3, %v2789_v32  ;;  %v1620_v43 = vadd.f32 %v5463_v7, %v1619_v38  ;;  %v1780_v44 = vadd.f32 %v5463_v7, %v1779_v40 }
 0x19b   : > { %v3368_v45 = vpack.c.bf16 %v3112_v35, %v3112_v35  ;;  %v3432_v47 = vpack.c.bf16 %v3176_v39, %v3176_v39  ;;  %v2337_v48 = vmul.f32 0.2, %v1938_v36  ;;  %v2401_v50 = vmul.f32 0.2, %v2098_v37 }
 0x19c   : > { %v3241_v51 = vpack.c.bf16 %v2985_v41, %v2985_v41  ;;  %v3305_v52 = vpack.c.bf16 %v3049_v42, %v3049_v42  ;;  %v2210_v53 = vmul.f32 0.2, %v1620_v43  ;;  %v2274_v54 = vmul.f32 0.2, %v1780_v44 }
 0x19d   : > { %3625 = vst.msk [vmem:[%s4754_s12 + $0x27c] sm:$0xf] %vm3465_vm3, %v3368_v45  ;;  %v2593_v55 = vmax.f32 %v1938_v36, %v2337_v48  ;;  %v2657_v56 = vmax.f32 %v2098_v37, %v2401_v50 }
 0x19e   : > { %3689 = vst.msk [vmem:[%s4754_s12 + $0x37c] sm:$0xf] %vm3465_vm3, %v3432_v47  ;;  %v2466_v57 = vmax.f32 %v1620_v43, %v2210_v53  ;;  %v2530_v49 = vmax.f32 %v1780_v44, %v2274_v54 }
 0x19f   : > { %3498 = vst.msk [vmem:[%s4754_s12 + $0x80] sm:$0xf] %vm3465_vm3, %v3241_v51  ;;  %v2853_v58 = vmul.f32 %v5486_v29, %v2593_v55  ;;  %v2917_v59 = vmul.f32 %v5486_v29, %v2657_v56 }
 0x1a0   : > { %3562 = vst.msk [vmem:[%s4754_s12 + $0x180] sm:$0xf] %vm3465_vm3, %v3305_v52  ;;  %v2726_v46 = vmul.f32 %v5486_v29, %v2466_v57  ;;  %v2790_v60 = vmul.f32 %v5486_v29, %v2530_v49  ;;  %v1939_v61 = vpop.f32.mrf.mxu2  ;;  %v2099_v62 = vpop.f32.mrf.mxu3 }
 0x1a1   : > { %v3113_v1 = vadd.f32 %v5456_v3, %v2853_v58  ;;  %v3177_v2 = vadd.f32 %v5456_v3, %v2917_v59  ;;  %v1940_v5 = vadd.f32 %v5463_v7, %v1939_v61  ;;  %v2100_v6 = vadd.f32 %v5463_v7, %v2099_v62  ;;  %v1622_v4 = vpop.f32.mrf.mxu0  ;;  %v1782_v8 = vpop.f32.mrf.mxu1  ;;  %v4459_v62 = vld [vmem:[%s4650_s28 + $0xd0] sm:$0xff] }
 0x1a2   : > { %v2986_v11 = vadd.f32 %v5456_v3, %v2726_v46  ;;  %v3050_v12 = vadd.f32 %v5456_v3, %v2790_v60  ;;  %v1623_v13 = vadd.f32 %v5463_v7, %v1622_v4  ;;  %v1783_v14 = vadd.f32 %v5463_v7, %v1782_v8  ;;  %v4523_v8 = vld [vmem:[%s4650_s28 + $0x2d0] sm:$0xff] }
 0x1a3   : > { %v3369_v15 = vpack.c.bf16 %v3113_v1, %v3113_v1  ;;  %v3433_v16 = vpack.c.bf16 %v3177_v2, %v3177_v2  ;;  %v2338_v17 = vmul.f32 0.2, %v1940_v5  ;;  %v2402_v18 = vmul.f32 0.2, %v2100_v6 }
 0x1a4   : > { %v3242_v19 = vpack.c.bf16 %v2986_v11, %v2986_v11  ;;  %v3306_v20 = vpack.c.bf16 %v3050_v12, %v3050_v12  ;;  %v2211_v21 = vmul.f32 0.2, %v1623_v13  ;;  %v2275_v22 = vmul.f32 0.2, %v1783_v14  ;;  %4328 = vmatmul.msk.bf16.gmra.mxu0 %vm1136_vm2, %v4458_v63  ;;  %4360 = vmatmul.msk.bf16.gmra.mxu1 %vm1136_vm2, %v4490_v0  ;;  %v4491_v63 = vld [vmem:[%s4650_s28 + $0x1d0] sm:$0xff] }
 0x1a5   : > { %3626 = vst.msk [vmem:[%s4754_s12 + $0x280] sm:$0xf] %vm3465_vm3, %v3369_v15  ;;  %v2594_v23 = vmax.f32 %v1940_v5, %v2338_v17  ;;  %v2658_v24 = vmax.f32 %v2100_v6, %v2402_v18  ;;  %4392 = vmatmul.msk.bf16.gmra.mxu2 %vm1136_vm2, %v4522_v9  ;;  %4424 = vmatmul.msk.bf16.gmra.mxu3 %vm1136_vm2, %v4554_v10  ;;  %v4555_v9 = vld [vmem:[%s4650_s28 + $0x3d0] sm:$0xff] }
 0x1a6   : > { %3690 = vst.msk [vmem:[%s4754_s12 + $0x380] sm:$0xf] %vm3465_vm3, %v3433_v16  ;;  %v2467_v25 = vmax.f32 %v1623_v13, %v2211_v21  ;;  %v2531_v26 = vmax.f32 %v1783_v14, %v2275_v22 }
 0x1a7   : > { %3499 = vst.msk [vmem:[%s4754_s12 + $0x84] sm:$0xf] %vm3465_vm3, %v3242_v19  ;;  %v2854_v27 = vmul.f32 %v5486_v29, %v2594_v23  ;;  %v2918_v28 = vmul.f32 %v5486_v29, %v2658_v24 }
 0x1a8   : > { %3563 = vst.msk [vmem:[%s4754_s12 + $0x184] sm:$0xf] %vm3465_vm3, %v3306_v20  ;;  %v2727_v30 = vmul.f32 %v5486_v29, %v2467_v25  ;;  %v2791_v31 = vmul.f32 %v5486_v29, %v2531_v26  ;;  %v1942_v32 = vpop.f32.mrf.mxu2  ;;  %v2102_v33 = vpop.f32.mrf.mxu3 }
 0x1a9   : > { %v3114_v34 = vadd.f32 %v5456_v3, %v2854_v27  ;;  %v3178_v35 = vadd.f32 %v5456_v3, %v2918_v28  ;;  %v1943_v39 = vadd.f32 %v5463_v7, %v1942_v32  ;;  %v2103_v36 = vadd.f32 %v5463_v7, %v2102_v33  ;;  %v1624_v37 = vpop.f32.mrf.mxu0  ;;  %v1784_v38 = vpop.f32.mrf.mxu1 }
 0x1aa   : > { %v2987_v40 = vadd.f32 %v5456_v3, %v2727_v30  ;;  %v3051_v41 = vadd.f32 %v5456_v3, %v2791_v31  ;;  %v1625_v42 = vadd.f32 %v5463_v7, %v1624_v37  ;;  %v1785_v43 = vadd.f32 %v5463_v7, %v1784_v38 }
 0x1ab   : > { %v3370_v44 = vpack.c.bf16 %v3114_v34, %v3114_v34  ;;  %v3434_v45 = vpack.c.bf16 %v3178_v35, %v3178_v35  ;;  %v2339_v47 = vmul.f32 0.2, %v1943_v39  ;;  %v2403_v48 = vmul.f32 0.2, %v2103_v36 }
 0x1ac   : > { %v3243_v50 = vpack.c.bf16 %v2987_v40, %v2987_v40  ;;  %v3307_v51 = vpack.c.bf16 %v3051_v41, %v3051_v41  ;;  %v2212_v52 = vmul.f32 0.2, %v1625_v42  ;;  %v2276_v53 = vmul.f32 0.2, %v1785_v43 }
 0x1ad   : > { %3627 = vst.msk [vmem:[%s4754_s12 + $0x284] sm:$0xf] %vm3465_vm3, %v3370_v44  ;;  %v2595_v54 = vmax.f32 %v1943_v39, %v2339_v47  ;;  %v2659_v55 = vmax.f32 %v2103_v36, %v2403_v48 }
 0x1ae   : > { %3691 = vst.msk [vmem:[%s4754_s12 + $0x384] sm:$0xf] %vm3465_vm3, %v3434_v45  ;;  %v2468_v56 = vmax.f32 %v1625_v42, %v2212_v52  ;;  %v2532_v57 = vmax.f32 %v1785_v43, %v2276_v53 }
 0x1af   : > { %3500 = vst.msk [vmem:[%s4754_s12 + $0x88] sm:$0xf] %vm3465_vm3, %v3243_v50  ;;  %v2855_v49 = vmul.f32 %v5486_v29, %v2595_v54  ;;  %v2919_v58 = vmul.f32 %v5486_v29, %v2659_v55 }
 0x1b0   : > { %3564 = vst.msk [vmem:[%s4754_s12 + $0x188] sm:$0xf] %vm3465_vm3, %v3307_v51  ;;  %v2728_v59 = vmul.f32 %v5486_v29, %v2468_v56  ;;  %v2792_v46 = vmul.f32 %v5486_v29, %v2532_v57  ;;  %v1944_v60 = vpop.f32.mrf.mxu2  ;;  %v2104_v61 = vpop.f32.mrf.mxu3 }
 0x1b1   : > { %v3115_v0 = vadd.f32 %v5456_v3, %v2855_v49  ;;  %v3179_v1 = vadd.f32 %v5456_v3, %v2919_v58  ;;  %v1945_v2 = vadd.f32 %v5463_v7, %v1944_v60  ;;  %v2105_v5 = vadd.f32 %v5463_v7, %v2104_v61  ;;  %v1627_v6 = vpop.f32.mrf.mxu0  ;;  %v1787_v4 = vpop.f32.mrf.mxu1  ;;  %v4460_v61 = vld [vmem:[%s4650_s28 + $0xd8] sm:$0xff] }
 0x1b2   : > { %v2988_v10 = vadd.f32 %v5456_v3, %v2728_v59  ;;  %v3052_v11 = vadd.f32 %v5456_v3, %v2792_v46  ;;  %v1628_v12 = vadd.f32 %v5463_v7, %v1627_v6  ;;  %v1788_v13 = vadd.f32 %v5463_v7, %v1787_v4  ;;  %v4524_v4 = vld [vmem:[%s4650_s28 + $0x2d8] sm:$0xff] }
 0x1b3   : > { %v3371_v14 = vpack.c.bf16 %v3115_v0, %v3115_v0  ;;  %v3435_v15 = vpack.c.bf16 %v3179_v1, %v3179_v1  ;;  %v2340_v16 = vmul.f32 0.2, %v1945_v2  ;;  %v2404_v17 = vmul.f32 0.2, %v2105_v5 }
 0x1b4   : > { %v3244_v18 = vpack.c.bf16 %v2988_v10, %v2988_v10  ;;  %v3308_v19 = vpack.c.bf16 %v3052_v11, %v3052_v11  ;;  %v2213_v20 = vmul.f32 0.2, %v1628_v12  ;;  %v2277_v21 = vmul.f32 0.2, %v1788_v13  ;;  %4329 = vmatmul.msk.bf16.gmra.mxu0 %vm1136_vm2, %v4459_v62  ;;  %4361 = vmatmul.msk.bf16.gmra.mxu1 %vm1136_vm2, %v4491_v63  ;;  %v4492_v62 = vld [vmem:[%s4650_s28 + $0x1d8] sm:$0xff] }
 0x1b5   : > { %3628 = vst.msk [vmem:[%s4754_s12 + $0x288] sm:$0xf] %vm3465_vm3, %v3371_v14  ;;  %v2596_v22 = vmax.f32 %v1945_v2, %v2340_v16  ;;  %v2660_v23 = vmax.f32 %v2105_v5, %v2404_v17  ;;  %4393 = vmatmul.msk.bf16.gmra.mxu2 %vm1136_vm2, %v4523_v8  ;;  %4425 = vmatmul.msk.bf16.gmra.mxu3 %vm1136_vm2, %v4555_v9  ;;  %v4556_v8 = vld [vmem:[%s4650_s28 + $0x3d8] sm:$0xff] }
 0x1b6   : > { %3692 = vst.msk [vmem:[%s4754_s12 + $0x388] sm:$0xf] %vm3465_vm3, %v3435_v15  ;;  %v2469_v24 = vmax.f32 %v1628_v12, %v2213_v20  ;;  %v2533_v25 = vmax.f32 %v1788_v13, %v2277_v21 }
 0x1b7   : > { %3501 = vst.msk [vmem:[%s4754_s12 + $0x8c] sm:$0xf] %vm3465_vm3, %v3244_v18  ;;  %v2856_v26 = vmul.f32 %v5486_v29, %v2596_v22  ;;  %v2920_v27 = vmul.f32 %v5486_v29, %v2660_v23 }
 0x1b8   : > { %3565 = vst.msk [vmem:[%s4754_s12 + $0x18c] sm:$0xf] %vm3465_vm3, %v3308_v19  ;;  %v2729_v28 = vmul.f32 %v5486_v29, %v2469_v24  ;;  %v2793_v30 = vmul.f32 %v5486_v29, %v2533_v25  ;;  %v1947_v31 = vpop.f32.mrf.mxu2  ;;  %v2107_v32 = vpop.f32.mrf.mxu3 }
 0x1b9   : > { %v3116_v33 = vadd.f32 %v5456_v3, %v2856_v26  ;;  %v3180_v34 = vadd.f32 %v5456_v3, %v2920_v27  ;;  %v1948_v35 = vadd.f32 %v5463_v7, %v1947_v31  ;;  %v2108_v39 = vadd.f32 %v5463_v7, %v2107_v32  ;;  %v1629_v36 = vpop.f32.mrf.mxu0  ;;  %v1789_v37 = vpop.f32.mrf.mxu1 }
 0x1ba   : > { %v2989_v38 = vadd.f32 %v5456_v3, %v2729_v28  ;;  %v3053_v40 = vadd.f32 %v5456_v3, %v2793_v30  ;;  %v1630_v41 = vadd.f32 %v5463_v7, %v1629_v36  ;;  %v1790_v42 = vadd.f32 %v5463_v7, %v1789_v37 }
 0x1bb   : > { %v3372_v43 = vpack.c.bf16 %v3116_v33, %v3116_v33  ;;  %v3436_v44 = vpack.c.bf16 %v3180_v34, %v3180_v34  ;;  %v2341_v45 = vmul.f32 0.2, %v1948_v35  ;;  %v2405_v47 = vmul.f32 0.2, %v2108_v39 }
 0x1bc   : > { %v3245_v48 = vpack.c.bf16 %v2989_v38, %v2989_v38  ;;  %v3309_v50 = vpack.c.bf16 %v3053_v40, %v3053_v40  ;;  %v2214_v51 = vmul.f32 0.2, %v1630_v41  ;;  %v2278_v52 = vmul.f32 0.2, %v1790_v42 }
 0x1bd   : > { %3629 = vst.msk [vmem:[%s4754_s12 + $0x28c] sm:$0xf] %vm3465_vm3, %v3372_v43  ;;  %v2597_v53 = vmax.f32 %v1948_v35, %v2341_v45  ;;  %v2661_v54 = vmax.f32 %v2108_v39, %v2405_v47 }
 0x1be   : > { %3693 = vst.msk [vmem:[%s4754_s12 + $0x38c] sm:$0xf] %vm3465_vm3, %v3436_v44  ;;  %v2470_v55 = vmax.f32 %v1630_v41, %v2214_v51  ;;  %v2534_v56 = vmax.f32 %v1790_v42, %v2278_v52 }
 0x1bf   : > { %3502 = vst.msk [vmem:[%s4754_s12 + $0x90] sm:$0xf] %vm3465_vm3, %v3245_v48  ;;  %v2857_v57 = vmul.f32 %v5486_v29, %v2597_v53  ;;  %v2921_v49 = vmul.f32 %v5486_v29, %v2661_v54 }
 0x1c0   : > { %3566 = vst.msk [vmem:[%s4754_s12 + $0x190] sm:$0xf] %vm3465_vm3, %v3309_v50  ;;  %v2730_v58 = vmul.f32 %v5486_v29, %v2470_v55  ;;  %v2794_v59 = vmul.f32 %v5486_v29, %v2534_v56  ;;  %v1949_v46 = vpop.f32.mrf.mxu2  ;;  %v2109_v60 = vpop.f32.mrf.mxu3 }
 0x1c1   : > { %v3117_v63 = vadd.f32 %v5456_v3, %v2857_v57  ;;  %v3181_v0 = vadd.f32 %v5456_v3, %v2921_v49  ;;  %v1950_v1 = vadd.f32 %v5463_v7, %v1949_v46  ;;  %v2110_v2 = vadd.f32 %v5463_v7, %v2109_v60  ;;  %v1632_v5 = vpop.f32.mrf.mxu0  ;;  %v1792_v6 = vpop.f32.mrf.mxu1  ;;  %v4461_v60 = vld [vmem:[%s4650_s28 + $0xe0] sm:$0xff] }
 0x1c2   : > { %v2990_v9 = vadd.f32 %v5456_v3, %v2730_v58  ;;  %v3054_v10 = vadd.f32 %v5456_v3, %v2794_v59  ;;  %v1633_v11 = vadd.f32 %v5463_v7, %v1632_v5  ;;  %v1793_v12 = vadd.f32 %v5463_v7, %v1792_v6  ;;  %v4525_v6 = vld [vmem:[%s4650_s28 + $0x2e0] sm:$0xff] }
 0x1c3   : > { %v3373_v13 = vpack.c.bf16 %v3117_v63, %v3117_v63  ;;  %v3437_v14 = vpack.c.bf16 %v3181_v0, %v3181_v0  ;;  %v2342_v15 = vmul.f32 0.2, %v1950_v1  ;;  %v2406_v16 = vmul.f32 0.2, %v2110_v2 }
 0x1c4   : > { %v3246_v17 = vpack.c.bf16 %v2990_v9, %v2990_v9  ;;  %v3310_v18 = vpack.c.bf16 %v3054_v10, %v3054_v10  ;;  %v2215_v19 = vmul.f32 0.2, %v1633_v11  ;;  %v2279_v20 = vmul.f32 0.2, %v1793_v12  ;;  %4330 = vmatmul.msk.bf16.gmra.mxu0 %vm1136_vm2, %v4460_v61  ;;  %4362 = vmatmul.msk.bf16.gmra.mxu1 %vm1136_vm2, %v4492_v62  ;;  %v4493_v61 = vld [vmem:[%s4650_s28 + $0x1e0] sm:$0xff] }
 0x1c5   : > { %3630 = vst.msk [vmem:[%s4754_s12 + $0x290] sm:$0xf] %vm3465_vm3, %v3373_v13  ;;  %v2598_v21 = vmax.f32 %v1950_v1, %v2342_v15  ;;  %v2662_v22 = vmax.f32 %v2110_v2, %v2406_v16  ;;  %4394 = vmatmul.msk.bf16.gmra.mxu2 %vm1136_vm2, %v4524_v4  ;;  %4426 = vmatmul.msk.bf16.gmra.mxu3 %vm1136_vm2, %v4556_v8  ;;  %v4557_v4 = vld [vmem:[%s4650_s28 + $0x3e0] sm:$0xff] }
 0x1c6   : > { %3694 = vst.msk [vmem:[%s4754_s12 + $0x390] sm:$0xf] %vm3465_vm3, %v3437_v14  ;;  %v2471_v23 = vmax.f32 %v1633_v11, %v2215_v19  ;;  %v2535_v24 = vmax.f32 %v1793_v12, %v2279_v20 }
 0x1c7   : > { %3503 = vst.msk [vmem:[%s4754_s12 + $0x94] sm:$0xf] %vm3465_vm3, %v3246_v17  ;;  %v2858_v25 = vmul.f32 %v5486_v29, %v2598_v21  ;;  %v2922_v26 = vmul.f32 %v5486_v29, %v2662_v22 }
 0x1c8   : > { %3567 = vst.msk [vmem:[%s4754_s12 + $0x194] sm:$0xf] %vm3465_vm3, %v3310_v18  ;;  %v2731_v27 = vmul.f32 %v5486_v29, %v2471_v23  ;;  %v2795_v28 = vmul.f32 %v5486_v29, %v2535_v24  ;;  %v1952_v30 = vpop.f32.mrf.mxu2  ;;  %v2112_v31 = vpop.f32.mrf.mxu3 }
 0x1c9   : > { %v3118_v32 = vadd.f32 %v5456_v3, %v2858_v25  ;;  %v3182_v33 = vadd.f32 %v5456_v3, %v2922_v26  ;;  %v1953_v34 = vadd.f32 %v5463_v7, %v1952_v30  ;;  %v2113_v35 = vadd.f32 %v5463_v7, %v2112_v31  ;;  %v1634_v39 = vpop.f32.mrf.mxu0  ;;  %v1794_v36 = vpop.f32.mrf.mxu1 }
 0x1ca   : > { %v2991_v37 = vadd.f32 %v5456_v3, %v2731_v27  ;;  %v3055_v38 = vadd.f32 %v5456_v3, %v2795_v28  ;;  %v1635_v40 = vadd.f32 %v5463_v7, %v1634_v39  ;;  %v1795_v41 = vadd.f32 %v5463_v7, %v1794_v36 }
 0x1cb   : > { %v3374_v42 = vpack.c.bf16 %v3118_v32, %v3118_v32  ;;  %v3438_v43 = vpack.c.bf16 %v3182_v33, %v3182_v33  ;;  %v2343_v44 = vmul.f32 0.2, %v1953_v34  ;;  %v2407_v45 = vmul.f32 0.2, %v2113_v35 }
 0x1cc   : > { %v3247_v47 = vpack.c.bf16 %v2991_v37, %v2991_v37  ;;  %v3311_v48 = vpack.c.bf16 %v3055_v38, %v3055_v38  ;;  %v2216_v50 = vmul.f32 0.2, %v1635_v40  ;;  %v2280_v51 = vmul.f32 0.2, %v1795_v41 }
 0x1cd   : > { %3631 = vst.msk [vmem:[%s4754_s12 + $0x294] sm:$0xf] %vm3465_vm3, %v3374_v42  ;;  %v2599_v52 = vmax.f32 %v1953_v34, %v2343_v44  ;;  %v2663_v53 = vmax.f32 %v2113_v35, %v2407_v45 }
 0x1ce   : > { %3695 = vst.msk [vmem:[%s4754_s12 + $0x394] sm:$0xf] %vm3465_vm3, %v3438_v43  ;;  %v2472_v54 = vmax.f32 %v1635_v40, %v2216_v50  ;;  %v2536_v55 = vmax.f32 %v1795_v41, %v2280_v51 }
 0x1cf   : > { %3504 = vst.msk [vmem:[%s4754_s12 + $0x98] sm:$0xf] %vm3465_vm3, %v3247_v47  ;;  %v2859_v56 = vmul.f32 %v5486_v29, %v2599_v52  ;;  %v2923_v57 = vmul.f32 %v5486_v29, %v2663_v53 }
 0x1d0   : > { %3568 = vst.msk [vmem:[%s4754_s12 + $0x198] sm:$0xf] %vm3465_vm3, %v3311_v48  ;;  %v2732_v49 = vmul.f32 %v5486_v29, %v2472_v54  ;;  %v2796_v58 = vmul.f32 %v5486_v29, %v2536_v55  ;;  %v1954_v59 = vpop.f32.mrf.mxu2  ;;  %v2114_v46 = vpop.f32.mrf.mxu3 }
 0x1d1   : > { %v3119_v62 = vadd.f32 %v5456_v3, %v2859_v56  ;;  %v3183_v63 = vadd.f32 %v5456_v3, %v2923_v57  ;;  %v1955_v0 = vadd.f32 %v5463_v7, %v1954_v59  ;;  %v2115_v1 = vadd.f32 %v5463_v7, %v2114_v46  ;;  %v1637_v2 = vpop.f32.mrf.mxu0  ;;  %v1797_v5 = vpop.f32.mrf.mxu1  ;;  %v4462_v46 = vld [vmem:[%s4650_s28 + $0xe8] sm:$0xff] }
 0x1d2   : > { %v2992_v8 = vadd.f32 %v5456_v3, %v2732_v49  ;;  %v3056_v9 = vadd.f32 %v5456_v3, %v2796_v58  ;;  %v1638_v10 = vadd.f32 %v5463_v7, %v1637_v2  ;;  %v1798_v11 = vadd.f32 %v5463_v7, %v1797_v5  ;;  %v4526_v5 = vld [vmem:[%s4650_s28 + $0x2e8] sm:$0xff] }
 0x1d3   : > { %v3375_v12 = vpack.c.bf16 %v3119_v62, %v3119_v62  ;;  %v3439_v13 = vpack.c.bf16 %v3183_v63, %v3183_v63  ;;  %v2344_v14 = vmul.f32 0.2, %v1955_v0  ;;  %v2408_v15 = vmul.f32 0.2, %v2115_v1 }
 0x1d4   : > { %v3248_v16 = vpack.c.bf16 %v2992_v8, %v2992_v8  ;;  %v3312_v17 = vpack.c.bf16 %v3056_v9, %v3056_v9  ;;  %v2217_v18 = vmul.f32 0.2, %v1638_v10  ;;  %v2281_v19 = vmul.f32 0.2, %v1798_v11  ;;  %4331 = vmatmul.msk.bf16.gmra.mxu0 %vm1136_vm2, %v4461_v60  ;;  %4363 = vmatmul.msk.bf16.gmra.mxu1 %vm1136_vm2, %v4493_v61  ;;  %v4494_v60 = vld [vmem:[%s4650_s28 + $0x1e8] sm:$0xff] }
 0x1d5   : > { %3632 = vst.msk [vmem:[%s4754_s12 + $0x298] sm:$0xf] %vm3465_vm3, %v3375_v12  ;;  %v2600_v20 = vmax.f32 %v1955_v0, %v2344_v14  ;;  %v2664_v21 = vmax.f32 %v2115_v1, %v2408_v15  ;;  %4395 = vmatmul.msk.bf16.gmra.mxu2 %vm1136_vm2, %v4525_v6  ;;  %4427 = vmatmul.msk.bf16.gmra.mxu3 %vm1136_vm2, %v4557_v4  ;;  %v4558_v6 = vld [vmem:[%s4650_s28 + $0x3e8] sm:$0xff] }
 0x1d6   : > { %3696 = vst.msk [vmem:[%s4754_s12 + $0x398] sm:$0xf] %vm3465_vm3, %v3439_v13  ;;  %v2473_v22 = vmax.f32 %v1638_v10, %v2217_v18  ;;  %v2537_v23 = vmax.f32 %v1798_v11, %v2281_v19 }
 0x1d7   : > { %3505 = vst.msk [vmem:[%s4754_s12 + $0x9c] sm:$0xf] %vm3465_vm3, %v3248_v16  ;;  %v2860_v24 = vmul.f32 %v5486_v29, %v2600_v20  ;;  %v2924_v25 = vmul.f32 %v5486_v29, %v2664_v21 }
 0x1d8   : > { %3569 = vst.msk [vmem:[%s4754_s12 + $0x19c] sm:$0xf] %vm3465_vm3, %v3312_v17  ;;  %v2733_v26 = vmul.f32 %v5486_v29, %v2473_v22  ;;  %v2797_v27 = vmul.f32 %v5486_v29, %v2537_v23  ;;  %v1957_v28 = vpop.f32.mrf.mxu2  ;;  %v2117_v30 = vpop.f32.mrf.mxu3 }
 0x1d9   : > { %v3120_v31 = vadd.f32 %v5456_v3, %v2860_v24  ;;  %v3184_v32 = vadd.f32 %v5456_v3, %v2924_v25  ;;  %v1958_v33 = vadd.f32 %v5463_v7, %v1957_v28  ;;  %v2118_v34 = vadd.f32 %v5463_v7, %v2117_v30  ;;  %v1639_v35 = vpop.f32.mrf.mxu0  ;;  %v1799_v39 = vpop.f32.mrf.mxu1 }
 0x1da   : > { %v2993_v36 = vadd.f32 %v5456_v3, %v2733_v26  ;;  %v3057_v37 = vadd.f32 %v5456_v3, %v2797_v27  ;;  %v1640_v38 = vadd.f32 %v5463_v7, %v1639_v35  ;;  %v1800_v40 = vadd.f32 %v5463_v7, %v1799_v39 }
 0x1db   : > { %v3376_v41 = vpack.c.bf16 %v3120_v31, %v3120_v31  ;;  %v3440_v42 = vpack.c.bf16 %v3184_v32, %v3184_v32  ;;  %v2345_v43 = vmul.f32 0.2, %v1958_v33  ;;  %v2409_v44 = vmul.f32 0.2, %v2118_v34 }
 0x1dc   : > { %v3249_v45 = vpack.c.bf16 %v2993_v36, %v2993_v36  ;;  %v3313_v47 = vpack.c.bf16 %v3057_v37, %v3057_v37  ;;  %v2218_v48 = vmul.f32 0.2, %v1640_v38  ;;  %v2282_v50 = vmul.f32 0.2, %v1800_v40 }
 0x1dd   : > { %3633 = vst.msk [vmem:[%s4754_s12 + $0x29c] sm:$0xf] %vm3465_vm3, %v3376_v41  ;;  %v2601_v51 = vmax.f32 %v1958_v33, %v2345_v43  ;;  %v2665_v52 = vmax.f32 %v2118_v34, %v2409_v44 }
 0x1de   : > { %3697 = vst.msk [vmem:[%s4754_s12 + $0x39c] sm:$0xf] %vm3465_vm3, %v3440_v42  ;;  %v2474_v53 = vmax.f32 %v1640_v38, %v2218_v48  ;;  %v2538_v54 = vmax.f32 %v1800_v40, %v2282_v50 }
 0x1df   : > { %3506 = vst.msk [vmem:[%s4754_s12 + $0xa0] sm:$0xf] %vm3465_vm3, %v3249_v45  ;;  %v2861_v55 = vmul.f32 %v5486_v29, %v2601_v51  ;;  %v2925_v56 = vmul.f32 %v5486_v29, %v2665_v52 }
 0x1e0   : > { %3570 = vst.msk [vmem:[%s4754_s12 + $0x1a0] sm:$0xf] %vm3465_vm3, %v3313_v47  ;;  %v2734_v57 = vmul.f32 %v5486_v29, %v2474_v53  ;;  %v2798_v49 = vmul.f32 %v5486_v29, %v2538_v54  ;;  %v1959_v58 = vpop.f32.mrf.mxu2  ;;  %v2119_v59 = vpop.f32.mrf.mxu3 }
 0x1e1   : > { %v3121_v61 = vadd.f32 %v5456_v3, %v2861_v55  ;;  %v3185_v62 = vadd.f32 %v5456_v3, %v2925_v56  ;;  %v1960_v63 = vadd.f32 %v5463_v7, %v1959_v58  ;;  %v2120_v0 = vadd.f32 %v5463_v7, %v2119_v59  ;;  %v1642_v1 = vpop.f32.mrf.mxu0  ;;  %v1802_v2 = vpop.f32.mrf.mxu1  ;;  %v4463_v59 = vld [vmem:[%s4650_s28 + $0xf0] sm:$0xff] }
 0x1e2   : > { %v2994_v4 = vadd.f32 %v5456_v3, %v2734_v57  ;;  %v3058_v8 = vadd.f32 %v5456_v3, %v2798_v49  ;;  %v1643_v9 = vadd.f32 %v5463_v7, %v1642_v1  ;;  %v1803_v10 = vadd.f32 %v5463_v7, %v1802_v2  ;;  %v4527_v2 = vld [vmem:[%s4650_s28 + $0x2f0] sm:$0xff] }
 0x1e3   : > { %v3377_v11 = vpack.c.bf16 %v3121_v61, %v3121_v61  ;;  %v3441_v12 = vpack.c.bf16 %v3185_v62, %v3185_v62  ;;  %v2346_v13 = vmul.f32 0.2, %v1960_v63  ;;  %v2410_v14 = vmul.f32 0.2, %v2120_v0 }
 0x1e4   : > { %v3250_v15 = vpack.c.bf16 %v2994_v4, %v2994_v4  ;;  %v3314_v16 = vpack.c.bf16 %v3058_v8, %v3058_v8  ;;  %v2219_v17 = vmul.f32 0.2, %v1643_v9  ;;  %v2283_v18 = vmul.f32 0.2, %v1803_v10  ;;  %4332 = vmatmul.msk.bf16.gmra.mxu0 %vm1136_vm2, %v4462_v46  ;;  %4364 = vmatmul.msk.bf16.gmra.mxu1 %vm1136_vm2, %v4494_v60  ;;  %v4495_v46 = vld [vmem:[%s4650_s28 + $0x1f0] sm:$0xff] }
 0x1e5   : > { %3634 = vst.msk [vmem:[%s4754_s12 + $0x2a0] sm:$0xf] %vm3465_vm3, %v3377_v11  ;;  %v2602_v19 = vmax.f32 %v1960_v63, %v2346_v13  ;;  %v2666_v20 = vmax.f32 %v2120_v0, %v2410_v14  ;;  %4396 = vmatmul.msk.bf16.gmra.mxu2 %vm1136_vm2, %v4526_v5  ;;  %4428 = vmatmul.msk.bf16.gmra.mxu3 %vm1136_vm2, %v4558_v6  ;;  %v4559_v5 = vld [vmem:[%s4650_s28 + $0x3f0] sm:$0xff]  ;;  %v5813_v6 = vld [vmem:[%s6277_s4] ss:$0 sm:$0xff] }
 0x1e6   : > { %3698 = vst.msk [vmem:[%s4754_s12 + $0x3a0] sm:$0xf] %vm3465_vm3, %v3441_v12  ;;  %v2475_v21 = vmax.f32 %v1643_v9, %v2219_v17  ;;  %v2539_v22 = vmax.f32 %v1803_v10, %v2283_v18 }
 0x1e7   : > { %3507 = vst.msk [vmem:[%s4754_s12 + $0xa4] sm:$0xf] %vm3465_vm3, %v3250_v15  ;;  %v2862_v23 = vmul.f32 %v5486_v29, %v2602_v19  ;;  %v2926_v24 = vmul.f32 %v5486_v29, %v2666_v20 }
 0x1e8   : > { %3571 = vst.msk [vmem:[%s4754_s12 + $0x1a4] sm:$0xf] %vm3465_vm3, %v3314_v16  ;;  %v2735_v25 = vmul.f32 %v5486_v29, %v2475_v21  ;;  %v2799_v26 = vmul.f32 %v5486_v29, %v2539_v22  ;;  %v1962_v27 = vpop.f32.mrf.mxu2  ;;  %v2122_v28 = vpop.f32.mrf.mxu3 }
 0x1e9   : > { %v3122_v30 = vadd.f32 %v5456_v3, %v2862_v23  ;;  %v3186_v31 = vadd.f32 %v5456_v3, %v2926_v24  ;;  %v1963_v32 = vadd.f32 %v5463_v7, %v1962_v27  ;;  %v2123_v33 = vadd.f32 %v5463_v7, %v2122_v28  ;;  %v1644_v34 = vpop.f32.mrf.mxu0  ;;  %v1804_v35 = vpop.f32.mrf.mxu1 }
 0x1ea   : > { %v2995_v39 = vadd.f32 %v5456_v3, %v2735_v25  ;;  %v3059_v36 = vadd.f32 %v5456_v3, %v2799_v26  ;;  %v1645_v37 = vadd.f32 %v5463_v7, %v1644_v34  ;;  %v1805_v38 = vadd.f32 %v5463_v7, %v1804_v35 }
 0x1eb   : > { %v3378_v40 = vpack.c.bf16 %v3122_v30, %v3122_v30  ;;  %v3442_v41 = vpack.c.bf16 %v3186_v31, %v3186_v31  ;;  %v2347_v42 = vmul.f32 0.2, %v1963_v32  ;;  %v2411_v43 = vmul.f32 0.2, %v2123_v33 }
 0x1ec   : > { %v3251_v44 = vpack.c.bf16 %v2995_v39, %v2995_v39  ;;  %v3315_v45 = vpack.c.bf16 %v3059_v36, %v3059_v36  ;;  %v2220_v47 = vmul.f32 0.2, %v1645_v37  ;;  %v2284_v48 = vmul.f32 0.2, %v1805_v38 }
 0x1ed   : > { %3635 = vst.msk [vmem:[%s4754_s12 + $0x2a4] sm:$0xf] %vm3465_vm3, %v3378_v40  ;;  %v2603_v50 = vmax.f32 %v1963_v32, %v2347_v42  ;;  %v2667_v51 = vmax.f32 %v2123_v33, %v2411_v43 }
 0x1ee   : > { %3699 = vst.msk [vmem:[%s4754_s12 + $0x3a4] sm:$0xf] %vm3465_vm3, %v3442_v41  ;;  %v2476_v52 = vmax.f32 %v1645_v37, %v2220_v47  ;;  %v2540_v53 = vmax.f32 %v1805_v38, %v2284_v48 }
 0x1ef   : > { %3508 = vst.msk [vmem:[%s4754_s12 + $0xa8] sm:$0xf] %vm3465_vm3, %v3251_v44  ;;  %v2863_v54 = vmul.f32 %v5486_v29, %v2603_v50  ;;  %v2927_v55 = vmul.f32 %v5486_v29, %v2667_v51 }
 0x1f0   : > { %3572 = vst.msk [vmem:[%s4754_s12 + $0x1a8] sm:$0xf] %vm3465_vm3, %v3315_v45  ;;  %v2736_v56 = vmul.f32 %v5486_v29, %v2476_v52  ;;  %v2800_v57 = vmul.f32 %v5486_v29, %v2540_v53  ;;  %v1964_v49 = vpop.f32.mrf.mxu2  ;;  %v2124_v58 = vpop.f32.mrf.mxu3  ;;  %v5857_v52 = vld [vmem:[%s6276_s3] ss:$0 sm:$0xff] }
 0x1f1   : > { %v3123_v60 = vadd.f32 %v5456_v3, %v2863_v54  ;;  %v3187_v61 = vadd.f32 %v5456_v3, %v2927_v55  ;;  %v1965_v62 = vadd.f32 %v5463_v7, %v1964_v49  ;;  %v2125_v63 = vadd.f32 %v5463_v7, %v2124_v58  ;;  %v1647_v0 = vpop.f32.mrf.mxu0  ;;  %v1807_v1 = vpop.f32.mrf.mxu1  ;;  %v5820_v3 = vld [vmem:[%s6275_s2] ss:$0 sm:$0xff]  ;;  %v4464_v58 = vld [vmem:[%s4650_s28 + $0xf8] sm:$0xff] }
 0x1f2   : > { %v2996_v4 = vadd.f32 %v5813_v6, %v2736_v56  ;;  %v3060_v8 = vadd.f32 %v5813_v6, %v2800_v57  ;;  %v1648_v7 = vadd.f32 %v5820_v3, %v1647_v0  ;;  %v1808_v9 = vadd.f32 %v5820_v3, %v1807_v1  ;;  %v4528_v1 = vld [vmem:[%s4650_s28 + $0x2f8] sm:$0xff] }
 0x1f3   : > { %v3379_v10 = vpack.c.bf16 %v3123_v60, %v3123_v60  ;;  %v3443_v11 = vpack.c.bf16 %v3187_v61, %v3187_v61  ;;  %v2348_v12 = vmul.f32 0.2, %v1965_v62  ;;  %v2412_v13 = vmul.f32 0.2, %v2125_v63 }
 0x1f4   : > { %v3252_v14 = vpack.c.bf16 %v2996_v4, %v2996_v4  ;;  %v3316_v15 = vpack.c.bf16 %v3060_v8, %v3060_v8  ;;  %v2221_v16 = vmul.f32 0.2, %v1648_v7  ;;  %v2285_v17 = vmul.f32 0.2, %v1808_v9  ;;  %4333 = vmatmul.msk.bf16.gmra.mxu0 %vm1136_vm2, %v4463_v59  ;;  %4365 = vmatmul.msk.bf16.gmra.mxu1 %vm1136_vm2, %v4495_v46  ;;  %v4496_v59 = vld [vmem:[%s4650_s28 + $0x1f8] sm:$0xff] }
 0x1f5   : > { %3636 = vst.msk [vmem:[%s4754_s12 + $0x2a8] sm:$0xf] %vm3465_vm3, %v3379_v10  ;;  %v2604_v18 = vmax.f32 %v1965_v62, %v2348_v12  ;;  %v2668_v19 = vmax.f32 %v2125_v63, %v2412_v13  ;;  %4397 = vmatmul.msk.bf16.gmra.mxu2 %vm1136_vm2, %v4527_v2  ;;  %4429 = vmatmul.msk.bf16.gmra.mxu3 %vm1136_vm2, %v4559_v5  ;;  %v4560_v2 = vld [vmem:[%s4650_s28 + $0x3f8] sm:$0xff] }
 0x1f6   : > { %3700 = vst.msk [vmem:[%s4754_s12 + $0x3a8] sm:$0xf] %vm3465_vm3, %v3443_v11  ;;  %v2477_v20 = vmax.f32 %v1648_v7, %v2221_v16  ;;  %v2541_v21 = vmax.f32 %v1808_v9, %v2285_v17 }
 0x1f7   : > { %3509 = vst.msk [vmem:[%s4754_s12 + $0xac] sm:$0xf] %vm3465_vm3, %v3252_v14  ;;  %v2864_v22 = vmul.f32 %v5486_v29, %v2604_v18  ;;  %v2928_v23 = vmul.f32 %v5486_v29, %v2668_v19 }
 0x1f8   : > { %3573 = vst.msk [vmem:[%s4754_s12 + $0x1ac] sm:$0xf] %vm3465_vm3, %v3316_v15  ;;  %v2737_v24 = vmul.f32 %v5486_v29, %v2477_v20  ;;  %v2801_v25 = vmul.f32 %v5486_v29, %v2541_v21  ;;  %v1967_v26 = vpop.f32.mrf.mxu2  ;;  %v2127_v27 = vpop.f32.mrf.mxu3 }
 0x1f9   : > { %v3124_v28 = vadd.f32 %v5813_v6, %v2864_v22  ;;  %v3188_v30 = vadd.f32 %v5813_v6, %v2928_v23  ;;  %v1968_v31 = vadd.f32 %v5820_v3, %v1967_v26  ;;  %v2128_v32 = vadd.f32 %v5820_v3, %v2127_v27  ;;  %v1649_v33 = vpop.f32.mrf.mxu0  ;;  %v1809_v34 = vpop.f32.mrf.mxu1 }
 0x1fa   : > { %v2997_v35 = vadd.f32 %v5813_v6, %v2737_v24  ;;  %v3061_v39 = vadd.f32 %v5813_v6, %v2801_v25  ;;  %v1650_v29 = vadd.f32 %v5820_v3, %v1649_v33  ;;  %v1810_v36 = vadd.f32 %v5820_v3, %v1809_v34 }
 0x1fb   : > { %v3380_v37 = vpack.c.bf16 %v3124_v28, %v3124_v28  ;;  %v3444_v38 = vpack.c.bf16 %v3188_v30, %v3188_v30  ;;  %v2349_v40 = vmul.f32 0.2, %v1968_v31  ;;  %v2413_v41 = vmul.f32 0.2, %v2128_v32 }
 0x1fc   : > { %v3253_v42 = vpack.c.bf16 %v2997_v35, %v2997_v35  ;;  %v3317_v43 = vpack.c.bf16 %v3061_v39, %v3061_v39  ;;  %v2222_v44 = vmul.f32 0.2, %v1650_v29  ;;  %v2286_v45 = vmul.f32 0.2, %v1810_v36 }
 0x1fd   : > { %3637 = vst.msk [vmem:[%s4754_s12 + $0x2ac] sm:$0xf] %vm3465_vm3, %v3380_v37  ;;  %v2605_v47 = vmax.f32 %v1968_v31, %v2349_v40  ;;  %v2669_v48 = vmax.f32 %v2128_v32, %v2413_v41 }
 0x1fe   : > { %3701 = vst.msk [vmem:[%s4754_s12 + $0x3ac] sm:$0xf] %vm3465_vm3, %v3444_v38  ;;  %v2478_v50 = vmax.f32 %v1650_v29, %v2222_v44  ;;  %v2542_v51 = vmax.f32 %v1810_v36, %v2286_v45 }
 0x1ff   : > { %3510 = vst.msk [vmem:[%s4754_s12 + $0xb0] sm:$0xf] %vm3465_vm3, %v3253_v42  ;;  %v2865_v53 = vmul.f32 %v5857_v52, %v2605_v47  ;;  %v2929_v54 = vmul.f32 %v5857_v52, %v2669_v48 }
 0x200   : > { %3574 = vst.msk [vmem:[%s4754_s12 + $0x1b0] sm:$0xf] %vm3465_vm3, %v3317_v43  ;;  %v2738_v55 = vmul.f32 %v5857_v52, %v2478_v50  ;;  %v2802_v56 = vmul.f32 %v5857_v52, %v2542_v51  ;;  %v1969_v57 = vpop.f32.mrf.mxu2  ;;  %v2129_v49 = vpop.f32.mrf.mxu3 }
 0x201   : > { %v3125_v46 = vadd.f32 %v5813_v6, %v2865_v53  ;;  %v3189_v60 = vadd.f32 %v5813_v6, %v2929_v54  ;;  %v1970_v61 = vadd.f32 %v5820_v3, %v1969_v57  ;;  %v2130_v62 = vadd.f32 %v5820_v3, %v2129_v49  ;;  %v1652_v63 = vpop.f32.mrf.mxu0  ;;  %v1812_v0 = vpop.f32.mrf.mxu1 }
 0x202   : > { %v2998_v5 = vadd.f32 %v5813_v6, %v2738_v55  ;;  %v3062_v4 = vadd.f32 %v5813_v6, %v2802_v56  ;;  %v1653_v8 = vadd.f32 %v5820_v3, %v1652_v63  ;;  %v1813_v7 = vadd.f32 %v5820_v3, %v1812_v0 }
 0x203   : > { %v3381_v9 = vpack.c.bf16 %v3125_v46, %v3125_v46  ;;  %v3445_v10 = vpack.c.bf16 %v3189_v60, %v3189_v60  ;;  %v2350_v11 = vmul.f32 0.2, %v1970_v61  ;;  %v2414_v12 = vmul.f32 0.2, %v2130_v62 }
 0x204   : > { %v3254_v13 = vpack.c.bf16 %v2998_v5, %v2998_v5  ;;  %v3318_v14 = vpack.c.bf16 %v3062_v4, %v3062_v4  ;;  %v2223_v15 = vmul.f32 0.2, %v1653_v8  ;;  %v2287_v16 = vmul.f32 0.2, %v1813_v7  ;;  %4334 = vmatmul.msk.bf16.gmra.mxu0 %vm1136_vm2, %v4464_v58  ;;  %4366 = vmatmul.msk.bf16.gmra.mxu1 %vm1136_vm2, %v4496_v59 }
 0x205   : > { %3638 = vst.msk [vmem:[%s4754_s12 + $0x2b0] sm:$0xf] %vm3465_vm3, %v3381_v9  ;;  %v2606_v17 = vmax.f32 %v1970_v61, %v2350_v11  ;;  %v2670_v18 = vmax.f32 %v2130_v62, %v2414_v12  ;;  %4398 = vmatmul.msk.bf16.gmra.mxu2 %vm1136_vm2, %v4528_v1  ;;  %4430 = vmatmul.msk.bf16.gmra.mxu3 %vm1136_vm2, %v4560_v2 }
 0x206   : > { %3702 = vst.msk [vmem:[%s4754_s12 + $0x3b0] sm:$0xf] %vm3465_vm3, %v3445_v10  ;;  %v2479_v19 = vmax.f32 %v1653_v8, %v2223_v15  ;;  %v2543_v20 = vmax.f32 %v1813_v7, %v2287_v16 }
 0x207   : > { %3511 = vst.msk [vmem:[%s4754_s12 + $0xb4] sm:$0xf] %vm3465_vm3, %v3254_v13  ;;  %v2866_v21 = vmul.f32 %v5857_v52, %v2606_v17  ;;  %v2930_v22 = vmul.f32 %v5857_v52, %v2670_v18 }
 0x208   : > { %3575 = vst.msk [vmem:[%s4754_s12 + $0x1b4] sm:$0xf] %vm3465_vm3, %v3318_v14  ;;  %v2739_v23 = vmul.f32 %v5857_v52, %v2479_v19  ;;  %v2803_v24 = vmul.f32 %v5857_v52, %v2543_v20  ;;  %v1972_v25 = vpop.f32.mrf.mxu2  ;;  %v2132_v26 = vpop.f32.mrf.mxu3 }
 0x209   : > { %v3126_v27 = vadd.f32 %v5813_v6, %v2866_v21  ;;  %v3190_v28 = vadd.f32 %v5813_v6, %v2930_v22  ;;  %v1973_v30 = vadd.f32 %v5820_v3, %v1972_v25  ;;  %v2133_v31 = vadd.f32 %v5820_v3, %v2132_v26  ;;  %v1654_v32 = vpop.f32.mrf.mxu0  ;;  %v1814_v33 = vpop.f32.mrf.mxu1 }
 0x20a   : > { %v2999_v34 = vadd.f32 %v5813_v6, %v2739_v23  ;;  %v3063_v35 = vadd.f32 %v5813_v6, %v2803_v24  ;;  %v1655_v39 = vadd.f32 %v5820_v3, %v1654_v32  ;;  %v1815_v29 = vadd.f32 %v5820_v3, %v1814_v33 }
 0x20b   : > { %v3382_v36 = vpack.c.bf16 %v3126_v27, %v3126_v27  ;;  %v3446_v37 = vpack.c.bf16 %v3190_v28, %v3190_v28  ;;  %v2351_v38 = vmul.f32 0.2, %v1973_v30  ;;  %v2415_v40 = vmul.f32 0.2, %v2133_v31 }
 0x20c   : > { %v3255_v41 = vpack.c.bf16 %v2999_v34, %v2999_v34  ;;  %v3319_v42 = vpack.c.bf16 %v3063_v35, %v3063_v35  ;;  %v2224_v43 = vmul.f32 0.2, %v1655_v39  ;;  %v2288_v44 = vmul.f32 0.2, %v1815_v29 }
 0x20d   : > { %3639 = vst.msk [vmem:[%s4754_s12 + $0x2b4] sm:$0xf] %vm3465_vm3, %v3382_v36  ;;  %v2607_v45 = vmax.f32 %v1973_v30, %v2351_v38  ;;  %v2671_v47 = vmax.f32 %v2133_v31, %v2415_v40 }
 0x20e   : > { %3703 = vst.msk [vmem:[%s4754_s12 + $0x3b4] sm:$0xf] %vm3465_vm3, %v3446_v37  ;;  %v2480_v48 = vmax.f32 %v1655_v39, %v2224_v43  ;;  %v2544_v50 = vmax.f32 %v1815_v29, %v2288_v44 }
 0x20f   : > { %3512 = vst.msk [vmem:[%s4754_s12 + $0xb8] sm:$0xf] %vm3465_vm3, %v3255_v41  ;;  %v2867_v51 = vmul.f32 %v5857_v52, %v2607_v45  ;;  %v2931_v53 = vmul.f32 %v5857_v52, %v2671_v47 }
 0x210   : > { %3576 = vst.msk [vmem:[%s4754_s12 + $0x1b8] sm:$0xf] %vm3465_vm3, %v3319_v42  ;;  %v2740_v54 = vmul.f32 %v5857_v52, %v2480_v48  ;;  %v2804_v55 = vmul.f32 %v5857_v52, %v2544_v50  ;;  %v1974_v56 = vpop.f32.mrf.mxu2  ;;  %v2134_v57 = vpop.f32.mrf.mxu3 }
 0x211   : > { %v3127_v49 = vadd.f32 %v5813_v6, %v2867_v51  ;;  %v3191_v58 = vadd.f32 %v5813_v6, %v2931_v53  ;;  %v1975_v59 = vadd.f32 %v5820_v3, %v1974_v56  ;;  %v2135_v46 = vadd.f32 %v5820_v3, %v2134_v57  ;;  %v1657_v60 = vpop.f32.mrf.mxu0  ;;  %v1817_v61 = vpop.f32.mrf.mxu1 }
 0x212   : > { %v3000_v62 = vadd.f32 %v5813_v6, %v2740_v54  ;;  %v3064_v63 = vadd.f32 %v5813_v6, %v2804_v55  ;;  %v1658_v0 = vadd.f32 %v5820_v3, %v1657_v60  ;;  %v1818_v1 = vadd.f32 %v5820_v3, %v1817_v61 }
 0x213   : > { %v3383_v2 = vpack.c.bf16 %v3127_v49, %v3127_v49  ;;  %v3447_v5 = vpack.c.bf16 %v3191_v58, %v3191_v58  ;;  %v2352_v4 = vmul.f32 0.2, %v1975_v59  ;;  %v2416_v8 = vmul.f32 0.2, %v2135_v46 }
 0x214   : > { %v3256_v7 = vpack.c.bf16 %v3000_v62, %v3000_v62  ;;  %v3320_v9 = vpack.c.bf16 %v3064_v63, %v3064_v63  ;;  %v2225_v10 = vmul.f32 0.2, %v1658_v0  ;;  %v2289_v11 = vmul.f32 0.2, %v1818_v1 }
 0x215   : > { %3640 = vst.msk [vmem:[%s4754_s12 + $0x2b8] sm:$0xf] %vm3465_vm3, %v3383_v2  ;;  %v2608_v12 = vmax.f32 %v1975_v59, %v2352_v4  ;;  %v2672_v13 = vmax.f32 %v2135_v46, %v2416_v8 }
 0x216   : > { %3704 = vst.msk [vmem:[%s4754_s12 + $0x3b8] sm:$0xf] %vm3465_vm3, %v3447_v5  ;;  %v2481_v14 = vmax.f32 %v1658_v0, %v2225_v10  ;;  %v2545_v15 = vmax.f32 %v1818_v1, %v2289_v11 }
 0x217   : > { %3513 = vst.msk [vmem:[%s4754_s12 + $0xbc] sm:$0xf] %vm3465_vm3, %v3256_v7  ;;  %v2868_v16 = vmul.f32 %v5857_v52, %v2608_v12  ;;  %v2932_v17 = vmul.f32 %v5857_v52, %v2672_v13 }
 0x218   : > { %3577 = vst.msk [vmem:[%s4754_s12 + $0x1bc] sm:$0xf] %vm3465_vm3, %v3320_v9  ;;  %v2741_v18 = vmul.f32 %v5857_v52, %v2481_v14  ;;  %v2805_v19 = vmul.f32 %v5857_v52, %v2545_v15  ;;  %v1977_v20 = vpop.f32.mrf.mxu2  ;;  %v2137_v21 = vpop.f32.mrf.mxu3 }
 0x219   : > { %v3128_v22 = vadd.f32 %v5813_v6, %v2868_v16  ;;  %v3192_v23 = vadd.f32 %v5813_v6, %v2932_v17  ;;  %v1978_v24 = vadd.f32 %v5820_v3, %v1977_v20  ;;  %v2138_v25 = vadd.f32 %v5820_v3, %v2137_v21  ;;  %v1659_v26 = vpop.f32.mrf.mxu0  ;;  %v1819_v27 = vpop.f32.mrf.mxu1 }
 0x21a   : > { %v3001_v28 = vadd.f32 %v5813_v6, %v2741_v18  ;;  %v3065_v30 = vadd.f32 %v5813_v6, %v2805_v19  ;;  %v1660_v31 = vadd.f32 %v5820_v3, %v1659_v26  ;;  %v1820_v32 = vadd.f32 %v5820_v3, %v1819_v27 }
 0x21b   : > { %v3384_v33 = vpack.c.bf16 %v3128_v22, %v3128_v22  ;;  %v3448_v34 = vpack.c.bf16 %v3192_v23, %v3192_v23  ;;  %v2353_v35 = vmul.f32 0.2, %v1978_v24  ;;  %v2417_v39 = vmul.f32 0.2, %v2138_v25 }
 0x21c   : > { %v3257_v29 = vpack.c.bf16 %v3001_v28, %v3001_v28  ;;  %v3321_v36 = vpack.c.bf16 %v3065_v30, %v3065_v30  ;;  %v2226_v37 = vmul.f32 0.2, %v1660_v31  ;;  %v2290_v38 = vmul.f32 0.2, %v1820_v32 }
 0x21d   : > { %3641 = vst.msk [vmem:[%s4754_s12 + $0x2bc] sm:$0xf] %vm3465_vm3, %v3384_v33  ;;  %v2609_v40 = vmax.f32 %v1978_v24, %v2353_v35  ;;  %v2673_v41 = vmax.f32 %v2138_v25, %v2417_v39 }
 0x21e   : > { %3705 = vst.msk [vmem:[%s4754_s12 + $0x3bc] sm:$0xf] %vm3465_vm3, %v3448_v34  ;;  %v2482_v42 = vmax.f32 %v1660_v31, %v2226_v37  ;;  %v2546_v43 = vmax.f32 %v1820_v32, %v2290_v38 }
 0x21f   : > { %3514 = vst.msk [vmem:[%s4754_s12 + $0xc0] sm:$0xf] %vm3465_vm3, %v3257_v29  ;;  %v2869_v44 = vmul.f32 %v5857_v52, %v2609_v40  ;;  %v2933_v45 = vmul.f32 %v5857_v52, %v2673_v41 }
 0x220   : > { %3578 = vst.msk [vmem:[%s4754_s12 + $0x1c0] sm:$0xf] %vm3465_vm3, %v3321_v36  ;;  %v2742_v47 = vmul.f32 %v5857_v52, %v2482_v42  ;;  %v2806_v48 = vmul.f32 %v5857_v52, %v2546_v43  ;;  %v1979_v50 = vpop.f32.mrf.mxu2  ;;  %v2139_v51 = vpop.f32.mrf.mxu3 }
 0x221   : > { %v3129_v53 = vadd.f32 %v5813_v6, %v2869_v44  ;;  %v3193_v54 = vadd.f32 %v5813_v6, %v2933_v45  ;;  %v1980_v55 = vadd.f32 %v5820_v3, %v1979_v50  ;;  %v2140_v56 = vadd.f32 %v5820_v3, %v2139_v51  ;;  %v1662_v57 = vpop.f32.mrf.mxu0  ;;  %v1822_v49 = vpop.f32.mrf.mxu1 }
 0x222   : > { %v3002_v58 = vadd.f32 %v5813_v6, %v2742_v47  ;;  %v3066_v59 = vadd.f32 %v5813_v6, %v2806_v48  ;;  %v1663_v46 = vadd.f32 %v5820_v3, %v1662_v57  ;;  %v1823_v60 = vadd.f32 %v5820_v3, %v1822_v49 }
 0x223   : > { %v3385_v61 = vpack.c.bf16 %v3129_v53, %v3129_v53  ;;  %v3449_v62 = vpack.c.bf16 %v3193_v54, %v3193_v54  ;;  %v2354_v63 = vmul.f32 0.2, %v1980_v55  ;;  %v2418_v0 = vmul.f32 0.2, %v2140_v56 }
 0x224   : > { %v3258_v1 = vpack.c.bf16 %v3002_v58, %v3002_v58  ;;  %v3322_v2 = vpack.c.bf16 %v3066_v59, %v3066_v59  ;;  %v2227_v5 = vmul.f32 0.2, %v1663_v46  ;;  %v2291_v4 = vmul.f32 0.2, %v1823_v60 }
 0x225   : > { %3642 = vst.msk [vmem:[%s4754_s12 + $0x2c0] sm:$0xf] %vm3465_vm3, %v3385_v61  ;;  %v2610_v8 = vmax.f32 %v1980_v55, %v2354_v63  ;;  %v2674_v7 = vmax.f32 %v2140_v56, %v2418_v0 }
 0x226   : > { %3706 = vst.msk [vmem:[%s4754_s12 + $0x3c0] sm:$0xf] %vm3465_vm3, %v3449_v62  ;;  %v2483_v9 = vmax.f32 %v1663_v46, %v2227_v5  ;;  %v2547_v10 = vmax.f32 %v1823_v60, %v2291_v4 }
 0x227   : > { %3515 = vst.msk [vmem:[%s4754_s12 + $0xc4] sm:$0xf] %vm3465_vm3, %v3258_v1  ;;  %v2870_v11 = vmul.f32 %v5857_v52, %v2610_v8  ;;  %v2934_v12 = vmul.f32 %v5857_v52, %v2674_v7 }
 0x228   : > { %3579 = vst.msk [vmem:[%s4754_s12 + $0x1c4] sm:$0xf] %vm3465_vm3, %v3322_v2  ;;  %v2743_v13 = vmul.f32 %v5857_v52, %v2483_v9  ;;  %v2807_v14 = vmul.f32 %v5857_v52, %v2547_v10  ;;  %v1982_v15 = vpop.f32.mrf.mxu2  ;;  %v2142_v16 = vpop.f32.mrf.mxu3 }
 0x229   : > { %v3130_v17 = vadd.f32 %v5813_v6, %v2870_v11  ;;  %v3194_v18 = vadd.f32 %v5813_v6, %v2934_v12  ;;  %v1983_v19 = vadd.f32 %v5820_v3, %v1982_v15  ;;  %v2143_v20 = vadd.f32 %v5820_v3, %v2142_v16  ;;  %v1664_v21 = vpop.f32.mrf.mxu0  ;;  %v1824_v22 = vpop.f32.mrf.mxu1 }
 0x22a   : > { %v3003_v23 = vadd.f32 %v5813_v6, %v2743_v13  ;;  %v3067_v24 = vadd.f32 %v5813_v6, %v2807_v14  ;;  %v1665_v25 = vadd.f32 %v5820_v3, %v1664_v21  ;;  %v1825_v26 = vadd.f32 %v5820_v3, %v1824_v22 }
 0x22b   : > { %v3386_v27 = vpack.c.bf16 %v3130_v17, %v3130_v17  ;;  %v3450_v28 = vpack.c.bf16 %v3194_v18, %v3194_v18  ;;  %v2355_v30 = vmul.f32 0.2, %v1983_v19  ;;  %v2419_v31 = vmul.f32 0.2, %v2143_v20 }
 0x22c   : > { %v3259_v32 = vpack.c.bf16 %v3003_v23, %v3003_v23  ;;  %v3323_v33 = vpack.c.bf16 %v3067_v24, %v3067_v24  ;;  %v2228_v34 = vmul.f32 0.2, %v1665_v25  ;;  %v2292_v35 = vmul.f32 0.2, %v1825_v26 }
 0x22d   : > { %3643 = vst.msk [vmem:[%s4754_s12 + $0x2c4] sm:$0xf] %vm3465_vm3, %v3386_v27  ;;  %v2611_v39 = vmax.f32 %v1983_v19, %v2355_v30  ;;  %v2675_v29 = vmax.f32 %v2143_v20, %v2419_v31 }
 0x22e   : > { %3707 = vst.msk [vmem:[%s4754_s12 + $0x3c4] sm:$0xf] %vm3465_vm3, %v3450_v28  ;;  %v2484_v36 = vmax.f32 %v1665_v25, %v2228_v34  ;;  %v2548_v37 = vmax.f32 %v1825_v26, %v2292_v35 }
 0x22f   : > { %3516 = vst.msk [vmem:[%s4754_s12 + $0xc8] sm:$0xf] %vm3465_vm3, %v3259_v32  ;;  %v2871_v38 = vmul.f32 %v5857_v52, %v2611_v39  ;;  %v2935_v40 = vmul.f32 %v5857_v52, %v2675_v29 }
 0x230   : > { %3580 = vst.msk [vmem:[%s4754_s12 + $0x1c8] sm:$0xf] %vm3465_vm3, %v3323_v33  ;;  %v2744_v41 = vmul.f32 %v5857_v52, %v2484_v36  ;;  %v2808_v42 = vmul.f32 %v5857_v52, %v2548_v37  ;;  %v1984_v43 = vpop.f32.mrf.mxu2  ;;  %v2144_v44 = vpop.f32.mrf.mxu3 }
 0x231   : > { %v3131_v45 = vadd.f32 %v5813_v6, %v2871_v38  ;;  %v3195_v47 = vadd.f32 %v5813_v6, %v2935_v40  ;;  %v1985_v48 = vadd.f32 %v5820_v3, %v1984_v43  ;;  %v2145_v50 = vadd.f32 %v5820_v3, %v2144_v44  ;;  %v1667_v51 = vpop.f32.mrf.mxu0  ;;  %v1827_v53 = vpop.f32.mrf.mxu1 }
 0x232   : > { %v3004_v54 = vadd.f32 %v5813_v6, %v2744_v41  ;;  %v3068_v55 = vadd.f32 %v5813_v6, %v2808_v42  ;;  %v1668_v56 = vadd.f32 %v5820_v3, %v1667_v51  ;;  %v1828_v57 = vadd.f32 %v5820_v3, %v1827_v53 }
 0x233   : > { %v3387_v49 = vpack.c.bf16 %v3131_v45, %v3131_v45  ;;  %v3451_v58 = vpack.c.bf16 %v3195_v47, %v3195_v47  ;;  %v2356_v59 = vmul.f32 0.2, %v1985_v48  ;;  %v2420_v46 = vmul.f32 0.2, %v2145_v50 }
 0x234   : > { %v3260_v60 = vpack.c.bf16 %v3004_v54, %v3004_v54  ;;  %v3324_v61 = vpack.c.bf16 %v3068_v55, %v3068_v55  ;;  %v2229_v62 = vmul.f32 0.2, %v1668_v56  ;;  %v2293_v63 = vmul.f32 0.2, %v1828_v57 }
 0x235   : > { %3644 = vst.msk [vmem:[%s4754_s12 + $0x2c8] sm:$0xf] %vm3465_vm3, %v3387_v49  ;;  %v2612_v0 = vmax.f32 %v1985_v48, %v2356_v59  ;;  %v2676_v1 = vmax.f32 %v2145_v50, %v2420_v46 }
 0x236   : > { %3708 = vst.msk [vmem:[%s4754_s12 + $0x3c8] sm:$0xf] %vm3465_vm3, %v3451_v58  ;;  %v2485_v2 = vmax.f32 %v1668_v56, %v2229_v62  ;;  %v2549_v5 = vmax.f32 %v1828_v57, %v2293_v63 }
 0x237   : > { %3517 = vst.msk [vmem:[%s4754_s12 + $0xcc] sm:$0xf] %vm3465_vm3, %v3260_v60  ;;  %v2872_v4 = vmul.f32 %v5857_v52, %v2612_v0  ;;  %v2936_v8 = vmul.f32 %v5857_v52, %v2676_v1 }
 0x238   : > { %3581 = vst.msk [vmem:[%s4754_s12 + $0x1cc] sm:$0xf] %vm3465_vm3, %v3324_v61  ;;  %v2745_v7 = vmul.f32 %v5857_v52, %v2485_v2  ;;  %v2809_v9 = vmul.f32 %v5857_v52, %v2549_v5  ;;  %v1987_v10 = vpop.f32.mrf.mxu2  ;;  %v2147_v11 = vpop.f32.mrf.mxu3 }
 0x239   : > { %v3132_v12 = vadd.f32 %v5813_v6, %v2872_v4  ;;  %v3196_v13 = vadd.f32 %v5813_v6, %v2936_v8  ;;  %v1988_v14 = vadd.f32 %v5820_v3, %v1987_v10  ;;  %v2148_v15 = vadd.f32 %v5820_v3, %v2147_v11  ;;  %v1669_v16 = vpop.f32.mrf.mxu0  ;;  %v1829_v17 = vpop.f32.mrf.mxu1 }
 0x23a   : > { %v3005_v18 = vadd.f32 %v5813_v6, %v2745_v7  ;;  %v3069_v19 = vadd.f32 %v5813_v6, %v2809_v9  ;;  %v1670_v20 = vadd.f32 %v5820_v3, %v1669_v16  ;;  %v1830_v21 = vadd.f32 %v5820_v3, %v1829_v17 }
 0x23b   : > { %v3388_v22 = vpack.c.bf16 %v3132_v12, %v3132_v12  ;;  %v3452_v23 = vpack.c.bf16 %v3196_v13, %v3196_v13  ;;  %v2357_v24 = vmul.f32 0.2, %v1988_v14  ;;  %v2421_v25 = vmul.f32 0.2, %v2148_v15 }
 0x23c   : > { %v3261_v26 = vpack.c.bf16 %v3005_v18, %v3005_v18  ;;  %v3325_v27 = vpack.c.bf16 %v3069_v19, %v3069_v19  ;;  %v2230_v28 = vmul.f32 0.2, %v1670_v20  ;;  %v2294_v30 = vmul.f32 0.2, %v1830_v21 }
 0x23d   : > { %3645 = vst.msk [vmem:[%s4754_s12 + $0x2cc] sm:$0xf] %vm3465_vm3, %v3388_v22  ;;  %v2613_v31 = vmax.f32 %v1988_v14, %v2357_v24  ;;  %v2677_v32 = vmax.f32 %v2148_v15, %v2421_v25 }
 0x23e   : > { %3709 = vst.msk [vmem:[%s4754_s12 + $0x3cc] sm:$0xf] %vm3465_vm3, %v3452_v23  ;;  %v2486_v33 = vmax.f32 %v1670_v20, %v2230_v28  ;;  %v2550_v34 = vmax.f32 %v1830_v21, %v2294_v30 }
 0x23f   : > { %3518 = vst.msk [vmem:[%s4754_s12 + $0xd0] sm:$0xf] %vm3465_vm3, %v3261_v26  ;;  %v2873_v35 = vmul.f32 %v5857_v52, %v2613_v31  ;;  %v2937_v39 = vmul.f32 %v5857_v52, %v2677_v32 }
 0x240   : > { %3582 = vst.msk [vmem:[%s4754_s12 + $0x1d0] sm:$0xf] %vm3465_vm3, %v3325_v27  ;;  %v2746_v29 = vmul.f32 %v5857_v52, %v2486_v33  ;;  %v2810_v36 = vmul.f32 %v5857_v52, %v2550_v34  ;;  %v1989_v37 = vpop.f32.mrf.mxu2  ;;  %v2149_v38 = vpop.f32.mrf.mxu3 }
 0x241   : > { %v3133_v40 = vadd.f32 %v5813_v6, %v2873_v35  ;;  %v3197_v41 = vadd.f32 %v5813_v6, %v2937_v39  ;;  %v1990_v42 = vadd.f32 %v5820_v3, %v1989_v37  ;;  %v2150_v43 = vadd.f32 %v5820_v3, %v2149_v38  ;;  %v1672_v44 = vpop.f32.mrf.mxu0  ;;  %v1832_v45 = vpop.f32.mrf.mxu1 }
 0x242   : > { %v3006_v47 = vadd.f32 %v5813_v6, %v2746_v29  ;;  %v3070_v48 = vadd.f32 %v5813_v6, %v2810_v36  ;;  %v1673_v50 = vadd.f32 %v5820_v3, %v1672_v44  ;;  %v1833_v51 = vadd.f32 %v5820_v3, %v1832_v45 }
 0x243   : > { %v3389_v53 = vpack.c.bf16 %v3133_v40, %v3133_v40  ;;  %v3453_v54 = vpack.c.bf16 %v3197_v41, %v3197_v41  ;;  %v2358_v55 = vmul.f32 0.2, %v1990_v42  ;;  %v2422_v56 = vmul.f32 0.2, %v2150_v43 }
 0x244   : > { %v3262_v57 = vpack.c.bf16 %v3006_v47, %v3006_v47  ;;  %v3326_v49 = vpack.c.bf16 %v3070_v48, %v3070_v48  ;;  %v2231_v58 = vmul.f32 0.2, %v1673_v50  ;;  %v2295_v59 = vmul.f32 0.2, %v1833_v51 }
 0x245   : > { %3646 = vst.msk [vmem:[%s4754_s12 + $0x2d0] sm:$0xf] %vm3465_vm3, %v3389_v53  ;;  %v2614_v46 = vmax.f32 %v1990_v42, %v2358_v55  ;;  %v2678_v60 = vmax.f32 %v2150_v43, %v2422_v56 }
 0x246   : > { %3710 = vst.msk [vmem:[%s4754_s12 + $0x3d0] sm:$0xf] %vm3465_vm3, %v3453_v54  ;;  %v2487_v61 = vmax.f32 %v1673_v50, %v2231_v58  ;;  %v2551_v62 = vmax.f32 %v1833_v51, %v2295_v59 }
 0x247   : > { %3519 = vst.msk [vmem:[%s4754_s12 + $0xd4] sm:$0xf] %vm3465_vm3, %v3262_v57  ;;  %v2874_v63 = vmul.f32 %v5857_v52, %v2614_v46  ;;  %v2938_v0 = vmul.f32 %v5857_v52, %v2678_v60 }
 0x248   : > { %3583 = vst.msk [vmem:[%s4754_s12 + $0x1d4] sm:$0xf] %vm3465_vm3, %v3326_v49  ;;  %v2747_v1 = vmul.f32 %v5857_v52, %v2487_v61  ;;  %v2811_v2 = vmul.f32 %v5857_v52, %v2551_v62  ;;  %v1992_v5 = vpop.f32.mrf.mxu2  ;;  %v2152_v4 = vpop.f32.mrf.mxu3 }
 0x249   : > { %v3134_v8 = vadd.f32 %v5813_v6, %v2874_v63  ;;  %v3198_v7 = vadd.f32 %v5813_v6, %v2938_v0  ;;  %v1993_v9 = vadd.f32 %v5820_v3, %v1992_v5  ;;  %v2153_v10 = vadd.f32 %v5820_v3, %v2152_v4  ;;  %v1674_v11 = vpop.f32.mrf.mxu0  ;;  %v1834_v12 = vpop.f32.mrf.mxu1 }
 0x24a   : > { %v3007_v13 = vadd.f32 %v5813_v6, %v2747_v1  ;;  %v3071_v14 = vadd.f32 %v5813_v6, %v2811_v2  ;;  %v1675_v15 = vadd.f32 %v5820_v3, %v1674_v11  ;;  %v1835_v16 = vadd.f32 %v5820_v3, %v1834_v12 }
 0x24b   : > { %v3390_v17 = vpack.c.bf16 %v3134_v8, %v3134_v8  ;;  %v3454_v18 = vpack.c.bf16 %v3198_v7, %v3198_v7  ;;  %v2359_v19 = vmul.f32 0.2, %v1993_v9  ;;  %v2423_v20 = vmul.f32 0.2, %v2153_v10 }
 0x24c   : > { %v3263_v21 = vpack.c.bf16 %v3007_v13, %v3007_v13  ;;  %v3327_v22 = vpack.c.bf16 %v3071_v14, %v3071_v14  ;;  %v2232_v23 = vmul.f32 0.2, %v1675_v15  ;;  %v2296_v24 = vmul.f32 0.2, %v1835_v16 }
 0x24d   : > { %3647 = vst.msk [vmem:[%s4754_s12 + $0x2d4] sm:$0xf] %vm3465_vm3, %v3390_v17  ;;  %v2615_v25 = vmax.f32 %v1993_v9, %v2359_v19  ;;  %v2679_v26 = vmax.f32 %v2153_v10, %v2423_v20 }
 0x24e   : > { %3711 = vst.msk [vmem:[%s4754_s12 + $0x3d4] sm:$0xf] %vm3465_vm3, %v3454_v18  ;;  %v2488_v27 = vmax.f32 %v1675_v15, %v2232_v23  ;;  %v2552_v28 = vmax.f32 %v1835_v16, %v2296_v24 }
 0x24f   : > { %3520 = vst.msk [vmem:[%s4754_s12 + $0xd8] sm:$0xf] %vm3465_vm3, %v3263_v21  ;;  %v2875_v30 = vmul.f32 %v5857_v52, %v2615_v25  ;;  %v2939_v31 = vmul.f32 %v5857_v52, %v2679_v26 }
 0x250   : > { %3584 = vst.msk [vmem:[%s4754_s12 + $0x1d8] sm:$0xf] %vm3465_vm3, %v3327_v22  ;;  %v2748_v32 = vmul.f32 %v5857_v52, %v2488_v27  ;;  %v2812_v33 = vmul.f32 %v5857_v52, %v2552_v28  ;;  %v1994_v34 = vpop.f32.mrf.mxu2  ;;  %v2154_v35 = vpop.f32.mrf.mxu3 }
 0x251   : > { %v3135_v39 = vadd.f32 %v5813_v6, %v2875_v30  ;;  %v3199_v29 = vadd.f32 %v5813_v6, %v2939_v31  ;;  %v1995_v36 = vadd.f32 %v5820_v3, %v1994_v34  ;;  %v2155_v37 = vadd.f32 %v5820_v3, %v2154_v35  ;;  %v1677_v38 = vpop.f32.mrf.mxu0  ;;  %v1837_v40 = vpop.f32.mrf.mxu1 }
 0x252   : > { %v3008_v41 = vadd.f32 %v5813_v6, %v2748_v32  ;;  %v3072_v42 = vadd.f32 %v5813_v6, %v2812_v33  ;;  %v1678_v43 = vadd.f32 %v5820_v3, %v1677_v38  ;;  %v1838_v44 = vadd.f32 %v5820_v3, %v1837_v40 }
 0x253   : > { %v3391_v45 = vpack.c.bf16 %v3135_v39, %v3135_v39  ;;  %v3455_v47 = vpack.c.bf16 %v3199_v29, %v3199_v29  ;;  %v2360_v48 = vmul.f32 0.2, %v1995_v36  ;;  %v2424_v50 = vmul.f32 0.2, %v2155_v37 }
 0x254   : > { %v3264_v51 = vpack.c.bf16 %v3008_v41, %v3008_v41  ;;  %v3328_v53 = vpack.c.bf16 %v3072_v42, %v3072_v42  ;;  %v2233_v54 = vmul.f32 0.2, %v1678_v43  ;;  %v2297_v55 = vmul.f32 0.2, %v1838_v44 }
 0x255   : > { %3648 = vst.msk [vmem:[%s4754_s12 + $0x2d8] sm:$0xf] %vm3465_vm3, %v3391_v45  ;;  %v2616_v56 = vmax.f32 %v1995_v36, %v2360_v48  ;;  %v2680_v57 = vmax.f32 %v2155_v37, %v2424_v50 }
 0x256   : > { %3712 = vst.msk [vmem:[%s4754_s12 + $0x3d8] sm:$0xf] %vm3465_vm3, %v3455_v47  ;;  %v2489_v49 = vmax.f32 %v1678_v43, %v2233_v54  ;;  %v2553_v58 = vmax.f32 %v1838_v44, %v2297_v55 }
 0x257   : > { %3521 = vst.msk [vmem:[%s4754_s12 + $0xdc] sm:$0xf] %vm3465_vm3, %v3264_v51  ;;  %v2876_v59 = vmul.f32 %v5857_v52, %v2616_v56  ;;  %v2940_v46 = vmul.f32 %v5857_v52, %v2680_v57 }
 0x258   : > { %3585 = vst.msk [vmem:[%s4754_s12 + $0x1dc] sm:$0xf] %vm3465_vm3, %v3328_v53  ;;  %v2749_v60 = vmul.f32 %v5857_v52, %v2489_v49  ;;  %v2813_v61 = vmul.f32 %v5857_v52, %v2553_v58  ;;  %v1997_v62 = vpop.f32.mrf.mxu2  ;;  %v2157_v63 = vpop.f32.mrf.mxu3 }
 0x259   : > { %v3136_v0 = vadd.f32 %v5813_v6, %v2876_v59  ;;  %v3200_v1 = vadd.f32 %v5813_v6, %v2940_v46  ;;  %v1998_v2 = vadd.f32 %v5820_v3, %v1997_v62  ;;  %v2158_v5 = vadd.f32 %v5820_v3, %v2157_v63  ;;  %v1679_v4 = vpop.f32.mrf.mxu0  ;;  %v1839_v8 = vpop.f32.mrf.mxu1 }
 0x25a   : > { %v3009_v7 = vadd.f32 %v5813_v6, %v2749_v60  ;;  %v3073_v9 = vadd.f32 %v5813_v6, %v2813_v61  ;;  %v1680_v10 = vadd.f32 %v5820_v3, %v1679_v4  ;;  %v1840_v11 = vadd.f32 %v5820_v3, %v1839_v8 }
 0x25b   : > { %v3392_v12 = vpack.c.bf16 %v3136_v0, %v3136_v0  ;;  %v3456_v13 = vpack.c.bf16 %v3200_v1, %v3200_v1  ;;  %v2361_v14 = vmul.f32 0.2, %v1998_v2  ;;  %v2425_v15 = vmul.f32 0.2, %v2158_v5 }
 0x25c   : > { %v3265_v16 = vpack.c.bf16 %v3009_v7, %v3009_v7  ;;  %v3329_v17 = vpack.c.bf16 %v3073_v9, %v3073_v9  ;;  %v2234_v18 = vmul.f32 0.2, %v1680_v10  ;;  %v2298_v19 = vmul.f32 0.2, %v1840_v11 }
 0x25d   : > { %3649 = vst.msk [vmem:[%s4754_s12 + $0x2dc] sm:$0xf] %vm3465_vm3, %v3392_v12  ;;  %v2617_v20 = vmax.f32 %v1998_v2, %v2361_v14  ;;  %v2681_v21 = vmax.f32 %v2158_v5, %v2425_v15 }
 0x25e   : > { %3713 = vst.msk [vmem:[%s4754_s12 + $0x3dc] sm:$0xf] %vm3465_vm3, %v3456_v13  ;;  %v2490_v22 = vmax.f32 %v1680_v10, %v2234_v18  ;;  %v2554_v23 = vmax.f32 %v1840_v11, %v2298_v19 }
 0x25f   : > { %3522 = vst.msk [vmem:[%s4754_s12 + $0xe0] sm:$0xf] %vm3465_vm3, %v3265_v16  ;;  %v2877_v24 = vmul.f32 %v5857_v52, %v2617_v20  ;;  %v2941_v25 = vmul.f32 %v5857_v52, %v2681_v21 }
 0x260   : > { %3586 = vst.msk [vmem:[%s4754_s12 + $0x1e0] sm:$0xf] %vm3465_vm3, %v3329_v17  ;;  %v2750_v26 = vmul.f32 %v5857_v52, %v2490_v22  ;;  %v2814_v27 = vmul.f32 %v5857_v52, %v2554_v23  ;;  %v1999_v28 = vpop.f32.mrf.mxu2  ;;  %v2159_v30 = vpop.f32.mrf.mxu3  ;;  %v6156_v23 = vld [vmem:[%s6277_s4] ss:$0 sm:$0xff] }
 0x261   : > { %v3137_v31 = vadd.f32 %v5813_v6, %v2877_v24  ;;  %v3201_v32 = vadd.f32 %v5813_v6, %v2941_v25  ;;  %v2000_v33 = vadd.f32 %v5820_v3, %v1999_v28  ;;  %v2160_v34 = vadd.f32 %v5820_v3, %v2159_v30  ;;  %v1682_v35 = vpop.f32.mrf.mxu0  ;;  %v1842_v39 = vpop.f32.mrf.mxu1 }
 0x262   : > { %v3010_v29 = vadd.f32 %v5813_v6, %v2750_v26  ;;  %v3074_v36 = vadd.f32 %v5813_v6, %v2814_v27  ;;  %v1683_v37 = vadd.f32 %v5820_v3, %v1682_v35  ;;  %v1843_v38 = vadd.f32 %v5820_v3, %v1842_v39  ;;  %v6163_v26 = vld [vmem:[%s6275_s2] ss:$0 sm:$0xff] }
 0x263   : > { %v3393_v40 = vpack.c.bf16 %v3137_v31, %v3137_v31  ;;  %v3457_v41 = vpack.c.bf16 %v3201_v32, %v3201_v32  ;;  %v2362_v42 = vmul.f32 0.2, %v2000_v33  ;;  %v2426_v43 = vmul.f32 0.2, %v2160_v34 }
 0x264   : > { %v3266_v44 = vpack.c.bf16 %v3010_v29, %v3010_v29  ;;  %v3330_v45 = vpack.c.bf16 %v3074_v36, %v3074_v36  ;;  %v2235_v47 = vmul.f32 0.2, %v1683_v37  ;;  %v2299_v48 = vmul.f32 0.2, %v1843_v38 }
 0x265   : > { %3650 = vst.msk [vmem:[%s4754_s12 + $0x2e0] sm:$0xf] %vm3465_vm3, %v3393_v40  ;;  %v2618_v50 = vmax.f32 %v2000_v33, %v2362_v42  ;;  %v2682_v51 = vmax.f32 %v2160_v34, %v2426_v43 }
 0x266   : > { %3714 = vst.msk [vmem:[%s4754_s12 + $0x3e0] sm:$0xf] %vm3465_vm3, %v3457_v41  ;;  %v2491_v53 = vmax.f32 %v1683_v37, %v2235_v47  ;;  %v2555_v54 = vmax.f32 %v1843_v38, %v2299_v48 }
 0x267   : > { %3523 = vst.msk [vmem:[%s4754_s12 + $0xe4] sm:$0xf] %vm3465_vm3, %v3266_v44  ;;  %v2878_v55 = vmul.f32 %v5857_v52, %v2618_v50  ;;  %v2942_v56 = vmul.f32 %v5857_v52, %v2682_v51 }
 0x268   : > { %3587 = vst.msk [vmem:[%s4754_s12 + $0x1e4] sm:$0xf] %vm3465_vm3, %v3330_v45  ;;  %v2751_v57 = vmul.f32 %v5857_v52, %v2491_v53  ;;  %v2815_v49 = vmul.f32 %v5857_v52, %v2555_v54  ;;  %v2002_v58 = vpop.f32.mrf.mxu2  ;;  %v2162_v59 = vpop.f32.mrf.mxu3 }
 0x269   : > { %v3138_v46 = vadd.f32 %v5813_v6, %v2878_v55  ;;  %v3202_v60 = vadd.f32 %v5813_v6, %v2942_v56  ;;  %v2003_v61 = vadd.f32 %v5820_v3, %v2002_v58  ;;  %v2163_v62 = vadd.f32 %v5820_v3, %v2162_v59  ;;  %v1684_v63 = vpop.f32.mrf.mxu0  ;;  %v1844_v0 = vpop.f32.mrf.mxu1 }
 0x26a   : > { %v3011_v1 = vadd.f32 %v5813_v6, %v2751_v57  ;;  %v3075_v2 = vadd.f32 %v5813_v6, %v2815_v49  ;;  %v1685_v5 = vadd.f32 %v5820_v3, %v1684_v63  ;;  %v1845_v4 = vadd.f32 %v5820_v3, %v1844_v0 }
 0x26b   : > { %v3394_v8 = vpack.c.bf16 %v3138_v46, %v3138_v46  ;;  %v3458_v7 = vpack.c.bf16 %v3202_v60, %v3202_v60  ;;  %v2363_v9 = vmul.f32 0.2, %v2003_v61  ;;  %v2427_v10 = vmul.f32 0.2, %v2163_v62 }
 0x26c   : > { %v3267_v11 = vpack.c.bf16 %v3011_v1, %v3011_v1  ;;  %v3331_v12 = vpack.c.bf16 %v3075_v2, %v3075_v2  ;;  %v2236_v13 = vmul.f32 0.2, %v1685_v5  ;;  %v2300_v14 = vmul.f32 0.2, %v1845_v4 }
 0x26d   : > { %3651 = vst.msk [vmem:[%s4754_s12 + $0x2e4] sm:$0xf] %vm3465_vm3, %v3394_v8  ;;  %v2619_v15 = vmax.f32 %v2003_v61, %v2363_v9  ;;  %v2683_v16 = vmax.f32 %v2163_v62, %v2427_v10 }
 0x26e   : > { %3715 = vst.msk [vmem:[%s4754_s12 + $0x3e4] sm:$0xf] %vm3465_vm3, %v3458_v7  ;;  %v2492_v6 = vmax.f32 %v1685_v5, %v2236_v13  ;;  %v2556_v17 = vmax.f32 %v1845_v4, %v2300_v14  ;;  %v6200_v13 = vld [vmem:[%s6276_s3] ss:$0 sm:$0xff] }
 0x26f   : > { %3524 = vst.msk [vmem:[%s4754_s12 + $0xe8] sm:$0xf] %vm3465_vm3, %v3267_v11  ;;  %v2879_v3 = vmul.f32 %v5857_v52, %v2619_v15  ;;  %v2943_v18 = vmul.f32 %v5857_v52, %v2683_v16 }
 0x270   : > { %3588 = vst.msk [vmem:[%s4754_s12 + $0x1e8] sm:$0xf] %vm3465_vm3, %v3331_v12  ;;  %v2752_v19 = vmul.f32 %v5857_v52, %v2492_v6  ;;  %v2816_v20 = vmul.f32 %v5857_v52, %v2556_v17  ;;  %v2004_v21 = vpop.f32.mrf.mxu2  ;;  %v2164_v22 = vpop.f32.mrf.mxu3 }
 0x271   : > { %v3139_v24 = vadd.f32 %v6156_v23, %v2879_v3  ;;  %v3203_v25 = vadd.f32 %v6156_v23, %v2943_v18  ;;  %v2005_v27 = vadd.f32 %v6163_v26, %v2004_v21  ;;  %v2165_v28 = vadd.f32 %v6163_v26, %v2164_v22  ;;  %v1687_v30 = vpop.f32.mrf.mxu0  ;;  %v1847_v31 = vpop.f32.mrf.mxu1 }
 0x272   : > { %v3012_v32 = vadd.f32 %v6156_v23, %v2752_v19  ;;  %v3076_v33 = vadd.f32 %v6156_v23, %v2816_v20  ;;  %v1688_v34 = vadd.f32 %v6163_v26, %v1687_v30  ;;  %v1848_v35 = vadd.f32 %v6163_v26, %v1847_v31 }
 0x273   : > { %v3395_v39 = vpack.c.bf16 %v3139_v24, %v3139_v24  ;;  %v3459_v29 = vpack.c.bf16 %v3203_v25, %v3203_v25  ;;  %v2364_v36 = vmul.f32 0.2, %v2005_v27  ;;  %v2428_v37 = vmul.f32 0.2, %v2165_v28 }
 0x274   : > { %v3268_v38 = vpack.c.bf16 %v3012_v32, %v3012_v32  ;;  %v3332_v40 = vpack.c.bf16 %v3076_v33, %v3076_v33  ;;  %v2237_v41 = vmul.f32 0.2, %v1688_v34  ;;  %v2301_v42 = vmul.f32 0.2, %v1848_v35 }
 0x275   : > { %3652 = vst.msk [vmem:[%s4754_s12 + $0x2e8] sm:$0xf] %vm3465_vm3, %v3395_v39  ;;  %v2620_v43 = vmax.f32 %v2005_v27, %v2364_v36  ;;  %v2684_v44 = vmax.f32 %v2165_v28, %v2428_v37 }
 0x276   : > { %3716 = vst.msk [vmem:[%s4754_s12 + $0x3e8] sm:$0xf] %vm3465_vm3, %v3459_v29  ;;  %v2493_v45 = vmax.f32 %v1688_v34, %v2237_v41  ;;  %v2557_v47 = vmax.f32 %v1848_v35, %v2301_v42 }
 0x277   : > { %3525 = vst.msk [vmem:[%s4754_s12 + $0xec] sm:$0xf] %vm3465_vm3, %v3268_v38  ;;  %v2880_v48 = vmul.f32 %v5857_v52, %v2620_v43  ;;  %v2944_v50 = vmul.f32 %v5857_v52, %v2684_v44 }
 0x278   : > { %3589 = vst.msk [vmem:[%s4754_s12 + $0x1ec] sm:$0xf] %vm3465_vm3, %v3332_v40  ;;  %v2753_v51 = vmul.f32 %v5857_v52, %v2493_v45  ;;  %v2817_v53 = vmul.f32 %v5857_v52, %v2557_v47  ;;  %v2007_v54 = vpop.f32.mrf.mxu2  ;;  %v2167_v55 = vpop.f32.mrf.mxu3 }
 0x279   : > { %v3140_v56 = vadd.f32 %v6156_v23, %v2880_v48  ;;  %v3204_v57 = vadd.f32 %v6156_v23, %v2944_v50  ;;  %v2008_v49 = vadd.f32 %v6163_v26, %v2007_v54  ;;  %v2168_v58 = vadd.f32 %v6163_v26, %v2167_v55  ;;  %v1689_v59 = vpop.f32.mrf.mxu0  ;;  %v1849_v46 = vpop.f32.mrf.mxu1 }
 0x27a   : > { %v3013_v60 = vadd.f32 %v6156_v23, %v2753_v51  ;;  %v3077_v61 = vadd.f32 %v6156_v23, %v2817_v53  ;;  %v1690_v52 = vadd.f32 %v6163_v26, %v1689_v59  ;;  %v1850_v62 = vadd.f32 %v6163_v26, %v1849_v46 }
 0x27b   : > { %v3396_v63 = vpack.c.bf16 %v3140_v56, %v3140_v56  ;;  %v3460_v0 = vpack.c.bf16 %v3204_v57, %v3204_v57  ;;  %v2365_v1 = vmul.f32 0.2, %v2008_v49  ;;  %v2429_v2 = vmul.f32 0.2, %v2168_v58 }
 0x27c   : > { %v3269_v5 = vpack.c.bf16 %v3013_v60, %v3013_v60  ;;  %v3333_v4 = vpack.c.bf16 %v3077_v61, %v3077_v61  ;;  %v2238_v8 = vmul.f32 0.2, %v1690_v52  ;;  %v2302_v7 = vmul.f32 0.2, %v1850_v62 }
 0x27d   : > { %3653 = vst.msk [vmem:[%s4754_s12 + $0x2ec] sm:$0xf] %vm3465_vm3, %v3396_v63  ;;  %v2621_v9 = vmax.f32 %v2008_v49, %v2365_v1  ;;  %v2685_v10 = vmax.f32 %v2168_v58, %v2429_v2 }
 0x27e   : > { %3717 = vst.msk [vmem:[%s4754_s12 + $0x3ec] sm:$0xf] %vm3465_vm3, %v3460_v0  ;;  %v2494_v11 = vmax.f32 %v1690_v52, %v2238_v8  ;;  %v2558_v12 = vmax.f32 %v1850_v62, %v2302_v7 }
 0x27f   : > { %3526 = vst.msk [vmem:[%s4754_s12 + $0xf0] sm:$0xf] %vm3465_vm3, %v3269_v5  ;;  %v2881_v14 = vmul.f32 %v6200_v13, %v2621_v9  ;;  %v2945_v15 = vmul.f32 %v6200_v13, %v2685_v10 }
 0x280   : > { %3590 = vst.msk [vmem:[%s4754_s12 + $0x1f0] sm:$0xf] %vm3465_vm3, %v3333_v4  ;;  %v2754_v16 = vmul.f32 %v6200_v13, %v2494_v11  ;;  %v2818_v6 = vmul.f32 %v6200_v13, %v2558_v12  ;;  %v2009_v17 = vpop.f32.mrf.mxu2  ;;  %v2169_v3 = vpop.f32.mrf.mxu3 }
 0x281   : > { %v3141_v18 = vadd.f32 %v6156_v23, %v2881_v14  ;;  %v3205_v19 = vadd.f32 %v6156_v23, %v2945_v15  ;;  %v2010_v20 = vadd.f32 %v6163_v26, %v2009_v17  ;;  %v2170_v21 = vadd.f32 %v6163_v26, %v2169_v3  ;;  %v1692_v22 = vpop.f32.mrf.mxu0  ;;  %v1852_v24 = vpop.f32.mrf.mxu1 }
 0x282   : > { %v3014_v25 = vadd.f32 %v6156_v23, %v2754_v16  ;;  %v3078_v27 = vadd.f32 %v6156_v23, %v2818_v6  ;;  %v1693_v28 = vadd.f32 %v6163_v26, %v1692_v22  ;;  %v1853_v30 = vadd.f32 %v6163_v26, %v1852_v24 }
 0x283   : > { %v3397_v31 = vpack.c.bf16 %v3141_v18, %v3141_v18  ;;  %v3461_v32 = vpack.c.bf16 %v3205_v19, %v3205_v19  ;;  %v2366_v33 = vmul.f32 0.2, %v2010_v20  ;;  %v2430_v34 = vmul.f32 0.2, %v2170_v21 }
 0x284   : > { %v3270_v35 = vpack.c.bf16 %v3014_v25, %v3014_v25  ;;  %v3334_v39 = vpack.c.bf16 %v3078_v27, %v3078_v27  ;;  %v2239_v29 = vmul.f32 0.2, %v1693_v28  ;;  %v2303_v36 = vmul.f32 0.2, %v1853_v30 }
 0x285   : > { %3654 = vst.msk [vmem:[%s4754_s12 + $0x2f0] sm:$0xf] %vm3465_vm3, %v3397_v31  ;;  %v2622_v37 = vmax.f32 %v2010_v20, %v2366_v33  ;;  %v2686_v38 = vmax.f32 %v2170_v21, %v2430_v34 }
 0x286   : > { %3718 = vst.msk [vmem:[%s4754_s12 + $0x3f0] sm:$0xf] %vm3465_vm3, %v3461_v32  ;;  %v2495_v40 = vmax.f32 %v1693_v28, %v2239_v29  ;;  %v2559_v41 = vmax.f32 %v1853_v30, %v2303_v36 }
 0x287   : > { %3527 = vst.msk [vmem:[%s4754_s12 + $0xf4] sm:$0xf] %vm3465_vm3, %v3270_v35  ;;  %v2882_v42 = vmul.f32 %v6200_v13, %v2622_v37  ;;  %v2946_v43 = vmul.f32 %v6200_v13, %v2686_v38 }
 0x288   : > { %3591 = vst.msk [vmem:[%s4754_s12 + $0x1f4] sm:$0xf] %vm3465_vm3, %v3334_v39  ;;  %v2755_v44 = vmul.f32 %v6200_v13, %v2495_v40  ;;  %v2819_v45 = vmul.f32 %v6200_v13, %v2559_v41  ;;  %v2012_v47 = vpop.f32.mrf.mxu2  ;;  %v2172_v48 = vpop.f32.mrf.mxu3 }
 0x289   : > { %v3142_v50 = vadd.f32 %v6156_v23, %v2882_v42  ;;  %v3206_v51 = vadd.f32 %v6156_v23, %v2946_v43  ;;  %v2013_v53 = vadd.f32 %v6163_v26, %v2012_v47  ;;  %v2173_v54 = vadd.f32 %v6163_v26, %v2172_v48  ;;  %v1694_v55 = vpop.f32.mrf.mxu0  ;;  %v1854_v56 = vpop.f32.mrf.mxu1 }
 0x28a   : > { %v3015_v57 = vadd.f32 %v6156_v23, %v2755_v44  ;;  %v3079_v49 = vadd.f32 %v6156_v23, %v2819_v45  ;;  %v1695_v58 = vadd.f32 %v6163_v26, %v1694_v55  ;;  %v1855_v59 = vadd.f32 %v6163_v26, %v1854_v56 }
 0x28b   : > { %v3398_v46 = vpack.c.bf16 %v3142_v50, %v3142_v50  ;;  %v3462_v60 = vpack.c.bf16 %v3206_v51, %v3206_v51  ;;  %v2367_v61 = vmul.f32 0.2, %v2013_v53  ;;  %v2431_v52 = vmul.f32 0.2, %v2173_v54 }
 0x28c   : > { %v3271_v62 = vpack.c.bf16 %v3015_v57, %v3015_v57  ;;  %v3335_v63 = vpack.c.bf16 %v3079_v49, %v3079_v49  ;;  %v2240_v0 = vmul.f32 0.2, %v1695_v58  ;;  %v2304_v1 = vmul.f32 0.2, %v1855_v59 }
 0x28d   : > { %3655 = vst.msk [vmem:[%s4754_s12 + $0x2f4] sm:$0xf] %vm3465_vm3, %v3398_v46  ;;  %v2623_v2 = vmax.f32 %v2013_v53, %v2367_v61  ;;  %v2687_v5 = vmax.f32 %v2173_v54, %v2431_v52 }
 0x28e   : > { %3719 = vst.msk [vmem:[%s4754_s12 + $0x3f4] sm:$0xf] %vm3465_vm3, %v3462_v60  ;;  %v2496_v4 = vmax.f32 %v1695_v58, %v2240_v0  ;;  %v2560_v8 = vmax.f32 %v1855_v59, %v2304_v1 }
 0x28f   : > { %3528 = vst.msk [vmem:[%s4754_s12 + $0xf8] sm:$0xf] %vm3465_vm3, %v3271_v62  ;;  %v2883_v7 = vmul.f32 %v6200_v13, %v2623_v2  ;;  %v2947_v9 = vmul.f32 %v6200_v13, %v2687_v5 }
 0x290   : > { %3592 = vst.msk [vmem:[%s4754_s12 + $0x1f8] sm:$0xf] %vm3465_vm3, %v3335_v63  ;;  %v2756_v10 = vmul.f32 %v6200_v13, %v2496_v4  ;;  %v2820_v11 = vmul.f32 %v6200_v13, %v2560_v8  ;;  %v2014_v12 = vpop.f32.mrf.mxu2  ;;  %v2174_v14 = vpop.f32.mrf.mxu3 }
 0x291   : > { %v3143_v15 = vadd.f32 %v6156_v23, %v2883_v7  ;;  %v3207_v16 = vadd.f32 %v6156_v23, %v2947_v9  ;;  %v2015_v6 = vadd.f32 %v6163_v26, %v2014_v12  ;;  %v2175_v17 = vadd.f32 %v6163_v26, %v2174_v14 }
 0x292   : > { %v3016_v3 = vadd.f32 %v6156_v23, %v2756_v10  ;;  %v3080_v18 = vadd.f32 %v6156_v23, %v2820_v11 }
 0x293   : > { %v3399_v19 = vpack.c.bf16 %v3143_v15, %v3143_v15  ;;  %v3463_v20 = vpack.c.bf16 %v3207_v16, %v3207_v16  ;;  %v2368_v21 = vmul.f32 0.2, %v2015_v6  ;;  %v2432_v22 = vmul.f32 0.2, %v2175_v17 }
 0x294   : > { %v3272_v24 = vpack.c.bf16 %v3016_v3, %v3016_v3  ;;  %v3336_v25 = vpack.c.bf16 %v3080_v18, %v3080_v18 }
 0x295   : > { %3656 = vst.msk [vmem:[%s4754_s12 + $0x2f8] sm:$0xf] %vm3465_vm3, %v3399_v19  ;;  %v2624_v27 = vmax.f32 %v2015_v6, %v2368_v21  ;;  %v2688_v28 = vmax.f32 %v2175_v17, %v2432_v22 }
 0x296   : > { %3720 = vst.msk [vmem:[%s4754_s12 + $0x3f8] sm:$0xf] %vm3465_vm3, %v3463_v20 }
 0x297   : > { %3529 = vst.msk [vmem:[%s4754_s12 + $0xfc] sm:$0xf] %vm3465_vm3, %v3272_v24  ;;  %v2884_v26 = vmul.f32 %v6200_v13, %v2624_v27  ;;  %v2948_v30 = vmul.f32 %v6200_v13, %v2688_v28 }
 0x298   : > { %3593 = vst.msk [vmem:[%s4754_s12 + $0x1fc] sm:$0xf] %vm3465_vm3, %v3336_v25 }
 0x299   : > { %v3144_v31 = vadd.f32 %v6156_v23, %v2884_v26  ;;  %v3208_v32 = vadd.f32 %v6156_v23, %v2948_v30 }
 0x29b   : > { %v3400_v33 = vpack.c.bf16 %v3144_v31, %v3144_v31  ;;  %v3464_v34 = vpack.c.bf16 %v3208_v32, %v3208_v32 }
 0x29d   : > { %3657 = vst.msk [vmem:[%s4754_s12 + $0x2fc] sm:$0xf] %vm3465_vm3, %v3400_v33 }
 0x29e   : > { %3721 = vst.msk [vmem:[%s4754_s12 + $0x3fc] sm:$0xf] %vm3465_vm3, %v3464_v34 }
 0x29f PF: > { %s15_s18 = sadd.s32 1, %s4595_s18  }
 0x2a0   : > { %p12_p4 = scmp.ge.s32.totalorder %s15_s18, 6  }
 0x2a2   :  { %14 = sbr.rel (!%p12_p4) target bundleno = 1 (0x1), region = 70 }

// kernel: discriminator_forward.6
= control target key start
LH: loop header
LB: loop body
LE: loop exit
PB: predicated region body
PF: predicated region fallthrough
CT: control target
= control target key end

     0   :  { %s2015_s18 = smov 0   ;;  %s2721_s0 = inlined_call_operand.vmem [shape: bf16[2048,144], index: 0, kind: input, shape index: {}]   ;;  %s2722_s1 = inlined_call_operand.vmem [shape: bf16[144,32], index: 1, kind: input, shape index: {}]   ;;  %s2723_s2 = inlined_call_operand.vmem [shape: f32[1,32], index: 2, kind: input, shape index: {}]   ;;  %s2724_s3 = inlined_call_operand.vmem [shape: f32[1,32], index: 3, kind: input, shape index: {}]   ;;  %s2725_s4 = inlined_call_operand.vmem [shape: f32[1,32], index: 4, kind: input, shape index: {}]   ;;  %s2726_s5 = inlined_call_operand.vmem [shape: bf16[2048,32], index: 5, kind: output, shape index: {}]  }
   0x1 LB: > { %s1544_s19 = sadd.s32 4294967295, %s1983_s18   ;;  %p1548_p0 = scmp.ge.s32.totalorder %s1983_s18, 1  ;;  %s1983_s18 = sphi %s2015_s18, %s15_s18  }
   0x2   : > { %p189_p1 = scmp.lt.s32.totalorder %s1983_s18, 5 }
   0x4   : > { %p190_p2 = pnand %p1548_p0, %p189_p1 }
   0x5   : > { %s1549_s24 = sshll.u32 (!%p190_p2), %s1544_s19, 6 }
   0x6   : > { %193 = sbr.rel (%p190_p2) target bundleno = 438 (0x1b6), region = 40  ;;  %p219_p3 = scmp.lt.s32.totalorder (!%p190_p2), %s1549_s24, 255 }
   0xb   : > { %v1952_v0 = vld [vmem:[%s2722_s1 + $0x38] sm:$0xff]  ;;  %v1953_v1 = vld [vmem:[%s2722_s1 + $0x40] sm:$0xff]  ;;  %v1951_v2 = vld [vmem:[%s2722_s1 + $0x30] sm:$0xff]  ;;  %s2728_s24 = smov (!%p219_p3, %s1549_s24), 255  ;;  %vm660_vm0 = vcmask 130048   ;;  %vm1423_vm1 = vcmask 257024  }
   0xc   : > { %757 = vmatpush.bf16.msra.mxu0 %v1952_v0  ;;  %1954 = vmatpush.bf16.msra.mxu2 %v1952_v0  ;;  %s1880_s27 = sshll.u32 %s2728_s24, 3  ;;  %v1950_v3 = vld [vmem:[%s2722_s1 + $0x28] sm:$0xff]  ;;  %v1949_v7 = vld [vmem:[%s2722_s1 + $0x20] sm:$0xff]  ;;  %v1948_v11 = vld [vmem:[%s2722_s1 + $0x18] sm:$0xff]  ;;  %s1553_s26 = sshll.u32 %s2728_s24, 2 }
   0xd   : > { %933 = vmatpush.bf16.msra.mxu1 %v1953_v1  ;;  %1962 = vmatpush.bf16.msra.mxu3 %v1953_v1  ;;  %s2038_s30 = scalar_lea.vmem %s2721_s0, %s1880_s27  ;;  %v1947_v12 = vld [vmem:[%s2722_s1 + $0x10] sm:$0xff]  ;;  %v1946_v16 = vld [vmem:[%s2722_s1 + $0x8] sm:$0xff]  ;;  %v1945_v19 = vld [vmem:[%s2722_s1] sm:$0xff]  ;;  %s2195_s29 = scalar_lea.vmem %s2726_s5, %s1553_s26 }
   0xe   : > { %v1881_v4 = vld [vmem:[%s2038_s30 + $0x4] sm:$0xf]  ;;  %v1558_v5 = vld [vmem:[%s2038_s30 + $0x8] sm:$0xf0]  ;;  %v1915_v8 = vld [vmem:[%s2038_s30 + $0x114] sm:$0xf] }
   0xf   : > { %v1561_v6 = vor.u32 %v1881_v4, %v1558_v5  ;;  %v1694_v9 = vld [vmem:[%s2038_s30 + $0x118] sm:$0xf0]  ;;  %v1883_v13 = vld [vmem:[%s2038_s30 + $0x14] sm:$0xf]  ;;  %v1917_v17 = vld [vmem:[%s2038_s30 + $0x124] sm:$0xf] }
  0x10   : > { %758 = vmatpush.bf16.msra.mxu0 %v1951_v2  ;;  %1955 = vmatpush.bf16.msra.mxu2 %v1951_v2  ;;  %v1697_v10 = vor.u32 %v1915_v8, %v1694_v9  ;;  %v1566_v14 = vld [vmem:[%s2038_s30 + $0x18] sm:$0xf0]  ;;  %v1702_v18 = vld [vmem:[%s2038_s30 + $0x128] sm:$0xf0]  ;;  %v1556_v20 = vld [vmem:[%s2038_s30] sm:$0xf] }
  0x11   : > { %1846 = vmatmul.msk.bf16.vlgmr.msra.gmra.mxu1 %vm660_vm0, %v1561_v6  ;;  %v1569_v15 = vor.u32 %v1883_v13, %v1566_v14  ;;  %v1882_v21 = vld [vmem:[%s2038_s30 + $0x4] sm:$0xf0]  ;;  %v1705_v22 = vor.u32 %v1917_v17, %v1702_v18  ;;  %v1684_v23 = vld [vmem:[%s2038_s30 + $0x100] sm:$0xf]  ;;  %v1885_v27 = vld [vmem:[%s2038_s30 + $0x24] sm:$0xf] }
  0x12   : > { %1863 = vmatmul.msk.bf16.vlgmr.msra.gmra.mxu3 %vm660_vm0, %v1697_v10  ;;  %v1914_v24 = vld [vmem:[%s2038_s30 + $0x104] sm:$0xf0]  ;;  %v1557_v25 = vor.u32 %v1882_v21, %v1556_v20  ;;  %v1574_v28 = vld [vmem:[%s2038_s30 + $0x28] sm:$0xf0]  ;;  %v1919_v30 = vld [vmem:[%s2038_s30 + $0x134] sm:$0xf] }
  0x13   : > { %v1685_v26 = vor.u32 %v1914_v24, %v1684_v23  ;;  %v1577_v29 = vor.u32 %v1885_v27, %v1574_v28  ;;  %v1710_v31 = vld [vmem:[%s2038_s30 + $0x138] sm:$0xf0]  ;;  %v1564_v32 = vld [vmem:[%s2038_s30 + $0x10] sm:$0xf]  ;;  %v1884_v33 = vld [vmem:[%s2038_s30 + $0x14] sm:$0xf0] }
  0x14   : > { %759 = vmatpush.bf16.msra.mxu0 %v1950_v3  ;;  %1956 = vmatpush.bf16.msra.mxu2 %v1950_v3  ;;  %v1713_v34 = vor.u32 %v1919_v30, %v1710_v31  ;;  %v1692_v35 = vld [vmem:[%s2038_s30 + $0x110] sm:$0xf]  ;;  %v1916_v36 = vld [vmem:[%s2038_s30 + $0x114] sm:$0xf0]  ;;  %v1565_v37 = vor.u32 %v1884_v33, %v1564_v32  ;;  %v1887_v39 = vld [vmem:[%s2038_s30 + $0x34] sm:$0xf] }
  0x15   : > { %v1693_v38 = vor.u32 %v1916_v36, %v1692_v35  ;;  %v1582_v40 = vld [vmem:[%s2038_s30 + $0x38] sm:$0xf0]  ;;  %v1921_v42 = vld [vmem:[%s2038_s30 + $0x144] sm:$0xf]  ;;  %v1718_v43 = vld [vmem:[%s2038_s30 + $0x148] sm:$0xf0] }
  0x16   : > { %v1585_v41 = vor.u32 %v1887_v39, %v1582_v40  ;;  %v1572_v44 = vld [vmem:[%s2038_s30 + $0x20] sm:$0xf]  ;;  %v1886_v45 = vld [vmem:[%s2038_s30 + $0x24] sm:$0xf0]  ;;  %v1721_v46 = vor.u32 %v1921_v42, %v1718_v43  ;;  %v1889_v51 = vld [vmem:[%s2038_s30 + $0x44] sm:$0xf] }
  0x17   : > { %v1700_v47 = vld [vmem:[%s2038_s30 + $0x120] sm:$0xf]  ;;  %v1918_v48 = vld [vmem:[%s2038_s30 + $0x124] sm:$0xf0]  ;;  %v1573_v49 = vor.u32 %v1886_v45, %v1572_v44  ;;  %v1590_v52 = vld [vmem:[%s2038_s30 + $0x48] sm:$0xf0] }
  0x18   : > { %760 = vmatpush.bf16.msra.mxu0 %v1949_v7  ;;  %1957 = vmatpush.bf16.msra.mxu2 %v1949_v7  ;;  %v1701_v50 = vor.u32 %v1918_v48, %v1700_v47  ;;  %v1593_v53 = vor.u32 %v1889_v51, %v1590_v52  ;;  %v1923_v54 = vld [vmem:[%s2038_s30 + $0x154] sm:$0xf]  ;;  %v1726_v55 = vld [vmem:[%s2038_s30 + $0x158] sm:$0xf0]  ;;  %v1580_v56 = vld [vmem:[%s2038_s30 + $0x30] sm:$0xf] }
  0x19   : > { %v1888_v57 = vld [vmem:[%s2038_s30 + $0x34] sm:$0xf0]  ;;  %v1729_v58 = vor.u32 %v1923_v54, %v1726_v55  ;;  %v1708_v59 = vld [vmem:[%s2038_s30 + $0x130] sm:$0xf]  ;;  %v1891_v63 = vld [vmem:[%s2038_s30 + $0x54] sm:$0xf] }
  0x1a   : > { %v1920_v60 = vld [vmem:[%s2038_s30 + $0x134] sm:$0xf0]  ;;  %v1581_v61 = vor.u32 %v1888_v57, %v1580_v56  ;;  %v1598_v0 = vld [vmem:[%s2038_s30 + $0x58] sm:$0xf0]  ;;  %v1925_v2 = vld [vmem:[%s2038_s30 + $0x164] sm:$0xf] }
  0x1b   : > { %v1709_v62 = vor.u32 %v1920_v60, %v1708_v59  ;;  %v1601_v1 = vor.u32 %v1891_v63, %v1598_v0  ;;  %v1734_v3 = vld [vmem:[%s2038_s30 + $0x168] sm:$0xf0]  ;;  %v1588_v4 = vld [vmem:[%s2038_s30 + $0x40] sm:$0xf]  ;;  %v1890_v5 = vld [vmem:[%s2038_s30 + $0x44] sm:$0xf0] }
  0x1c   : > { %761 = vmatpush.bf16.msra.mxu0 %v1948_v11  ;;  %1958 = vmatpush.bf16.msra.mxu2 %v1948_v11  ;;  %v1737_v6 = vor.u32 %v1925_v2, %v1734_v3  ;;  %v1716_v7 = vld [vmem:[%s2038_s30 + $0x140] sm:$0xf]  ;;  %v1922_v8 = vld [vmem:[%s2038_s30 + $0x144] sm:$0xf0]  ;;  %v1589_v9 = vor.u32 %v1890_v5, %v1588_v4  ;;  %v1893_v11 = vld [vmem:[%s2038_s30 + $0x64] sm:$0xf] }
  0x1d   : > { %v1717_v10 = vor.u32 %v1922_v8, %v1716_v7  ;;  %v1927_v14 = vld [vmem:[%s2038_s30 + $0x174] sm:$0xf]  ;;  %v1892_v17 = vld [vmem:[%s2038_s30 + $0x54] sm:$0xf0]  ;;  %v1614_v24 = vld [vmem:[%s2038_s30 + $0x78] sm:$0xf0] }
  0x1e   : > { %v1924_v20 = vld [vmem:[%s2038_s30 + $0x154] sm:$0xf0]  ;;  %v1895_v23 = vld [vmem:[%s2038_s30 + $0x74] sm:$0xf]  ;;  %v1750_v27 = vld [vmem:[%s2038_s30 + $0x188] sm:$0xf0] }
  0x1f   : > { %v1604_v28 = vld [vmem:[%s2038_s30 + $0x60] sm:$0xf]  ;;  %v1926_v32 = vld [vmem:[%s2038_s30 + $0x164] sm:$0xf0]  ;;  %v1897_v35 = vld [vmem:[%s2038_s30 + $0x84] sm:$0xf] }
  0x20   : > { %762 = vmatpush.bf16.msra.mxu0 %v1947_v12  ;;  %1959 = vmatpush.bf16.msra.mxu2 %v1947_v12  ;;  %v1606_v12 = vld [vmem:[%s2038_s30 + $0x68] sm:$0xf0]  ;;  %v1732_v31 = vld [vmem:[%s2038_s30 + $0x160] sm:$0xf]  ;;  %v1931_v39 = vld [vmem:[%s2038_s30 + $0x194] sm:$0xf] }
  0x21   : > { %1847 = vmatmul.msk.bf16.gmra.mxu1 %vm660_vm0, %v1569_v15  ;;  %v1609_v13 = vor.u32 %v1893_v11, %v1606_v12  ;;  %v1742_v15 = vld [vmem:[%s2038_s30 + $0x178] sm:$0xf0]  ;;  %v1622_v36 = vld [vmem:[%s2038_s30 + $0x88] sm:$0xf0]  ;;  %v1896_v42 = vld [vmem:[%s2038_s30 + $0x74] sm:$0xf0] }
  0x22   : > { %1864 = vmatmul.msk.bf16.gmra.mxu3 %vm660_vm0, %v1705_v22  ;;  %v1745_v18 = vor.u32 %v1927_v14, %v1742_v15  ;;  %v1758_v40 = vld [vmem:[%s2038_s30 + $0x198] sm:$0xf0]  ;;  %v1740_v44 = vld [vmem:[%s2038_s30 + $0x170] sm:$0xf]  ;;  %v1928_v45 = vld [vmem:[%s2038_s30 + $0x174] sm:$0xf0] }
  0x23   : > { %v1761_v43 = vor.u32 %v1931_v39, %v1758_v40  ;;  %v1741_v47 = vor.u32 %v1928_v45, %v1740_v44  ;;  %v1630_v51 = vld [vmem:[%s2038_s30 + $0x98] sm:$0xf0]  ;;  %v1933_v55 = vld [vmem:[%s2038_s30 + $0x1a4] sm:$0xf]  ;;  %v1766_v56 = vld [vmem:[%s2038_s30 + $0x1a8] sm:$0xf0] }
  0x24   : > { %763 = vmatpush.bf16.msra.mxu0 %v1946_v16  ;;  %1960 = vmatpush.bf16.msra.mxu2 %v1946_v16  ;;  %v1596_v16 = vld [vmem:[%s2038_s30 + $0x50] sm:$0xf]  ;;  %v1620_v57 = vld [vmem:[%s2038_s30 + $0x80] sm:$0xf]  ;;  %v1769_v59 = vor.u32 %v1933_v55, %v1766_v56  ;;  %v1901_v8 = vld [vmem:[%s2038_s30 + $0xa4] sm:$0xf] }
  0x25   : > { %v1597_v21 = vor.u32 %v1892_v17, %v1596_v16  ;;  %v2158_v60 = vld [vmem:[%s2723_s2] ss:$0 sm:$0xff]  ;;  %v1646_v44 = vld [vmem:[%s2038_s30 + $0xb8] sm:$0xf0] }
  0x26   : > { %v2178_v11 = vld [vmem:[%s2725_s4] ss:$0 sm:$0xff] }
  0x28   : > { %764 = vmatpush.bf16.msra.mxu0 %v1945_v19  ;;  %1961 = vmatpush.bf16.msra.mxu2 %v1945_v19  ;;  %v1724_v19 = vld [vmem:[%s2038_s30 + $0x150] sm:$0xf] }
  0x29   : > { %v1725_v22 = vor.u32 %v1924_v20, %v1724_v19 }
  0x2b   : > { %765 = vmatmul.bf16.vlgmr.msra.gmra.mxu0 %v1557_v25  ;;  %845 = vmatmul.bf16.vlgmr.msra.gmra.mxu2 %v1685_v26  ;;  %v1617_v25 = vor.u32 %v1895_v23, %v1614_v24  ;;  %v1929_v26 = vld [vmem:[%s2038_s30 + $0x184] sm:$0xf]  ;;  %v1628_v23 = vld [vmem:[%s2038_s30 + $0x90] sm:$0xf]  ;;  %v1900_v24 = vld [vmem:[%s2038_s30 + $0x94] sm:$0xf0] }
  0x2c   : > { %v1753_v30 = vor.u32 %v1929_v26, %v1750_v27 }
  0x31   : > { %1848 = vmatmul.msk.bf16.gmra.mxu1 %vm660_vm0, %v1577_v29  ;;  %v1894_v29 = vld [vmem:[%s2038_s30 + $0x64] sm:$0xf0] }
  0x32   : > { %1865 = vmatmul.msk.bf16.gmra.mxu3 %vm660_vm0, %v1713_v34  ;;  %v1605_v33 = vor.u32 %v1894_v29, %v1604_v28  ;;  %v1733_v34 = vor.u32 %v1926_v32, %v1732_v31  ;;  %v1756_v28 = vld [vmem:[%s2038_s30 + $0x190] sm:$0xf]  ;;  %v1932_v29 = vld [vmem:[%s2038_s30 + $0x194] sm:$0xf0]  ;;  %v1629_v32 = vor.u32 %v1900_v24, %v1628_v23 }
  0x3b   : > { %770 = vmatmul.bf16.gmra.mxu0 %v1565_v37  ;;  %850 = vmatmul.bf16.gmra.mxu2 %v1693_v38  ;;  %v1625_v37 = vor.u32 %v1897_v35, %v1622_v36 }
  0x41   : > { %1849 = vmatmul.msk.bf16.gmra.mxu1 %vm660_vm0, %v1585_v41  ;;  %v1612_v41 = vld [vmem:[%s2038_s30 + $0x70] sm:$0xf] }
  0x42   : > { %1866 = vmatmul.msk.bf16.gmra.mxu3 %vm660_vm0, %v1721_v46  ;;  %v1613_v46 = vor.u32 %v1896_v42, %v1612_v41 }
  0x4b   : > { %775 = vmatmul.bf16.gmra.mxu0 %v1573_v49  ;;  %855 = vmatmul.bf16.gmra.mxu2 %v1701_v50  ;;  %v1899_v50 = vld [vmem:[%s2038_s30 + $0x94] sm:$0xf] }
  0x4c   : > { %v1633_v52 = vor.u32 %v1899_v50, %v1630_v51 }
  0x51   : > { %1850 = vmatmul.msk.bf16.gmra.mxu1 %vm660_vm0, %v1593_v53 }
  0x52   : > { %1867 = vmatmul.msk.bf16.gmra.mxu3 %vm660_vm0, %v1729_v58  ;;  %v1898_v58 = vld [vmem:[%s2038_s30 + $0x84] sm:$0xf0] }
  0x53   : > { %v1621_v63 = vor.u32 %v1898_v58, %v1620_v57 }
  0x5b   : > { %780 = vmatmul.bf16.gmra.mxu0 %v1581_v61  ;;  %860 = vmatmul.bf16.gmra.mxu2 %v1709_v62  ;;  %v1748_v61 = vld [vmem:[%s2038_s30 + $0x180] sm:$0xf]  ;;  %v1930_v62 = vld [vmem:[%s2038_s30 + $0x184] sm:$0xf0] }
  0x61   : > { %1851 = vmatmul.msk.bf16.gmra.mxu1 %vm660_vm0, %v1601_v1  ;;  %v1749_v1 = vor.u32 %v1930_v62, %v1748_v61  ;;  %v1782_v61 = vld [vmem:[%s2038_s30 + $0x1c8] sm:$0xf0] }
  0x62   : > { %1868 = vmatmul.msk.bf16.gmra.mxu3 %vm660_vm0, %v1737_v6  ;;  %v2171_v6 = vld [vmem:[%s2724_s3] ss:$0 sm:$0xff] }
  0x6b   : > { %785 = vmatmul.bf16.gmra.mxu0 %v1589_v9  ;;  %865 = vmatmul.bf16.gmra.mxu2 %v1717_v10  ;;  %v1638_v9 = vld [vmem:[%s2038_s30 + $0xa8] sm:$0xf0] }
  0x6c   : > { %v1641_v14 = vor.u32 %v1901_v8, %v1638_v9  ;;  %v1934_v8 = vld [vmem:[%s2038_s30 + $0x1a4] sm:$0xf0] }
  0x71   : > { %1852 = vmatmul.msk.bf16.gmra.mxu1 %vm660_vm0, %v1609_v13 }
  0x72   : > { %1869 = vmatmul.msk.bf16.gmra.mxu3 %vm660_vm0, %v1745_v18 }
  0x7b   : > { %790 = vmatmul.bf16.gmra.mxu0 %v1597_v21  ;;  %870 = vmatmul.bf16.gmra.mxu2 %v1725_v22  ;;  %v1935_v21 = vld [vmem:[%s2038_s30 + $0x1b4] sm:$0xf]  ;;  %v1774_v22 = vld [vmem:[%s2038_s30 + $0x1b8] sm:$0xf0] }
  0x81   : > { %1853 = vmatmul.msk.bf16.gmra.mxu1 %vm660_vm0, %v1617_v25  ;;  %v1777_v25 = vor.u32 %v1935_v21, %v1774_v22 }
  0x82   : > { %1870 = vmatmul.msk.bf16.gmra.mxu3 %vm660_vm0, %v1753_v30 }
  0x8b   : > { %795 = vmatmul.bf16.gmra.mxu0 %v1605_v33  ;;  %875 = vmatmul.bf16.gmra.mxu2 %v1733_v34  ;;  %v1757_v34 = vor.u32 %v1932_v29, %v1756_v28 }
  0x8e   : > { %v935_v38 = vpop.f32.mrf.mxu1 }
  0x91   : > { %1854 = vmatmul.msk.bf16.gmra.mxu1 %vm660_vm0, %v1625_v37 }
  0x92   : > { %1871 = vmatmul.msk.bf16.gmra.mxu3 %vm660_vm0, %v1761_v43  ;;  %v1903_v43 = vld [vmem:[%s2038_s30 + $0xb4] sm:$0xf] }
  0x93   : > { %v1649_v50 = vor.u32 %v1903_v43, %v1646_v44 }
  0x95   : > { %v2144_v49 = vpop.f32.mrf.mxu3 }
  0x96   : > { %v937_v48 = vpop.f32.mrf.mxu1 }
  0x9b   : > { %800 = vmatmul.bf16.gmra.mxu0 %v1613_v46  ;;  %880 = vmatmul.bf16.gmra.mxu2 %v1741_v47 }
  0x9d   : > { %v2148_v54 = vpop.f32.mrf.mxu3 }
  0x9e   : > { %v940_v53 = vpop.f32.mrf.mxu1 }
  0xa1   : > { %1855 = vmatmul.msk.bf16.gmra.mxu1 %vm660_vm0, %v1633_v52 }
  0xa2   : > { %1872 = vmatmul.msk.bf16.gmra.mxu3 %vm660_vm0, %v1769_v59  ;;  %v1937_v59 = vld [vmem:[%s2038_s30 + $0x1c4] sm:$0xf] }
  0xa5   : > { %v2166_v4 = vpop.f32.mrf.mxu3 }
  0xa6   : > { %v2164_v3 = vpop.f32.mrf.mxu1 }
  0xa8   : > { %v766_v0 = vpop.f32.mrf.mxu0 }
  0xa9   : > { %v767_v2 = vadd.f32 %v2158_v60, %v766_v0  ;;  %v1902_v0 = vld [vmem:[%s2038_s30 + $0xa4] sm:$0xf0] }
  0xab   : > { %v936_v5 = vadd.f32 %v935_v38, %v767_v2  ;;  %805 = vmatmul.bf16.gmra.mxu0 %v1621_v63  ;;  %885 = vmatmul.bf16.gmra.mxu2 %v1749_v1  ;;  %v1636_v63 = vld [vmem:[%s2038_s30 + $0xa0] sm:$0xf]  ;;  %v1785_v1 = vor.u32 %v1937_v59, %v1782_v61 }
  0xad   : > { %v1095_v7 = vmul.f32 0.2, %v936_v5  ;;  %v2187_v18 = vpop.f32.mrf.mxu3 }
  0xae   : > { %v2180_v12 = vpop.f32.mrf.mxu2  ;;  %v2185_v17 = vpop.f32.mrf.mxu1 }
  0xaf   : > { %v1159_v10 = vmax.f32 %v936_v5, %v1095_v7  ;;  %v1764_v7 = vld [vmem:[%s2038_s30 + $0x1a0] sm:$0xf] }
  0xb0   : > { %v768_v13 = vpop.f32.mrf.mxu0 }
  0xb1   : > { %v1227_v15 = vmul.f32 %v2171_v6, %v1159_v10  ;;  %v769_v16 = vadd.f32 %v2158_v60, %v768_v13  ;;  %1856 = vmatmul.msk.bf16.gmra.mxu1 %vm660_vm0, %v1641_v14  ;;  %v1637_v13 = vor.u32 %v1902_v0, %v1636_v63  ;;  %v1936_v63 = vld [vmem:[%s2038_s30 + $0x1b4] sm:$0xf0] }
  0xb2   : > { %1873 = vmatmul.msk.bf16.gmra.mxu3 %vm660_vm0, %v1777_v25 }
  0xb3   : > { %v1295_v19 = vadd.f32 %v2178_v11, %v1227_v15  ;;  %v938_v20 = vadd.f32 %v937_v48, %v769_v16  ;;  %v1765_v16 = vor.u32 %v1934_v8, %v1764_v7 }
  0xb5   : > { %v1359_v26 = vpack.c.bf16 %v1295_v19, %v1295_v19  ;;  %v1096_v27 = vmul.f32 0.2, %v938_v20  ;;  %v2211_v38 = vpop.f32.mrf.mxu3 }
  0xb6   : > { %v2204_v31 = vpop.f32.mrf.mxu2  ;;  %v2209_v37 = vpop.f32.mrf.mxu1 }
  0xb7   : > { %1424 = vst.msk [vmem:[%s2195_s29] sm:$0xf] %vm1423_vm1, %v1359_v26  ;;  %v1160_v30 = vmax.f32 %v938_v20, %v1096_v27 }
  0xb8   : > { %v771_v33 = vpop.f32.mrf.mxu0 }
  0xb9   : > { %v1228_v35 = vmul.f32 %v2171_v6, %v1160_v30  ;;  %v772_v36 = vadd.f32 %v2158_v60, %v771_v33  ;;  %v1654_v33 = vld [vmem:[%s2038_s30 + $0xc8] sm:$0xf0] }
  0xbb   : > { %v1296_v39 = vadd.f32 %v2178_v11, %v1228_v35  ;;  %v941_v40 = vadd.f32 %v940_v53, %v772_v36  ;;  %810 = vmatmul.bf16.gmra.mxu0 %v1629_v32  ;;  %890 = vmatmul.bf16.gmra.mxu2 %v1757_v34  ;;  %v1905_v32 = vld [vmem:[%s2038_s30 + $0xc4] sm:$0xf] }
  0xbd   : > { %v1360_v41 = vpack.c.bf16 %v1296_v39, %v1296_v39  ;;  %v1097_v42 = vmul.f32 0.2, %v941_v40  ;;  %v2224_v56 = vpop.f32.mrf.mxu3 }
  0xbe   : > { %v851_v46 = vpop.f32.mrf.mxu2  ;;  %v2221_v53 = vpop.f32.mrf.mxu1 }
  0xbf   : > { %1425 = vst.msk [vmem:[%s2195_s29 + $0x4] sm:$0xf] %vm1423_vm1, %v1360_v41  ;;  %v1161_v45 = vmax.f32 %v941_v40, %v1097_v42  ;;  %v852_v47 = vadd.f32 %v2158_v60, %v851_v46  ;;  %v1657_v40 = vor.u32 %v1905_v32, %v1654_v33 }
  0xc0   : > { %v773_v48 = vpop.f32.mrf.mxu0 }
  0xc1   : > { %v1229_v51 = vmul.f32 %v2171_v6, %v1161_v45  ;;  %v774_v52 = vadd.f32 %v2158_v60, %v773_v48  ;;  %v1021_v55 = vadd.f32 %v2144_v49, %v852_v47  ;;  %1857 = vmatmul.msk.bf16.gmra.mxu1 %vm660_vm0, %v1649_v50  ;;  %v1939_v50 = vld [vmem:[%s2038_s30 + $0x1d4] sm:$0xf] }
  0xc2   : > { %1874 = vmatmul.msk.bf16.gmra.mxu3 %vm660_vm0, %v1785_v1 }
  0xc3   : > { %v1297_v57 = vadd.f32 %v2178_v11, %v1229_v51  ;;  %v943_v58 = vadd.f32 %v2164_v3, %v774_v52  ;;  %v1129_v62 = vmul.f32 0.2, %v1021_v55  ;;  %v1790_v51 = vld [vmem:[%s2038_s30 + $0x1d8] sm:$0xf0] }
  0xc4   : > { %v1793_v59 = vor.u32 %v1939_v50, %v1790_v51  ;;  %v1906_v50 = vld [vmem:[%s2038_s30 + $0xc4] sm:$0xf0] }
  0xc5   : > { %v1361_v2 = vpack.c.bf16 %v1297_v57, %v1297_v57  ;;  %v1098_v5 = vmul.f32 0.2, %v943_v58  ;;  %v1193_v49 = vmax.f32 %v1021_v55, %v1129_v62  ;;  %v2246_v24 = vpop.f32.mrf.mxu3  ;;  %v1644_v57 = vld [vmem:[%s2038_s30 + $0xb0] sm:$0xf] }
  0xc6   : > { %v853_v10 = vpop.f32.mrf.mxu2  ;;  %v2242_v21 = vpop.f32.mrf.mxu1 }
  0xc7   : > { %1426 = vst.msk [vmem:[%s2195_s29 + $0x8] sm:$0xf] %vm1423_vm1, %v1361_v2  ;;  %v1162_v9 = vmax.f32 %v943_v58, %v1098_v5  ;;  %v1261_v3 = vmul.f32 %v2171_v6, %v1193_v49  ;;  %v854_v14 = vadd.f32 %v2158_v60, %v853_v10  ;;  %v1904_v58 = vld [vmem:[%s2038_s30 + $0xb4] sm:$0xf0] }
  0xc8   : > { %v776_v15 = vpop.f32.mrf.mxu0  ;;  %v1645_v2 = vor.u32 %v1904_v58, %v1644_v57  ;;  %v1938_v57 = vld [vmem:[%s2038_s30 + $0x1c4] sm:$0xf0] }
  0xc9   : > { %v1230_v19 = vmul.f32 %v2171_v6, %v1162_v9  ;;  %v777_v20 = vadd.f32 %v2158_v60, %v776_v15  ;;  %v1329_v22 = vadd.f32 %v2178_v11, %v1261_v3  ;;  %v1023_v23 = vadd.f32 %v2148_v54, %v854_v14 }
  0xcb   : > { %v1298_v25 = vadd.f32 %v2178_v11, %v1230_v19  ;;  %v946_v26 = vadd.f32 %v2185_v17, %v777_v20  ;;  %815 = vmatmul.bf16.gmra.mxu0 %v1637_v13  ;;  %v1393_v27 = vpack.c.bf16 %v1329_v22, %v1329_v22  ;;  %v1130_v28 = vmul.f32 0.2, %v1023_v23  ;;  %895 = vmatmul.bf16.gmra.mxu2 %v1765_v16 }
  0xcd   : > { %v1362_v29 = vpack.c.bf16 %v1298_v25, %v1298_v25  ;;  %v1099_v30 = vmul.f32 0.2, %v946_v26  ;;  %1458 = vst.msk [vmem:[%s2195_s29 + $0x88] sm:$0xf] %vm1423_vm1, %v1393_v27  ;;  %v1194_v34 = vmax.f32 %v1023_v23, %v1130_v28  ;;  %v2264_v46 = vpop.f32.mrf.mxu3  ;;  %v1662_v27 = vld [vmem:[%s2038_s30 + $0xd8] sm:$0xf0] }
  0xce   : > { %v856_v35 = vpop.f32.mrf.mxu2  ;;  %v2260_v43 = vpop.f32.mrf.mxu1 }
  0xcf   : > { %1427 = vst.msk [vmem:[%s2195_s29 + $0xc] sm:$0xf] %vm1423_vm1, %v1362_v29  ;;  %v1163_v54 = vmax.f32 %v946_v26, %v1099_v30  ;;  %v1262_v36 = vmul.f32 %v2171_v6, %v1194_v34  ;;  %v857_v17 = vadd.f32 %v2158_v60, %v856_v35  ;;  %v1907_v26 = vld [vmem:[%s2038_s30 + $0xd4] sm:$0xf] }
  0xd0   : > { %v778_v39 = vpop.f32.mrf.mxu0  ;;  %v1665_v33 = vor.u32 %v1907_v26, %v1662_v27 }
  0xd1   : > { %v1231_v41 = vmul.f32 %v2171_v6, %v1163_v54  ;;  %v779_v42 = vadd.f32 %v2158_v60, %v778_v39  ;;  %v1330_v44 = vadd.f32 %v2178_v11, %v1262_v36  ;;  %v1026_v45 = vadd.f32 %v2166_v4, %v857_v17  ;;  %1858 = vmatmul.msk.bf16.gmra.mxu1 %vm660_vm0, %v1657_v40  ;;  %v1772_v4 = vld [vmem:[%s2038_s30 + $0x1b0] sm:$0xf] }
  0xd2   : > { %1875 = vmatmul.msk.bf16.gmra.mxu3 %vm660_vm0, %v1793_v59  ;;  %v1773_v49 = vor.u32 %v1936_v63, %v1772_v4 }
  0xd3   : > { %v1299_v47 = vadd.f32 %v2178_v11, %v1231_v41  ;;  %v948_v48 = vadd.f32 %v2209_v37, %v779_v42  ;;  %v1394_v52 = vpack.c.bf16 %v1330_v44, %v1330_v44  ;;  %v1131_v55 = vmul.f32 0.2, %v1026_v45  ;;  %v1941_v42 = vld [vmem:[%s2038_s30 + $0x1e4] sm:$0xf]  ;;  %v1798_v44 = vld [vmem:[%s2038_s30 + $0x1e8] sm:$0xf0] }
  0xd4   : > { %v1801_v51 = vor.u32 %v1941_v42, %v1798_v44 }
  0xd5   : > { %v1363_v61 = vpack.c.bf16 %v1299_v47, %v1299_v47  ;;  %v1100_v62 = vmul.f32 0.2, %v948_v48  ;;  %1459 = vst.msk [vmem:[%s2195_s29 + $0x8c] sm:$0xf] %vm1423_vm1, %v1394_v52  ;;  %v1195_v0 = vmax.f32 %v1026_v45, %v1131_v55  ;;  %v2288_v15 = vpop.f32.mrf.mxu3 }
  0xd6   : > { %v858_v37 = vpop.f32.mrf.mxu2  ;;  %v2284_v13 = vpop.f32.mrf.mxu1 }
  0xd7   : > { %1428 = vst.msk [vmem:[%s2195_s29 + $0x10] sm:$0xf] %vm1423_vm1, %v1363_v61  ;;  %v1164_v1 = vmax.f32 %v948_v48, %v1100_v62  ;;  %v1263_v5 = vmul.f32 %v2171_v6, %v1195_v0  ;;  %v859_v7 = vadd.f32 %v2158_v60, %v858_v37  ;;  %v1652_v48 = vld [vmem:[%s2038_s30 + $0xc0] sm:$0xf] }
  0xd8   : > { %v781_v8 = vpop.f32.mrf.mxu0  ;;  %v1653_v61 = vor.u32 %v1906_v50, %v1652_v48  ;;  %v1940_v48 = vld [vmem:[%s2038_s30 + $0x1d4] sm:$0xf0] }
  0xd9   : > { %v1232_v9 = vmul.f32 %v2171_v6, %v1164_v1  ;;  %v782_v10 = vadd.f32 %v2158_v60, %v781_v8  ;;  %v1331_v3 = vadd.f32 %v2178_v11, %v1263_v5  ;;  %v1028_v14 = vadd.f32 %v2187_v18, %v859_v7 }
  0xdb   : > { %v1300_v16 = vadd.f32 %v2178_v11, %v1232_v9  ;;  %v951_v19 = vadd.f32 %v2221_v53, %v782_v10  ;;  %820 = vmatmul.bf16.gmra.mxu0 %v1645_v2  ;;  %v1395_v20 = vpack.c.bf16 %v1331_v3, %v1331_v3  ;;  %v1132_v22 = vmul.f32 0.2, %v1028_v14  ;;  %900 = vmatmul.bf16.gmra.mxu2 %v1773_v49 }
  0xdd   : > { %v1364_v23 = vpack.c.bf16 %v1300_v16, %v1300_v16  ;;  %v1101_v25 = vmul.f32 0.2, %v951_v19  ;;  %1460 = vst.msk [vmem:[%s2195_s29 + $0x90] sm:$0xf] %vm1423_vm1, %v1395_v20  ;;  %v1196_v28 = vmax.f32 %v1028_v14, %v1132_v22  ;;  %v2306_v39 = vpop.f32.mrf.mxu3  ;;  %v1670_v20 = vld [vmem:[%s2038_s30 + $0xe8] sm:$0xf0] }
  0xde   : > { %v861_v29 = vpop.f32.mrf.mxu2  ;;  %v2302_v35 = vpop.f32.mrf.mxu1 }
  0xdf   : > { %1429 = vst.msk [vmem:[%s2195_s29 + $0x14] sm:$0xf] %vm1423_vm1, %v1364_v23  ;;  %v1165_v18 = vmax.f32 %v951_v19, %v1101_v25  ;;  %v1264_v30 = vmul.f32 %v2171_v6, %v1196_v28  ;;  %v862_v53 = vadd.f32 %v2158_v60, %v861_v29  ;;  %v1909_v19 = vld [vmem:[%s2038_s30 + $0xe4] sm:$0xf] }
  0xe0   : > { %v783_v32 = vpop.f32.mrf.mxu0  ;;  %v1673_v27 = vor.u32 %v1909_v19, %v1670_v20 }
  0xe1   : > { %v1233_v34 = vmul.f32 %v2171_v6, %v1165_v18  ;;  %v784_v54 = vadd.f32 %v2158_v60, %v783_v32  ;;  %v1332_v36 = vadd.f32 %v2178_v11, %v1264_v30  ;;  %v1031_v17 = vadd.f32 %v2211_v38, %v862_v53  ;;  %1859 = vmatmul.msk.bf16.gmra.mxu1 %vm660_vm0, %v1665_v33  ;;  %v1780_v38 = vld [vmem:[%s2038_s30 + $0x1c0] sm:$0xf] }
  0xe2   : > { %1876 = vmatmul.msk.bf16.gmra.mxu3 %vm660_vm0, %v1801_v51  ;;  %v1781_v0 = vor.u32 %v1938_v57, %v1780_v38 }
  0xe3   : > { %v1301_v40 = vadd.f32 %v2178_v11, %v1233_v34  ;;  %v953_v41 = vadd.f32 %v2242_v21, %v784_v54  ;;  %v1396_v45 = vpack.c.bf16 %v1332_v36, %v1332_v36  ;;  %v1133_v47 = vmul.f32 0.2, %v1031_v17  ;;  %v1943_v34 = vld [vmem:[%s2038_s30 + $0x1f4] sm:$0xf]  ;;  %v1806_v54 = vld [vmem:[%s2038_s30 + $0x1f8] sm:$0xf0] }
  0xe4   : > { %v1809_v42 = vor.u32 %v1943_v34, %v1806_v54  ;;  %v1796_v34 = vld [vmem:[%s2038_s30 + $0x1e0] sm:$0xf]  ;;  %v1942_v54 = vld [vmem:[%s2038_s30 + $0x1e4] sm:$0xf0] }
  0xe5   : > { %v1365_v52 = vpack.c.bf16 %v1301_v40, %v1301_v40  ;;  %v1102_v55 = vmul.f32 0.2, %v953_v41  ;;  %1461 = vst.msk [vmem:[%s2195_s29 + $0x94] sm:$0xf] %vm1423_vm1, %v1396_v45  ;;  %v1197_v58 = vmax.f32 %v1031_v17, %v1133_v47  ;;  %v2332_v9 = vpop.f32.mrf.mxu3  ;;  %v1660_v40 = vld [vmem:[%s2038_s30 + $0xd0] sm:$0xf] }
  0xe6   : > { %v863_v21 = vpop.f32.mrf.mxu2  ;;  %v2326_v2 = vpop.f32.mrf.mxu1  ;;  %v1788_v47 = vld [vmem:[%s2038_s30 + $0x1d0] sm:$0xf] }
  0xe7   : > { %1430 = vst.msk [vmem:[%s2195_s29 + $0x18] sm:$0xf] %vm1423_vm1, %v1365_v52  ;;  %v1166_v59 = vmax.f32 %v953_v41, %v1102_v55  ;;  %v1265_v62 = vmul.f32 %v2171_v6, %v1197_v58  ;;  %v864_v4 = vadd.f32 %v2158_v60, %v863_v21  ;;  %v1908_v41 = vld [vmem:[%s2038_s30 + $0xd4] sm:$0xf0]  ;;  %v1789_v58 = vor.u32 %v1940_v48, %v1788_v47 }
  0xe8   : > { %v786_v63 = vpop.f32.mrf.mxu0  ;;  %v1661_v52 = vor.u32 %v1908_v41, %v1660_v40 }
  0xe9   : > { %v1234_v1 = vmul.f32 %v2171_v6, %v1166_v59  ;;  %v787_v37 = vadd.f32 %v2158_v60, %v786_v63  ;;  %v1333_v5 = vadd.f32 %v2178_v11, %v1265_v62  ;;  %v1033_v7 = vadd.f32 %v2224_v56, %v864_v4 }
  0xeb   : > { %v1302_v8 = vadd.f32 %v2178_v11, %v1234_v1  ;;  %v956_v49 = vadd.f32 %v2260_v43, %v787_v37  ;;  %825 = vmatmul.bf16.gmra.mxu0 %v1653_v61  ;;  %v1397_v10 = vpack.c.bf16 %v1333_v5, %v1333_v5  ;;  %v1134_v3 = vmul.f32 0.2, %v1033_v7  ;;  %905 = vmatmul.bf16.gmra.mxu2 %v1781_v0 }
  0xed   : > { %v1366_v14 = vpack.c.bf16 %v1302_v8, %v1302_v8  ;;  %v1103_v16 = vmul.f32 0.2, %v956_v49  ;;  %1462 = vst.msk [vmem:[%s2195_s29 + $0x98] sm:$0xf] %vm1423_vm1, %v1397_v10  ;;  %v1198_v22 = vmax.f32 %v1033_v7, %v1134_v3  ;;  %v1911_v8 = vld [vmem:[%s2038_s30 + $0xf4] sm:$0xf] }
  0xee   : > { %v866_v23 = vpop.f32.mrf.mxu2  ;;  %v2344_v29 = vpop.f32.mrf.mxu1 }
  0xef   : > { %1431 = vst.msk [vmem:[%s2195_s29 + $0x1c] sm:$0xf] %vm1423_vm1, %v1366_v14  ;;  %v1167_v56 = vmax.f32 %v956_v49, %v1103_v16  ;;  %v1266_v43 = vmul.f32 %v2171_v6, %v1198_v22  ;;  %v867_v25 = vadd.f32 %v2158_v60, %v866_v23  ;;  %v1678_v49 = vld [vmem:[%s2038_s30 + $0xf8] sm:$0xf0] }
  0xf0   : > { %v788_v26 = vpop.f32.mrf.mxu0  ;;  %v1681_v20 = vor.u32 %v1911_v8, %v1678_v49 }
  0xf1   : > { %v1235_v28 = vmul.f32 %v2171_v6, %v1167_v56  ;;  %v789_v18 = vadd.f32 %v2158_v60, %v788_v26  ;;  %v1334_v30 = vadd.f32 %v2178_v11, %v1266_v43  ;;  %v1036_v53 = vadd.f32 %v2246_v24, %v867_v25  ;;  %1860 = vmatmul.msk.bf16.gmra.mxu1 %vm660_vm0, %v1673_v27  ;;  %v2357_v24 = vpop.f32.mrf.mxu3 }
  0xf2   : > { %1877 = vmatmul.msk.bf16.gmra.mxu3 %vm660_vm0, %v1809_v42 }
  0xf3   : > { %v1303_v32 = vadd.f32 %v2178_v11, %v1235_v28  ;;  %v958_v33 = vadd.f32 %v2284_v13, %v789_v18  ;;  %v1398_v36 = vpack.c.bf16 %v1334_v30, %v1334_v30  ;;  %v1135_v17 = vmul.f32 0.2, %v1036_v53  ;;  %v1668_v30 = vld [vmem:[%s2038_s30 + $0xe0] sm:$0xf] }
  0xf5   : > { %v1367_v44 = vpack.c.bf16 %v1303_v32, %v1303_v32  ;;  %v1104_v45 = vmul.f32 0.2, %v958_v33  ;;  %1463 = vst.msk [vmem:[%s2195_s29 + $0x9c] sm:$0xf] %vm1423_vm1, %v1398_v36  ;;  %v1199_v50 = vmax.f32 %v1036_v53, %v1135_v17  ;;  %v1910_v53 = vld [vmem:[%s2038_s30 + $0xe4] sm:$0xf0] }
  0xf6   : > { %v868_v51 = vpop.f32.mrf.mxu2  ;;  %v2368_v61 = vpop.f32.mrf.mxu1  ;;  %v1669_v40 = vor.u32 %v1910_v53, %v1668_v30 }
  0xf7   : > { %1432 = vst.msk [vmem:[%s2195_s29 + $0x20] sm:$0xf] %vm1423_vm1, %v1367_v44  ;;  %v1168_v13 = vmax.f32 %v958_v33, %v1104_v45  ;;  %v1267_v55 = vmul.f32 %v2171_v6, %v1199_v50  ;;  %v869_v38 = vadd.f32 %v2158_v60, %v868_v51  ;;  %v1797_v44 = vor.u32 %v1942_v54, %v1796_v34 }
  0xf8   : > { %v791_v57 = vpop.f32.mrf.mxu0 }
  0xf9   : > { %v1236_v59 = vmul.f32 %v2171_v6, %v1168_v13  ;;  %v792_v21 = vadd.f32 %v2158_v60, %v791_v57  ;;  %v1335_v62 = vadd.f32 %v2178_v11, %v1267_v55  ;;  %v1038_v4 = vadd.f32 %v2264_v46, %v869_v38  ;;  %v2380_v46 = vpop.f32.mrf.mxu3 }
  0xfb   : > { %v1304_v63 = vadd.f32 %v2178_v11, %v1236_v59  ;;  %v961_v0 = vadd.f32 %v2302_v35, %v792_v21  ;;  %830 = vmatmul.bf16.gmra.mxu0 %v1661_v52  ;;  %v1399_v1 = vpack.c.bf16 %v1335_v62, %v1335_v62  ;;  %v1136_v37 = vmul.f32 0.2, %v1038_v4  ;;  %910 = vmatmul.bf16.gmra.mxu2 %v1789_v58  ;;  %v1913_v21 = vld [vmem:[%s2038_s30 + $0x104] sm:$0xf]  ;;  %v1686_v62 = vld [vmem:[%s2038_s30 + $0x108] sm:$0xf0] }
  0xfd   : > { %v1368_v5 = vpack.c.bf16 %v1304_v63, %v1304_v63  ;;  %v1105_v7 = vmul.f32 0.2, %v961_v0  ;;  %1464 = vst.msk [vmem:[%s2195_s29 + $0xa0] sm:$0xf] %vm1423_vm1, %v1399_v1  ;;  %v1200_v10 = vmax.f32 %v1038_v4, %v1136_v37  ;;  %v1689_v37 = vor.u32 %v1913_v21, %v1686_v62 }
  0xfe   : > { %v871_v14 = vpop.f32.mrf.mxu2  ;;  %v2386_v23 = vpop.f32.mrf.mxu1 }
  0xff   : > { %1433 = vst.msk [vmem:[%s2195_s29 + $0x24] sm:$0xf] %vm1423_vm1, %v1368_v5  ;;  %v1169_v3 = vmax.f32 %v961_v0, %v1105_v7  ;;  %v1268_v35 = vmul.f32 %v2171_v6, %v1200_v10  ;;  %v872_v16 = vadd.f32 %v2158_v60, %v871_v14 }
 0x100   : > { %v793_v19 = vpop.f32.mrf.mxu0 }
 0x101   : > { %v1237_v22 = vmul.f32 %v2171_v6, %v1169_v3  ;;  %v794_v56 = vadd.f32 %v2158_v60, %v793_v19  ;;  %v1336_v43 = vadd.f32 %v2178_v11, %v1268_v35  ;;  %v1041_v25 = vadd.f32 %v2288_v15, %v872_v16  ;;  %1861 = vmatmul.msk.bf16.gmra.mxu1 %vm660_vm0, %v1681_v20  ;;  %v2407_v50 = vpop.f32.mrf.mxu3  ;;  %v1676_v20 = vld [vmem:[%s2038_s30 + $0xf0] sm:$0xf] }
 0x103   : > { %v1305_v26 = vadd.f32 %v2178_v11, %v1237_v22  ;;  %v963_v27 = vadd.f32 %v2326_v2, %v794_v56  ;;  %v1400_v28 = vpack.c.bf16 %v1336_v43, %v1336_v43  ;;  %v1137_v18 = vmul.f32 0.2, %v1041_v25  ;;  %v1912_v22 = vld [vmem:[%s2038_s30 + $0xf4] sm:$0xf0] }
 0x105   : > { %v1369_v32 = vpack.c.bf16 %v1305_v26, %v1305_v26  ;;  %v1106_v33 = vmul.f32 0.2, %v963_v27  ;;  %1465 = vst.msk [vmem:[%s2195_s29 + $0xa4] sm:$0xf] %vm1423_vm1, %v1400_v28  ;;  %v1201_v36 = vmax.f32 %v1041_v25, %v1137_v18  ;;  %v1804_v25 = vld [vmem:[%s2038_s30 + $0x1f0] sm:$0xf] }
 0x106   : > { %v873_v17 = vpop.f32.mrf.mxu2  ;;  %v2405_v48 = vpop.f32.mrf.mxu1  ;;  %v1944_v26 = vld [vmem:[%s2038_s30 + $0x1f4] sm:$0xf0] }
 0x107   : > { %1434 = vst.msk [vmem:[%s2195_s29 + $0x28] sm:$0xf] %vm1423_vm1, %v1369_v32  ;;  %v1170_v15 = vmax.f32 %v963_v27, %v1106_v33  ;;  %v1269_v2 = vmul.f32 %v2171_v6, %v1201_v36  ;;  %v874_v41 = vadd.f32 %v2158_v60, %v873_v17  ;;  %v1805_v32 = vor.u32 %v1944_v26, %v1804_v25 }
 0x108   : > { %v796_v42 = vpop.f32.mrf.mxu0 }
 0x109   : > { %v1238_v45 = vmul.f32 %v2171_v6, %v1170_v15  ;;  %v797_v47 = vadd.f32 %v2158_v60, %v796_v42  ;;  %v1337_v13 = vadd.f32 %v2178_v11, %v1269_v2  ;;  %v1043_v51 = vadd.f32 %v2306_v39, %v874_v41  ;;  %v2429_v35 = vpop.f32.mrf.mxu3 }
 0x10b   : > { %v1306_v52 = vadd.f32 %v2178_v11, %v1238_v45  ;;  %v966_v55 = vadd.f32 %v2344_v29, %v797_v47  ;;  %835 = vmatmul.bf16.gmra.mxu0 %v1669_v40  ;;  %v1401_v38 = vpack.c.bf16 %v1337_v13, %v1337_v13  ;;  %v1138_v57 = vmul.f32 0.2, %v1043_v51  ;;  %915 = vmatmul.bf16.gmra.mxu2 %v1797_v44 }
 0x10d   : > { %v1370_v58 = vpack.c.bf16 %v1306_v52, %v1306_v52  ;;  %v1107_v59 = vmul.f32 0.2, %v966_v55  ;;  %1466 = vst.msk [vmem:[%s2195_s29 + $0xa8] sm:$0xf] %vm1423_vm1, %v1401_v38  ;;  %v1202_v4 = vmax.f32 %v1043_v51, %v1138_v57 }
 0x10e   : > { %v876_v0 = vpop.f32.mrf.mxu2  ;;  %v2423_v8 = vpop.f32.mrf.mxu1 }
 0x10f   : > { %1435 = vst.msk [vmem:[%s2195_s29 + $0x2c] sm:$0xf] %vm1423_vm1, %v1370_v58  ;;  %v1171_v63 = vmax.f32 %v966_v55, %v1107_v59  ;;  %v1270_v39 = vmul.f32 %v2171_v6, %v1202_v4  ;;  %v877_v29 = vadd.f32 %v2158_v60, %v876_v0 }
 0x110   : > { %v798_v1 = vpop.f32.mrf.mxu0 }
 0x111   : > { %v1239_v5 = vmul.f32 %v2171_v6, %v1171_v63  ;;  %v799_v7 = vadd.f32 %v2158_v60, %v798_v1  ;;  %v1338_v49 = vadd.f32 %v2178_v11, %v1270_v39  ;;  %v1046_v10 = vadd.f32 %v2332_v9, %v877_v29  ;;  %1862 = vmatmul.msk.bf16.gmra.mxu1 %vm660_vm0, %v1689_v37  ;;  %v2450_v45 = vpop.f32.mrf.mxu3 }
 0x113   : > { %v1307_v3 = vadd.f32 %v2178_v11, %v1239_v5  ;;  %v968_v14 = vadd.f32 %v2368_v61, %v799_v7  ;;  %v1402_v16 = vpack.c.bf16 %v1338_v49, %v1338_v49  ;;  %v1139_v19 = vmul.f32 0.2, %v1046_v10 }
 0x114   : > { %v1677_v61 = vor.u32 %v1912_v22, %v1676_v20 }
 0x115   : > { %v1371_v56 = vpack.c.bf16 %v1307_v3, %v1307_v3  ;;  %v1108_v43 = vmul.f32 0.2, %v968_v14  ;;  %1467 = vst.msk [vmem:[%s2195_s29 + $0xac] sm:$0xf] %vm1423_vm1, %v1402_v16  ;;  %v1203_v27 = vmax.f32 %v1046_v10, %v1139_v19 }
 0x116   : > { %v878_v28 = vpop.f32.mrf.mxu2  ;;  %v2444_v54 = vpop.f32.mrf.mxu1 }
 0x117   : > { %1436 = vst.msk [vmem:[%s2195_s29 + $0x30] sm:$0xf] %vm1423_vm1, %v1371_v56  ;;  %v1172_v9 = vmax.f32 %v968_v14, %v1108_v43  ;;  %v1271_v18 = vmul.f32 %v2171_v6, %v1203_v27  ;;  %v879_v30 = vadd.f32 %v2158_v60, %v878_v28 }
 0x118   : > { %v801_v53 = vpop.f32.mrf.mxu0 }
 0x119   : > { %v1240_v33 = vmul.f32 %v2171_v6, %v1172_v9  ;;  %v802_v34 = vadd.f32 %v2158_v60, %v801_v53  ;;  %v1339_v36 = vadd.f32 %v2178_v11, %v1271_v18  ;;  %v1048_v15 = vadd.f32 %v2357_v24, %v879_v30  ;;  %v2470_v5 = vpop.f32.mrf.mxu3 }
 0x11b   : > { %v1308_v17 = vadd.f32 %v2178_v11, %v1240_v33  ;;  %v971_v40 = vadd.f32 %v2386_v23, %v802_v34  ;;  %840 = vmatmul.bf16.gmra.mxu0 %v1677_v61  ;;  %v1403_v2 = vpack.c.bf16 %v1339_v36, %v1339_v36  ;;  %v1140_v41 = vmul.f32 0.2, %v1048_v15  ;;  %920 = vmatmul.bf16.gmra.mxu2 %v1805_v32 }
 0x11d   : > { %v1372_v42 = vpack.c.bf16 %v1308_v17, %v1308_v17  ;;  %v1109_v44 = vmul.f32 0.2, %v971_v40  ;;  %1468 = vst.msk [vmem:[%s2195_s29 + $0xb0] sm:$0xf] %vm1423_vm1, %v1403_v2  ;;  %v1204_v47 = vmax.f32 %v1048_v15, %v1140_v41 }
 0x11e   : > { %v881_v24 = vpop.f32.mrf.mxu2  ;;  %v2460_v57 = vpop.f32.mrf.mxu1 }
 0x11f   : > { %1437 = vst.msk [vmem:[%s2195_s29 + $0x34] sm:$0xf] %vm1423_vm1, %v1372_v42  ;;  %v1173_v13 = vmax.f32 %v971_v40, %v1109_v44  ;;  %v1272_v51 = vmul.f32 %v2171_v6, %v1204_v47  ;;  %v882_v23 = vadd.f32 %v2158_v60, %v881_v24 }
 0x120   : > { %v803_v52 = vpop.f32.mrf.mxu0 }
 0x121   : > { %v1241_v55 = vmul.f32 %v2171_v6, %v1173_v13  ;;  %v804_v38 = vadd.f32 %v2158_v60, %v803_v52  ;;  %v1340_v58 = vadd.f32 %v2178_v11, %v1272_v51  ;;  %v1051_v59 = vadd.f32 %v2380_v46, %v882_v23  ;;  %v1062_v53 = vpop.f32.mrf.mxu3 }
 0x123   : > { %v1309_v21 = vadd.f32 %v2178_v11, %v1241_v55  ;;  %v973_v62 = vadd.f32 %v2405_v48, %v804_v38  ;;  %v1404_v4 = vpack.c.bf16 %v1340_v58, %v1340_v58  ;;  %v1141_v63 = vmul.f32 0.2, %v1051_v59 }
 0x125   : > { %v1373_v0 = vpack.c.bf16 %v1309_v21, %v1309_v21  ;;  %v1110_v39 = vmul.f32 0.2, %v973_v62  ;;  %1469 = vst.msk [vmem:[%s2195_s29 + $0xb4] sm:$0xf] %vm1423_vm1, %v1404_v4  ;;  %v1205_v29 = vmax.f32 %v1051_v59, %v1141_v63 }
 0x126   : > { %v883_v37 = vpop.f32.mrf.mxu2  ;;  %v2476_v3 = vpop.f32.mrf.mxu1 }
 0x127   : > { %1438 = vst.msk [vmem:[%s2195_s29 + $0x38] sm:$0xf] %vm1423_vm1, %v1373_v0  ;;  %v1174_v1 = vmax.f32 %v973_v62, %v1110_v39  ;;  %v1273_v46 = vmul.f32 %v2171_v6, %v1205_v29  ;;  %v884_v7 = vadd.f32 %v2158_v60, %v883_v37 }
 0x128   : > { %v806_v48 = vpop.f32.mrf.mxu0 }
 0x129   : > { %v1242_v49 = vmul.f32 %v2171_v6, %v1174_v1  ;;  %v807_v10 = vadd.f32 %v2158_v60, %v806_v48  ;;  %v1341_v14 = vadd.f32 %v2178_v11, %v1273_v46  ;;  %v1053_v16 = vadd.f32 %v2407_v50, %v884_v7  ;;  %v1065_v58 = vpop.f32.mrf.mxu3 }
 0x12b   : > { %v1310_v19 = vadd.f32 %v2178_v11, %v1242_v49  ;;  %v976_v20 = vadd.f32 %v2423_v8, %v807_v10  ;;  %v1405_v22 = vpack.c.bf16 %v1341_v14, %v1341_v14  ;;  %v1142_v56 = vmul.f32 0.2, %v1053_v16 }
 0x12d   : > { %v1374_v43 = vpack.c.bf16 %v1310_v19, %v1310_v19  ;;  %v1111_v25 = vmul.f32 0.2, %v976_v20  ;;  %1470 = vst.msk [vmem:[%s2195_s29 + $0xb8] sm:$0xf] %vm1423_vm1, %v1405_v22  ;;  %v1206_v26 = vmax.f32 %v1053_v16, %v1142_v56 }
 0x12e   : > { %v886_v9 = vpop.f32.mrf.mxu2  ;;  %v2490_v30 = vpop.f32.mrf.mxu1 }
 0x12f   : > { %1439 = vst.msk [vmem:[%s2195_s29 + $0x3c] sm:$0xf] %vm1423_vm1, %v1374_v43  ;;  %v1175_v27 = vmax.f32 %v976_v20, %v1111_v25  ;;  %v1274_v28 = vmul.f32 %v2171_v6, %v1206_v26  ;;  %v887_v50 = vadd.f32 %v2158_v60, %v886_v9 }
 0x130   : > { %v808_v61 = vpop.f32.mrf.mxu0 }
 0x131   : > { %v1243_v8 = vmul.f32 %v2171_v6, %v1175_v27  ;;  %v809_v18 = vadd.f32 %v2158_v60, %v808_v61  ;;  %v1342_v32 = vadd.f32 %v2178_v11, %v1274_v28  ;;  %v1056_v33 = vadd.f32 %v2429_v35, %v887_v50  ;;  %v1067_v22 = vpop.f32.mrf.mxu3 }
 0x133   : > { %v1311_v34 = vadd.f32 %v2178_v11, %v1243_v8  ;;  %v978_v36 = vadd.f32 %v2444_v54, %v809_v18  ;;  %v1406_v15 = vpack.c.bf16 %v1342_v32, %v1342_v32  ;;  %v1143_v17 = vmul.f32 0.2, %v1056_v33 }
 0x135   : > { %v1375_v40 = vpack.c.bf16 %v1311_v34, %v1311_v34  ;;  %v1112_v2 = vmul.f32 0.2, %v978_v36  ;;  %1471 = vst.msk [vmem:[%s2195_s29 + $0xbc] sm:$0xf] %vm1423_vm1, %v1406_v15  ;;  %v1207_v41 = vmax.f32 %v1056_v33, %v1143_v17 }
 0x136   : > { %v888_v44 = vpop.f32.mrf.mxu2  ;;  %v2504_v51 = vpop.f32.mrf.mxu1 }
 0x137   : > { %1440 = vst.msk [vmem:[%s2195_s29 + $0x40] sm:$0xf] %vm1423_vm1, %v1375_v40  ;;  %v1176_v42 = vmax.f32 %v978_v36, %v1112_v2  ;;  %v1275_v47 = vmul.f32 %v2171_v6, %v1207_v41  ;;  %v889_v35 = vadd.f32 %v2158_v60, %v888_v44 }
 0x138   : > { %v811_v13 = vpop.f32.mrf.mxu0 }
 0x139   : > { %v1244_v54 = vmul.f32 %v2171_v6, %v1176_v42  ;;  %v812_v24 = vadd.f32 %v2158_v60, %v811_v13  ;;  %v1343_v23 = vadd.f32 %v2178_v11, %v1275_v47  ;;  %v1058_v52 = vadd.f32 %v2450_v45, %v889_v35  ;;  %v1070_v2 = vpop.f32.mrf.mxu3 }
 0x13b   : > { %v1312_v55 = vadd.f32 %v2178_v11, %v1244_v54  ;;  %v981_v38 = vadd.f32 %v2460_v57, %v812_v24  ;;  %v1407_v59 = vpack.c.bf16 %v1343_v23, %v1343_v23  ;;  %v1144_v21 = vmul.f32 0.2, %v1058_v52 }
 0x13d   : > { %v1376_v62 = vpack.c.bf16 %v1312_v55, %v1312_v55  ;;  %v1113_v4 = vmul.f32 0.2, %v981_v38  ;;  %1472 = vst.msk [vmem:[%s2195_s29 + $0xc0] sm:$0xf] %vm1423_vm1, %v1407_v59  ;;  %v1208_v63 = vmax.f32 %v1058_v52, %v1144_v21 }
 0x13e   : > { %v891_v39 = vpop.f32.mrf.mxu2  ;;  %v2518_v46 = vpop.f32.mrf.mxu1 }
 0x13f   : > { %1441 = vst.msk [vmem:[%s2195_s29 + $0x44] sm:$0xf] %vm1423_vm1, %v1376_v62  ;;  %v1177_v0 = vmax.f32 %v981_v38, %v1113_v4  ;;  %v1276_v29 = vmul.f32 %v2171_v6, %v1208_v63  ;;  %v892_v45 = vadd.f32 %v2158_v60, %v891_v39  ;;  %v2564_v63 = vld [vmem:[%s2724_s3] ss:$0 sm:$0xff] }
 0x140   : > { %v813_v1 = vpop.f32.mrf.mxu0 }
 0x141   : > { %v1245_v57 = vmul.f32 %v2171_v6, %v1177_v0  ;;  %v814_v37 = vadd.f32 %v2158_v60, %v813_v1  ;;  %v1344_v7 = vadd.f32 %v2178_v11, %v1276_v29  ;;  %v1061_v48 = vadd.f32 %v2470_v5, %v892_v45  ;;  %v1072_v29 = vpop.f32.mrf.mxu3 }
 0x143   : > { %v1313_v49 = vadd.f32 %v2178_v11, %v1245_v57  ;;  %v983_v10 = vadd.f32 %v2476_v3, %v814_v37  ;;  %v1408_v14 = vpack.c.bf16 %v1344_v7, %v1344_v7  ;;  %v1145_v16 = vmul.f32 0.2, %v1061_v48  ;;  %v2574_v57 = vld [vmem:[%s2725_s4] ss:$0 sm:$0xff] }
 0x145   : > { %v1377_v19 = vpack.c.bf16 %v1313_v49, %v1313_v49  ;;  %v1114_v20 = vmul.f32 0.2, %v983_v10  ;;  %1473 = vst.msk [vmem:[%s2195_s29 + $0xc4] sm:$0xf] %vm1423_vm1, %v1408_v14  ;;  %v1209_v56 = vmax.f32 %v1061_v48, %v1145_v16 }
 0x146   : > { %v893_v25 = vpop.f32.mrf.mxu2  ;;  %v2532_v28 = vpop.f32.mrf.mxu1 }
 0x147   : > { %1442 = vst.msk [vmem:[%s2195_s29 + $0x48] sm:$0xf] %vm1423_vm1, %v1377_v19  ;;  %v1178_v43 = vmax.f32 %v983_v10, %v1114_v20  ;;  %v1277_v26 = vmul.f32 %v2171_v6, %v1209_v56  ;;  %v894_v5 = vadd.f32 %v2158_v60, %v893_v25 }
 0x148   : > { %v816_v27 = vpop.f32.mrf.mxu0 }
 0x149   : > { %v1246_v3 = vmul.f32 %v2171_v6, %v1178_v43  ;;  %v817_v9 = vadd.f32 %v2158_v60, %v816_v27  ;;  %v1345_v50 = vadd.f32 %v2178_v11, %v1277_v26  ;;  %v1063_v61 = vadd.f32 %v1062_v53, %v894_v5 }
 0x14b   : > { %v1314_v8 = vadd.f32 %v2178_v11, %v1246_v3  ;;  %v986_v18 = vadd.f32 %v2490_v30, %v817_v9  ;;  %v1409_v32 = vpack.c.bf16 %v1345_v50, %v1345_v50  ;;  %v1146_v33 = vmul.f32 0.2, %v1063_v61  ;;  %v1075_v9 = vpop.f32.mrf.mxu3 }
 0x14d   : > { %v1378_v34 = vpack.c.bf16 %v1314_v8, %v1314_v8  ;;  %v1115_v36 = vmul.f32 0.2, %v986_v18  ;;  %1474 = vst.msk [vmem:[%s2195_s29 + $0xc8] sm:$0xf] %vm1423_vm1, %v1409_v32  ;;  %v1210_v15 = vmax.f32 %v1063_v61, %v1146_v33 }
 0x14e   : > { %v896_v40 = vpop.f32.mrf.mxu2  ;;  %v2545_v47 = vpop.f32.mrf.mxu1 }
 0x14f   : > { %1443 = vst.msk [vmem:[%s2195_s29 + $0x4c] sm:$0xf] %vm1423_vm1, %v1378_v34  ;;  %v1179_v17 = vmax.f32 %v986_v18, %v1115_v36  ;;  %v1278_v41 = vmul.f32 %v2171_v6, %v1210_v15  ;;  %v897_v53 = vadd.f32 %v2158_v60, %v896_v40 }
 0x150   : > { %v818_v42 = vpop.f32.mrf.mxu0 }
 0x151   : > { %v1247_v30 = vmul.f32 %v2171_v6, %v1179_v17  ;;  %v819_v44 = vadd.f32 %v2158_v60, %v818_v42  ;;  %v1346_v35 = vadd.f32 %v2178_v11, %v1278_v41  ;;  %v1066_v13 = vadd.f32 %v1065_v58, %v897_v53  ;;  %v2558_v58 = vld [vmem:[%s2723_s2] ss:$0 sm:$0xff] }
 0x153   : > { %v1315_v54 = vadd.f32 %v2178_v11, %v1247_v30  ;;  %v988_v24 = vadd.f32 %v2504_v51, %v819_v44  ;;  %v1410_v23 = vpack.c.bf16 %v1346_v35, %v1346_v35  ;;  %v1147_v52 = vmul.f32 0.2, %v1066_v13 }
 0x155   : > { %v1379_v55 = vpack.c.bf16 %v1315_v54, %v1315_v54  ;;  %v1116_v38 = vmul.f32 0.2, %v988_v24  ;;  %1475 = vst.msk [vmem:[%s2195_s29 + $0xcc] sm:$0xf] %vm1423_vm1, %v1410_v23  ;;  %v1211_v59 = vmax.f32 %v1066_v13, %v1147_v52 }
 0x156   : > { %v898_v60 = vpop.f32.mrf.mxu2 }
 0x157   : > { %1444 = vst.msk [vmem:[%s2195_s29 + $0x50] sm:$0xf] %vm1423_vm1, %v1379_v55  ;;  %v1180_v21 = vmax.f32 %v988_v24, %v1116_v38  ;;  %v1279_v62 = vmul.f32 %v2171_v6, %v1211_v59  ;;  %v899_v51 = vadd.f32 %v2558_v58, %v898_v60  ;;  %v2568_v6 = vpop.f32.mrf.mxu1  ;;  %v1077_v24 = vpop.f32.mrf.mxu3 }
 0x158   : > { %v821_v4 = vpop.f32.mrf.mxu0 }
 0x159   : > { %v1248_v0 = vmul.f32 %v2564_v63, %v1180_v21  ;;  %v822_v39 = vadd.f32 %v2558_v58, %v821_v4  ;;  %v1347_v45 = vadd.f32 %v2178_v11, %v1279_v62  ;;  %v1068_v1 = vadd.f32 %v1067_v22, %v899_v51 }
 0x15b   : > { %v1316_v37 = vadd.f32 %v2574_v57, %v1248_v0  ;;  %v991_v7 = vadd.f32 %v2518_v46, %v822_v39  ;;  %v1411_v48 = vpack.c.bf16 %v1347_v45, %v1347_v45  ;;  %v1148_v49 = vmul.f32 0.2, %v1068_v1 }
 0x15d   : > { %v1380_v10 = vpack.c.bf16 %v1316_v37, %v1316_v37  ;;  %v1117_v14 = vmul.f32 0.2, %v991_v7  ;;  %1476 = vst.msk [vmem:[%s2195_s29 + $0xd0] sm:$0xf] %vm1423_vm1, %v1411_v48  ;;  %v1212_v16 = vmax.f32 %v1068_v1, %v1148_v49 }
 0x15e   : > { %v901_v19 = vpop.f32.mrf.mxu2 }
 0x15f   : > { %1445 = vst.msk [vmem:[%s2195_s29 + $0x54] sm:$0xf] %vm1423_vm1, %v1380_v10  ;;  %v1181_v11 = vmax.f32 %v991_v7, %v1117_v14  ;;  %v1280_v20 = vmul.f32 %v2564_v63, %v1212_v16  ;;  %v902_v22 = vadd.f32 %v2558_v58, %v901_v19  ;;  %v2586_v25 = vpop.f32.mrf.mxu1  ;;  %v1080_v10 = vpop.f32.mrf.mxu3 }
 0x160   : > { %v823_v56 = vpop.f32.mrf.mxu0 }
 0x161   : > { %v1249_v46 = vmul.f32 %v2564_v63, %v1181_v11  ;;  %v824_v43 = vadd.f32 %v2558_v58, %v823_v56  ;;  %v1348_v26 = vadd.f32 %v2574_v57, %v1280_v20  ;;  %v1071_v5 = vadd.f32 %v1070_v2, %v902_v22 }
 0x163   : > { %v1317_v27 = vadd.f32 %v2574_v57, %v1249_v46  ;;  %v993_v3 = vadd.f32 %v2532_v28, %v824_v43  ;;  %v1412_v50 = vpack.c.bf16 %v1348_v26, %v1348_v26  ;;  %v1149_v61 = vmul.f32 0.2, %v1071_v5 }
 0x165   : > { %v1381_v8 = vpack.c.bf16 %v1317_v27, %v1317_v27  ;;  %v1118_v18 = vmul.f32 0.2, %v993_v3  ;;  %1477 = vst.msk [vmem:[%s2195_s29 + $0xd4] sm:$0xf] %vm1423_vm1, %v1412_v50  ;;  %v1213_v32 = vmax.f32 %v1071_v5, %v1149_v61 }
 0x166   : > { %v903_v34 = vpop.f32.mrf.mxu2 }
 0x167   : > { %1446 = vst.msk [vmem:[%s2195_s29 + $0x58] sm:$0xf] %vm1423_vm1, %v1381_v8  ;;  %v1182_v33 = vmax.f32 %v993_v3, %v1118_v18  ;;  %v1281_v36 = vmul.f32 %v2564_v63, %v1213_v32  ;;  %v904_v15 = vadd.f32 %v2558_v58, %v903_v34  ;;  %v2599_v2 = vpop.f32.mrf.mxu1 }
 0x168   : > { %v826_v17 = vpop.f32.mrf.mxu0 }
 0x169   : > { %v1250_v28 = vmul.f32 %v2564_v63, %v1182_v33  ;;  %v827_v40 = vadd.f32 %v2558_v58, %v826_v17  ;;  %v1349_v41 = vadd.f32 %v2574_v57, %v1281_v36  ;;  %v1073_v53 = vadd.f32 %v1072_v29, %v904_v15  ;;  %v1082_v36 = vpop.f32.mrf.mxu3 }
 0x16b   : > { %v1318_v42 = vadd.f32 %v2574_v57, %v1250_v28  ;;  %v996_v30 = vadd.f32 %v2545_v47, %v827_v40  ;;  %v1413_v44 = vpack.c.bf16 %v1349_v41, %v1349_v41  ;;  %v1150_v35 = vmul.f32 0.2, %v1073_v53 }
 0x16d   : > { %v1382_v13 = vpack.c.bf16 %v1318_v42, %v1318_v42  ;;  %v1119_v54 = vmul.f32 0.2, %v996_v30  ;;  %1478 = vst.msk [vmem:[%s2195_s29 + $0xd8] sm:$0xf] %vm1423_vm1, %v1413_v44  ;;  %v1214_v23 = vmax.f32 %v1073_v53, %v1150_v35 }
 0x16e   : > { %v906_v55 = vpop.f32.mrf.mxu2 }
 0x16f   : > { %1447 = vst.msk [vmem:[%s2195_s29 + $0x5c] sm:$0xf] %vm1423_vm1, %v1382_v13  ;;  %v1183_v52 = vmax.f32 %v996_v30, %v1119_v54  ;;  %v1282_v38 = vmul.f32 %v2564_v63, %v1214_v23  ;;  %v907_v59 = vadd.f32 %v2558_v58, %v906_v55  ;;  %v2612_v62 = vpop.f32.mrf.mxu1 }
 0x170   : > { %v828_v21 = vpop.f32.mrf.mxu0 }
 0x171   : > { %v1251_v47 = vmul.f32 %v2564_v63, %v1183_v52  ;;  %v829_v60 = vadd.f32 %v2558_v58, %v828_v21  ;;  %v1350_v51 = vadd.f32 %v2574_v57, %v1282_v38  ;;  %v1076_v4 = vadd.f32 %v1075_v9, %v907_v59 }
 0x173   : > { %v1319_v0 = vadd.f32 %v2574_v57, %v1251_v47  ;;  %v998_v39 = vadd.f32 %v2568_v6, %v829_v60  ;;  %v1414_v29 = vpack.c.bf16 %v1350_v51, %v1350_v51  ;;  %v1151_v45 = vmul.f32 0.2, %v1076_v4  ;;  %v1085_v60 = vpop.f32.mrf.mxu3 }
 0x175   : > { %v1383_v1 = vpack.c.bf16 %v1319_v0, %v1319_v0  ;;  %v1120_v37 = vmul.f32 0.2, %v998_v39  ;;  %1479 = vst.msk [vmem:[%s2195_s29 + $0xdc] sm:$0xf] %vm1423_vm1, %v1414_v29  ;;  %v1215_v7 = vmax.f32 %v1076_v4, %v1151_v45 }
 0x176   : > { %v908_v49 = vpop.f32.mrf.mxu2 }
 0x177   : > { %1448 = vst.msk [vmem:[%s2195_s29 + $0x60] sm:$0xf] %vm1423_vm1, %v1383_v1  ;;  %v1184_v48 = vmax.f32 %v998_v39, %v1120_v37  ;;  %v1283_v14 = vmul.f32 %v2564_v63, %v1215_v7  ;;  %v909_v16 = vadd.f32 %v2558_v58, %v908_v49  ;;  %v2625_v20 = vpop.f32.mrf.mxu1  ;;  %v847_v37 = vadd.f32 %v2558_v58, %v2180_v12 }
 0x178   : > { %v831_v11 = vpop.f32.mrf.mxu0 }
 0x179   : > { %v1252_v6 = vmul.f32 %v2564_v63, %v1184_v48  ;;  %v832_v19 = vadd.f32 %v2558_v58, %v831_v11  ;;  %v1351_v22 = vadd.f32 %v2574_v57, %v1283_v14  ;;  %v1078_v56 = vadd.f32 %v1077_v24, %v909_v16 }
 0x17b   : > { %v1320_v46 = vadd.f32 %v2574_v57, %v1252_v6  ;;  %v1001_v43 = vadd.f32 %v2586_v25, %v832_v19  ;;  %v1415_v26 = vpack.c.bf16 %v1351_v22, %v1351_v22  ;;  %v1152_v5 = vmul.f32 0.2, %v1078_v56 }
 0x17d   : > { %v1384_v27 = vpack.c.bf16 %v1320_v46, %v1320_v46  ;;  %v1121_v3 = vmul.f32 0.2, %v1001_v43  ;;  %1480 = vst.msk [vmem:[%s2195_s29 + $0xe0] sm:$0xf] %vm1423_vm1, %v1415_v26  ;;  %v1216_v9 = vmax.f32 %v1078_v56, %v1152_v5  ;;  %v1087_v5 = vpop.f32.mrf.mxu3 }
 0x17e   : > { %v911_v61 = vpop.f32.mrf.mxu2 }
 0x17f   : > { %1449 = vst.msk [vmem:[%s2195_s29 + $0x64] sm:$0xf] %vm1423_vm1, %v1384_v27  ;;  %v1185_v50 = vmax.f32 %v1001_v43, %v1121_v3  ;;  %v1284_v8 = vmul.f32 %v2564_v63, %v1216_v9  ;;  %v912_v18 = vadd.f32 %v2558_v58, %v911_v61  ;;  %v2638_v34 = vpop.f32.mrf.mxu1  ;;  %v849_v61 = vadd.f32 %v2558_v58, %v2204_v31 }
 0x180   : > { %v833_v32 = vpop.f32.mrf.mxu0 }
 0x181   : > { %v1253_v25 = vmul.f32 %v2564_v63, %v1185_v50  ;;  %v834_v33 = vadd.f32 %v2558_v58, %v833_v32  ;;  %v1352_v15 = vadd.f32 %v2574_v57, %v1284_v8  ;;  %v1081_v17 = vadd.f32 %v1080_v10, %v912_v18 }
 0x183   : > { %v1321_v28 = vadd.f32 %v2574_v57, %v1253_v25  ;;  %v1003_v40 = vadd.f32 %v2599_v2, %v834_v33  ;;  %v1416_v41 = vpack.c.bf16 %v1352_v15, %v1352_v15  ;;  %v1153_v53 = vmul.f32 0.2, %v1081_v17 }
 0x185   : > { %v1385_v42 = vpack.c.bf16 %v1321_v28, %v1321_v28  ;;  %v1122_v30 = vmul.f32 0.2, %v1003_v40  ;;  %1481 = vst.msk [vmem:[%s2195_s29 + $0xe4] sm:$0xf] %vm1423_vm1, %v1416_v41  ;;  %v1217_v44 = vmax.f32 %v1081_v17, %v1153_v53 }
 0x186   : > { %v913_v13 = vpop.f32.mrf.mxu2 }
 0x187   : > { %1450 = vst.msk [vmem:[%s2195_s29 + $0x68] sm:$0xf] %vm1423_vm1, %v1385_v42  ;;  %v1186_v35 = vmax.f32 %v1003_v40, %v1122_v30  ;;  %v1285_v54 = vmul.f32 %v2564_v63, %v1217_v44  ;;  %v914_v24 = vadd.f32 %v2558_v58, %v913_v13  ;;  %v2651_v55 = vpop.f32.mrf.mxu1 }
 0x188   : > { %v836_v23 = vpop.f32.mrf.mxu0 }
 0x189   : > { %v1254_v2 = vmul.f32 %v2564_v63, %v1186_v35  ;;  %v837_v52 = vadd.f32 %v2558_v58, %v836_v23  ;;  %v1353_v38 = vadd.f32 %v2574_v57, %v1285_v54  ;;  %v1083_v59 = vadd.f32 %v1082_v36, %v914_v24 }
 0x18b   : > { %v1322_v21 = vadd.f32 %v2574_v57, %v1254_v2  ;;  %v1006_v47 = vadd.f32 %v2612_v62, %v837_v52  ;;  %v1417_v51 = vpack.c.bf16 %v1353_v38, %v1353_v38  ;;  %v1154_v4 = vmul.f32 0.2, %v1083_v59  ;;  %v1090_v2 = vpop.f32.mrf.mxu3 }
 0x18d   : > { %v1386_v0 = vpack.c.bf16 %v1322_v21, %v1322_v21  ;;  %v1123_v39 = vmul.f32 0.2, %v1006_v47  ;;  %1482 = vst.msk [vmem:[%s2195_s29 + $0xe8] sm:$0xf] %vm1423_vm1, %v1417_v51  ;;  %v1218_v29 = vmax.f32 %v1083_v59, %v1154_v4 }
 0x18e   : > { %v916_v1 = vpop.f32.mrf.mxu2 }
 0x18f   : > { %1451 = vst.msk [vmem:[%s2195_s29 + $0x6c] sm:$0xf] %vm1423_vm1, %v1386_v0  ;;  %v1187_v45 = vmax.f32 %v1006_v47, %v1123_v39  ;;  %v1286_v7 = vmul.f32 %v2564_v63, %v1218_v29  ;;  %v917_v48 = vadd.f32 %v2558_v58, %v916_v1  ;;  %v1015_v14 = vpop.f32.mrf.mxu1 }
 0x190   : > { %v838_v62 = vpop.f32.mrf.mxu0  ;;  %v1016_v6 = vadd.f32 %v1015_v14, %v847_v37 }
 0x191   : > { %v1255_v49 = vmul.f32 %v2564_v63, %v1187_v45  ;;  %v839_v10 = vadd.f32 %v2558_v58, %v838_v62  ;;  %v1354_v16 = vadd.f32 %v2574_v57, %v1286_v7  ;;  %v1086_v11 = vadd.f32 %v1085_v60, %v917_v48 }
 0x192   : > { %v1127_v46 = vmul.f32 0.2, %v1016_v6 }
 0x193   : > { %v1323_v19 = vadd.f32 %v2574_v57, %v1255_v49  ;;  %v1008_v12 = vadd.f32 %v2625_v20, %v839_v10  ;;  %v1418_v22 = vpack.c.bf16 %v1354_v16, %v1354_v16  ;;  %v1155_v56 = vmul.f32 0.2, %v1086_v11 }
 0x194   : > { %v1191_v3 = vmax.f32 %v1016_v6, %v1127_v46 }
 0x195   : > { %v1387_v43 = vpack.c.bf16 %v1323_v19, %v1323_v19  ;;  %v1124_v26 = vmul.f32 0.2, %v1008_v12  ;;  %1483 = vst.msk [vmem:[%s2195_s29 + $0xec] sm:$0xf] %vm1423_vm1, %v1418_v22  ;;  %v1219_v27 = vmax.f32 %v1086_v11, %v1155_v56  ;;  %v1092_v11 = vpop.f32.mrf.mxu3 }
 0x196   : > { %v918_v50 = vpop.f32.mrf.mxu2  ;;  %v1259_v20 = vmul.f32 %v2564_v63, %v1191_v3 }
 0x197   : > { %1452 = vst.msk [vmem:[%s2195_s29 + $0x70] sm:$0xf] %vm1423_vm1, %v1387_v43  ;;  %v1188_v9 = vmax.f32 %v1008_v12, %v1124_v26  ;;  %v1287_v8 = vmul.f32 %v2564_v63, %v1219_v27  ;;  %v919_v18 = vadd.f32 %v2558_v58, %v918_v50  ;;  %v1017_v36 = vpop.f32.mrf.mxu1 }
 0x198   : > { %v841_v32 = vpop.f32.mrf.mxu0  ;;  %v1327_v17 = vadd.f32 %v2574_v57, %v1259_v20  ;;  %v1018_v31 = vadd.f32 %v1017_v36, %v849_v61 }
 0x199   : > { %v1256_v25 = vmul.f32 %v2564_v63, %v1188_v9  ;;  %v842_v33 = vadd.f32 %v2558_v58, %v841_v32  ;;  %v1355_v15 = vadd.f32 %v2574_v57, %v1287_v8  ;;  %v1088_v28 = vadd.f32 %v1087_v5, %v919_v18 }
 0x19a   : > { %v1391_v42 = vpack.c.bf16 %v1327_v17, %v1327_v17  ;;  %v1128_v44 = vmul.f32 0.2, %v1018_v31 }
 0x19b   : > { %v1324_v40 = vadd.f32 %v2574_v57, %v1256_v25  ;;  %v1011_v41 = vadd.f32 %v2638_v34, %v842_v33  ;;  %v1419_v53 = vpack.c.bf16 %v1355_v15, %v1355_v15  ;;  %v1156_v30 = vmul.f32 0.2, %v1088_v28 }
 0x19c   : > { %v1192_v24 = vmax.f32 %v1018_v31, %v1128_v44  ;;  %1456 = vst.msk [vmem:[%s2195_s29 + $0x80] sm:$0xf] %vm1423_vm1, %v1391_v42 }
 0x19d   : > { %v1388_v35 = vpack.c.bf16 %v1324_v40, %v1324_v40  ;;  %v1125_v13 = vmul.f32 0.2, %v1011_v41  ;;  %1484 = vst.msk [vmem:[%s2195_s29 + $0xf0] sm:$0xf] %vm1423_vm1, %v1419_v53  ;;  %v1220_v54 = vmax.f32 %v1088_v28, %v1156_v30 }
 0x19e   : > { %v921_v52 = vpop.f32.mrf.mxu2  ;;  %v1260_v34 = vmul.f32 %v2564_v63, %v1192_v24 }
 0x19f   : > { %1453 = vst.msk [vmem:[%s2195_s29 + $0x74] sm:$0xf] %vm1423_vm1, %v1388_v35  ;;  %v1189_v23 = vmax.f32 %v1011_v41, %v1125_v13  ;;  %v1288_v38 = vmul.f32 %v2564_v63, %v1220_v54  ;;  %v922_v59 = vadd.f32 %v2558_v58, %v921_v52 }
 0x1a0   : > { %v843_v21 = vpop.f32.mrf.mxu0  ;;  %v1328_v4 = vadd.f32 %v2574_v57, %v1260_v34 }
 0x1a1   : > { %v1257_v47 = vmul.f32 %v2564_v63, %v1189_v23  ;;  %v844_v60 = vadd.f32 %v2558_v58, %v843_v21  ;;  %v1356_v51 = vadd.f32 %v2574_v57, %v1288_v38  ;;  %v1091_v0 = vadd.f32 %v1090_v2, %v922_v59 }
 0x1a2   : > { %v1392_v1 = vpack.c.bf16 %v1328_v4, %v1328_v4 }
 0x1a3   : > { %v1325_v39 = vadd.f32 %v2574_v57, %v1257_v47  ;;  %v1013_v29 = vadd.f32 %v2651_v55, %v844_v60  ;;  %v1420_v45 = vpack.c.bf16 %v1356_v51, %v1356_v51  ;;  %v1157_v37 = vmul.f32 0.2, %v1091_v0 }
 0x1a4   : > { %1457 = vst.msk [vmem:[%s2195_s29 + $0x84] sm:$0xf] %vm1423_vm1, %v1392_v1 }
 0x1a5   : > { %v1389_v7 = vpack.c.bf16 %v1325_v39, %v1325_v39  ;;  %v1126_v48 = vmul.f32 0.2, %v1013_v29  ;;  %1485 = vst.msk [vmem:[%s2195_s29 + $0xf4] sm:$0xf] %vm1423_vm1, %v1420_v45  ;;  %v1221_v62 = vmax.f32 %v1091_v0, %v1157_v37 }
 0x1a6   : > { %v923_v10 = vpop.f32.mrf.mxu2 }
 0x1a7   : > { %1454 = vst.msk [vmem:[%s2195_s29 + $0x78] sm:$0xf] %vm1423_vm1, %v1389_v7  ;;  %v1190_v49 = vmax.f32 %v1013_v29, %v1126_v48  ;;  %v1289_v14 = vmul.f32 %v2564_v63, %v1221_v62  ;;  %v924_v55 = vadd.f32 %v2558_v58, %v923_v10 }
 0x1a9   : > { %v1258_v16 = vmul.f32 %v2564_v63, %v1190_v49  ;;  %v1357_v6 = vadd.f32 %v2574_v57, %v1289_v14  ;;  %v1093_v19 = vadd.f32 %v1092_v11, %v924_v55 }
 0x1ab   : > { %v1326_v12 = vadd.f32 %v2574_v57, %v1258_v16  ;;  %v1421_v22 = vpack.c.bf16 %v1357_v6, %v1357_v6  ;;  %v1158_v56 = vmul.f32 0.2, %v1093_v19 }
 0x1ad   : > { %v1390_v46 = vpack.c.bf16 %v1326_v12, %v1326_v12  ;;  %1486 = vst.msk [vmem:[%s2195_s29 + $0xf8] sm:$0xf] %vm1423_vm1, %v1421_v22  ;;  %v1222_v43 = vmax.f32 %v1093_v19, %v1158_v56 }
 0x1af   : > { %1455 = vst.msk [vmem:[%s2195_s29 + $0x7c] sm:$0xf] %vm1423_vm1, %v1390_v46  ;;  %v1290_v26 = vmul.f32 %v2564_v63, %v1222_v43 }
 0x1b1   : > { %v1358_v58 = vadd.f32 %v2574_v57, %v1290_v26 }
 0x1b3   : > { %v1422_v5 = vpack.c.bf16 %v1358_v58, %v1358_v58 }
 0x1b5   : > { %1487 = vst.msk [vmem:[%s2195_s29 + $0xfc] sm:$0xf] %vm1423_vm1, %v1422_v5 }
 0x1b6 PF: > { %s15_s18 = sadd.s32 1, %s1983_s18  }
 0x1b7   : > { %p12_p4 = scmp.ge.s32.totalorder %s15_s18, 6  }
 0x1b9   :  { %14 = sbr.rel (!%p12_p4) target bundleno = 1 (0x1), region = 70 }

// kernel: discriminator_forward.7
= control target key start
LH: loop header
LB: loop body
LE: loop exit
PB: predicated region body
PF: predicated region fallthrough
CT: control target
= control target key end

     0   :  { %vm777_vm0 = vcmask 261120   ;;  %vm1709_vm1 = vcmask 519168   ;;  %s3691_s1 = inlined_call_operand.vmem [shape: bf16[288,64], index: 1, kind: input, shape index: {}]   ;;  %s3692_s0 = inlined_call_operand.vmem [shape: bf16[512,288], index: 0, kind: input, shape index: {}]   ;;  %s3693_s2 = inlined_call_operand.vmem [shape: f32[1,64], index: 2, kind: input, shape index: {}]   ;;  %s3694_s3 = inlined_call_operand.vmem [shape: f32[1,64], index: 3, kind: input, shape index: {}]   ;;  %s3695_s4 = inlined_call_operand.vmem [shape: f32[1,64], index: 4, kind: input, shape index: {}]   ;;  %s3696_s5 = inlined_call_operand.vmem [shape: bf16[512,64], index: 5, kind: output, shape index: {}]  }
   0x1   :  { %v2369_v0 = vld [vmem:[%s3691_s1 + $0x38] sm:$0xff]  ;;  %v2440_v1 = vld [vmem:[%s3691_s1 + $0x88] sm:$0xff]  ;;  %v2368_v3 = vld [vmem:[%s3691_s1 + $0x30] sm:$0xff] }
   0x2   :  { %v2445_v2 = vld [vmem:[%s3691_s1 + $0x78] sm:$0xff]  ;;  %874 = vmatpush.bf16.msra.mxu0 %v2369_v0  ;;  %2380 = vmatpush.bf16.msra.mxu3 %v2369_v0  ;;  %v2453_v4 = vld [vmem:[%s3691_s1 + $0x80] sm:$0xff]  ;;  %v2376_v5 = vld [vmem:[%s3691_s1 + $0x70] sm:$0xff] }
   0x3   :  { %1218 = vmatpush.bf16.msra.mxu2 %v2440_v1  ;;  %1043 = vmatpush.bf16.msra.mxu1 %v2445_v2  ;;  %v1788_v6 = vld [vmem:[%s3692_s0 + $0x8] sm:$0xf]  ;;  %v2268_v7 = vld [vmem:[%s3692_s0 + $0x10] sm:$0xf0]  ;;  %v2366_v11 = vld [vmem:[%s3691_s1 + $0x20] sm:$0xff] }
   0x4   :  { %v1789_v8 = vor.u32 %v2268_v7, %v1788_v6  ;;  %v2367_v9 = vld [vmem:[%s3691_s1 + $0x28] sm:$0xff]  ;;  %v2374_v12 = vld [vmem:[%s3691_s1 + $0x60] sm:$0xff]  ;;  %v2365_v13 = vld [vmem:[%s3691_s1 + $0x18] sm:$0xff] }
   0x5   :  { %v2375_v10 = vld [vmem:[%s3691_s1 + $0x68] sm:$0xff]  ;;  %v2373_v14 = vld [vmem:[%s3691_s1 + $0x58] sm:$0xff]  ;;  %v2364_v15 = vld [vmem:[%s3691_s1 + $0x10] sm:$0xff] }
   0x6   :  { %875 = vmatpush.bf16.msra.mxu0 %v2368_v3  ;;  %2381 = vmatpush.bf16.msra.mxu3 %v2368_v3  ;;  %v2372_v16 = vld [vmem:[%s3691_s1 + $0x50] sm:$0xff]  ;;  %v1800_v17 = vld [vmem:[%s3692_s0 + $0x20] sm:$0xf]  ;;  %v2271_v18 = vld [vmem:[%s3692_s0 + $0x28] sm:$0xf0] }
   0x7   :  { %1219 = vmatpush.bf16.msra.mxu2 %v2453_v4  ;;  %1044 = vmatpush.bf16.msra.mxu1 %v2376_v5  ;;  %v1801_v19 = vor.u32 %v2271_v18, %v1800_v17  ;;  %v2363_v20 = vld [vmem:[%s3691_s1 + $0x8] sm:$0xff]  ;;  %v2362_v22 = vld [vmem:[%s3691_s1] sm:$0xff]  ;;  %v1782_v29 = vld [vmem:[%s3692_s0 + $0xc] sm:$0xf0] }
   0x8   :  { %v2371_v21 = vld [vmem:[%s3691_s1 + $0x48] sm:$0xff]  ;;  %v2370_v23 = vld [vmem:[%s3691_s1 + $0x40] sm:$0xff]  ;;  %v1812_v33 = vld [vmem:[%s3692_s0 + $0x38] sm:$0xf] }
   0x9   :  { %v1780_v24 = vld [vmem:[%s3692_s0] sm:$0xf]  ;;  %v2267_v25 = vld [vmem:[%s3692_s0 + $0x8] sm:$0xf0]  ;;  %v2266_v28 = vld [vmem:[%s3692_s0 + $0x4] sm:$0xf] }
   0xa   :  { %2234 = vmatmul.msk.bf16.vlgmr.msra.gmra.mxu2 %vm777_vm0, %v1789_v8  ;;  %876 = vmatpush.bf16.msra.mxu0 %v2367_v9  ;;  %v2068_v26 = vld [vmem:[%s3692_s0 + $0x240] sm:$0xf]  ;;  %v2339_v27 = vld [vmem:[%s3692_s0 + $0x248] sm:$0xf0]  ;;  %v1781_v30 = vor.u32 %v2267_v25, %v1780_v24  ;;  %v1785_v32 = vor.u32 %v2266_v28, %v1782_v29  ;;  %v2274_v34 = vld [vmem:[%s3692_s0 + $0x40] sm:$0xf0] }
   0xb   :  { %2382 = vmatpush.bf16.msra.mxu3 %v2367_v9  ;;  %1045 = vmatpush.bf16.msra.mxu1 %v2375_v10  ;;  %v2069_v31 = vor.u32 %v2339_v27, %v2068_v26  ;;  %v1813_v35 = vor.u32 %v2274_v34, %v1812_v33  ;;  %v1792_v36 = vld [vmem:[%s3692_s0 + $0x18] sm:$0xf]  ;;  %v2270_v37 = vld [vmem:[%s3692_s0 + $0x20] sm:$0xf0]  ;;  %v2269_v40 = vld [vmem:[%s3692_s0 + $0x1c] sm:$0xf] }
   0xc   :  { %v2080_v38 = vld [vmem:[%s3692_s0 + $0x258] sm:$0xf]  ;;  %v2342_v39 = vld [vmem:[%s3692_s0 + $0x260] sm:$0xf0]  ;;  %v1794_v41 = vld [vmem:[%s3692_s0 + $0x24] sm:$0xf0]  ;;  %v1793_v42 = vor.u32 %v2270_v37, %v1792_v36 }
   0xd   :  { %v2081_v43 = vor.u32 %v2342_v39, %v2080_v38  ;;  %v1797_v44 = vor.u32 %v2269_v40, %v1794_v41  ;;  %v1824_v45 = vld [vmem:[%s3692_s0 + $0x50] sm:$0xf]  ;;  %v2277_v46 = vld [vmem:[%s3692_s0 + $0x58] sm:$0xf0]  ;;  %v2272_v52 = vld [vmem:[%s3692_s0 + $0x34] sm:$0xf] }
   0xe   :  { %877 = vmatpush.bf16.msra.mxu0 %v2366_v11  ;;  %v1825_v47 = vor.u32 %v2277_v46, %v1824_v45  ;;  %v1804_v48 = vld [vmem:[%s3692_s0 + $0x30] sm:$0xf]  ;;  %v2273_v49 = vld [vmem:[%s3692_s0 + $0x38] sm:$0xf0]  ;;  %v1806_v53 = vld [vmem:[%s3692_s0 + $0x3c] sm:$0xf0] }
   0xf   :  { %2383 = vmatpush.bf16.msra.mxu3 %v2366_v11  ;;  %1046 = vmatpush.bf16.msra.mxu1 %v2374_v12  ;;  %v2092_v50 = vld [vmem:[%s3692_s0 + $0x270] sm:$0xf]  ;;  %v2345_v51 = vld [vmem:[%s3692_s0 + $0x278] sm:$0xf0]  ;;  %v1805_v54 = vor.u32 %v2273_v49, %v1804_v48  ;;  %v1809_v56 = vor.u32 %v2272_v52, %v1806_v53  ;;  %v1836_v57 = vld [vmem:[%s3692_s0 + $0x68] sm:$0xf] }
  0x10   :  { %v2093_v55 = vor.u32 %v2345_v51, %v2092_v50  ;;  %v2280_v58 = vld [vmem:[%s3692_s0 + $0x70] sm:$0xf0]  ;;  %v1816_v60 = vld [vmem:[%s3692_s0 + $0x48] sm:$0xf]  ;;  %v2275_v0 = vld [vmem:[%s3692_s0 + $0x4c] sm:$0xf] }
  0x11   :  { %v1837_v59 = vor.u32 %v2280_v58, %v1836_v57  ;;  %v2276_v61 = vld [vmem:[%s3692_s0 + $0x50] sm:$0xf0]  ;;  %v2104_v62 = vld [vmem:[%s3692_s0 + $0x288] sm:$0xf]  ;;  %v2283_v6 = vld [vmem:[%s3692_s0 + $0x88] sm:$0xf0] }
  0x12   :  { %878 = vmatpush.bf16.msra.mxu0 %v2365_v13  ;;  %v2348_v63 = vld [vmem:[%s3692_s0 + $0x290] sm:$0xf0]  ;;  %v1828_v8 = vld [vmem:[%s3692_s0 + $0x60] sm:$0xf]  ;;  %v2279_v9 = vld [vmem:[%s3692_s0 + $0x68] sm:$0xf0] }
  0x13   :  { %2384 = vmatpush.bf16.msra.mxu3 %v2365_v13  ;;  %1047 = vmatpush.bf16.msra.mxu1 %v2373_v14  ;;  %v2105_v3 = vor.u32 %v2348_v63, %v2104_v62  ;;  %v2351_v11 = vld [vmem:[%s3692_s0 + $0x2a8] sm:$0xf0]  ;;  %v1830_v13 = vld [vmem:[%s3692_s0 + $0x6c] sm:$0xf0]  ;;  %v1860_v17 = vld [vmem:[%s3692_s0 + $0x98] sm:$0xf] }
  0x14   :  { %v2286_v18 = vld [vmem:[%s3692_s0 + $0xa0] sm:$0xf0]  ;;  %v2281_v24 = vld [vmem:[%s3692_s0 + $0x7c] sm:$0xf]  ;;  %v1842_v25 = vld [vmem:[%s3692_s0 + $0x84] sm:$0xf0] }
  0x15   :  { %v1845_v28 = vor.u32 %v2281_v24, %v1842_v25  ;;  %v1872_v29 = vld [vmem:[%s3692_s0 + $0xb0] sm:$0xf]  ;;  %v2285_v33 = vld [vmem:[%s3692_s0 + $0x98] sm:$0xf0]  ;;  %v2284_v36 = vld [vmem:[%s3692_s0 + $0x94] sm:$0xf] }
  0x16   :  { %879 = vmatpush.bf16.msra.mxu0 %v2364_v15  ;;  %v2140_v34 = vld [vmem:[%s3692_s0 + $0x2d0] sm:$0xf]  ;;  %v1854_v37 = vld [vmem:[%s3692_s0 + $0x9c] sm:$0xf0]  ;;  %v1884_v41 = vld [vmem:[%s3692_s0 + $0xc8] sm:$0xf] }
  0x17   :  { %2385 = vmatpush.bf16.msra.mxu3 %v2364_v15  ;;  %1048 = vmatpush.bf16.msra.mxu1 %v2372_v16  ;;  %v1857_v40 = vor.u32 %v2284_v36, %v1854_v37  ;;  %v2288_v45 = vld [vmem:[%s3692_s0 + $0xb0] sm:$0xf0]  ;;  %v2152_v46 = vld [vmem:[%s3692_s0 + $0x2e8] sm:$0xf]  ;;  %v2287_v48 = vld [vmem:[%s3692_s0 + $0xac] sm:$0xf] }
  0x18   :  { %v1866_v49 = vld [vmem:[%s3692_s0 + $0xb4] sm:$0xf0]  ;;  %v2716_v58 = vld [vmem:[%s3693_s2] ss:$0 sm:$0xff]  ;;  %v2070_v62 = vld [vmem:[%s3692_s0 + $0x24c] sm:$0xf0] }
  0x19   :  { %v1869_v53 = vor.u32 %v2287_v48, %v1866_v49  ;;  %v2290_v63 = vld [vmem:[%s3692_s0 + $0xc4] sm:$0xf]  ;;  %v1888_v24 = vld [vmem:[%s3692_s0 + $0xd8] sm:$0xf]  ;;  %v2301_v48 = vld [vmem:[%s3692_s0 + $0x118] sm:$0xf0] }
  0x1a   :  { %2235 = vmatmul.msk.bf16.gmra.mxu2 %vm777_vm0, %v1801_v19  ;;  %880 = vmatpush.bf16.msra.mxu0 %v2363_v20  ;;  %v1861_v19 = vor.u32 %v2286_v18, %v1860_v17  ;;  %v2294_v25 = vld [vmem:[%s3692_s0 + $0xe0] sm:$0xf0] }
  0x1b   :  { %2386 = vmatpush.bf16.msra.mxu3 %v2363_v20  ;;  %1049 = vmatpush.bf16.msra.mxu1 %v2371_v21  ;;  %v1840_v20 = vld [vmem:[%s3692_s0 + $0x78] sm:$0xf]  ;;  %v1889_v36 = vor.u32 %v2294_v25, %v1888_v24  ;;  %v2304_v24 = vld [vmem:[%s3692_s0 + $0x130] sm:$0xf0] }
  0x1e   :  { %881 = vmatpush.bf16.msra.mxu0 %v2362_v22 }
  0x1f   :  { %2387 = vmatpush.bf16.msra.mxu3 %v2362_v22  ;;  %1050 = vmatpush.bf16.msra.mxu1 %v2370_v23  ;;  %v2128_v22 = vld [vmem:[%s3692_s0 + $0x2b8] sm:$0xf] }
  0x21   :  { %882 = vmatmul.bf16.vlgmr.msra.gmra.mxu0 %v1781_v30  ;;  %v2289_v30 = vld [vmem:[%s3692_s0 + $0xb8] sm:$0xf0] }
  0x22   :  { %1002 = vmatmul.bf16.vlgmr.msra.gmra.mxu3 %v2069_v31  ;;  %1051 = vmatmul.bf16.vlgmr.msra.gmra.mxu1 %v1785_v32  ;;  %v1873_v31 = vor.u32 %v2289_v30, %v1872_v29  ;;  %v1852_v32 = vld [vmem:[%s3692_s0 + $0x90] sm:$0xf]  ;;  %v2082_v29 = vld [vmem:[%s3692_s0 + $0x264] sm:$0xf0]  ;;  %v2293_v30 = vld [vmem:[%s3692_s0 + $0xdc] sm:$0xf] }
  0x23   :  { %2388 = vmatpush.bf16.msrb.mxu3 %v2445_v2  ;;  %v1817_v2 = vor.u32 %v2276_v61, %v1816_v60  ;;  %v1853_v38 = vor.u32 %v2285_v33, %v1852_v32  ;;  %v2291_v60 = vld [vmem:[%s3692_s0 + $0xc8] sm:$0xf0]  ;;  %v2338_v61 = vld [vmem:[%s3692_s0 + $0x244] sm:$0xf] }
  0x27   :  { %2389 = vmatpush.bf16.msrb.mxu3 %v2376_v5  ;;  %v1848_v5 = vld [vmem:[%s3692_s0 + $0x80] sm:$0xf] }
  0x28   :  { %v1849_v7 = vor.u32 %v2283_v6, %v1848_v5 }
  0x2a   :  { %2236 = vmatmul.msk.bf16.gmra.mxu2 %vm777_vm0, %v1813_v35  ;;  %v2357_v35 = vld [vmem:[%s3692_s0 + $0x2d8] sm:$0xf0] }
  0x2b   :  { %2390 = vmatpush.bf16.msrb.mxu3 %v2375_v10  ;;  %v2116_v10 = vld [vmem:[%s3692_s0 + $0x2a0] sm:$0xf]  ;;  %v2141_v39 = vor.u32 %v2357_v35, %v2140_v34 }
  0x2c   :  { %v2117_v15 = vor.u32 %v2351_v11, %v2116_v10  ;;  %v1908_v10 = vld [vmem:[%s3692_s0 + $0xf8] sm:$0xf]  ;;  %v2298_v11 = vld [vmem:[%s3692_s0 + $0x100] sm:$0xf0] }
  0x2d   :  { %v1909_v17 = vor.u32 %v2298_v11, %v1908_v10 }
  0x2f   :  { %2391 = vmatpush.bf16.msrb.mxu3 %v2374_v12  ;;  %v2278_v12 = vld [vmem:[%s3692_s0 + $0x64] sm:$0xf] }
  0x31   :  { %887 = vmatmul.bf16.gmra.mxu0 %v1793_v42  ;;  %v2292_v42 = vld [vmem:[%s3692_s0 + $0xd0] sm:$0xf0] }
  0x32   :  { %1007 = vmatmul.bf16.gmra.mxu3 %v2081_v43  ;;  %1056 = vmatmul.bf16.gmra.mxu1 %v1797_v44  ;;  %v1885_v43 = vor.u32 %v2292_v42, %v1884_v41  ;;  %v1864_v44 = vld [vmem:[%s3692_s0 + $0xa8] sm:$0xf] }
  0x33   :  { %2392 = vmatpush.bf16.msrb.mxu3 %v2373_v14  ;;  %v1829_v14 = vor.u32 %v2279_v9, %v1828_v8  ;;  %v1865_v51 = vor.u32 %v2288_v45, %v1864_v44 }
  0x37   :  { %2393 = vmatpush.bf16.msrb.mxu3 %v2372_v16  ;;  %v1833_v16 = vor.u32 %v2278_v12, %v1830_v13  ;;  %v2747_v13 = vld [vmem:[%s3694_s3] ss:$0 sm:$0xff] }
  0x3a   :  { %2237 = vmatmul.msk.bf16.gmra.mxu2 %vm777_vm0, %v1825_v47  ;;  %v2360_v47 = vld [vmem:[%s3692_s0 + $0x2f0] sm:$0xf0] }
  0x3b   :  { %2394 = vmatpush.bf16.msrb.mxu3 %v2371_v21  ;;  %v2282_v21 = vld [vmem:[%s3692_s0 + $0x80] sm:$0xf0]  ;;  %v2153_v52 = vor.u32 %v2360_v47, %v2152_v46  ;;  %v1920_v47 = vld [vmem:[%s3692_s0 + $0x110] sm:$0xf] }
  0x3c   :  { %v1841_v26 = vor.u32 %v2282_v21, %v1840_v20 }
  0x3f   :  { %2395 = vmatpush.bf16.msrb.mxu3 %v2370_v23  ;;  %v2354_v23 = vld [vmem:[%s3692_s0 + $0x2c0] sm:$0xf0] }
  0x40   :  { %v2129_v27 = vor.u32 %v2354_v23, %v2128_v22 }
  0x41   :  { %892 = vmatmul.bf16.gmra.mxu0 %v1805_v54  ;;  %v1896_v54 = vld [vmem:[%s3692_s0 + $0xe0] sm:$0xf] }
  0x42   :  { %1012 = vmatmul.bf16.gmra.mxu3 %v2093_v55  ;;  %1061 = vmatmul.bf16.gmra.mxu1 %v1809_v56  ;;  %v2295_v55 = vld [vmem:[%s3692_s0 + $0xe8] sm:$0xf0] }
  0x43   :  { %2396 = vmatpush.bf16.msra.mxu3 %v2440_v1  ;;  %v1818_v1 = vld [vmem:[%s3692_s0 + $0x54] sm:$0xf0]  ;;  %v1897_v57 = vor.u32 %v2295_v55, %v1896_v54  ;;  %v1921_v54 = vor.u32 %v2301_v48, %v1920_v47 }
  0x47   :  { %2397 = vmatpush.bf16.msra.mxu3 %v2453_v4  ;;  %v1821_v4 = vor.u32 %v2275_v0, %v1818_v1  ;;  %v1878_v0 = vld [vmem:[%s3692_s0 + $0xcc] sm:$0xf0] }
  0x48   :  { %v1881_v5 = vor.u32 %v2290_v63, %v1878_v0  ;;  %v2344_v63 = vld [vmem:[%s3692_s0 + $0x274] sm:$0xf] }
  0x4a   :  { %2238 = vmatmul.msk.bf16.gmra.mxu2 %vm777_vm0, %v1837_v59  ;;  %v1876_v59 = vld [vmem:[%s3692_s0 + $0xc0] sm:$0xf] }
  0x51   :  { %897 = vmatmul.bf16.gmra.mxu0 %v1817_v2  ;;  %v1877_v2 = vor.u32 %v2291_v60, %v1876_v59 }
  0x52   :  { %1017 = vmatmul.bf16.gmra.mxu3 %v2105_v3  ;;  %1066 = vmatmul.bf16.gmra.mxu1 %v1821_v4  ;;  %v2073_v4 = vor.u32 %v2338_v61, %v2070_v62  ;;  %v1900_v61 = vld [vmem:[%s3692_s0 + $0xf0] sm:$0xf]  ;;  %v2297_v62 = vld [vmem:[%s3692_s0 + $0xf8] sm:$0xf0] }
  0x5a   :  { %2239 = vmatmul.msk.bf16.gmra.mxu2 %vm777_vm0, %v1849_v7 }
  0x61   :  { %902 = vmatmul.bf16.gmra.mxu0 %v1829_v14 }
  0x62   :  { %1022 = vmatmul.bf16.gmra.mxu3 %v2117_v15  ;;  %1071 = vmatmul.bf16.gmra.mxu1 %v1833_v16 }
  0x6a   :  { %2240 = vmatmul.msk.bf16.gmra.mxu2 %vm777_vm0, %v1861_v19  ;;  %v2754_v19 = vld [vmem:[%s3695_s4] ss:$0 sm:$0xff] }
  0x71   :  { %907 = vmatmul.bf16.gmra.mxu0 %v1841_v26  ;;  %v2341_v26 = vld [vmem:[%s3692_s0 + $0x25c] sm:$0xf] }
  0x72   :  { %1027 = vmatmul.bf16.gmra.mxu3 %v2129_v27  ;;  %1076 = vmatmul.bf16.gmra.mxu1 %v1845_v28 }
  0x7a   :  { %2241 = vmatmul.msk.bf16.gmra.mxu2 %vm777_vm0, %v1873_v31  ;;  %v1890_v31 = vld [vmem:[%s3692_s0 + $0xe4] sm:$0xf0] }
  0x81   :  { %912 = vmatmul.bf16.gmra.mxu0 %v1853_v38  ;;  %v2085_v38 = vor.u32 %v2341_v26, %v2082_v29 }
  0x82   :  { %1032 = vmatmul.bf16.gmra.mxu3 %v2141_v39  ;;  %1081 = vmatmul.bf16.gmra.mxu1 %v1857_v40  ;;  %v1893_v39 = vor.u32 %v2293_v30, %v1890_v31 }
  0x8a   :  { %2242 = vmatmul.msk.bf16.gmra.mxu2 %vm777_vm0, %v1885_v43 }
  0x8d   :  { %v1221_v50 = vpop.f32.mrf.mxu2 }
  0x91   :  { %917 = vmatmul.bf16.gmra.mxu0 %v1865_v51 }
  0x92   :  { %1037 = vmatmul.bf16.gmra.mxu3 %v2153_v52  ;;  %1086 = vmatmul.bf16.gmra.mxu1 %v1869_v53 }
  0x95   :  { %v1223_v56 = vpop.f32.mrf.mxu2 }
  0x9a   :  { %2243 = vmatmul.msk.bf16.gmra.mxu2 %vm777_vm0, %v1897_v57 }
  0x9d   :  { %v1226_v1 = vpop.f32.mrf.mxu2 }
  0x9e   :  { %v883_v3 = vpop.f32.mrf.mxu0 }
  0x9f   :  { %v884_v6 = vadd.f32 %v2716_v58, %v883_v3  ;;  %v1052_v7 = vpop.f32.mrf.mxu1  ;;  %v2296_v3 = vld [vmem:[%s3692_s0 + $0xf4] sm:$0xf] }
  0xa1   :  { %v1053_v8 = vadd.f32 %v1052_v7, %v884_v6  ;;  %922 = vmatmul.bf16.gmra.mxu0 %v1877_v2  ;;  %v2094_v2 = vld [vmem:[%s3692_s0 + $0x27c] sm:$0xf0] }
  0xa2   :  { %1171 = vmatmul.bf16.vlgmr.msrb.gmra.mxu3 %v2073_v4  ;;  %1091 = vmatmul.bf16.gmra.mxu1 %v1881_v5  ;;  %v1902_v4 = vld [vmem:[%s3692_s0 + $0xfc] sm:$0xf0]  ;;  %v2097_v11 = vor.u32 %v2344_v63, %v2094_v2  ;;  %v2307_v63 = vld [vmem:[%s3692_s0 + $0x148] sm:$0xf0] }
  0xa3   :  { %v1222_v9 = vadd.f32 %v1221_v50, %v1053_v8 }
  0xa5   :  { %v1381_v12 = vmul.f32 0.2, %v1222_v9  ;;  %v2749_v14 = vpop.f32.mrf.mxu3  ;;  %v1228_v15 = vpop.f32.mrf.mxu2 }
  0xa6   :  { %v885_v16 = vpop.f32.mrf.mxu0 }
  0xa7   :  { %v1445_v18 = vmax.f32 %v1222_v9, %v1381_v12  ;;  %v886_v20 = vadd.f32 %v2716_v58, %v885_v16  ;;  %v1054_v21 = vpop.f32.mrf.mxu1  ;;  %v1901_v9 = vor.u32 %v2297_v62, %v1900_v61  ;;  %v1905_v12 = vor.u32 %v2296_v3, %v1902_v4  ;;  %v1944_v62 = vld [vmem:[%s3692_s0 + $0x140] sm:$0xf] }
  0xa9   :  { %v1513_v22 = vmul.f32 %v2747_v13, %v1445_v18  ;;  %v1055_v23 = vadd.f32 %v1054_v21, %v886_v20 }
  0xaa   :  { %2244 = vmatmul.msk.bf16.gmra.mxu2 %vm777_vm0, %v1909_v17 }
  0xab   :  { %v1581_v27 = vadd.f32 %v2754_v19, %v1513_v22  ;;  %v1224_v28 = vadd.f32 %v1223_v56, %v1055_v23  ;;  %v1932_v23 = vld [vmem:[%s3692_s0 + $0x128] sm:$0xf] }
  0xac   :  { %v1933_v30 = vor.u32 %v2304_v24, %v1932_v23 }
  0xad   :  { %v1645_v32 = vpack.c.bf16 %v1581_v27, %v1581_v27  ;;  %v1382_v33 = vmul.f32 0.2, %v1224_v28  ;;  %v2778_v34 = vpop.f32.mrf.mxu3  ;;  %v1231_v35 = vpop.f32.mrf.mxu2 }
  0xae   :  { %v888_v37 = vpop.f32.mrf.mxu0 }
  0xaf   :  { %1710 = vst.msk [vmem:[%s3696_s5] sm:$0xf] %vm1709_vm1, %v1645_v32  ;;  %v1446_v40 = vmax.f32 %v1224_v28, %v1382_v33  ;;  %v889_v41 = vadd.f32 %v2716_v58, %v888_v37  ;;  %v1057_v42 = vpop.f32.mrf.mxu1  ;;  %v1912_v37 = vld [vmem:[%s3692_s0 + $0x108] sm:$0xf] }
  0xb1   :  { %v1514_v43 = vmul.f32 %v2747_v13, %v1446_v40  ;;  %v1058_v44 = vadd.f32 %v1057_v42, %v889_v41  ;;  %927 = vmatmul.bf16.gmra.mxu0 %v1889_v36  ;;  %v2106_v42 = vld [vmem:[%s3692_s0 + $0x294] sm:$0xf0] }
  0xb2   :  { %1176 = vmatmul.bf16.gmra.mxu3 %v2085_v38  ;;  %1096 = vmatmul.bf16.gmra.mxu1 %v1893_v39  ;;  %v2300_v38 = vld [vmem:[%s3692_s0 + $0x110] sm:$0xf0]  ;;  %v2347_v39 = vld [vmem:[%s3692_s0 + $0x28c] sm:$0xf] }
  0xb3   :  { %v1582_v45 = vadd.f32 %v2754_v19, %v1514_v43  ;;  %v1227_v46 = vadd.f32 %v1226_v1, %v1058_v44  ;;  %v2299_v43 = vld [vmem:[%s3692_s0 + $0x10c] sm:$0xf]  ;;  %v1914_v44 = vld [vmem:[%s3692_s0 + $0x114] sm:$0xf0] }
  0xb5   :  { %v1646_v49 = vpack.c.bf16 %v1582_v45, %v1582_v45  ;;  %v1383_v50 = vmul.f32 0.2, %v1227_v46  ;;  %v2793_v51 = vpop.f32.mrf.mxu3  ;;  %v1233_v52 = vpop.f32.mrf.mxu2 }
  0xb6   :  { %v890_v53 = vpop.f32.mrf.mxu0 }
  0xb7   :  { %1711 = vst.msk [vmem:[%s3696_s5 + $0x4] sm:$0xf] %vm1709_vm1, %v1646_v49  ;;  %v1447_v55 = vmax.f32 %v1227_v46, %v1383_v50  ;;  %v891_v56 = vadd.f32 %v2716_v58, %v890_v53  ;;  %v1059_v57 = vpop.f32.mrf.mxu1  ;;  %v1913_v49 = vor.u32 %v2300_v38, %v1912_v37  ;;  %v1917_v53 = vor.u32 %v2299_v43, %v1914_v44 }
  0xb9   :  { %v1515_v59 = vmul.f32 %v2747_v13, %v1447_v55  ;;  %v1060_v60 = vadd.f32 %v1059_v57, %v891_v56 }
  0xba   :  { %2245 = vmatmul.msk.bf16.gmra.mxu2 %vm777_vm0, %v1921_v54 }
  0xbb   :  { %v1583_v0 = vadd.f32 %v2754_v19, %v1515_v59  ;;  %v1229_v1 = vadd.f32 %v1228_v15, %v1060_v60 }
  0xbd   :  { %v1647_v5 = vpack.c.bf16 %v1583_v0, %v1583_v0  ;;  %v1384_v6 = vmul.f32 0.2, %v1229_v1  ;;  %v2821_v7 = vpop.f32.mrf.mxu3  ;;  %v1236_v8 = vpop.f32.mrf.mxu2 }
  0xbe   :  { %v893_v10 = vpop.f32.mrf.mxu0 }
  0xbf   :  { %1712 = vst.msk [vmem:[%s3696_s5 + $0x8] sm:$0xf] %vm1709_vm1, %v1647_v5  ;;  %v1448_v15 = vmax.f32 %v1229_v1, %v1384_v6  ;;  %v894_v16 = vadd.f32 %v2716_v58, %v893_v10  ;;  %v1062_v17 = vpop.f32.mrf.mxu1  ;;  %v1945_v5 = vor.u32 %v2307_v63, %v1944_v62  ;;  %v2305_v62 = vld [vmem:[%s3692_s0 + $0x13c] sm:$0xf]  ;;  %v1938_v63 = vld [vmem:[%s3692_s0 + $0x144] sm:$0xf0] }
  0xc1   :  { %v1516_v18 = vmul.f32 %v2747_v13, %v1448_v15  ;;  %v1063_v20 = vadd.f32 %v1062_v17, %v894_v16  ;;  %932 = vmatmul.bf16.gmra.mxu0 %v1901_v9  ;;  %v2303_v15 = vld [vmem:[%s3692_s0 + $0x128] sm:$0xf0]  ;;  %v2350_v16 = vld [vmem:[%s3692_s0 + $0x2a4] sm:$0xf] }
  0xc2   :  { %1181 = vmatmul.bf16.gmra.mxu3 %v2097_v11  ;;  %1101 = vmatmul.bf16.gmra.mxu1 %v1905_v12  ;;  %v1924_v12 = vld [vmem:[%s3692_s0 + $0x120] sm:$0xf] }
  0xc3   :  { %v1584_v21 = vadd.f32 %v2754_v19, %v1516_v18  ;;  %v1232_v22 = vadd.f32 %v1231_v35, %v1063_v20  ;;  %v2118_v20 = vld [vmem:[%s3692_s0 + $0x2ac] sm:$0xf0] }
  0xc5   :  { %v1648_v25 = vpack.c.bf16 %v1584_v21, %v1584_v21  ;;  %v1385_v26 = vmul.f32 0.2, %v1232_v22  ;;  %v2836_v27 = vpop.f32.mrf.mxu3  ;;  %v1238_v28 = vpop.f32.mrf.mxu2  ;;  %v2302_v21 = vld [vmem:[%s3692_s0 + $0x124] sm:$0xf] }
  0xc6   :  { %v895_v29 = vpop.f32.mrf.mxu0 }
  0xc7   :  { %1713 = vst.msk [vmem:[%s3696_s5 + $0xc] sm:$0xf] %vm1709_vm1, %v1648_v25  ;;  %v1449_v31 = vmax.f32 %v1232_v22, %v1385_v26  ;;  %v896_v32 = vadd.f32 %v2716_v58, %v895_v29  ;;  %v1064_v33 = vpop.f32.mrf.mxu1  ;;  %v1926_v22 = vld [vmem:[%s3692_s0 + $0x12c] sm:$0xf0]  ;;  %v1925_v29 = vor.u32 %v2303_v15, %v1924_v12 }
  0xc9   :  { %v1517_v35 = vmul.f32 %v2747_v13, %v1449_v31  ;;  %v1065_v36 = vadd.f32 %v1064_v33, %v896_v32  ;;  %v1929_v31 = vor.u32 %v2302_v21, %v1926_v22  ;;  %v2313_v21 = vld [vmem:[%s3692_s0 + $0x178] sm:$0xf0] }
  0xca   :  { %2246 = vmatmul.msk.bf16.gmra.mxu2 %vm777_vm0, %v1933_v30 }
  0xcb   :  { %v1585_v40 = vadd.f32 %v2754_v19, %v1517_v35  ;;  %v1234_v41 = vadd.f32 %v1233_v52, %v1065_v36  ;;  %v2109_v52 = vor.u32 %v2347_v39, %v2106_v42 }
  0xcd   :  { %v1649_v45 = vpack.c.bf16 %v1585_v40, %v1585_v40  ;;  %v1386_v46 = vmul.f32 0.2, %v1234_v41  ;;  %v2864_v47 = vpop.f32.mrf.mxu3  ;;  %v1241_v48 = vpop.f32.mrf.mxu2  ;;  %v1956_v40 = vld [vmem:[%s3692_s0 + $0x158] sm:$0xf] }
  0xce   :  { %v898_v50 = vpop.f32.mrf.mxu0 }
  0xcf   :  { %1714 = vst.msk [vmem:[%s3696_s5 + $0x10] sm:$0xf] %vm1709_vm1, %v1649_v45  ;;  %v1450_v54 = vmax.f32 %v1234_v41, %v1386_v46  ;;  %v899_v55 = vadd.f32 %v2716_v58, %v898_v50  ;;  %v1067_v56 = vpop.f32.mrf.mxu1  ;;  %v2310_v41 = vld [vmem:[%s3692_s0 + $0x160] sm:$0xf0] }
  0xd1   :  { %v1518_v57 = vmul.f32 %v2747_v13, %v1450_v54  ;;  %v1068_v59 = vadd.f32 %v1067_v56, %v899_v55  ;;  %937 = vmatmul.bf16.gmra.mxu0 %v1913_v49  ;;  %v1957_v49 = vor.u32 %v2310_v41, %v1956_v40  ;;  %v1936_v55 = vld [vmem:[%s3692_s0 + $0x138] sm:$0xf]  ;;  %v2306_v56 = vld [vmem:[%s3692_s0 + $0x140] sm:$0xf0]  ;;  %v2142_v41 = vld [vmem:[%s3692_s0 + $0x2dc] sm:$0xf0] }
  0xd2   :  { %1186 = vmatmul.bf16.gmra.mxu3 %v2109_v52  ;;  %1106 = vmatmul.bf16.gmra.mxu1 %v1917_v53 }
  0xd3   :  { %v1586_v60 = vadd.f32 %v2754_v19, %v1518_v57  ;;  %v1237_v61 = vadd.f32 %v1236_v8, %v1068_v59  ;;  %v2353_v57 = vld [vmem:[%s3692_s0 + $0x2bc] sm:$0xf] }
  0xd5   :  { %v1650_v0 = vpack.c.bf16 %v1586_v60, %v1586_v60  ;;  %v1387_v1 = vmul.f32 0.2, %v1237_v61  ;;  %v2879_v2 = vpop.f32.mrf.mxu3  ;;  %v1243_v3 = vpop.f32.mrf.mxu2 }
  0xd6   :  { %v900_v4 = vpop.f32.mrf.mxu0 }
  0xd7   :  { %1715 = vst.msk [vmem:[%s3696_s5 + $0x14] sm:$0xf] %vm1709_vm1, %v1650_v0  ;;  %v1451_v6 = vmax.f32 %v1237_v61, %v1387_v1  ;;  %v901_v8 = vadd.f32 %v2716_v58, %v900_v4  ;;  %v1069_v9 = vpop.f32.mrf.mxu1  ;;  %v2130_v61 = vld [vmem:[%s3692_s0 + $0x2c4] sm:$0xf0] }
  0xd9   :  { %v1519_v10 = vmul.f32 %v2747_v13, %v1451_v6  ;;  %v1070_v11 = vadd.f32 %v1069_v9, %v901_v8  ;;  %v1937_v6 = vor.u32 %v2306_v56, %v1936_v55  ;;  %v1941_v9 = vor.u32 %v2305_v62, %v1938_v63  ;;  %v1980_v63 = vld [vmem:[%s3692_s0 + $0x188] sm:$0xf] }
  0xda   :  { %2247 = vmatmul.msk.bf16.gmra.mxu2 %vm777_vm0, %v1945_v5 }
  0xdb   :  { %v1587_v17 = vadd.f32 %v2754_v19, %v1519_v10  ;;  %v1239_v18 = vadd.f32 %v1238_v28, %v1070_v11  ;;  %v2121_v28 = vor.u32 %v2350_v16, %v2118_v20  ;;  %v1968_v20 = vld [vmem:[%s3692_s0 + $0x170] sm:$0xf] }
  0xdd   :  { %v1651_v23 = vpack.c.bf16 %v1587_v17, %v1587_v17  ;;  %v1388_v24 = vmul.f32 0.2, %v1239_v18  ;;  %v2907_v25 = vpop.f32.mrf.mxu3  ;;  %v1246_v26 = vpop.f32.mrf.mxu2 }
  0xde   :  { %v903_v30 = vpop.f32.mrf.mxu0 }
  0xdf   :  { %1716 = vst.msk [vmem:[%s3696_s5 + $0x18] sm:$0xf] %vm1709_vm1, %v1651_v23  ;;  %v1452_v32 = vmax.f32 %v1239_v18, %v1388_v24  ;;  %v904_v33 = vadd.f32 %v2716_v58, %v903_v30  ;;  %v1072_v35 = vpop.f32.mrf.mxu1 }
  0xe1   :  { %v1520_v36 = vmul.f32 %v2747_v13, %v1452_v32  ;;  %v1073_v37 = vadd.f32 %v1072_v35, %v904_v33  ;;  %942 = vmatmul.bf16.gmra.mxu0 %v1925_v29 }
  0xe2   :  { %1191 = vmatmul.bf16.gmra.mxu3 %v2121_v28  ;;  %1111 = vmatmul.bf16.gmra.mxu1 %v1929_v31  ;;  %v1969_v28 = vor.u32 %v2313_v21, %v1968_v20  ;;  %v2359_v20 = vld [vmem:[%s3692_s0 + $0x2ec] sm:$0xf] }
  0xe3   :  { %v1588_v38 = vadd.f32 %v2754_v19, %v1520_v36  ;;  %v1242_v39 = vadd.f32 %v1241_v48, %v1073_v37  ;;  %v1948_v36 = vld [vmem:[%s3692_s0 + $0x150] sm:$0xf]  ;;  %v2309_v37 = vld [vmem:[%s3692_s0 + $0x158] sm:$0xf0] }
  0xe5   :  { %v1652_v42 = vpack.c.bf16 %v1588_v38, %v1588_v38  ;;  %v1389_v43 = vmul.f32 0.2, %v1242_v39  ;;  %v2922_v44 = vpop.f32.mrf.mxu3  ;;  %v1248_v45 = vpop.f32.mrf.mxu2  ;;  %v2356_v38 = vld [vmem:[%s3692_s0 + $0x2d4] sm:$0xf] }
  0xe6   :  { %v905_v46 = vpop.f32.mrf.mxu0 }
  0xe7   :  { %1717 = vst.msk [vmem:[%s3696_s5 + $0x1c] sm:$0xf] %vm1709_vm1, %v1652_v42  ;;  %v1453_v48 = vmax.f32 %v1242_v39, %v1389_v43  ;;  %v906_v50 = vadd.f32 %v2716_v58, %v905_v46  ;;  %v1074_v52 = vpop.f32.mrf.mxu1  ;;  %v2308_v42 = vld [vmem:[%s3692_s0 + $0x154] sm:$0xf]  ;;  %v1950_v43 = vld [vmem:[%s3692_s0 + $0x15c] sm:$0xf0] }
  0xe9   :  { %v1521_v53 = vmul.f32 %v2747_v13, %v1453_v48  ;;  %v1075_v54 = vadd.f32 %v1074_v52, %v906_v50  ;;  %v1949_v52 = vor.u32 %v2309_v37, %v1948_v36 }
  0xea   :  { %2248 = vmatmul.msk.bf16.gmra.mxu2 %vm777_vm0, %v1957_v49 }
  0xeb   :  { %v1589_v59 = vadd.f32 %v2754_v19, %v1521_v53  ;;  %v1244_v60 = vadd.f32 %v1243_v3, %v1075_v54  ;;  %v2133_v3 = vor.u32 %v2353_v57, %v2130_v61  ;;  %v1953_v54 = vor.u32 %v2308_v42, %v1950_v43 }
  0xed   :  { %v1653_v0 = vpack.c.bf16 %v1589_v59, %v1589_v59  ;;  %v1390_v1 = vmul.f32 0.2, %v1244_v60  ;;  %v2950_v4 = vpop.f32.mrf.mxu3  ;;  %v1251_v5 = vpop.f32.mrf.mxu2 }
  0xee   :  { %v908_v8 = vpop.f32.mrf.mxu0 }
  0xef   :  { %1718 = vst.msk [vmem:[%s3696_s5 + $0x20] sm:$0xf] %vm1709_vm1, %v1653_v0  ;;  %v1454_v10 = vmax.f32 %v1244_v60, %v1390_v1  ;;  %v909_v11 = vadd.f32 %v2716_v58, %v908_v8  ;;  %v1077_v12 = vpop.f32.mrf.mxu1  ;;  %v2316_v0 = vld [vmem:[%s3692_s0 + $0x190] sm:$0xf0] }
  0xf1   :  { %v1522_v15 = vmul.f32 %v2747_v13, %v1454_v10  ;;  %v1078_v16 = vadd.f32 %v1077_v12, %v909_v11  ;;  %947 = vmatmul.bf16.gmra.mxu0 %v1937_v6  ;;  %v1981_v10 = vor.u32 %v2316_v0, %v1980_v63  ;;  %v1972_v63 = vld [vmem:[%s3692_s0 + $0x180] sm:$0xf]  ;;  %v2315_v0 = vld [vmem:[%s3692_s0 + $0x188] sm:$0xf0] }
  0xf2   :  { %1196 = vmatmul.bf16.gmra.mxu3 %v2133_v3  ;;  %1116 = vmatmul.bf16.gmra.mxu1 %v1941_v9 }
  0xf3   :  { %v1590_v17 = vadd.f32 %v2754_v19, %v1522_v15  ;;  %v1247_v18 = vadd.f32 %v1246_v26, %v1078_v16 }
  0xf5   :  { %v1654_v22 = vpack.c.bf16 %v1590_v17, %v1590_v17  ;;  %v1391_v23 = vmul.f32 0.2, %v1247_v18  ;;  %v2965_v24 = vpop.f32.mrf.mxu3  ;;  %v1253_v29 = vpop.f32.mrf.mxu2  ;;  %v1960_v17 = vld [vmem:[%s3692_s0 + $0x168] sm:$0xf] }
  0xf6   :  { %v910_v30 = vpop.f32.mrf.mxu0 }
  0xf7   :  { %1719 = vst.msk [vmem:[%s3696_s5 + $0x24] sm:$0xf] %vm1709_vm1, %v1654_v22  ;;  %v1455_v26 = vmax.f32 %v1247_v18, %v1391_v23  ;;  %v911_v31 = vadd.f32 %v2716_v58, %v910_v30  ;;  %v1079_v32 = vpop.f32.mrf.mxu1  ;;  %v2312_v18 = vld [vmem:[%s3692_s0 + $0x170] sm:$0xf0]  ;;  %v2154_v23 = vld [vmem:[%s3692_s0 + $0x2f4] sm:$0xf0] }
  0xf8   :  { %v2311_v30 = vld [vmem:[%s3692_s0 + $0x16c] sm:$0xf] }
  0xf9   :  { %v1523_v33 = vmul.f32 %v2747_v13, %v1455_v26  ;;  %v1080_v35 = vadd.f32 %v1079_v32, %v911_v31 }
  0xfa   :  { %2249 = vmatmul.msk.bf16.gmra.mxu2 %vm777_vm0, %v1969_v28  ;;  %v1962_v28 = vld [vmem:[%s3692_s0 + $0x174] sm:$0xf0] }
  0xfb   :  { %v1591_v39 = vadd.f32 %v2754_v19, %v1523_v33  ;;  %v1249_v40 = vadd.f32 %v1248_v45, %v1080_v35  ;;  %v2145_v45 = vor.u32 %v2356_v38, %v2142_v41  ;;  %v1961_v35 = vor.u32 %v2312_v18, %v1960_v17 }
  0xfc   :  { %v1965_v37 = vor.u32 %v2311_v30, %v1962_v28  ;;  %v1973_v18 = vor.u32 %v2315_v0, %v1972_v63  ;;  %v1006_v63 = vadd.f32 %v2716_v58, %v2778_v34 }
  0xfd   :  { %v1655_v46 = vpack.c.bf16 %v1591_v39, %v1591_v39  ;;  %v1392_v49 = vmul.f32 0.2, %v1249_v40  ;;  %v2993_v48 = vpop.f32.mrf.mxu3  ;;  %v1256_v50 = vpop.f32.mrf.mxu2 }
  0xfe   :  { %v913_v53 = vpop.f32.mrf.mxu0 }
  0xff   :  { %1720 = vst.msk [vmem:[%s3696_s5 + $0x28] sm:$0xf] %vm1709_vm1, %v1655_v46  ;;  %v1456_v55 = vmax.f32 %v1249_v40, %v1392_v49  ;;  %v914_v56 = vadd.f32 %v2716_v58, %v913_v53  ;;  %v1082_v57 = vpop.f32.mrf.mxu1  ;;  %v1992_v49 = vld [vmem:[%s3692_s0 + $0x1a0] sm:$0xf] }
 0x101   :  { %v1524_v59 = vmul.f32 %v2747_v13, %v1456_v55  ;;  %v1083_v60 = vadd.f32 %v1082_v57, %v914_v56  ;;  %952 = vmatmul.bf16.gmra.mxu0 %v1949_v52  ;;  %v2319_v52 = vld [vmem:[%s3692_s0 + $0x1a8] sm:$0xf0] }
 0x102   :  { %1201 = vmatmul.bf16.gmra.mxu3 %v2145_v45  ;;  %1121 = vmatmul.bf16.gmra.mxu1 %v1953_v54  ;;  %v1993_v57 = vor.u32 %v2319_v52, %v1992_v49 }
 0x103   :  { %v1592_v61 = vadd.f32 %v2754_v19, %v1524_v59  ;;  %v1252_v62 = vadd.f32 %v1251_v5, %v1083_v60 }
 0x105   :  { %v1656_v1 = vpack.c.bf16 %v1592_v61, %v1592_v61  ;;  %v1393_v6 = vmul.f32 0.2, %v1252_v62  ;;  %v3008_v8 = vpop.f32.mrf.mxu3  ;;  %v1258_v3 = vpop.f32.mrf.mxu2 }
 0x106   :  { %v915_v9 = vpop.f32.mrf.mxu0 }
 0x107   :  { %1721 = vst.msk [vmem:[%s3696_s5 + $0x2c] sm:$0xf] %vm1709_vm1, %v1656_v1  ;;  %v1457_v5 = vmax.f32 %v1252_v62, %v1393_v6  ;;  %v916_v11 = vadd.f32 %v2716_v58, %v915_v9  ;;  %v1084_v12 = vpop.f32.mrf.mxu1  ;;  %v2100_v1 = vld [vmem:[%s3692_s0 + $0x278] sm:$0xf] }
 0x109   :  { %v1525_v15 = vmul.f32 %v2747_v13, %v1457_v5  ;;  %v1085_v16 = vadd.f32 %v1084_v12, %v916_v11  ;;  %v2314_v5 = vld [vmem:[%s3692_s0 + $0x184] sm:$0xf]  ;;  %v1974_v11 = vld [vmem:[%s3692_s0 + $0x18c] sm:$0xf0] }
 0x10a   :  { %2250 = vmatmul.msk.bf16.gmra.mxu2 %vm777_vm0, %v1981_v10  ;;  %v2346_v10 = vld [vmem:[%s3692_s0 + $0x280] sm:$0xf0] }
 0x10b   :  { %v1593_v21 = vadd.f32 %v2754_v19, %v1525_v15  ;;  %v1254_v22 = vadd.f32 %v1253_v29, %v1085_v16  ;;  %v2157_v29 = vor.u32 %v2359_v20, %v2154_v23 }
 0x10d   :  { %v1657_v26 = vpack.c.bf16 %v1593_v21, %v1593_v21  ;;  %v1394_v31 = vmul.f32 0.2, %v1254_v22  ;;  %v3036_v32 = vpop.f32.mrf.mxu3  ;;  %v1261_v33 = vpop.f32.mrf.mxu2  ;;  %v1977_v21 = vor.u32 %v2314_v5, %v1974_v11 }
 0x10e   :  { %v918_v36 = vpop.f32.mrf.mxu0 }
 0x10f   :  { %1722 = vst.msk [vmem:[%s3696_s5 + $0x30] sm:$0xf] %vm1709_vm1, %v1657_v26  ;;  %v1458_v38 = vmax.f32 %v1254_v22, %v1394_v31  ;;  %v919_v39 = vadd.f32 %v2716_v58, %v918_v36  ;;  %v1087_v40 = vpop.f32.mrf.mxu1  ;;  %v2004_v36 = vld [vmem:[%s3692_s0 + $0x1b8] sm:$0xf] }
 0x111   :  { %v1526_v41 = vmul.f32 %v2747_v13, %v1458_v38  ;;  %v1088_v42 = vadd.f32 %v1087_v40, %v919_v39  ;;  %957 = vmatmul.bf16.gmra.mxu0 %v1961_v35 }
 0x112   :  { %1206 = vmatmul.bf16.gmra.mxu3 %v2157_v29  ;;  %1126 = vmatmul.bf16.gmra.mxu1 %v1965_v37  ;;  %v2322_v29 = vld [vmem:[%s3692_s0 + $0x1c0] sm:$0xf0]  ;;  %v1004_v37 = vadd.f32 %v2716_v58, %v2749_v14 }
 0x113   :  { %v1594_v43 = vadd.f32 %v2754_v19, %v1526_v41  ;;  %v1257_v46 = vadd.f32 %v1256_v50, %v1088_v42 }
 0x115   :  { %v1658_v53 = vpack.c.bf16 %v1594_v43, %v1594_v43  ;;  %v1395_v45 = vmul.f32 0.2, %v1257_v46  ;;  %v3051_v54 = vpop.f32.mrf.mxu3  ;;  %v1263_v55 = vpop.f32.mrf.mxu2 }
 0x116   :  { %v920_v56 = vpop.f32.mrf.mxu0 }
 0x117   :  { %1723 = vst.msk [vmem:[%s3696_s5 + $0x34] sm:$0xf] %vm1709_vm1, %v1658_v53  ;;  %v1459_v50 = vmax.f32 %v1257_v46, %v1395_v45  ;;  %v921_v59 = vadd.f32 %v2716_v58, %v920_v56  ;;  %v1089_v60 = vpop.f32.mrf.mxu1  ;;  %v2005_v46 = vor.u32 %v2322_v29, %v2004_v36  ;;  %v1984_v45 = vld [vmem:[%s3692_s0 + $0x198] sm:$0xf]  ;;  %v2318_v56 = vld [vmem:[%s3692_s0 + $0x1a0] sm:$0xf0] }
 0x119   :  { %v1527_v61 = vmul.f32 %v2747_v13, %v1459_v50  ;;  %v1090_v62 = vadd.f32 %v1089_v60, %v921_v59  ;;  %v2349_v60 = vld [vmem:[%s3692_s0 + $0x298] sm:$0xf0] }
 0x11a   :  { %2251 = vmatmul.msk.bf16.gmra.mxu2 %vm777_vm0, %v1993_v57  ;;  %v2112_v57 = vld [vmem:[%s3692_s0 + $0x290] sm:$0xf] }
 0x11b   :  { %v1595_v6 = vadd.f32 %v2754_v19, %v1527_v61  ;;  %v1259_v9 = vadd.f32 %v1258_v3, %v1090_v62  ;;  %v2101_v3 = vor.u32 %v2346_v10, %v2100_v1  ;;  %v2317_v61 = vld [vmem:[%s3692_s0 + $0x19c] sm:$0xf]  ;;  %v1986_v62 = vld [vmem:[%s3692_s0 + $0x1a4] sm:$0xf0]  ;;  %v2113_v11 = vor.u32 %v2349_v60, %v2112_v57 }
 0x11c   :  { %v1011_v57 = vadd.f32 %v2716_v58, %v2821_v7 }
 0x11d   :  { %v1659_v12 = vpack.c.bf16 %v1595_v6, %v1595_v6  ;;  %v1396_v15 = vmul.f32 0.2, %v1259_v9  ;;  %v3079_v16 = vpop.f32.mrf.mxu3  ;;  %v1266_v17 = vpop.f32.mrf.mxu2 }
 0x11e   :  { %v923_v20 = vpop.f32.mrf.mxu0 }
 0x11f   :  { %1724 = vst.msk [vmem:[%s3696_s5 + $0x38] sm:$0xf] %vm1709_vm1, %v1659_v12  ;;  %v1460_v22 = vmax.f32 %v1259_v9, %v1396_v15  ;;  %v924_v23 = vadd.f32 %v2716_v58, %v923_v20  ;;  %v1092_v30 = vpop.f32.mrf.mxu1  ;;  %v1989_v12 = vor.u32 %v2317_v61, %v1986_v62 }
 0x121   :  { %v1528_v28 = vmul.f32 %v2747_v13, %v1460_v22  ;;  %v1093_v26 = vadd.f32 %v1092_v30, %v924_v23  ;;  %962 = vmatmul.bf16.gmra.mxu0 %v1973_v18  ;;  %v2016_v23 = vld [vmem:[%s3692_s0 + $0x1d0] sm:$0xf]  ;;  %v2325_v30 = vld [vmem:[%s3692_s0 + $0x1d8] sm:$0xf0] }
 0x122   :  { %2260 = vmatmul.msk.bf16.vlgmr.msra.gmra.mxu3 %vm777_vm0, %v2101_v3  ;;  %1131 = vmatmul.bf16.gmra.mxu1 %v1977_v21 }
 0x123   :  { %v1596_v31 = vadd.f32 %v2754_v19, %v1528_v28  ;;  %v1262_v35 = vadd.f32 %v1261_v33, %v1093_v26  ;;  %v1009_v28 = vadd.f32 %v2716_v58, %v2793_v51 }
 0x125   :  { %v1660_v38 = vpack.c.bf16 %v1596_v31, %v1596_v31  ;;  %v1397_v39 = vmul.f32 0.2, %v1262_v35  ;;  %v1172_v40 = vpop.f32.mrf.mxu3  ;;  %v1268_v41 = vpop.f32.mrf.mxu2 }
 0x126   :  { %v3097_v42 = vadd.f32 %v1172_v40, %v1004_v37  ;;  %v925_v43 = vpop.f32.mrf.mxu0 }
 0x127   :  { %1725 = vst.msk [vmem:[%s3696_s5 + $0x3c] sm:$0xf] %vm1709_vm1, %v1660_v38  ;;  %v1461_v33 = vmax.f32 %v1262_v35, %v1397_v39  ;;  %v926_v49 = vadd.f32 %v2716_v58, %v925_v43  ;;  %v1094_v52 = vpop.f32.mrf.mxu1  ;;  %v2017_v38 = vor.u32 %v2325_v30, %v2016_v23 }
 0x129   :  { %v1529_v53 = vmul.f32 %v2747_v13, %v1461_v33  ;;  %v1095_v14 = vadd.f32 %v1094_v52, %v926_v49  ;;  %v2321_v33 = vld [vmem:[%s3692_s0 + $0x1b8] sm:$0xf0]  ;;  %v2124_v49 = vld [vmem:[%s3692_s0 + $0x2a8] sm:$0xf] }
 0x12a   :  { %2252 = vmatmul.msk.bf16.gmra.mxu2 %vm777_vm0, %v2005_v46  ;;  %v1996_v46 = vld [vmem:[%s3692_s0 + $0x1b0] sm:$0xf] }
 0x12b   :  { %v1597_v50 = vadd.f32 %v2754_v19, %v1529_v53  ;;  %v1264_v59 = vadd.f32 %v1263_v55, %v1095_v14  ;;  %v1985_v55 = vor.u32 %v2318_v56, %v1984_v45  ;;  %v2352_v14 = vld [vmem:[%s3692_s0 + $0x2b0] sm:$0xf0]  ;;  %v1998_v56 = vld [vmem:[%s3692_s0 + $0x1bc] sm:$0xf0] }
 0x12c   :  { %v2320_v45 = vld [vmem:[%s3692_s0 + $0x1b4] sm:$0xf] }
 0x12d   :  { %v1661_v0 = vpack.c.bf16 %v1597_v50, %v1597_v50  ;;  %v1398_v1 = vmul.f32 0.2, %v1264_v59  ;;  %v1174_v6 = vpop.f32.mrf.mxu3  ;;  %v1271_v9 = vpop.f32.mrf.mxu2 }
 0x12e   :  { %v3127_v10 = vadd.f32 %v1174_v6, %v1006_v63  ;;  %v928_v5 = vpop.f32.mrf.mxu0 }
 0x12f   :  { %1726 = vst.msk [vmem:[%s3696_s5 + $0x40] sm:$0xf] %vm1709_vm1, %v1661_v0  ;;  %v1462_v15 = vmax.f32 %v1264_v59, %v1398_v1  ;;  %v929_v18 = vadd.f32 %v2716_v58, %v928_v5  ;;  %v1097_v20 = vpop.f32.mrf.mxu1  ;;  %v2125_v0 = vor.u32 %v2352_v14, %v2124_v49  ;;  %v2001_v1 = vor.u32 %v2320_v45, %v1998_v56 }
 0x130   :  { %v1016_v49 = vadd.f32 %v2716_v58, %v2864_v47 }
 0x131   :  { %v1530_v34 = vmul.f32 %v2747_v13, %v1462_v15  ;;  %v1098_v3 = vadd.f32 %v1097_v20, %v929_v18  ;;  %967 = vmatmul.bf16.gmra.mxu0 %v1985_v55  ;;  %v2028_v18 = vld [vmem:[%s3692_s0 + $0x1e8] sm:$0xf]  ;;  %v2328_v20 = vld [vmem:[%s3692_s0 + $0x1f0] sm:$0xf0] }
 0x132   :  { %2261 = vmatmul.msk.bf16.gmra.mxu3 %vm777_vm0, %v2113_v11  ;;  %1136 = vmatmul.bf16.gmra.mxu1 %v1989_v12 }
 0x133   :  { %v1598_v21 = vadd.f32 %v2754_v19, %v1530_v34  ;;  %v1267_v22 = vadd.f32 %v1266_v17, %v1098_v3  ;;  %v1014_v34 = vadd.f32 %v2716_v58, %v2836_v27 }
 0x135   :  { %v1662_v26 = vpack.c.bf16 %v1598_v21, %v1598_v21  ;;  %v1399_v31 = vmul.f32 0.2, %v1267_v22  ;;  %v1177_v35 = vpop.f32.mrf.mxu3  ;;  %v1273_v36 = vpop.f32.mrf.mxu2 }
 0x136   :  { %v3145_v29 = vadd.f32 %v1177_v35, %v1009_v28  ;;  %v930_v37 = vpop.f32.mrf.mxu0 }
 0x137   :  { %1727 = vst.msk [vmem:[%s3696_s5 + $0x44] sm:$0xf] %vm1709_vm1, %v1662_v26  ;;  %v1463_v17 = vmax.f32 %v1267_v22, %v1399_v31  ;;  %v931_v39 = vadd.f32 %v2716_v58, %v930_v37  ;;  %v1099_v40 = vpop.f32.mrf.mxu1  ;;  %v2029_v26 = vor.u32 %v2328_v20, %v2028_v18 }
 0x139   :  { %v1531_v43 = vmul.f32 %v2747_v13, %v1463_v17  ;;  %v1100_v51 = vadd.f32 %v1099_v40, %v931_v39  ;;  %v2324_v17 = vld [vmem:[%s3692_s0 + $0x1d0] sm:$0xf0]  ;;  %v2136_v39 = vld [vmem:[%s3692_s0 + $0x2c0] sm:$0xf] }
 0x13a   :  { %2253 = vmatmul.msk.bf16.gmra.mxu2 %vm777_vm0, %v2017_v38  ;;  %v2008_v38 = vld [vmem:[%s3692_s0 + $0x1c8] sm:$0xf] }
 0x13b   :  { %v1599_v52 = vadd.f32 %v2754_v19, %v1531_v43  ;;  %v1269_v53 = vadd.f32 %v1268_v41, %v1100_v51  ;;  %v1997_v41 = vor.u32 %v2321_v33, %v1996_v46  ;;  %v2355_v51 = vld [vmem:[%s3692_s0 + $0x2c8] sm:$0xf0]  ;;  %v2010_v33 = vld [vmem:[%s3692_s0 + $0x1d4] sm:$0xf0] }
 0x13c   :  { %v2323_v46 = vld [vmem:[%s3692_s0 + $0x1cc] sm:$0xf] }
 0x13d   :  { %v1663_v50 = vpack.c.bf16 %v1599_v52, %v1599_v52  ;;  %v1400_v59 = vmul.f32 0.2, %v1269_v53  ;;  %v1179_v60 = vpop.f32.mrf.mxu3  ;;  %v1276_v61 = vpop.f32.mrf.mxu2 }
 0x13e   :  { %v3175_v62 = vadd.f32 %v1179_v60, %v1011_v57  ;;  %v933_v63 = vpop.f32.mrf.mxu0 }
 0x13f   :  { %1728 = vst.msk [vmem:[%s3696_s5 + $0x48] sm:$0xf] %vm1709_vm1, %v1663_v50  ;;  %v1464_v6 = vmax.f32 %v1269_v53, %v1400_v59  ;;  %v934_v55 = vadd.f32 %v2716_v58, %v933_v63  ;;  %v1102_v5 = vpop.f32.mrf.mxu1  ;;  %v2137_v50 = vor.u32 %v2355_v51, %v2136_v39  ;;  %v2013_v59 = vor.u32 %v2323_v46, %v2010_v33 }
 0x141   :  { %v1532_v7 = vmul.f32 %v2747_v13, %v1464_v6  ;;  %v1103_v11 = vadd.f32 %v1102_v5, %v934_v55  ;;  %972 = vmatmul.bf16.gmra.mxu0 %v1997_v41  ;;  %v2040_v55 = vld [vmem:[%s3692_s0 + $0x200] sm:$0xf]  ;;  %v2331_v5 = vld [vmem:[%s3692_s0 + $0x208] sm:$0xf0] }
 0x142   :  { %2262 = vmatmul.msk.bf16.gmra.mxu3 %vm777_vm0, %v2125_v0  ;;  %1141 = vmatmul.bf16.gmra.mxu1 %v2001_v1 }
 0x143   :  { %v1600_v12 = vadd.f32 %v2754_v19, %v1532_v7  ;;  %v1272_v15 = vadd.f32 %v1271_v9, %v1103_v11  ;;  %v1019_v7 = vadd.f32 %v2716_v58, %v2879_v2 }
 0x145   :  { %v1664_v3 = vpack.c.bf16 %v1600_v12, %v1600_v12  ;;  %v1401_v21 = vmul.f32 0.2, %v1272_v15  ;;  %v1182_v22 = vpop.f32.mrf.mxu3  ;;  %v1278_v23 = vpop.f32.mrf.mxu2 }
 0x146   :  { %v3193_v30 = vadd.f32 %v1182_v22, %v1014_v34  ;;  %v935_v28 = vpop.f32.mrf.mxu0 }
 0x147   :  { %1729 = vst.msk [vmem:[%s3696_s5 + $0x4c] sm:$0xf] %vm1709_vm1, %v1664_v3  ;;  %v1465_v9 = vmax.f32 %v1272_v15, %v1401_v21  ;;  %v936_v31 = vadd.f32 %v2716_v58, %v935_v28  ;;  %v1104_v35 = vpop.f32.mrf.mxu1 }
 0x149   :  { %v1533_v37 = vmul.f32 %v2747_v13, %v1465_v9  ;;  %v1105_v27 = vadd.f32 %v1104_v35, %v936_v31  ;;  %v2327_v9 = vld [vmem:[%s3692_s0 + $0x1e8] sm:$0xf0]  ;;  %v2148_v31 = vld [vmem:[%s3692_s0 + $0x2d8] sm:$0xf] }
 0x14a   :  { %2254 = vmatmul.msk.bf16.gmra.mxu2 %vm777_vm0, %v2029_v26  ;;  %v2020_v26 = vld [vmem:[%s3692_s0 + $0x1e0] sm:$0xf] }
 0x14b   :  { %v1601_v40 = vadd.f32 %v2754_v19, %v1533_v37  ;;  %v1274_v43 = vadd.f32 %v1273_v36, %v1105_v27  ;;  %v2009_v36 = vor.u32 %v2324_v17, %v2008_v38  ;;  %v2326_v37 = vld [vmem:[%s3692_s0 + $0x1e4] sm:$0xf]  ;;  %v2022_v27 = vld [vmem:[%s3692_s0 + $0x1ec] sm:$0xf0]  ;;  %v3276_v38 = vld [vmem:[%s3693_s2] ss:$0 sm:$0xff]  ;;  %v2021_v51 = vor.u32 %v2327_v9, %v2020_v26 }
 0x14c   :  { %v2329_v26 = vld [vmem:[%s3692_s0 + $0x1fc] sm:$0xf]  ;;  %v2034_v9 = vld [vmem:[%s3692_s0 + $0x204] sm:$0xf0] }
 0x14d   :  { %v1665_v52 = vpack.c.bf16 %v1601_v40, %v1601_v40  ;;  %v1402_v53 = vmul.f32 0.2, %v1274_v43  ;;  %v1184_v14 = vpop.f32.mrf.mxu3  ;;  %v3223_v45 = vpop.f32.mrf.mxu2 }
 0x14e   :  { %v3225_v56 = vadd.f32 %v1184_v14, %v1016_v49  ;;  %v938_v57 = vpop.f32.mrf.mxu0 }
 0x14f   :  { %1730 = vst.msk [vmem:[%s3696_s5 + $0x50] sm:$0xf] %vm1709_vm1, %v1665_v52  ;;  %v1466_v60 = vmax.f32 %v1274_v43, %v1402_v53  ;;  %v939_v41 = vadd.f32 %v2716_v58, %v938_v57  ;;  %v1107_v47 = vpop.f32.mrf.mxu1  ;;  %v2025_v52 = vor.u32 %v2326_v37, %v2022_v27 }
 0x151   :  { %v1534_v63 = vmul.f32 %v2747_v13, %v1466_v60  ;;  %v1108_v0 = vadd.f32 %v1107_v47, %v939_v41  ;;  %977 = vmatmul.bf16.gmra.mxu0 %v2009_v36  ;;  %v3292_v36 = vld [vmem:[%s3694_s3] ss:$0 sm:$0xff]  ;;  %v2052_v41 = vld [vmem:[%s3692_s0 + $0x218] sm:$0xf]  ;;  %v2334_v47 = vld [vmem:[%s3692_s0 + $0x220] sm:$0xf0] }
 0x152   :  { %2263 = vmatmul.msk.bf16.gmra.mxu3 %vm777_vm0, %v2137_v50  ;;  %1146 = vmatmul.bf16.gmra.mxu1 %v2013_v59 }
 0x153   :  { %v1602_v1 = vadd.f32 %v2754_v19, %v1534_v63  ;;  %v1277_v6 = vadd.f32 %v1276_v61, %v1108_v0  ;;  %v2041_v61 = vor.u32 %v2331_v5, %v2040_v55  ;;  %v1024_v63 = vadd.f32 %v3276_v38, %v2922_v44 }
 0x155   :  { %v1666_v11 = vpack.c.bf16 %v1602_v1, %v1602_v1  ;;  %v1403_v12 = vmul.f32 0.2, %v1277_v6  ;;  %v1187_v15 = vpop.f32.mrf.mxu3  ;;  %v3243_v18 = vpop.f32.mrf.mxu2 }
 0x156   :  { %v3245_v20 = vadd.f32 %v1187_v15, %v1019_v7  ;;  %v940_v34 = vpop.f32.mrf.mxu0  ;;  %v2053_v7 = vor.u32 %v2334_v47, %v2052_v41 }
 0x157   :  { %1731 = vst.msk [vmem:[%s3696_s5 + $0x54] sm:$0xf] %vm1709_vm1, %v1666_v11  ;;  %v1467_v3 = vmax.f32 %v1277_v6, %v1403_v12  ;;  %v941_v21 = vadd.f32 %v2716_v58, %v940_v34  ;;  %v1109_v22 = vpop.f32.mrf.mxu1  ;;  %v2032_v34 = vld [vmem:[%s3692_s0 + $0x1f8] sm:$0xf] }
 0x159   :  { %v1535_v2 = vmul.f32 %v2747_v13, %v1467_v3  ;;  %v1110_v28 = vadd.f32 %v1109_v22, %v941_v21  ;;  %v2358_v13 = vld [vmem:[%s3692_s0 + $0x2e0] sm:$0xf0]  ;;  %v2160_v3 = vld [vmem:[%s3692_s0 + $0x2f0] sm:$0xf]  ;;  %v3327_v21 = vld [vmem:[%s3695_s4] ss:$0 sm:$0xff] }
 0x15a   :  { %2255 = vmatmul.msk.bf16.gmra.mxu2 %vm777_vm0, %v2041_v61  ;;  %v2149_v49 = vor.u32 %v2358_v13, %v2148_v31  ;;  %v2330_v61 = vld [vmem:[%s3692_s0 + $0x200] sm:$0xf0]  ;;  %v1026_v31 = vadd.f32 %v3276_v38, %v2950_v4 }
 0x15b   :  { %v1603_v58 = vadd.f32 %v2754_v19, %v1535_v2  ;;  %v1279_v35 = vadd.f32 %v1278_v23, %v1110_v28  ;;  %v1021_v23 = vadd.f32 %v3276_v38, %v2907_v25  ;;  %v2361_v28 = vld [vmem:[%s3692_s0 + $0x2f8] sm:$0xf0] }
 0x15d   :  { %v1667_v17 = vpack.c.bf16 %v1603_v58, %v1603_v58  ;;  %v1404_v39 = vmul.f32 0.2, %v1279_v35  ;;  %v1189_v40 = vpop.f32.mrf.mxu3  ;;  %v3280_v43 = vpop.f32.mrf.mxu2 }
 0x15e   :  { %v3282_v46 = vadd.f32 %v1189_v40, %v1021_v23  ;;  %v943_v33 = vpop.f32.mrf.mxu0 }
 0x15f   :  { %1732 = vst.msk [vmem:[%s3696_s5 + $0x58] sm:$0xf] %vm1709_vm1, %v1667_v17  ;;  %v1468_v53 = vmax.f32 %v1279_v35, %v1404_v39  ;;  %v944_v14 = vadd.f32 %v3276_v38, %v943_v33  ;;  %v1112_v25 = vpop.f32.mrf.mxu1  ;;  %v2161_v17 = vor.u32 %v2361_v28, %v2160_v3  ;;  %v2037_v39 = vor.u32 %v2329_v26, %v2034_v9 }
 0x161   :  { %v1536_v57 = vmul.f32 %v3292_v36, %v1468_v53  ;;  %v1113_v50 = vadd.f32 %v1112_v25, %v944_v14  ;;  %982 = vmatmul.bf16.gmra.mxu0 %v2021_v51  ;;  %v2064_v14 = vld [vmem:[%s3692_s0 + $0x230] sm:$0xf]  ;;  %v2337_v25 = vld [vmem:[%s3692_s0 + $0x238] sm:$0xf0] }
 0x162   :  { %2264 = vmatmul.msk.bf16.gmra.mxu3 %vm777_vm0, %v2149_v49  ;;  %1151 = vmatmul.bf16.gmra.mxu1 %v2025_v52 }
 0x163   :  { %v1604_v59 = vadd.f32 %v2754_v19, %v1536_v57  ;;  %v1282_v60 = vadd.f32 %v3223_v45, %v1113_v50  ;;  %v1029_v57 = vadd.f32 %v3276_v38, %v2965_v24 }
 0x165   :  { %v1668_v0 = vpack.c.bf16 %v1604_v59, %v1604_v59  ;;  %v1405_v1 = vmul.f32 0.2, %v1282_v60  ;;  %v1192_v6 = vpop.f32.mrf.mxu3  ;;  %v1288_v55 = vpop.f32.mrf.mxu2 }
 0x166   :  { %v3306_v5 = vadd.f32 %v1192_v6, %v1024_v63  ;;  %v945_v19 = vpop.f32.mrf.mxu0 }
 0x167   :  { %1733 = vst.msk [vmem:[%s3696_s5 + $0x5c] sm:$0xf] %vm1709_vm1, %v1668_v0  ;;  %v1469_v45 = vmax.f32 %v1282_v60, %v1405_v1  ;;  %v946_v11 = vadd.f32 %v3276_v38, %v945_v19  ;;  %v1114_v12 = vpop.f32.mrf.mxu1  ;;  %v2065_v0 = vor.u32 %v2337_v25, %v2064_v14 }
 0x169   :  { %v1537_v15 = vmul.f32 %v3292_v36, %v1469_v45  ;;  %v1115_v44 = vadd.f32 %v1114_v12, %v946_v11  ;;  %v2333_v45 = vld [vmem:[%s3692_s0 + $0x218] sm:$0xf0] }
 0x16a   :  { %2256 = vmatmul.msk.bf16.gmra.mxu2 %vm777_vm0, %v2053_v7  ;;  %v2044_v7 = vld [vmem:[%s3692_s0 + $0x210] sm:$0xf] }
 0x16b   :  { %v1605_v22 = vadd.f32 %v3327_v21, %v1537_v15  ;;  %v1284_v2 = vadd.f32 %v3243_v18, %v1115_v44  ;;  %v2033_v18 = vor.u32 %v2330_v61, %v2032_v34  ;;  %v2332_v15 = vld [vmem:[%s3692_s0 + $0x214] sm:$0xf]  ;;  %v2046_v44 = vld [vmem:[%s3692_s0 + $0x21c] sm:$0xf0]  ;;  %v1031_v34 = vadd.f32 %v3276_v38, %v2993_v48 }
 0x16c   :  { %v2045_v28 = vor.u32 %v2333_v45, %v2044_v7 }
 0x16d   :  { %v1669_v58 = vpack.c.bf16 %v1605_v22, %v1605_v22  ;;  %v1406_v35 = vmul.f32 0.2, %v1284_v2  ;;  %v1194_v13 = vpop.f32.mrf.mxu3  ;;  %v1291_v37 = vpop.f32.mrf.mxu2 }
 0x16e   :  { %v3342_v27 = vadd.f32 %v1194_v13, %v1026_v31  ;;  %v948_v23 = vpop.f32.mrf.mxu0 }
 0x16f   :  { %1734 = vst.msk [vmem:[%s3696_s5 + $0x60] sm:$0xf] %vm1709_vm1, %v1669_v58  ;;  %v1470_v40 = vmax.f32 %v1284_v2, %v1406_v35  ;;  %v949_v51 = vadd.f32 %v3276_v38, %v948_v23  ;;  %v1117_v33 = vpop.f32.mrf.mxu1 }
 0x171   :  { %v1538_v4 = vmul.f32 %v3292_v36, %v1470_v40  ;;  %v1118_v49 = vadd.f32 %v1117_v33, %v949_v51  ;;  %987 = vmatmul.bf16.gmra.mxu0 %v2033_v18  ;;  %v1034_v40 = vadd.f32 %v3276_v38, %v3008_v8 }
 0x172   :  { %2265 = vmatmul.msk.bf16.gmra.mxu3 %vm777_vm0, %v2161_v17  ;;  %1156 = vmatmul.bf16.gmra.mxu1 %v2037_v39  ;;  %v2076_v17 = vld [vmem:[%s3692_s0 + $0x248] sm:$0xf]  ;;  %v2340_v39 = vld [vmem:[%s3692_s0 + $0x250] sm:$0xf0] }
 0x173   :  { %v1606_v52 = vadd.f32 %v3327_v21, %v1538_v4  ;;  %v1287_v53 = vadd.f32 %v3280_v43, %v1118_v49  ;;  %v2077_v14 = vor.u32 %v2340_v39, %v2076_v17 }
 0x175   :  { %v1670_v50 = vpack.c.bf16 %v1606_v52, %v1606_v52  ;;  %v1407_v59 = vmul.f32 0.2, %v1287_v53  ;;  %v1197_v60 = vpop.f32.mrf.mxu3  ;;  %v1293_v41 = vpop.f32.mrf.mxu2 }
 0x176   :  { %v3361_v47 = vadd.f32 %v1197_v60, %v1029_v57  ;;  %v950_v63 = vpop.f32.mrf.mxu0  ;;  %v2336_v60 = vld [vmem:[%s3692_s0 + $0x230] sm:$0xf0] }
 0x177   :  { %1735 = vst.msk [vmem:[%s3696_s5 + $0x64] sm:$0xf] %vm1709_vm1, %v1670_v50  ;;  %v1471_v43 = vmax.f32 %v1287_v53, %v1407_v59  ;;  %v951_v1 = vadd.f32 %v3276_v38, %v950_v63  ;;  %v1119_v6 = vpop.f32.mrf.mxu1  ;;  %v2056_v59 = vld [vmem:[%s3692_s0 + $0x228] sm:$0xf] }
 0x179   :  { %v1539_v19 = vmul.f32 %v3292_v36, %v1471_v43  ;;  %v1120_v24 = vadd.f32 %v1119_v6, %v951_v1  ;;  %v2335_v43 = vld [vmem:[%s3692_s0 + $0x22c] sm:$0xf]  ;;  %v2058_v1 = vld [vmem:[%s3692_s0 + $0x234] sm:$0xf0]  ;;  %v1036_v6 = vadd.f32 %v3276_v38, %v3036_v32 }
 0x17a   :  { %2257 = vmatmul.msk.bf16.gmra.mxu2 %vm777_vm0, %v2065_v0 }
 0x17b   :  { %v1607_v11 = vadd.f32 %v3327_v21, %v1539_v19  ;;  %v1289_v12 = vadd.f32 %v1288_v55, %v1120_v24  ;;  %v2049_v55 = vor.u32 %v2332_v15, %v2046_v44 }
 0x17d   :  { %v1671_v61 = vpack.c.bf16 %v1607_v11, %v1607_v11  ;;  %v1408_v3 = vmul.f32 0.2, %v1289_v12  ;;  %v1199_v22 = vpop.f32.mrf.mxu3  ;;  %v1296_v2 = vpop.f32.mrf.mxu2  ;;  %v2057_v11 = vor.u32 %v2336_v60, %v2056_v59 }
 0x17e   :  { %v3385_v26 = vadd.f32 %v1199_v22, %v1031_v34  ;;  %v953_v9 = vpop.f32.mrf.mxu0 }
 0x17f   :  { %1736 = vst.msk [vmem:[%s3696_s5 + $0x68] sm:$0xf] %vm1709_vm1, %v1671_v61  ;;  %v1472_v31 = vmax.f32 %v1289_v12, %v1408_v3  ;;  %v954_v58 = vadd.f32 %v3276_v38, %v953_v9  ;;  %v1122_v35 = vpop.f32.mrf.mxu1  ;;  %v2088_v9 = vld [vmem:[%s3692_s0 + $0x260] sm:$0xf] }
 0x181   :  { %v1540_v48 = vmul.f32 %v3292_v36, %v1472_v31  ;;  %v1123_v13 = vadd.f32 %v1122_v35, %v954_v58  ;;  %992 = vmatmul.bf16.gmra.mxu0 %v2045_v28  ;;  %v1039_v31 = vadd.f32 %v3276_v38, %v3051_v54 }
 0x182   :  { %1161 = vmatmul.bf16.gmra.mxu1 %v2049_v55  ;;  %v2343_v55 = vld [vmem:[%s3692_s0 + $0x268] sm:$0xf0] }
 0x183   :  { %v1608_v18 = vadd.f32 %v3327_v21, %v1540_v48  ;;  %v1292_v23 = vadd.f32 %v1291_v37, %v1123_v13  ;;  %v2089_v17 = vor.u32 %v2343_v55, %v2088_v9 }
 0x185   :  { %v1672_v51 = vpack.c.bf16 %v1608_v18, %v1608_v18  ;;  %v1409_v33 = vmul.f32 0.2, %v1292_v23  ;;  %v1202_v4 = vpop.f32.mrf.mxu3  ;;  %v1298_v49 = vpop.f32.mrf.mxu2 }
 0x186   :  { %v3402_v52 = vadd.f32 %v1202_v4, %v1034_v40  ;;  %v955_v53 = vpop.f32.mrf.mxu0 }
 0x187   :  { %1737 = vst.msk [vmem:[%s3696_s5 + $0x6c] sm:$0xf] %vm1709_vm1, %v1672_v51  ;;  %v1473_v37 = vmax.f32 %v1292_v23, %v1409_v33  ;;  %v956_v25 = vadd.f32 %v3276_v38, %v955_v53  ;;  %v1124_v57 = vpop.f32.mrf.mxu1  ;;  %v1041_v53 = vadd.f32 %v3276_v38, %v3079_v16 }
 0x189   :  { %v1541_v50 = vmul.f32 %v3292_v36, %v1473_v37  ;;  %v1125_v8 = vadd.f32 %v1124_v57, %v956_v25 }
 0x18a   :  { %2258 = vmatmul.msk.bf16.gmra.mxu2 %vm777_vm0, %v2077_v14 }
 0x18b   :  { %v1609_v63 = vadd.f32 %v3327_v21, %v1541_v50  ;;  %v1294_v0 = vadd.f32 %v1293_v41, %v1125_v8  ;;  %v2061_v41 = vor.u32 %v2335_v43, %v2058_v1 }
 0x18d   :  { %v1673_v19 = vpack.c.bf16 %v1609_v63, %v1609_v63  ;;  %v1410_v24 = vmul.f32 0.2, %v1294_v0  ;;  %v1204_v7 = vpop.f32.mrf.mxu3  ;;  %v1301_v45 = vpop.f32.mrf.mxu2 }
 0x18e   :  { %v3426_v12 = vadd.f32 %v1204_v7, %v1036_v6  ;;  %v958_v15 = vpop.f32.mrf.mxu0 }
 0x18f   :  { %1738 = vst.msk [vmem:[%s3696_s5 + $0x70] sm:$0xf] %vm1709_vm1, %v1673_v19  ;;  %v1474_v44 = vmax.f32 %v1294_v0, %v1410_v24  ;;  %v959_v34 = vadd.f32 %v3276_v38, %v958_v15  ;;  %v1127_v61 = vpop.f32.mrf.mxu1 }
 0x191   :  { %v1542_v32 = vmul.f32 %v3292_v36, %v1474_v44  ;;  %v1128_v3 = vadd.f32 %v1127_v61, %v959_v34  ;;  %997 = vmatmul.bf16.gmra.mxu0 %v2057_v11 }
 0x192   :  { %1166 = vmatmul.bf16.gmra.mxu1 %v2061_v41 }
 0x193   :  { %v1610_v22 = vadd.f32 %v3327_v21, %v1542_v32  ;;  %v1297_v28 = vadd.f32 %v1296_v2, %v1128_v3 }
 0x195   :  { %v1674_v58 = vpack.c.bf16 %v1610_v22, %v1610_v22  ;;  %v1411_v35 = vmul.f32 0.2, %v1297_v28  ;;  %v1207_v48 = vpop.f32.mrf.mxu3  ;;  %v1303_v13 = vpop.f32.mrf.mxu2 }
 0x196   :  { %v3443_v18 = vadd.f32 %v1207_v48, %v1039_v31  ;;  %v960_v23 = vpop.f32.mrf.mxu0 }
 0x197   :  { %1739 = vst.msk [vmem:[%s3696_s5 + $0x74] sm:$0xf] %vm1709_vm1, %v1674_v58  ;;  %v1475_v2 = vmax.f32 %v1297_v28, %v1411_v35  ;;  %v961_v39 = vadd.f32 %v3276_v38, %v960_v23  ;;  %v1129_v40 = vpop.f32.mrf.mxu1 }
 0x199   :  { %v1543_v51 = vmul.f32 %v3292_v36, %v1475_v2  ;;  %v1130_v54 = vadd.f32 %v1129_v40, %v961_v39 }
 0x19a   :  { %2259 = vmatmul.msk.bf16.gmra.mxu2 %vm777_vm0, %v2089_v17 }
 0x19b   :  { %v1611_v33 = vadd.f32 %v3327_v21, %v1543_v51  ;;  %v1299_v4 = vadd.f32 %v1298_v49, %v1130_v54 }
 0x19d   :  { %v1675_v14 = vpack.c.bf16 %v1611_v33, %v1611_v33  ;;  %v1412_v37 = vmul.f32 0.2, %v1299_v4  ;;  %v1209_v25 = vpop.f32.mrf.mxu3  ;;  %v1306_v57 = vpop.f32.mrf.mxu2 }
 0x19e   :  { %v3455_v50 = vadd.f32 %v1209_v25, %v1041_v53  ;;  %v963_v8 = vpop.f32.mrf.mxu0 }
 0x19f   :  { %1740 = vst.msk [vmem:[%s3696_s5 + $0x78] sm:$0xf] %vm1709_vm1, %v1675_v14  ;;  %v1476_v59 = vmax.f32 %v1299_v4, %v1412_v37  ;;  %v964_v60 = vadd.f32 %v3276_v38, %v963_v8  ;;  %v1132_v63 = vpop.f32.mrf.mxu1 }
 0x1a1   :  { %v1544_v49 = vmul.f32 %v3292_v36, %v1476_v59  ;;  %v1133_v0 = vadd.f32 %v1132_v63, %v964_v60 }
 0x1a3   :  { %v1612_v16 = vadd.f32 %v3327_v21, %v1544_v49  ;;  %v1302_v43 = vadd.f32 %v1301_v45, %v1133_v0 }
 0x1a5   :  { %v1676_v1 = vpack.c.bf16 %v1612_v16, %v1612_v16  ;;  %v1413_v6 = vmul.f32 0.2, %v1302_v43  ;;  %v1308_v19 = vpop.f32.mrf.mxu2  ;;  %v1351_v24 = vpop.f32.mrf.mxu3 }
 0x1a6   :  { %v1352_v7 = vadd.f32 %v1351_v24, %v3193_v30  ;;  %v965_v11 = vpop.f32.mrf.mxu0 }
 0x1a7   :  { %1741 = vst.msk [vmem:[%s3696_s5 + $0x7c] sm:$0xf] %vm1709_vm1, %v1676_v1  ;;  %v1477_v15 = vmax.f32 %v1302_v43, %v1413_v6  ;;  %v966_v41 = vadd.f32 %v3276_v38, %v965_v11  ;;  %v1134_v44 = vpop.f32.mrf.mxu1 }
 0x1a8   :  { %v1433_v34 = vmul.f32 0.2, %v1352_v7 }
 0x1a9   :  { %v1545_v61 = vmul.f32 %v3292_v36, %v1477_v15  ;;  %v1135_v45 = vadd.f32 %v1134_v44, %v966_v41 }
 0x1aa   :  { %v1497_v32 = vmax.f32 %v1352_v7, %v1433_v34 }
 0x1ab   :  { %v1613_v3 = vadd.f32 %v3327_v21, %v1545_v61  ;;  %v1304_v22 = vadd.f32 %v1303_v13, %v1135_v45 }
 0x1ac   :  { %v1565_v30 = vmul.f32 %v3292_v36, %v1497_v32 }
 0x1ad   :  { %v1677_v28 = vpack.c.bf16 %v1613_v3, %v1613_v3  ;;  %v1414_v9 = vmul.f32 0.2, %v1304_v22  ;;  %v1311_v55 = vpop.f32.mrf.mxu2  ;;  %v1353_v31 = vpop.f32.mrf.mxu3 }
 0x1ae   :  { %v1633_v58 = vadd.f32 %v3327_v21, %v1565_v30  ;;  %v1354_v35 = vadd.f32 %v1353_v31, %v3225_v56  ;;  %v968_v48 = vpop.f32.mrf.mxu0 }
 0x1af   :  { %1742 = vst.msk [vmem:[%s3696_s5 + $0x80] sm:$0xf] %vm1709_vm1, %v1677_v28  ;;  %v1478_v23 = vmax.f32 %v1304_v22, %v1414_v9  ;;  %v969_v17 = vadd.f32 %v3276_v38, %v968_v48  ;;  %v1137_v13 = vpop.f32.mrf.mxu1 }
 0x1b0   :  { %v1697_v2 = vpack.c.bf16 %v1633_v58, %v1633_v58  ;;  %v1434_v39 = vmul.f32 0.2, %v1354_v35 }
 0x1b1   :  { %v1546_v40 = vmul.f32 %v3292_v36, %v1478_v23  ;;  %v1138_v51 = vadd.f32 %v1137_v13, %v969_v17 }
 0x1b2   :  { %1762 = vst.msk [vmem:[%s3696_s5 + $0xd0] sm:$0xf] %vm1709_vm1, %v1697_v2  ;;  %v1498_v56 = vmax.f32 %v1354_v35, %v1434_v39 }
 0x1b3   :  { %v1614_v54 = vadd.f32 %v3327_v21, %v1546_v40  ;;  %v1307_v33 = vadd.f32 %v1306_v57, %v1138_v51 }
 0x1b4   :  { %v1566_v4 = vmul.f32 %v3292_v36, %v1498_v56 }
 0x1b5   :  { %v1678_v53 = vpack.c.bf16 %v1614_v54, %v1614_v54  ;;  %v1415_v14 = vmul.f32 0.2, %v1307_v33  ;;  %v1313_v37 = vpop.f32.mrf.mxu2  ;;  %v1356_v25 = vpop.f32.mrf.mxu3 }
 0x1b6   :  { %v1634_v8 = vadd.f32 %v3327_v21, %v1566_v4  ;;  %v1357_v59 = vadd.f32 %v1356_v25, %v3245_v20  ;;  %v970_v60 = vpop.f32.mrf.mxu0 }
 0x1b7   :  { %1743 = vst.msk [vmem:[%s3696_s5 + $0x84] sm:$0xf] %vm1709_vm1, %v1678_v53  ;;  %v1479_v63 = vmax.f32 %v1307_v33, %v1415_v14  ;;  %v971_v49 = vadd.f32 %v3276_v38, %v970_v60  ;;  %v1139_v57 = vpop.f32.mrf.mxu1 }
 0x1b8   :  { %v1698_v0 = vpack.c.bf16 %v1634_v8, %v1634_v8  ;;  %v1435_v16 = vmul.f32 0.2, %v1357_v59 }
 0x1b9   :  { %v1547_v43 = vmul.f32 %v3292_v36, %v1479_v63  ;;  %v1140_v1 = vadd.f32 %v1139_v57, %v971_v49 }
 0x1ba   :  { %1763 = vst.msk [vmem:[%s3696_s5 + $0xd4] sm:$0xf] %vm1709_vm1, %v1698_v0  ;;  %v1499_v20 = vmax.f32 %v1357_v59, %v1435_v16 }
 0x1bb   :  { %v1615_v6 = vadd.f32 %v3327_v21, %v1547_v43  ;;  %v1309_v24 = vadd.f32 %v1308_v19, %v1140_v1 }
 0x1bc   :  { %v1567_v7 = vmul.f32 %v3292_v36, %v1499_v20 }
 0x1bd   :  { %v1679_v11 = vpack.c.bf16 %v1615_v6, %v1615_v6  ;;  %v1416_v15 = vmul.f32 0.2, %v1309_v24  ;;  %v1316_v41 = vpop.f32.mrf.mxu2  ;;  %v1358_v44 = vpop.f32.mrf.mxu3 }
 0x1be   :  { %v1635_v34 = vadd.f32 %v3327_v21, %v1567_v7  ;;  %v1359_v61 = vadd.f32 %v1358_v44, %v3282_v46  ;;  %v973_v45 = vpop.f32.mrf.mxu0 }
 0x1bf   :  { %1744 = vst.msk [vmem:[%s3696_s5 + $0x88] sm:$0xf] %vm1709_vm1, %v1679_v11  ;;  %v1480_v32 = vmax.f32 %v1309_v24, %v1416_v15  ;;  %v974_v3 = vadd.f32 %v3276_v38, %v973_v45  ;;  %v1142_v19 = vpop.f32.mrf.mxu1 }
 0x1c0   :  { %v1699_v22 = vpack.c.bf16 %v1635_v34, %v1635_v34  ;;  %v1436_v30 = vmul.f32 0.2, %v1359_v61 }
 0x1c1   :  { %v1548_v28 = vmul.f32 %v3292_v36, %v1480_v32  ;;  %v1143_v9 = vadd.f32 %v1142_v19, %v974_v3 }
 0x1c2   :  { %1764 = vst.msk [vmem:[%s3696_s5 + $0xd8] sm:$0xf] %vm1709_vm1, %v1699_v22  ;;  %v1500_v46 = vmax.f32 %v1359_v61, %v1436_v30 }
 0x1c3   :  { %v1616_v31 = vadd.f32 %v3327_v21, %v1548_v28  ;;  %v1312_v58 = vadd.f32 %v1311_v55, %v1143_v9 }
 0x1c4   :  { %v1568_v35 = vmul.f32 %v3292_v36, %v1500_v46 }
 0x1c5   :  { %v1680_v48 = vpack.c.bf16 %v1616_v31, %v1616_v31  ;;  %v1417_v23 = vmul.f32 0.2, %v1312_v58  ;;  %v1318_v17 = vpop.f32.mrf.mxu2  ;;  %v1361_v13 = vpop.f32.mrf.mxu3 }
 0x1c6   :  { %v1636_v2 = vadd.f32 %v3327_v21, %v1568_v35  ;;  %v1362_v39 = vadd.f32 %v1361_v13, %v3306_v5  ;;  %v975_v40 = vpop.f32.mrf.mxu0 }
 0x1c7   :  { %1745 = vst.msk [vmem:[%s3696_s5 + $0x8c] sm:$0xf] %vm1709_vm1, %v1680_v48  ;;  %v1481_v51 = vmax.f32 %v1312_v58, %v1417_v23  ;;  %v976_v56 = vadd.f32 %v3276_v38, %v975_v40  ;;  %v1144_v55 = vpop.f32.mrf.mxu1 }
 0x1c8   :  { %v1700_v54 = vpack.c.bf16 %v1636_v2, %v1636_v2  ;;  %v1437_v33 = vmul.f32 0.2, %v1362_v39 }
 0x1c9   :  { %v1549_v4 = vmul.f32 %v3292_v36, %v1481_v51  ;;  %v1145_v53 = vadd.f32 %v1144_v55, %v976_v56 }
 0x1ca   :  { %1765 = vst.msk [vmem:[%s3696_s5 + $0xdc] sm:$0xf] %vm1709_vm1, %v1700_v54  ;;  %v1501_v5 = vmax.f32 %v1362_v39, %v1437_v33 }
 0x1cb   :  { %v1617_v14 = vadd.f32 %v3327_v21, %v1549_v4  ;;  %v1314_v25 = vadd.f32 %v1313_v37, %v1145_v53 }
 0x1cc   :  { %v1569_v8 = vmul.f32 %v3292_v36, %v1501_v5 }
 0x1cd   :  { %v1681_v59 = vpack.c.bf16 %v1617_v14, %v1617_v14  ;;  %v1418_v60 = vmul.f32 0.2, %v1314_v25  ;;  %v1321_v63 = vpop.f32.mrf.mxu2  ;;  %v1363_v49 = vpop.f32.mrf.mxu3 }
 0x1ce   :  { %v1637_v57 = vadd.f32 %v3327_v21, %v1569_v8  ;;  %v1364_v0 = vadd.f32 %v1363_v49, %v3342_v27  ;;  %v978_v16 = vpop.f32.mrf.mxu0 }
 0x1cf   :  { %1746 = vst.msk [vmem:[%s3696_s5 + $0x90] sm:$0xf] %vm1709_vm1, %v1681_v59  ;;  %v1482_v43 = vmax.f32 %v1314_v25, %v1418_v60  ;;  %v979_v1 = vadd.f32 %v3276_v38, %v978_v16  ;;  %v1147_v37 = vpop.f32.mrf.mxu1 }
 0x1d0   :  { %v1701_v20 = vpack.c.bf16 %v1637_v57, %v1637_v57  ;;  %v1438_v6 = vmul.f32 0.2, %v1364_v0 }
 0x1d1   :  { %v1550_v24 = vmul.f32 %v3292_v36, %v1482_v43  ;;  %v1148_v7 = vadd.f32 %v1147_v37, %v979_v1 }
 0x1d2   :  { %1766 = vst.msk [vmem:[%s3696_s5 + $0xe0] sm:$0xf] %vm1709_vm1, %v1701_v20  ;;  %v1502_v27 = vmax.f32 %v1364_v0, %v1438_v6 }
 0x1d3   :  { %v1618_v11 = vadd.f32 %v3327_v21, %v1550_v24  ;;  %v1317_v15 = vadd.f32 %v1316_v41, %v1148_v7 }
 0x1d4   :  { %v1570_v44 = vmul.f32 %v3292_v36, %v1502_v27 }
 0x1d5   :  { %v1682_v34 = vpack.c.bf16 %v1618_v11, %v1618_v11  ;;  %v1419_v61 = vmul.f32 0.2, %v1317_v15  ;;  %v1323_v45 = vpop.f32.mrf.mxu2  ;;  %v1366_v32 = vpop.f32.mrf.mxu3 }
 0x1d6   :  { %v1638_v3 = vadd.f32 %v3327_v21, %v1570_v44  ;;  %v1367_v19 = vadd.f32 %v1366_v32, %v3361_v47  ;;  %v980_v22 = vpop.f32.mrf.mxu0 }
 0x1d7   :  { %1747 = vst.msk [vmem:[%s3696_s5 + $0x94] sm:$0xf] %vm1709_vm1, %v1682_v34  ;;  %v1483_v30 = vmax.f32 %v1317_v15, %v1419_v61  ;;  %v981_v28 = vadd.f32 %v3276_v38, %v980_v22  ;;  %v1149_v41 = vpop.f32.mrf.mxu1 }
 0x1d8   :  { %v1702_v9 = vpack.c.bf16 %v1638_v3, %v1638_v3  ;;  %v1439_v46 = vmul.f32 0.2, %v1367_v19 }
 0x1d9   :  { %v1551_v31 = vmul.f32 %v3292_v36, %v1483_v30  ;;  %v1150_v58 = vadd.f32 %v1149_v41, %v981_v28 }
 0x1da   :  { %1767 = vst.msk [vmem:[%s3696_s5 + $0xe4] sm:$0xf] %vm1709_vm1, %v1702_v9  ;;  %v1503_v47 = vmax.f32 %v1367_v19, %v1439_v46 }
 0x1db   :  { %v1619_v35 = vadd.f32 %v3327_v21, %v1551_v31  ;;  %v1319_v48 = vadd.f32 %v1318_v17, %v1150_v58 }
 0x1dc   :  { %v1571_v23 = vmul.f32 %v3292_v36, %v1503_v47 }
 0x1dd   :  { %v1683_v13 = vpack.c.bf16 %v1619_v35, %v1619_v35  ;;  %v1420_v2 = vmul.f32 0.2, %v1319_v48  ;;  %v1326_v39 = vpop.f32.mrf.mxu2  ;;  %v1368_v40 = vpop.f32.mrf.mxu3 }
 0x1de   :  { %v1639_v51 = vadd.f32 %v3327_v21, %v1571_v23  ;;  %v1369_v56 = vadd.f32 %v1368_v40, %v3385_v26  ;;  %v983_v55 = vpop.f32.mrf.mxu0 }
 0x1df   :  { %1748 = vst.msk [vmem:[%s3696_s5 + $0x98] sm:$0xf] %vm1709_vm1, %v1683_v13  ;;  %v1484_v54 = vmax.f32 %v1319_v48, %v1420_v2  ;;  %v984_v33 = vadd.f32 %v3276_v38, %v983_v55  ;;  %v1152_v17 = vpop.f32.mrf.mxu1 }
 0x1e0   :  { %v1703_v4 = vpack.c.bf16 %v1639_v51, %v1639_v51  ;;  %v1440_v53 = vmul.f32 0.2, %v1369_v56 }
 0x1e1   :  { %v1552_v5 = vmul.f32 %v3292_v36, %v1484_v54  ;;  %v1153_v14 = vadd.f32 %v1152_v17, %v984_v33 }
 0x1e2   :  { %1768 = vst.msk [vmem:[%s3696_s5 + $0xe8] sm:$0xf] %vm1709_vm1, %v1703_v4  ;;  %v1504_v26 = vmax.f32 %v1369_v56, %v1440_v53 }
 0x1e3   :  { %v1620_v25 = vadd.f32 %v3327_v21, %v1552_v5  ;;  %v1322_v8 = vadd.f32 %v1321_v63, %v1153_v14 }
 0x1e4   :  { %v1572_v59 = vmul.f32 %v3292_v36, %v1504_v26 }
 0x1e5   :  { %v1684_v60 = vpack.c.bf16 %v1620_v25, %v1620_v25  ;;  %v1421_v49 = vmul.f32 0.2, %v1322_v8  ;;  %v1328_v57 = vpop.f32.mrf.mxu2  ;;  %v1371_v0 = vpop.f32.mrf.mxu3 }
 0x1e6   :  { %v1640_v16 = vadd.f32 %v3327_v21, %v1572_v59  ;;  %v1372_v43 = vadd.f32 %v1371_v0, %v3402_v52  ;;  %v985_v1 = vpop.f32.mrf.mxu0 }
 0x1e7   :  { %1749 = vst.msk [vmem:[%s3696_s5 + $0x9c] sm:$0xf] %vm1709_vm1, %v1684_v60  ;;  %v1485_v37 = vmax.f32 %v1322_v8, %v1421_v49  ;;  %v986_v20 = vadd.f32 %v3276_v38, %v985_v1  ;;  %v1154_v63 = vpop.f32.mrf.mxu1 }
 0x1e8   :  { %v1704_v6 = vpack.c.bf16 %v1640_v16, %v1640_v16  ;;  %v1441_v24 = vmul.f32 0.2, %v1372_v43 }
 0x1e9   :  { %v1553_v7 = vmul.f32 %v3292_v36, %v1485_v37  ;;  %v1155_v27 = vadd.f32 %v1154_v63, %v986_v20 }
 0x1ea   :  { %1769 = vst.msk [vmem:[%s3696_s5 + $0xec] sm:$0xf] %vm1709_vm1, %v1704_v6  ;;  %v1505_v52 = vmax.f32 %v1372_v43, %v1441_v24 }
 0x1eb   :  { %v1621_v11 = vadd.f32 %v3327_v21, %v1553_v7  ;;  %v1324_v15 = vadd.f32 %v1323_v45, %v1155_v27 }
 0x1ec   :  { %v1573_v44 = vmul.f32 %v3292_v36, %v1505_v52 }
 0x1ed   :  { %v1685_v34 = vpack.c.bf16 %v1621_v11, %v1621_v11  ;;  %v1422_v61 = vmul.f32 0.2, %v1324_v15  ;;  %v1331_v32 = vpop.f32.mrf.mxu2  ;;  %v1373_v3 = vpop.f32.mrf.mxu3 }
 0x1ee   :  { %v1641_v19 = vadd.f32 %v3327_v21, %v1573_v44  ;;  %v1374_v22 = vadd.f32 %v1373_v3, %v3426_v12  ;;  %v988_v30 = vpop.f32.mrf.mxu0 }
 0x1ef   :  { %1750 = vst.msk [vmem:[%s3696_s5 + $0xa0] sm:$0xf] %vm1709_vm1, %v1685_v34  ;;  %v1486_v28 = vmax.f32 %v1324_v15, %v1422_v61  ;;  %v989_v41 = vadd.f32 %v3276_v38, %v988_v30  ;;  %v1157_v45 = vpop.f32.mrf.mxu1 }
 0x1f0   :  { %v1705_v9 = vpack.c.bf16 %v1641_v19, %v1641_v19  ;;  %v1442_v46 = vmul.f32 0.2, %v1374_v22 }
 0x1f1   :  { %v1554_v31 = vmul.f32 %v3292_v36, %v1486_v28  ;;  %v1158_v58 = vadd.f32 %v1157_v45, %v989_v41 }
 0x1f2   :  { %1770 = vst.msk [vmem:[%s3696_s5 + $0xf0] sm:$0xf] %vm1709_vm1, %v1705_v9  ;;  %v1506_v12 = vmax.f32 %v1374_v22, %v1442_v46 }
 0x1f3   :  { %v1622_v47 = vadd.f32 %v3327_v21, %v1554_v31  ;;  %v1327_v35 = vadd.f32 %v1326_v39, %v1158_v58 }
 0x1f4   :  { %v1574_v48 = vmul.f32 %v3292_v36, %v1506_v12 }
 0x1f5   :  { %v1686_v23 = vpack.c.bf16 %v1622_v47, %v1622_v47  ;;  %v1423_v13 = vmul.f32 0.2, %v1327_v35  ;;  %v1333_v2 = vpop.f32.mrf.mxu2  ;;  %v1376_v40 = vpop.f32.mrf.mxu3 }
 0x1f6   :  { %v1642_v51 = vadd.f32 %v3327_v21, %v1574_v48  ;;  %v1377_v56 = vadd.f32 %v1376_v40, %v3443_v18  ;;  %v990_v55 = vpop.f32.mrf.mxu0 }
 0x1f7   :  { %1751 = vst.msk [vmem:[%s3696_s5 + $0xa4] sm:$0xf] %vm1709_vm1, %v1686_v23  ;;  %v1487_v54 = vmax.f32 %v1327_v35, %v1423_v13  ;;  %v991_v33 = vadd.f32 %v3276_v38, %v990_v55  ;;  %v1159_v39 = vpop.f32.mrf.mxu1 }
 0x1f8   :  { %v1706_v17 = vpack.c.bf16 %v1642_v51, %v1642_v51  ;;  %v1443_v4 = vmul.f32 0.2, %v1377_v56 }
 0x1f9   :  { %v1555_v53 = vmul.f32 %v3292_v36, %v1487_v54  ;;  %v1160_v5 = vadd.f32 %v1159_v39, %v991_v33 }
 0x1fa   :  { %1771 = vst.msk [vmem:[%s3696_s5 + $0xf4] sm:$0xf] %vm1709_vm1, %v1706_v17  ;;  %v1507_v18 = vmax.f32 %v1377_v56, %v1443_v4 }
 0x1fb   :  { %v1623_v14 = vadd.f32 %v3327_v21, %v1555_v53  ;;  %v1329_v26 = vadd.f32 %v1328_v57, %v1160_v5 }
 0x1fc   :  { %v1575_v25 = vmul.f32 %v3292_v36, %v1507_v18 }
 0x1fd   :  { %v1687_v8 = vpack.c.bf16 %v1623_v14, %v1623_v14  ;;  %v1424_v59 = vmul.f32 0.2, %v1329_v26  ;;  %v1336_v60 = vpop.f32.mrf.mxu2  ;;  %v1378_v49 = vpop.f32.mrf.mxu3 }
 0x1fe   :  { %v1643_v0 = vadd.f32 %v3327_v21, %v1575_v25  ;;  %v1379_v16 = vadd.f32 %v1378_v49, %v3455_v50  ;;  %v993_v43 = vpop.f32.mrf.mxu0 }
 0x1ff   :  { %1752 = vst.msk [vmem:[%s3696_s5 + $0xa8] sm:$0xf] %vm1709_vm1, %v1687_v8  ;;  %v1488_v1 = vmax.f32 %v1329_v26, %v1424_v59  ;;  %v994_v37 = vadd.f32 %v3276_v38, %v993_v43  ;;  %v1162_v57 = vpop.f32.mrf.mxu1 }
 0x200   :  { %v1707_v20 = vpack.c.bf16 %v1643_v0, %v1643_v0  ;;  %v1444_v63 = vmul.f32 0.2, %v1379_v16 }
 0x201   :  { %v1556_v6 = vmul.f32 %v3292_v36, %v1488_v1  ;;  %v1163_v24 = vadd.f32 %v1162_v57, %v994_v37 }
 0x202   :  { %1772 = vst.msk [vmem:[%s3696_s5 + $0xf8] sm:$0xf] %vm1709_vm1, %v1707_v20  ;;  %v1508_v50 = vmax.f32 %v1379_v16, %v1444_v63 }
 0x203   :  { %v1624_v7 = vadd.f32 %v3327_v21, %v1556_v6  ;;  %v1332_v27 = vadd.f32 %v1331_v32, %v1163_v24 }
 0x204   :  { %v1576_v52 = vmul.f32 %v3292_v36, %v1508_v50 }
 0x205   :  { %v1688_v11 = vpack.c.bf16 %v1624_v7, %v1624_v7  ;;  %v1425_v15 = vmul.f32 0.2, %v1332_v27  ;;  %v1338_v44 = vpop.f32.mrf.mxu2 }
 0x206   :  { %v1644_v34 = vadd.f32 %v3327_v21, %v1576_v52  ;;  %v995_v61 = vpop.f32.mrf.mxu0 }
 0x207   :  { %1753 = vst.msk [vmem:[%s3696_s5 + $0xac] sm:$0xf] %vm1709_vm1, %v1688_v11  ;;  %v1489_v3 = vmax.f32 %v1332_v27, %v1425_v15  ;;  %v996_v19 = vadd.f32 %v3276_v38, %v995_v61  ;;  %v1164_v22 = vpop.f32.mrf.mxu1 }
 0x208   :  { %v1708_v30 = vpack.c.bf16 %v1644_v34, %v1644_v34 }
 0x209   :  { %v1557_v32 = vmul.f32 %v3292_v36, %v1489_v3  ;;  %v1165_v28 = vadd.f32 %v1164_v22, %v996_v19 }
 0x20a   :  { %1773 = vst.msk [vmem:[%s3696_s5 + $0xfc] sm:$0xf] %vm1709_vm1, %v1708_v30 }
 0x20b   :  { %v1625_v41 = vadd.f32 %v3327_v21, %v1557_v32  ;;  %v1334_v45 = vadd.f32 %v1333_v2, %v1165_v28 }
 0x20d   :  { %v1689_v9 = vpack.c.bf16 %v1625_v41, %v1625_v41  ;;  %v1426_v46 = vmul.f32 0.2, %v1334_v45  ;;  %v1341_v31 = vpop.f32.mrf.mxu2 }
 0x20e   :  { %v1342_v58 = vadd.f32 %v1341_v31, %v3097_v42  ;;  %v998_v12 = vpop.f32.mrf.mxu0 }
 0x20f   :  { %1754 = vst.msk [vmem:[%s3696_s5 + $0xb0] sm:$0xf] %vm1709_vm1, %v1689_v9  ;;  %v1490_v47 = vmax.f32 %v1334_v45, %v1426_v46  ;;  %v999_v35 = vadd.f32 %v3276_v38, %v998_v12  ;;  %v1167_v48 = vpop.f32.mrf.mxu1 }
 0x210   :  { %v1429_v23 = vmul.f32 0.2, %v1342_v58 }
 0x211   :  { %v1558_v13 = vmul.f32 %v3292_v36, %v1490_v47  ;;  %v1168_v40 = vadd.f32 %v1167_v48, %v999_v35 }
 0x212   :  { %v1493_v2 = vmax.f32 %v1342_v58, %v1429_v23 }
 0x213   :  { %v1626_v51 = vadd.f32 %v3327_v21, %v1558_v13  ;;  %v1337_v56 = vadd.f32 %v1336_v60, %v1168_v40 }
 0x214   :  { %v1561_v42 = vmul.f32 %v3292_v36, %v1493_v2 }
 0x215   :  { %v1690_v55 = vpack.c.bf16 %v1626_v51, %v1626_v51  ;;  %v1427_v54 = vmul.f32 0.2, %v1337_v56  ;;  %v1343_v33 = vpop.f32.mrf.mxu2 }
 0x216   :  { %v1629_v39 = vadd.f32 %v3327_v21, %v1561_v42  ;;  %v1344_v17 = vadd.f32 %v1343_v33, %v3127_v10  ;;  %v1000_v4 = vpop.f32.mrf.mxu0 }
 0x217   :  { %1755 = vst.msk [vmem:[%s3696_s5 + $0xb4] sm:$0xf] %vm1709_vm1, %v1690_v55  ;;  %v1491_v53 = vmax.f32 %v1337_v56, %v1427_v54  ;;  %v1001_v5 = vadd.f32 %v3276_v38, %v1000_v4  ;;  %v1169_v18 = vpop.f32.mrf.mxu1 }
 0x218   :  { %v1693_v14 = vpack.c.bf16 %v1629_v39, %v1629_v39  ;;  %v1430_v26 = vmul.f32 0.2, %v1344_v17 }
 0x219   :  { %v1559_v25 = vmul.f32 %v3292_v36, %v1491_v53  ;;  %v1170_v8 = vadd.f32 %v1169_v18, %v1001_v5 }
 0x21a   :  { %1758 = vst.msk [vmem:[%s3696_s5 + $0xc0] sm:$0xf] %vm1709_vm1, %v1693_v14  ;;  %v1494_v10 = vmax.f32 %v1344_v17, %v1430_v26 }
 0x21b   :  { %v1627_v59 = vadd.f32 %v3327_v21, %v1559_v25  ;;  %v1339_v60 = vadd.f32 %v1338_v44, %v1170_v8 }
 0x21c   :  { %v1562_v49 = vmul.f32 %v3292_v36, %v1494_v10 }
 0x21d   :  { %v1691_v0 = vpack.c.bf16 %v1627_v59, %v1627_v59  ;;  %v1428_v16 = vmul.f32 0.2, %v1339_v60  ;;  %v1346_v38 = vpop.f32.mrf.mxu2 }
 0x21e   :  { %v1630_v43 = vadd.f32 %v3327_v21, %v1562_v49  ;;  %v1347_v1 = vadd.f32 %v1346_v38, %v3145_v29 }
 0x21f   :  { %1756 = vst.msk [vmem:[%s3696_s5 + $0xb8] sm:$0xf] %vm1709_vm1, %v1691_v0  ;;  %v1492_v37 = vmax.f32 %v1339_v60, %v1428_v16 }
 0x220   :  { %v1694_v57 = vpack.c.bf16 %v1630_v43, %v1630_v43  ;;  %v1431_v20 = vmul.f32 0.2, %v1347_v1 }
 0x221   :  { %v1560_v63 = vmul.f32 %v3292_v36, %v1492_v37 }
 0x222   :  { %1759 = vst.msk [vmem:[%s3696_s5 + $0xc4] sm:$0xf] %vm1709_vm1, %v1694_v57  ;;  %v1495_v6 = vmax.f32 %v1347_v1, %v1431_v20 }
 0x223   :  { %v1628_v24 = vadd.f32 %v3327_v21, %v1560_v63 }
 0x224   :  { %v1563_v29 = vmul.f32 %v3292_v36, %v1495_v6 }
 0x225   :  { %v1692_v50 = vpack.c.bf16 %v1628_v24, %v1628_v24  ;;  %v1348_v7 = vpop.f32.mrf.mxu2 }
 0x226   :  { %v1631_v27 = vadd.f32 %v3327_v21, %v1563_v29  ;;  %v1349_v52 = vadd.f32 %v1348_v7, %v3175_v62 }
 0x227   :  { %1757 = vst.msk [vmem:[%s3696_s5 + $0xbc] sm:$0xf] %vm1709_vm1, %v1692_v50 }
 0x228   :  { %v1695_v11 = vpack.c.bf16 %v1631_v27, %v1631_v27  ;;  %v1432_v15 = vmul.f32 0.2, %v1349_v52 }
 0x22a   :  { %1760 = vst.msk [vmem:[%s3696_s5 + $0xc8] sm:$0xf] %vm1709_vm1, %v1695_v11  ;;  %v1496_v44 = vmax.f32 %v1349_v52, %v1432_v15 }
 0x22c   :  { %v1564_v34 = vmul.f32 %v3292_v36, %v1496_v44 }
 0x22e   :  { %v1632_v61 = vadd.f32 %v3327_v21, %v1564_v34 }
 0x230   :  { %v1696_v3 = vpack.c.bf16 %v1632_v61, %v1632_v61 }
 0x232   :  { %1761 = vst.msk [vmem:[%s3696_s5 + $0xcc] sm:$0xf] %vm1709_vm1, %v1696_v3 }

// kernel: discriminator_forward.8
= control target key start
LH: loop header
LB: loop body
LE: loop exit
PB: predicated region body
PF: predicated region fallthrough
CT: control target
= control target key end

     0   :  { %vm561_vm0 = vcmask 523264   ;;  %s1910_s1 = inlined_call_operand.vmem [shape: bf16[576,128], index: 1, kind: input, shape index: {}]   ;;  %s1911_s2 = inlined_call_operand.vmem [shape: f32[1,128], index: 2, kind: input, shape index: {}]   ;;  %s1912_s0 = inlined_call_operand.vmem [shape: bf16[128,576], index: 0, kind: input, shape index: {}]   ;;  %s1913_s3 = inlined_call_operand.vmem [shape: f32[1,128], index: 3, kind: input, shape index: {}]   ;;  %s1914_s4 = inlined_call_operand.vmem [shape: f32[1,128], index: 4, kind: input, shape index: {}]   ;;  %s1915_s5 = inlined_call_operand.vmem [shape: bf16[128,128], index: 5, kind: output, shape index: {}]  }
   0x1   :  { %v1298_v0 = vld [vmem:[%s1910_s1 + $0x38] sm:$0xff]  ;;  %v1297_v1 = vld [vmem:[%s1910_s1 + $0x30] sm:$0xff]  ;;  %v1296_v2 = vld [vmem:[%s1910_s1 + $0x28] sm:$0xff] }
   0x2   :  { %1374 = vmatpush.bf16.msra.mxu1 %v1298_v0  ;;  %1375 = vmatpush.bf16.msra.mxu2 %v1298_v0  ;;  %v1295_v3 = vld [vmem:[%s1910_s1 + $0x20] sm:$0xff]  ;;  %v1294_v4 = vld [vmem:[%s1910_s1 + $0x18] sm:$0xff]  ;;  %v1293_v5 = vld [vmem:[%s1910_s1 + $0x10] sm:$0xff] }
   0x3   :  { %1376 = vmatpush.bf16.msra.mxu3 %v1298_v0  ;;  %586 = vmatpush.bf16.msra.mxu0 %v1298_v0  ;;  %v1292_v6 = vld [vmem:[%s1910_s1 + $0x8] sm:$0xff]  ;;  %v1291_v7 = vld [vmem:[%s1910_s1] sm:$0xff]  ;;  %v981_v8 = vld [vmem:[%s1912_s0 + $0x50] sm:$0xf] }
   0x4   :  { %v1263_v9 = vld [vmem:[%s1912_s0 + $0x60] sm:$0xf0]  ;;  %v1021_v10 = vld [vmem:[%s1912_s0 + $0xa0] sm:$0xf]  ;;  %v1273_v11 = vld [vmem:[%s1912_s0 + $0xb0] sm:$0xf0] }
   0x5   :  { %v1061_v12 = vld [vmem:[%s1912_s0 + $0xf0] sm:$0xf]  ;;  %v1283_v13 = vld [vmem:[%s1912_s0 + $0x100] sm:$0xf0]  ;;  %v941_v14 = vld [vmem:[%s1912_s0] sm:$0xf]  ;;  %v982_v18 = vor.u32 %v1263_v9, %v981_v8  ;;  %v1022_v19 = vor.u32 %v1273_v11, %v1021_v10 }
   0x6   :  { %1377 = vmatpush.bf16.msra.mxu1 %v1297_v1  ;;  %1378 = vmatpush.bf16.msra.mxu2 %v1297_v1  ;;  %v1253_v15 = vld [vmem:[%s1912_s0 + $0x10] sm:$0xf0]  ;;  %v1314_v16 = vld [vmem:[%s1910_s1 + $0xb8] sm:$0xff]  ;;  %v1062_v20 = vor.u32 %v1283_v13, %v1061_v12  ;;  %v1312_v28 = vld [vmem:[%s1910_s1 + $0xa8] sm:$0xff] }
   0x7   :  { %1379 = vmatpush.bf16.msra.mxu3 %v1297_v1  ;;  %587 = vmatpush.bf16.msra.mxu0 %v1297_v1  ;;  %v1306_v17 = vld [vmem:[%s1910_s1 + $0x78] sm:$0xff]  ;;  %v942_v21 = vor.u32 %v1253_v15, %v941_v14  ;;  %v1313_v24 = vld [vmem:[%s1910_s1 + $0xb0] sm:$0xff]  ;;  %v1304_v29 = vld [vmem:[%s1910_s1 + $0x68] sm:$0xff] }
   0x8   :  { %v1322_v22 = vld [vmem:[%s1910_s1 + $0xf8] sm:$0xff]  ;;  %v1305_v25 = vld [vmem:[%s1910_s1 + $0x70] sm:$0xff]  ;;  %v1320_v30 = vld [vmem:[%s1910_s1 + $0xe8] sm:$0xff] }
   0x9   :  { %v1326_v23 = vld [vmem:[%s1910_s1 + $0x118] sm:$0xff]  ;;  %v1321_v26 = vld [vmem:[%s1910_s1 + $0xf0] sm:$0xff]  ;;  %v1324_v31 = vld [vmem:[%s1910_s1 + $0x108] sm:$0xff] }
   0xa   :  { %1380 = vmatpush.bf16.msra.mxu1 %v1296_v2  ;;  %1381 = vmatpush.bf16.msra.mxu2 %v1296_v2  ;;  %v1325_v27 = vld [vmem:[%s1910_s1 + $0x110] sm:$0xff]  ;;  %v1311_v32 = vld [vmem:[%s1910_s1 + $0xa0] sm:$0xff]  ;;  %v1001_v35 = vld [vmem:[%s1912_s0 + $0x78] sm:$0xf] }
   0xb   :  { %1382 = vmatpush.bf16.msra.mxu3 %v1296_v2  ;;  %588 = vmatpush.bf16.msra.mxu0 %v1296_v2  ;;  %v1303_v33 = vld [vmem:[%s1910_s1 + $0x60] sm:$0xff]  ;;  %v1268_v36 = vld [vmem:[%s1912_s0 + $0x88] sm:$0xf0]  ;;  %v1041_v37 = vld [vmem:[%s1912_s0 + $0xc8] sm:$0xf] }
   0xc   :  { %v1319_v34 = vld [vmem:[%s1910_s1 + $0xe0] sm:$0xff]  ;;  %v1278_v38 = vld [vmem:[%s1912_s0 + $0xd8] sm:$0xf0]  ;;  %v1081_v39 = vld [vmem:[%s1912_s0 + $0x118] sm:$0xf]  ;;  %v1002_v46 = vor.u32 %v1268_v36, %v1001_v35 }
   0xd   :  { %v1288_v40 = vld [vmem:[%s1912_s0 + $0x128] sm:$0xf0]  ;;  %v961_v41 = vld [vmem:[%s1912_s0 + $0x28] sm:$0xf]  ;;  %v1258_v42 = vld [vmem:[%s1912_s0 + $0x38] sm:$0xf0]  ;;  %v1042_v47 = vor.u32 %v1278_v38, %v1041_v37 }
   0xe   :  { %1383 = vmatpush.bf16.msra.mxu1 %v1295_v3  ;;  %1384 = vmatpush.bf16.msra.mxu2 %v1295_v3  ;;  %v1323_v43 = vld [vmem:[%s1910_s1 + $0x100] sm:$0xff]  ;;  %v1310_v44 = vld [vmem:[%s1910_s1 + $0x98] sm:$0xff]  ;;  %v1082_v48 = vor.u32 %v1288_v40, %v1081_v39  ;;  %v962_v49 = vor.u32 %v1258_v42, %v961_v41  ;;  %v1309_v51 = vld [vmem:[%s1910_s1 + $0x90] sm:$0xff] }
   0xf   :  { %1385 = vmatpush.bf16.msra.mxu3 %v1295_v3  ;;  %589 = vmatpush.bf16.msra.mxu0 %v1295_v3  ;;  %v1302_v45 = vld [vmem:[%s1910_s1 + $0x58] sm:$0xff]  ;;  %v1301_v52 = vld [vmem:[%s1910_s1 + $0x50] sm:$0xff]  ;;  %v1308_v54 = vld [vmem:[%s1910_s1 + $0x88] sm:$0xff] }
  0x10   :  { %v1318_v50 = vld [vmem:[%s1910_s1 + $0xd8] sm:$0xff]  ;;  %v1317_v53 = vld [vmem:[%s1910_s1 + $0xd0] sm:$0xff]  ;;  %v1300_v55 = vld [vmem:[%s1910_s1 + $0x48] sm:$0xff] }
  0x11   :  { %v1316_v56 = vld [vmem:[%s1910_s1 + $0xc8] sm:$0xff]  ;;  %v1307_v57 = vld [vmem:[%s1910_s1 + $0x80] sm:$0xff]  ;;  %v943_v61 = vld [vmem:[%s1912_s0 + $0x14] sm:$0xf0] }
  0x12   :  { %1386 = vmatpush.bf16.msra.mxu1 %v1294_v4  ;;  %1387 = vmatpush.bf16.msra.mxu2 %v1294_v4  ;;  %v1299_v58 = vld [vmem:[%s1910_s1 + $0x40] sm:$0xff]  ;;  %v949_v62 = vld [vmem:[%s1912_s0 + $0x8] sm:$0xf]  ;;  %v1254_v63 = vld [vmem:[%s1912_s0 + $0x18] sm:$0xf0] }
  0x13   :  { %1388 = vmatpush.bf16.msra.mxu3 %v1294_v4  ;;  %590 = vmatpush.bf16.msra.mxu0 %v1294_v4  ;;  %v1315_v59 = vld [vmem:[%s1910_s1 + $0xc0] sm:$0xff]  ;;  %v1252_v0 = vld [vmem:[%s1912_s0 + $0xc] sm:$0xf]  ;;  %v957_v2 = vld [vmem:[%s1912_s0 + $0x10] sm:$0xf] }
  0x14   :  { %v1251_v60 = vld [vmem:[%s1912_s0 + $0x4] sm:$0xf]  ;;  %v951_v1 = vld [vmem:[%s1912_s0 + $0x1c] sm:$0xf0]  ;;  %v1256_v8 = vld [vmem:[%s1912_s0 + $0x2c] sm:$0xf] }
  0x15   :  { %v1255_v3 = vld [vmem:[%s1912_s0 + $0x20] sm:$0xf0]  ;;  %v946_v4 = vor.u32 %v1251_v60, %v943_v61  ;;  %v963_v9 = vld [vmem:[%s1912_s0 + $0x3c] sm:$0xf0]  ;;  %v969_v10 = vld [vmem:[%s1912_s0 + $0x30] sm:$0xf] }
  0x16   :  { %1389 = vmatpush.bf16.msra.mxu1 %v1293_v5  ;;  %1390 = vmatpush.bf16.msra.mxu2 %v1293_v5  ;;  %v1259_v11 = vld [vmem:[%s1912_s0 + $0x40] sm:$0xf0]  ;;  %v1257_v12 = vld [vmem:[%s1912_s0 + $0x34] sm:$0xf]  ;;  %v971_v13 = vld [vmem:[%s1912_s0 + $0x44] sm:$0xf0] }
  0x17   :  { %1391 = vmatpush.bf16.msra.mxu3 %v1293_v5  ;;  %591 = vmatpush.bf16.msra.mxu0 %v1293_v5  ;;  %v950_v5 = vor.u32 %v1254_v63, %v949_v62  ;;  %v977_v14 = vld [vmem:[%s1912_s0 + $0x38] sm:$0xf]  ;;  %v1260_v15 = vld [vmem:[%s1912_s0 + $0x48] sm:$0xf0]  ;;  %v1269_v35 = vld [vmem:[%s1912_s0 + $0x90] sm:$0xf0] }
  0x18   :  { %v1267_v36 = vld [vmem:[%s1912_s0 + $0x84] sm:$0xf]  ;;  %v1011_v37 = vld [vmem:[%s1912_s0 + $0x94] sm:$0xf0]  ;;  %v1017_v38 = vld [vmem:[%s1912_s0 + $0x88] sm:$0xf] }
  0x19   :  { %v1270_v39 = vld [vmem:[%s1912_s0 + $0x98] sm:$0xf0]  ;;  %v1014_v42 = vor.u32 %v1267_v36, %v1011_v37  ;;  %v1277_v60 = vld [vmem:[%s1912_s0 + $0xd4] sm:$0xf]  ;;  %v1051_v61 = vld [vmem:[%s1912_s0 + $0xe4] sm:$0xf0] }
  0x1a   :  { %1392 = vmatpush.bf16.msra.mxu1 %v1292_v6  ;;  %1393 = vmatpush.bf16.msra.mxu2 %v1292_v6  ;;  %v1057_v62 = vld [vmem:[%s1912_s0 + $0xd8] sm:$0xf]  ;;  %v1280_v63 = vld [vmem:[%s1912_s0 + $0xe8] sm:$0xf0] }
  0x1b   :  { %1394 = vmatpush.bf16.msra.mxu3 %v1292_v6  ;;  %592 = vmatpush.bf16.msra.mxu0 %v1292_v6  ;;  %v954_v6 = vor.u32 %v1252_v0, %v951_v1 }
  0x1e   :  { %1395 = vmatpush.bf16.msra.mxu1 %v1291_v7  ;;  %1396 = vmatpush.bf16.msra.mxu2 %v1291_v7 }
  0x1f   :  { %1397 = vmatpush.bf16.msra.mxu3 %v1291_v7  ;;  %593 = vmatpush.bf16.msra.mxu0 %v1291_v7  ;;  %v958_v7 = vor.u32 %v1255_v3, %v957_v2  ;;  %v1054_v2 = vor.u32 %v1277_v60, %v1051_v61  ;;  %v1058_v3 = vor.u32 %v1280_v63, %v1057_v62 }
  0x21   :  { %604 = vmatmul.bf16.vlgmr.msra.gmra.mxu1 %v982_v18  ;;  %614 = vmatmul.bf16.vlgmr.msra.gmra.mxu2 %v1022_v19  ;;  %v974_v18 = vor.u32 %v1257_v12, %v971_v13  ;;  %v978_v19 = vor.u32 %v1260_v15, %v977_v14 }
  0x22   :  { %684 = vmatpush.bf16.msrb.mxu2 %v1314_v16  ;;  %635 = vmatpush.bf16.msrb.mxu1 %v1306_v17  ;;  %v966_v16 = vor.u32 %v1256_v8, %v963_v9  ;;  %v970_v17 = vor.u32 %v1259_v11, %v969_v10  ;;  %v1282_v8 = vld [vmem:[%s1912_s0 + $0xfc] sm:$0xf]  ;;  %v1071_v9 = vld [vmem:[%s1912_s0 + $0x10c] sm:$0xf0]  ;;  %v1077_v10 = vld [vmem:[%s1912_s0 + $0x100] sm:$0xf] }
  0x23   :  { %624 = vmatmul.bf16.vlgmr.msra.gmra.mxu3 %v1062_v20  ;;  %594 = vmatmul.bf16.vlgmr.msra.gmra.mxu0 %v942_v21  ;;  %v1261_v20 = vld [vmem:[%s1912_s0 + $0x54] sm:$0xf]  ;;  %v983_v21 = vld [vmem:[%s1912_s0 + $0x64] sm:$0xf0]  ;;  %v1074_v15 = vor.u32 %v1282_v8, %v1071_v9 }
  0x24   :  { %733 = vmatpush.bf16.msrb.mxu3 %v1322_v22  ;;  %786 = vmatpush.bf16.msrb.mxu0 %v1326_v23  ;;  %v989_v22 = vld [vmem:[%s1912_s0 + $0x58] sm:$0xf]  ;;  %v1264_v23 = vld [vmem:[%s1912_s0 + $0x68] sm:$0xf0]  ;;  %v1285_v11 = vld [vmem:[%s1912_s0 + $0x110] sm:$0xf0] }
  0x26   :  { %685 = vmatpush.bf16.msrb.mxu2 %v1313_v24  ;;  %636 = vmatpush.bf16.msrb.mxu1 %v1305_v25  ;;  %v1262_v24 = vld [vmem:[%s1912_s0 + $0x5c] sm:$0xf]  ;;  %v991_v25 = vld [vmem:[%s1912_s0 + $0x6c] sm:$0xf0] }
  0x28   :  { %734 = vmatpush.bf16.msrb.mxu3 %v1321_v26  ;;  %787 = vmatpush.bf16.msrb.mxu0 %v1325_v27  ;;  %v997_v26 = vld [vmem:[%s1912_s0 + $0x60] sm:$0xf]  ;;  %v1265_v27 = vld [vmem:[%s1912_s0 + $0x70] sm:$0xf0] }
  0x2a   :  { %686 = vmatpush.bf16.msrb.mxu2 %v1312_v28  ;;  %637 = vmatpush.bf16.msrb.mxu1 %v1304_v29  ;;  %v986_v28 = vor.u32 %v1261_v20, %v983_v21  ;;  %v990_v29 = vor.u32 %v1264_v23, %v989_v22 }
  0x2c   :  { %735 = vmatpush.bf16.msrb.mxu3 %v1320_v30  ;;  %788 = vmatpush.bf16.msrb.mxu0 %v1324_v31  ;;  %v994_v30 = vor.u32 %v1262_v24, %v991_v25  ;;  %v998_v31 = vor.u32 %v1265_v27, %v997_v26  ;;  %v1286_v25 = vld [vmem:[%s1912_s0 + $0x11c] sm:$0xf]  ;;  %v1083_v26 = vld [vmem:[%s1912_s0 + $0x12c] sm:$0xf0]  ;;  %v1089_v27 = vld [vmem:[%s1912_s0 + $0x120] sm:$0xf] }
  0x2d   :  { %v1086_v36 = vor.u32 %v1286_v25, %v1083_v26 }
  0x2e   :  { %687 = vmatpush.bf16.msrb.mxu2 %v1311_v32  ;;  %638 = vmatpush.bf16.msrb.mxu1 %v1303_v33  ;;  %v1266_v32 = vld [vmem:[%s1912_s0 + $0x7c] sm:$0xf]  ;;  %v1003_v33 = vld [vmem:[%s1912_s0 + $0x8c] sm:$0xf0] }
  0x2f   :  { %v1006_v40 = vor.u32 %v1266_v32, %v1003_v33  ;;  %v1290_v32 = vld [vmem:[%s1912_s0 + $0x138] sm:$0xf0] }
  0x30   :  { %736 = vmatpush.bf16.msrb.mxu3 %v1319_v34  ;;  %789 = vmatpush.bf16.msrb.mxu0 %v1323_v43  ;;  %v1009_v34 = vld [vmem:[%s1912_s0 + $0x80] sm:$0xf]  ;;  %v1018_v43 = vor.u32 %v1270_v39, %v1017_v38 }
  0x31   :  { %609 = vmatmul.bf16.gmra.mxu1 %v1002_v46  ;;  %619 = vmatmul.bf16.gmra.mxu2 %v1042_v47  ;;  %v1010_v41 = vor.u32 %v1269_v35, %v1009_v34  ;;  %v1029_v46 = vld [vmem:[%s1912_s0 + $0xa8] sm:$0xf]  ;;  %v1274_v47 = vld [vmem:[%s1912_s0 + $0xb8] sm:$0xf0] }
  0x32   :  { %688 = vmatpush.bf16.msrb.mxu2 %v1310_v44  ;;  %639 = vmatpush.bf16.msrb.mxu1 %v1302_v45  ;;  %v1271_v44 = vld [vmem:[%s1912_s0 + $0xa4] sm:$0xf]  ;;  %v1023_v45 = vld [vmem:[%s1912_s0 + $0xb4] sm:$0xf0] }
  0x33   :  { %629 = vmatmul.bf16.gmra.mxu3 %v1082_v48  ;;  %599 = vmatmul.bf16.gmra.mxu0 %v962_v49  ;;  %v1272_v48 = vld [vmem:[%s1912_s0 + $0xac] sm:$0xf]  ;;  %v1031_v49 = vld [vmem:[%s1912_s0 + $0xbc] sm:$0xf0] }
  0x34   :  { %737 = vmatpush.bf16.msrb.mxu3 %v1318_v50  ;;  %v1037_v50 = vld [vmem:[%s1912_s0 + $0xb0] sm:$0xf] }
  0x36   :  { %689 = vmatpush.bf16.msrb.mxu2 %v1309_v51  ;;  %640 = vmatpush.bf16.msrb.mxu1 %v1301_v52  ;;  %v1275_v51 = vld [vmem:[%s1912_s0 + $0xc0] sm:$0xf0]  ;;  %v1026_v52 = vor.u32 %v1271_v44, %v1023_v45 }
  0x38   :  { %738 = vmatpush.bf16.msrb.mxu3 %v1317_v53  ;;  %v1030_v53 = vor.u32 %v1274_v47, %v1029_v46 }
  0x3a   :  { %690 = vmatpush.bf16.msrb.mxu2 %v1308_v54  ;;  %641 = vmatpush.bf16.msrb.mxu1 %v1300_v55  ;;  %v1034_v54 = vor.u32 %v1272_v48, %v1031_v49  ;;  %v1038_v55 = vor.u32 %v1275_v51, %v1037_v50 }
  0x3c   :  { %739 = vmatpush.bf16.msrb.mxu3 %v1316_v56  ;;  %v1276_v56 = vld [vmem:[%s1912_s0 + $0xcc] sm:$0xf] }
  0x3e   :  { %691 = vmatpush.bf16.msrb.mxu2 %v1307_v57  ;;  %642 = vmatpush.bf16.msrb.mxu1 %v1299_v58  ;;  %v1043_v57 = vld [vmem:[%s1912_s0 + $0xdc] sm:$0xf0]  ;;  %v1049_v58 = vld [vmem:[%s1912_s0 + $0xd0] sm:$0xf] }
  0x3f   :  { %v1046_v0 = vor.u32 %v1276_v56, %v1043_v57 }
  0x40   :  { %740 = vmatpush.bf16.msrb.mxu3 %v1315_v59  ;;  %v1279_v59 = vld [vmem:[%s1912_s0 + $0xe0] sm:$0xf0] }
  0x41   :  { %643 = vmatmul.bf16.vlgmr.msrb.gmra.mxu1 %v946_v4  ;;  %692 = vmatmul.bf16.vlgmr.msrb.gmra.mxu2 %v950_v5  ;;  %v1050_v1 = vor.u32 %v1279_v59, %v1049_v58  ;;  %v1281_v4 = vld [vmem:[%s1912_s0 + $0xf4] sm:$0xf]  ;;  %v1063_v5 = vld [vmem:[%s1912_s0 + $0x104] sm:$0xf0] }
  0x42   :  { %v1066_v12 = vor.u32 %v1281_v4, %v1063_v5 }
  0x43   :  { %741 = vmatmul.bf16.vlgmr.msrb.gmra.mxu3 %v954_v6  ;;  %1243 = vmatmul.msk.bf16.vlgmr.msrb.gmra.mxu0 %vm561_vm0, %v958_v7  ;;  %v1069_v6 = vld [vmem:[%s1912_s0 + $0xf8] sm:$0xf]  ;;  %v1284_v7 = vld [vmem:[%s1912_s0 + $0x108] sm:$0xf0] }
  0x44   :  { %v1070_v13 = vor.u32 %v1284_v7, %v1069_v6 }
  0x51   :  { %648 = vmatmul.bf16.gmra.mxu1 %v966_v16  ;;  %697 = vmatmul.bf16.gmra.mxu2 %v970_v17  ;;  %v1078_v16 = vor.u32 %v1285_v11, %v1077_v10  ;;  %v1830_v11 = vld [vmem:[%s1913_s3] ss:$0 sm:$0xff] }
  0x53   :  { %746 = vmatmul.bf16.gmra.mxu3 %v974_v18  ;;  %1244 = vmatmul.msk.bf16.gmra.mxu0 %vm561_vm0, %v978_v19  ;;  %v1767_v18 = vld [vmem:[%s1911_s2] ss:$0 sm:$0xff] }
  0x61   :  { %653 = vmatmul.bf16.gmra.mxu1 %v986_v28  ;;  %702 = vmatmul.bf16.gmra.mxu2 %v990_v29  ;;  %v1289_v28 = vld [vmem:[%s1912_s0 + $0x130] sm:$0xf0]  ;;  %v1287_v29 = vld [vmem:[%s1912_s0 + $0x124] sm:$0xf] }
  0x62   :  { %v1090_v37 = vor.u32 %v1289_v28, %v1089_v27 }
  0x63   :  { %751 = vmatmul.bf16.gmra.mxu3 %v994_v30  ;;  %1245 = vmatmul.msk.bf16.gmra.mxu0 %vm561_vm0, %v998_v31  ;;  %v1091_v30 = vld [vmem:[%s1912_s0 + $0x134] sm:$0xf0]  ;;  %v1097_v31 = vld [vmem:[%s1912_s0 + $0x128] sm:$0xf] }
  0x71   :  { %658 = vmatmul.bf16.gmra.mxu1 %v1006_v40  ;;  %707 = vmatmul.bf16.gmra.mxu2 %v1010_v41  ;;  %v1094_v40 = vor.u32 %v1287_v29, %v1091_v30  ;;  %v1098_v41 = vor.u32 %v1290_v32, %v1097_v31 }
  0x73   :  { %756 = vmatmul.bf16.gmra.mxu3 %v1014_v42  ;;  %1246 = vmatmul.msk.bf16.gmra.mxu0 %vm561_vm0, %v1018_v43 }
  0x81   :  { %663 = vmatmul.bf16.gmra.mxu1 %v1026_v52  ;;  %712 = vmatmul.bf16.gmra.mxu2 %v1030_v53 }
  0x83   :  { %761 = vmatmul.bf16.gmra.mxu3 %v1034_v54  ;;  %1247 = vmatmul.msk.bf16.gmra.mxu0 %vm561_vm0, %v1038_v55 }
  0x91   :  { %668 = vmatmul.bf16.gmra.mxu1 %v1046_v0  ;;  %717 = vmatmul.bf16.gmra.mxu2 %v1050_v1 }
  0x93   :  { %766 = vmatmul.bf16.gmra.mxu3 %v1054_v2  ;;  %1248 = vmatmul.msk.bf16.gmra.mxu0 %vm561_vm0, %v1058_v3 }
  0x9e   :  { %v1761_v14 = vpop.f32.mrf.mxu1 }
  0xa0   :  { %v595_v17 = vpop.f32.mrf.mxu0 }
  0xa1   :  { %673 = vmatmul.bf16.gmra.mxu1 %v1066_v12  ;;  %722 = vmatmul.bf16.gmra.mxu2 %v1070_v13  ;;  %v596_v55 = vadd.f32 %v1767_v18, %v595_v17 }
  0xa3   :  { %771 = vmatmul.bf16.gmra.mxu3 %v1074_v15  ;;  %1249 = vmatmul.msk.bf16.gmra.mxu0 %vm561_vm0, %v1078_v16 }
  0xa4   :  { %v615_v19 = vpop.f32.mrf.mxu2 }
  0xa5   :  { %v1770_v20 = vadd.f32 %v1767_v18, %v615_v19  ;;  %v1836_v19 = vld [vmem:[%s1914_s4] ss:$0 sm:$0xff] }
  0xa6   :  { %v625_v21 = vpop.f32.mrf.mxu3  ;;  %v1775_v23 = vpop.f32.mrf.mxu1 }
  0xa7   :  { %v1773_v22 = vadd.f32 %v1767_v18, %v625_v21 }
  0xa8   :  { %v597_v24 = vpop.f32.mrf.mxu0 }
  0xa9   :  { %v598_v63 = vadd.f32 %v1767_v18, %v597_v24 }
  0xac   :  { %v617_v33 = vpop.f32.mrf.mxu2 }
  0xad   :  { %v1802_v34 = vadd.f32 %v1767_v18, %v617_v33 }
  0xae   :  { %v627_v35 = vpop.f32.mrf.mxu3  ;;  %v1807_v39 = vpop.f32.mrf.mxu1 }
  0xaf   :  { %v1805_v38 = vadd.f32 %v1767_v18, %v627_v35 }
  0xb0   :  { %v600_v42 = vpop.f32.mrf.mxu0 }
  0xb1   :  { %678 = vmatmul.bf16.gmra.mxu1 %v1086_v36  ;;  %727 = vmatmul.bf16.gmra.mxu2 %v1090_v37  ;;  %v601_v9 = vadd.f32 %v1767_v18, %v600_v42 }
  0xb3   :  { %776 = vmatmul.bf16.gmra.mxu3 %v1094_v40  ;;  %1250 = vmatmul.msk.bf16.gmra.mxu0 %vm561_vm0, %v1098_v41 }
  0xb4   :  { %v620_v43 = vpop.f32.mrf.mxu2 }
  0xb5   :  { %v1811_v44 = vadd.f32 %v1767_v18, %v620_v43 }
  0xb6   :  { %v630_v45 = vpop.f32.mrf.mxu3  ;;  %v1816_v47 = vpop.f32.mrf.mxu1 }
  0xb7   :  { %v1814_v46 = vadd.f32 %v1767_v18, %v630_v45 }
  0xb8   :  { %v602_v48 = vpop.f32.mrf.mxu0 }
  0xb9   :  { %v603_v30 = vadd.f32 %v1767_v18, %v602_v48  ;;  %v606_v48 = vadd.f32 %v1767_v18, %v1761_v14 }
  0xbc   :  { %v622_v49 = vpop.f32.mrf.mxu2 }
  0xbd   :  { %v1819_v50 = vadd.f32 %v1767_v18, %v622_v49 }
  0xbe   :  { %v632_v51 = vpop.f32.mrf.mxu3  ;;  %v644_v53 = vpop.f32.mrf.mxu1 }
  0xbf   :  { %v1822_v52 = vadd.f32 %v1767_v18, %v632_v51  ;;  %v645_v56 = vadd.f32 %v644_v53, %v596_v55 }
  0xc0   :  { %v791_v54 = vpop.f32.mrf.mxu0 }
  0xc4   :  { %v693_v57 = vpop.f32.mrf.mxu2 }
  0xc5   :  { %v694_v58 = vadd.f32 %v693_v57, %v645_v56 }
  0xc6   :  { %v742_v59 = vpop.f32.mrf.mxu3  ;;  %v646_v60 = vpop.f32.mrf.mxu1 }
  0xc7   :  { %v743_v61 = vadd.f32 %v742_v59, %v694_v58  ;;  %v647_v1 = vadd.f32 %v646_v60, %v598_v63 }
  0xc8   :  { %v793_v62 = vpop.f32.mrf.mxu0 }
  0xc9   :  { %v792_v0 = vadd.f32 %v791_v54, %v743_v61 }
  0xcb   :  { %v831_v3 = vmul.f32 0.2, %v792_v0 }
  0xcc   :  { %v695_v2 = vpop.f32.mrf.mxu2 }
  0xcd   :  { %v696_v4 = vadd.f32 %v695_v2, %v647_v1  ;;  %v847_v10 = vmax.f32 %v792_v0, %v831_v3  ;;  %v608_v1 = vadd.f32 %v1767_v18, %v1775_v23  ;;  %v611_v23 = vadd.f32 %v1767_v18, %v1807_v39 }
  0xce   :  { %v744_v5 = vpop.f32.mrf.mxu3  ;;  %v649_v6 = vpop.f32.mrf.mxu1 }
  0xcf   :  { %v745_v7 = vadd.f32 %v744_v5, %v696_v4  ;;  %v650_v15 = vadd.f32 %v649_v6, %v601_v9  ;;  %v867_v17 = vmul.f32 %v1830_v11, %v847_v10 }
  0xd0   :  { %v796_v8 = vpop.f32.mrf.mxu0 }
  0xd1   :  { %v794_v12 = vadd.f32 %v793_v62, %v745_v7  ;;  %v887_v31 = vadd.f32 %v1836_v19, %v867_v17 }
  0xd3   :  { %v832_v13 = vmul.f32 0.2, %v794_v12 }
  0xd4   :  { %v698_v16 = vpop.f32.mrf.mxu2 }
  0xd5   :  { %v848_v21 = vmax.f32 %v794_v12, %v832_v13  ;;  %v699_v24 = vadd.f32 %v698_v16, %v650_v15 }
  0xd6   :  { %v747_v25 = vpop.f32.mrf.mxu3  ;;  %v651_v26 = vpop.f32.mrf.mxu1 }
  0xd7   :  { %v868_v27 = vmul.f32 %v1830_v11, %v848_v21  ;;  %v748_v28 = vadd.f32 %v747_v25, %v699_v24  ;;  %v652_v36 = vadd.f32 %v651_v26, %v603_v30 }
  0xd8   :  { %v798_v29 = vpop.f32.mrf.mxu0 }
  0xd9   :  { %v888_v32 = vadd.f32 %v1836_v19, %v868_v27  ;;  %v797_v33 = vadd.f32 %v796_v8, %v748_v28 }
  0xdb   :  { %v1330_v35 = vpack.c.bf16 %v888_v32, %v887_v31  ;;  %v833_v40 = vmul.f32 0.2, %v797_v33 }
  0xdc   :  { %v700_v37 = vpop.f32.mrf.mxu2 }
  0xdd   :  { %1331 = vst [vmem:[%s1915_s5] sm:$0xff] %v1330_v35   ;;  %v701_v41 = vadd.f32 %v700_v37, %v652_v36  ;;  %v849_v51 = vmax.f32 %v797_v33, %v833_v40  ;;  %v613_v33 = vadd.f32 %v1767_v18, %v1816_v47 }
  0xde   :  { %v749_v42 = vpop.f32.mrf.mxu3  ;;  %v654_v43 = vpop.f32.mrf.mxu1 }
  0xdf   :  { %v750_v45 = vadd.f32 %v749_v42, %v701_v41  ;;  %v655_v55 = vadd.f32 %v654_v43, %v606_v48  ;;  %v869_v57 = vmul.f32 %v1830_v11, %v849_v51 }
  0xe0   :  { %v801_v49 = vpop.f32.mrf.mxu0 }
  0xe1   :  { %v799_v53 = vadd.f32 %v798_v29, %v750_v45  ;;  %v889_v14 = vadd.f32 %v1836_v19, %v869_v57 }
  0xe3   :  { %v834_v54 = vmul.f32 0.2, %v799_v53 }
  0xe4   :  { %v703_v56 = vpop.f32.mrf.mxu2 }
  0xe5   :  { %v850_v58 = vmax.f32 %v799_v53, %v834_v54  ;;  %v704_v59 = vadd.f32 %v703_v56, %v655_v55 }
  0xe6   :  { %v752_v60 = vpop.f32.mrf.mxu3  ;;  %v656_v61 = vpop.f32.mrf.mxu1 }
  0xe7   :  { %v870_v62 = vmul.f32 %v1830_v11, %v850_v58  ;;  %v753_v63 = vadd.f32 %v752_v60, %v704_v59  ;;  %v657_v5 = vadd.f32 %v656_v61, %v608_v1 }
  0xe8   :  { %v803_v0 = vpop.f32.mrf.mxu0 }
  0xe9   :  { %v890_v2 = vadd.f32 %v1836_v19, %v870_v62  ;;  %v802_v3 = vadd.f32 %v801_v49, %v753_v63 }
  0xeb   :  { %v1335_v4 = vpack.c.bf16 %v890_v2, %v889_v14  ;;  %v835_v7 = vmul.f32 0.2, %v802_v3 }
  0xec   :  { %v705_v6 = vpop.f32.mrf.mxu2 }
  0xed   :  { %1367 = vst [vmem:[%s1915_s5 + $0x8] sm:$0xff] %v1335_v4   ;;  %v706_v8 = vadd.f32 %v705_v6, %v657_v5  ;;  %v851_v15 = vmax.f32 %v802_v3, %v835_v7 }
  0xee   :  { %v754_v9 = vpop.f32.mrf.mxu3  ;;  %v659_v10 = vpop.f32.mrf.mxu1 }
  0xef   :  { %v755_v12 = vadd.f32 %v754_v9, %v706_v8  ;;  %v660_v21 = vadd.f32 %v659_v10, %v611_v23  ;;  %v871_v25 = vmul.f32 %v1830_v11, %v851_v15 }
  0xf0   :  { %v806_v13 = vpop.f32.mrf.mxu0 }
  0xf1   :  { %v804_v16 = vadd.f32 %v803_v0, %v755_v12  ;;  %v891_v39 = vadd.f32 %v1836_v19, %v871_v25 }
  0xf3   :  { %v836_v17 = vmul.f32 0.2, %v804_v16 }
  0xf4   :  { %v708_v24 = vpop.f32.mrf.mxu2 }
  0xf5   :  { %v852_v26 = vmax.f32 %v804_v16, %v836_v17  ;;  %v709_v27 = vadd.f32 %v708_v24, %v660_v21 }
  0xf6   :  { %v757_v28 = vpop.f32.mrf.mxu3  ;;  %v661_v29 = vpop.f32.mrf.mxu1 }
  0xf7   :  { %v872_v30 = vmul.f32 %v1830_v11, %v852_v26  ;;  %v758_v31 = vadd.f32 %v757_v28, %v709_v27  ;;  %v662_v40 = vadd.f32 %v661_v29, %v613_v33 }
  0xf8   :  { %v808_v32 = vpop.f32.mrf.mxu0 }
  0xf9   :  { %v892_v35 = vadd.f32 %v1836_v19, %v872_v30  ;;  %v807_v36 = vadd.f32 %v806_v13, %v758_v31 }
  0xfb   :  { %v1340_v37 = vpack.c.bf16 %v892_v35, %v891_v39  ;;  %v837_v42 = vmul.f32 0.2, %v807_v36 }
  0xfc   :  { %v710_v41 = vpop.f32.mrf.mxu2 }
  0xfd   :  { %1368 = vst [vmem:[%s1915_s5 + $0x10] sm:$0xff] %v1340_v37   ;;  %v711_v43 = vadd.f32 %v710_v41, %v662_v40  ;;  %v853_v53 = vmax.f32 %v807_v36, %v837_v42 }
  0xfe   :  { %v759_v45 = vpop.f32.mrf.mxu3  ;;  %v664_v49 = vpop.f32.mrf.mxu1 }
  0xff   :  { %v760_v48 = vadd.f32 %v759_v45, %v711_v43  ;;  %v665_v54 = vadd.f32 %v664_v49, %v1770_v20  ;;  %v873_v56 = vmul.f32 %v1830_v11, %v853_v53 }
 0x100   :  { %v811_v51 = vpop.f32.mrf.mxu0 }
 0x101   :  { %v809_v18 = vadd.f32 %v808_v32, %v760_v48  ;;  %v893_v0 = vadd.f32 %v1836_v19, %v873_v56 }
 0x103   :  { %v838_v47 = vmul.f32 0.2, %v809_v18 }
 0x104   :  { %v713_v55 = vpop.f32.mrf.mxu2 }
 0x105   :  { %v854_v57 = vmax.f32 %v809_v18, %v838_v47  ;;  %v714_v58 = vadd.f32 %v713_v55, %v665_v54 }
 0x106   :  { %v762_v59 = vpop.f32.mrf.mxu3  ;;  %v666_v60 = vpop.f32.mrf.mxu1 }
 0x107   :  { %v874_v61 = vmul.f32 %v1830_v11, %v854_v57  ;;  %v763_v62 = vadd.f32 %v762_v59, %v714_v58  ;;  %v667_v3 = vadd.f32 %v666_v60, %v1802_v34 }
 0x108   :  { %v813_v63 = vpop.f32.mrf.mxu0 }
 0x109   :  { %v894_v1 = vadd.f32 %v1836_v19, %v874_v61  ;;  %v812_v14 = vadd.f32 %v811_v51, %v763_v62 }
 0x10b   :  { %v1345_v2 = vpack.c.bf16 %v894_v1, %v893_v0  ;;  %v839_v4 = vmul.f32 0.2, %v812_v14 }
 0x10c   :  { %v715_v20 = vpop.f32.mrf.mxu2 }
 0x10d   :  { %1369 = vst [vmem:[%s1915_s5 + $0x18] sm:$0xff] %v1345_v2   ;;  %v716_v5 = vadd.f32 %v715_v20, %v667_v3  ;;  %v855_v10 = vmax.f32 %v812_v14, %v839_v4 }
 0x10e   :  { %v764_v6 = vpop.f32.mrf.mxu3  ;;  %v669_v7 = vpop.f32.mrf.mxu1 }
 0x10f   :  { %v765_v8 = vadd.f32 %v764_v6, %v716_v5  ;;  %v670_v23 = vadd.f32 %v669_v7, %v1811_v44  ;;  %v875_v16 = vmul.f32 %v1830_v11, %v855_v10 }
 0x110   :  { %v816_v9 = vpop.f32.mrf.mxu0 }
 0x111   :  { %v814_v12 = vadd.f32 %v813_v63, %v765_v8  ;;  %v895_v28 = vadd.f32 %v1836_v19, %v875_v16 }
 0x113   :  { %v840_v13 = vmul.f32 0.2, %v814_v12 }
 0x114   :  { %v718_v15 = vpop.f32.mrf.mxu2 }
 0x115   :  { %v856_v34 = vmax.f32 %v814_v12, %v840_v13  ;;  %v719_v17 = vadd.f32 %v718_v15, %v670_v23 }
 0x116   :  { %v767_v21 = vpop.f32.mrf.mxu3  ;;  %v671_v24 = vpop.f32.mrf.mxu1 }
 0x117   :  { %v876_v25 = vmul.f32 %v1830_v11, %v856_v34  ;;  %v768_v26 = vadd.f32 %v767_v21, %v719_v17  ;;  %v672_v32 = vadd.f32 %v671_v24, %v1819_v50 }
 0x118   :  { %v818_v27 = vpop.f32.mrf.mxu0 }
 0x119   :  { %v896_v29 = vadd.f32 %v1836_v19, %v876_v25  ;;  %v817_v30 = vadd.f32 %v816_v9, %v768_v26 }
 0x11b   :  { %v1350_v31 = vpack.c.bf16 %v896_v29, %v895_v28  ;;  %v841_v33 = vmul.f32 0.2, %v817_v30 }
 0x11c   :  { %v720_v44 = vpop.f32.mrf.mxu2 }
 0x11d   :  { %1370 = vst [vmem:[%s1915_s5 + $0x20] sm:$0xff] %v1350_v31   ;;  %v721_v39 = vadd.f32 %v720_v44, %v672_v32  ;;  %v857_v40 = vmax.f32 %v817_v30, %v841_v33 }
 0x11e   :  { %v769_v35 = vpop.f32.mrf.mxu3  ;;  %v674_v36 = vpop.f32.mrf.mxu1 }
 0x11f   :  { %v770_v37 = vadd.f32 %v769_v35, %v721_v39  ;;  %v675_v45 = vadd.f32 %v674_v36, %v1773_v22  ;;  %v877_v48 = vmul.f32 %v1830_v11, %v857_v40 }
 0x120   :  { %v821_v42 = vpop.f32.mrf.mxu0 }
 0x121   :  { %v819_v41 = vadd.f32 %v818_v27, %v770_v37  ;;  %v897_v55 = vadd.f32 %v1836_v19, %v877_v48 }
 0x123   :  { %v842_v43 = vmul.f32 0.2, %v819_v41 }
 0x124   :  { %v723_v49 = vpop.f32.mrf.mxu2 }
 0x125   :  { %v858_v50 = vmax.f32 %v819_v41, %v842_v43  ;;  %v724_v51 = vadd.f32 %v723_v49, %v675_v45 }
 0x126   :  { %v772_v53 = vpop.f32.mrf.mxu3  ;;  %v676_v18 = vpop.f32.mrf.mxu1 }
 0x127   :  { %v878_v47 = vmul.f32 %v1830_v11, %v858_v50  ;;  %v773_v54 = vadd.f32 %v772_v53, %v724_v51  ;;  %v677_v59 = vadd.f32 %v676_v18, %v1805_v38 }
 0x128   :  { %v823_v60 = vpop.f32.mrf.mxu0 }
 0x129   :  { %v898_v56 = vadd.f32 %v1836_v19, %v878_v47  ;;  %v822_v57 = vadd.f32 %v821_v42, %v773_v54 }
 0x12b   :  { %v1355_v58 = vpack.c.bf16 %v898_v56, %v897_v55  ;;  %v843_v61 = vmul.f32 0.2, %v822_v57 }
 0x12c   :  { %v725_v22 = vpop.f32.mrf.mxu2 }
 0x12d   :  { %1371 = vst [vmem:[%s1915_s5 + $0x28] sm:$0xff] %v1355_v58   ;;  %v726_v62 = vadd.f32 %v725_v22, %v677_v59  ;;  %v859_v14 = vmax.f32 %v822_v57, %v843_v61 }
 0x12e   :  { %v774_v63 = vpop.f32.mrf.mxu3  ;;  %v679_v0 = vpop.f32.mrf.mxu1 }
 0x12f   :  { %v775_v1 = vadd.f32 %v774_v63, %v726_v62  ;;  %v680_v20 = vadd.f32 %v679_v0, %v1814_v46  ;;  %v879_v5 = vmul.f32 %v1830_v11, %v859_v14 }
 0x130   :  { %v826_v8 = vpop.f32.mrf.mxu0 }
 0x131   :  { %v824_v2 = vadd.f32 %v823_v60, %v775_v1  ;;  %v899_v13 = vadd.f32 %v1836_v19, %v879_v5 }
 0x133   :  { %v844_v3 = vmul.f32 0.2, %v824_v2 }
 0x134   :  { %v728_v4 = vpop.f32.mrf.mxu2 }
 0x135   :  { %v860_v38 = vmax.f32 %v824_v2, %v844_v3  ;;  %v729_v6 = vadd.f32 %v728_v4, %v680_v20 }
 0x136   :  { %v777_v7 = vpop.f32.mrf.mxu3  ;;  %v681_v12 = vpop.f32.mrf.mxu1 }
 0x137   :  { %v880_v9 = vmul.f32 %v1830_v11, %v860_v38  ;;  %v778_v10 = vadd.f32 %v777_v7, %v729_v6  ;;  %v682_v34 = vadd.f32 %v681_v12, %v1822_v52 }
 0x138   :  { %v828_v26 = vpop.f32.mrf.mxu0 }
 0x139   :  { %v900_v23 = vadd.f32 %v1836_v19, %v880_v9  ;;  %v827_v15 = vadd.f32 %v826_v8, %v778_v10 }
 0x13b   :  { %v1360_v16 = vpack.c.bf16 %v900_v23, %v899_v13  ;;  %v845_v17 = vmul.f32 0.2, %v827_v15 }
 0x13c   :  { %v730_v46 = vpop.f32.mrf.mxu2 }
 0x13d   :  { %1372 = vst [vmem:[%s1915_s5 + $0x30] sm:$0xff] %v1360_v16   ;;  %v731_v21 = vadd.f32 %v730_v46, %v682_v34  ;;  %v861_v27 = vmax.f32 %v827_v15, %v845_v17 }
 0x13e   :  { %v779_v24 = vpop.f32.mrf.mxu3 }
 0x13f   :  { %v780_v25 = vadd.f32 %v779_v24, %v731_v21  ;;  %v881_v30 = vmul.f32 %v1830_v11, %v861_v27 }
 0x141   :  { %v829_v28 = vadd.f32 %v828_v26, %v780_v25  ;;  %v901_v52 = vadd.f32 %v1836_v19, %v881_v30 }
 0x143   :  { %v846_v29 = vmul.f32 0.2, %v829_v28 }
 0x145   :  { %v862_v31 = vmax.f32 %v829_v28, %v846_v29 }
 0x147   :  { %v882_v32 = vmul.f32 %v1830_v11, %v862_v31 }
 0x149   :  { %v902_v44 = vadd.f32 %v1836_v19, %v882_v32 }
 0x14b   :  { %v1365_v33 = vpack.c.bf16 %v902_v44, %v901_v52 }
 0x14d   :  { %1373 = vst [vmem:[%s1915_s5 + $0x38] sm:$0xff] %v1365_v33  }

// kernel: discriminator_forward.9
= control target key start
LH: loop header
LB: loop body
LE: loop exit
PB: predicated region body
PF: predicated region fallthrough
CT: control target
= control target key end

     0   :  { %vm168_vm0 = vcmask 1041408   ;;  %vm170_vm1 = vcmask 1045508   ;;  %vm172_vm2 = vcmask 1043456   ;;  %vm564_vm6 = vcmask 1024   ;;  %s893_s2 = inlined_call_operand.<no memory space> [shape: f32[1,1], index: 2, kind: input, shape index: {}]   ;;  %s894_s0 = inlined_call_operand.vmem [shape: bf16[2,8192], index: 0, kind: input, shape index: {}]   ;;  %s895_s1 = inlined_call_operand.vmem [shape: f32[1,8192], index: 1, kind: input, shape index: {}]   ;;  %s896_s3 = inlined_call_operand.vmem [shape: f32[2,1], index: 3, kind: output, shape index: {}]  }
   0x1   :  { %v8_v0 = vstv %s893_s2  ;;  %v601_v1 = vld [vmem:[%s894_s0] sm:$0xff]  ;;  %v606_v2 = vld [vmem:[%s894_s0 + $0x30] sm:$0xff]  ;;  %v611_v3 = vld [vmem:[%s894_s0 + $0x38] sm:$0xff] }
   0x2   :  { %9 = vst [vmem:[#allocation2] sm:$0x1] %v8_v0  ;;  %v616_v4 = vld [vmem:[%s895_s1] sm:$0xff]  ;;  %v24_v5 = vunpack.c.l.bf16 %v601_v1  ;;  %v25_v6 = vunpack.c.h.bf16 %v601_v1  ;;  %v36_v7 = vunpack.c.l.bf16 %v606_v2  ;;  %v37_v8 = vunpack.c.h.bf16 %v606_v2  ;;  %v627_v11 = vld [vmem:[%s895_s1 + $0x8] sm:$0xff]  ;;  %v637_v17 = vld [vmem:[%s895_s1 + $0x30] sm:$0xff] }
   0x3   :  { %v38_v9 = vunpack.c.l.bf16 %v611_v3  ;;  %v39_v10 = vunpack.c.h.bf16 %v611_v3  ;;  %v56_v12 = vperm.slane %v616_v4, 0  ;;  %v57_v13 = vperm.slane %v616_v4, 1  ;;  %v650_v26 = vld [vmem:[%s895_s1 + $0x38] sm:$0xff] }
   0x4   :  { %v58_v14 = vperm.slane %v616_v4, 2  ;;  %v59_v15 = vperm.slane %v616_v4, 3  ;;  %v60_v16 = vperm.slane %v616_v4, 4  ;;  %v61_v18 = vperm.slane %v616_v4, 5  ;;  %v712_v1 = vld [vmem:[%s895_s1 + $0x18] sm:$0xff] }
   0x5   :  { %v62_v19 = vperm.slane %v616_v4, 6  ;;  %v63_v20 = vperm.slane %v616_v4, 7  ;;  %v64_v21 = vperm.slane %v627_v11, 0  ;;  %v65_v22 = vperm.slane %v627_v11, 1 }
   0x6   :  { %v66_v23 = vperm.slane %v627_v11, 2  ;;  %v67_v24 = vperm.slane %v627_v11, 3  ;;  %v68_v25 = vperm.slane %v627_v11, 4  ;;  %v69_v27 = vperm.slane %v627_v11, 5 }
   0x7   :  { %v70_v28 = vperm.slane %v627_v11, 6  ;;  %v71_v29 = vperm.slane %v627_v11, 7  ;;  %v104_v30 = vperm.slane %v637_v17, 0  ;;  %v105_v31 = vperm.slane %v637_v17, 1 }
   0x8   :  { %v106_v32 = vperm.slane %v637_v17, 2  ;;  %v107_v33 = vperm.slane %v637_v17, 3  ;;  %v108_v34 = vperm.slane %v637_v17, 4  ;;  %v109_v35 = vperm.slane %v637_v17, 5 }
   0x9   :  { %v110_v36 = vperm.slane %v637_v17, 6  ;;  %v111_v37 = vperm.slane %v637_v17, 7  ;;  %v112_v38 = vperm.slane %v650_v26, 0  ;;  %v113_v39 = vperm.slane %v650_v26, 1 }
   0xa   :  { %v114_v40 = vperm.slane %v650_v26, 2  ;;  %v115_v41 = vperm.slane %v650_v26, 3  ;;  %v116_v42 = vperm.slane %v650_v26, 4  ;;  %v117_v43 = vperm.slane %v650_v26, 5 }
   0xb   :  { %v120_v44 = vrot.slane %v57_v13, 6  ;;  %v121_v45 = vrot.slane %v58_v14, 4  ;;  %v122_v46 = vrot.slane %v59_v15, 2  ;;  %v118_v47 = vperm.slane %v650_v26, 6 }
   0xc   :  { %v123_v48 = vrot.slane %v61_v18, 6  ;;  %v124_v49 = vrot.slane %v62_v19, 4  ;;  %v125_v50 = vrot.slane %v63_v20, 2  ;;  %v119_v51 = vperm.slane %v650_v26, 7 }
   0xd   :  { %v126_v52 = vrot.slane %v65_v22, 6  ;;  %v156_v53 = vrot.slane %v105_v31, 6  ;;  %v157_v54 = vrot.slane %v106_v32, 4  ;;  %v158_v55 = vrot.slane %v107_v33, 2 }
   0xe   :  { %v159_v56 = vrot.slane %v109_v35, 6  ;;  %v160_v57 = vrot.slane %v110_v36, 4  ;;  %v161_v58 = vrot.slane %v111_v37, 2  ;;  %v162_v59 = vrot.slane %v113_v39, 6 }
   0xf   :  { %v169_v60 = vsel %vm168_vm0, %v56_v12, %v120_v44  ;;  %v171_v61 = vsel %vm170_vm1, %v121_v45, %v122_v46  ;;  %v163_v62 = vrot.slane %v114_v40, 4  ;;  %v164_v63 = vrot.slane %v115_v41, 2 }
  0x10   :  { %v174_v0 = vsel %vm168_vm0, %v60_v16, %v123_v48  ;;  %v175_v4 = vsel %vm170_vm1, %v124_v49, %v125_v50  ;;  %v127_v13 = vrot.slane %v66_v23, 4  ;;  %v165_v14 = vrot.slane %v117_v43, 6  ;;  %v17_v16 = vld [vmem:[%s894_s0 + $0x8] sm:$0xff]  ;;  %v686_v23 = vld [vmem:[%s895_s1 + $0x10] sm:$0xff] }
  0x11   :  { %v166_v15 = vrot.slane %v118_v47, 4  ;;  %v167_v17 = vrot.slane %v119_v51, 2  ;;  %v128_v18 = vrot.slane %v67_v24, 2  ;;  %v129_v19 = vrot.slane %v69_v27, 6 }
  0x12   :  { %v130_v20 = vrot.slane %v70_v28, 4  ;;  %v173_v22 = vsel %vm172_vm2, %v169_v60, %v171_v61  ;;  %v176_v12 = vsel %vm172_vm2, %v174_v0, %v175_v4  ;;  %v207_v26 = vsel %vm168_vm0, %v104_v30, %v156_v53 }
  0x13   :  { %v208_v31 = vsel %vm170_vm1, %v157_v54, %v158_v55  ;;  %v210_v32 = vsel %vm168_vm0, %v108_v34, %v159_v56  ;;  %v211_v27 = vsel %vm170_vm1, %v160_v57, %v161_v58  ;;  %v213_v28 = vsel %vm168_vm0, %v112_v38, %v162_v59  ;;  %v18_v56 = vld [vmem:[%s894_s0 + $0x10] sm:$0xff] }
  0x14   :  { %v209_v24 = vsel %vm172_vm2, %v207_v26, %v208_v31  ;;  %v214_v30 = vsel %vm170_vm1, %v163_v62, %v164_v63  ;;  %v212_v33 = vsel %vm172_vm2, %v210_v32, %v211_v27  ;;  %v216_v35 = vsel %vm168_vm0, %v116_v42, %v165_v14  ;;  %v751_v14 = vld [vmem:[%s895_s1 + $0x20] sm:$0xff] }
  0x15   :  { %v215_v34 = vsel %vm172_vm2, %v213_v28, %v214_v30  ;;  %v217_v36 = vsel %vm170_vm1, %v166_v15, %v167_v17  ;;  %v131_v37 = vrot.slane %v71_v29, 2  ;;  %v235_v40 = vmul.f32 %v173_v22, %v24_v5 }
  0x16   :  { %v218_v39 = vsel %vm172_vm2, %v216_v35, %v217_v36  ;;  %v236_v41 = vmul.f32 %v176_v12, %v25_v6  ;;  %v26_v38 = vunpack.c.l.bf16 %v17_v16  ;;  %v73_v43 = vperm.slane %v686_v23, 1 }
  0x17   :  { %v74_v44 = vperm.slane %v686_v23, 2  ;;  %v75_v45 = vperm.slane %v686_v23, 3  ;;  %v77_v42 = vperm.slane %v686_v23, 5  ;;  %v78_v46 = vperm.slane %v686_v23, 6  ;;  %267 = vst [vmem:[#allocation1] ss:$4 sm:$0xff] %v235_v40 }
  0x18   :  { %v177_v29 = vsel %vm168_vm0, %v64_v21, %v126_v52  ;;  %v178_v5 = vsel %vm170_vm1, %v127_v13, %v128_v18  ;;  %v717_v6 = vmul.f32 %v209_v24, %v36_v7  ;;  %v721_v47 = vmul.f32 %v212_v33, %v37_v8  ;;  %269 = vst [vmem:[#allocation1 + $0x20] ss:$4 sm:$0xff] %v236_v41 }
  0x19   :  { %v725_v48 = vmul.f32 %v215_v34, %v38_v9  ;;  %v79_v21 = vperm.slane %v686_v23, 7  ;;  %v180_v49 = vsel %vm168_vm0, %v68_v25, %v129_v19  ;;  %v181_v50 = vsel %vm170_vm1, %v130_v20, %v131_v37 }
  0x1a   :  { %v734_v7 = vmul.f32 %v218_v39, %v39_v10  ;;  %v27_v2 = vunpack.c.h.bf16 %v17_v16  ;;  %v72_v8 = vperm.slane %v686_v23, 0  ;;  %v76_v51 = vperm.slane %v686_v23, 4 }
  0x1b   :  { %v80_v9 = vperm.slane %v712_v1, 0  ;;  %v81_v52 = vperm.slane %v712_v1, 1  ;;  %v82_v53 = vperm.slane %v712_v1, 2  ;;  %v83_v11 = vperm.slane %v712_v1, 3 }
  0x1c   :  { %v179_v25 = vsel %vm172_vm2, %v177_v29, %v178_v5  ;;  %v84_v54 = vperm.slane %v712_v1, 4  ;;  %v132_v3 = vrot.slane %v73_v43, 6  ;;  %v133_v10 = vrot.slane %v74_v44, 4 }
  0x1d   :  { %v182_v55 = vsel %vm172_vm2, %v180_v49, %v181_v50  ;;  %v134_v57 = vrot.slane %v75_v45, 2  ;;  %v135_v58 = vrot.slane %v77_v42, 6  ;;  %v136_v59 = vrot.slane %v78_v46, 4  ;;  %v19_v50 = vld [vmem:[%s894_s0 + $0x18] sm:$0xff] }
  0x1e   :  { %v137_v60 = vrot.slane %v79_v21, 2  ;;  %v237_v61 = vmul.f32 %v179_v25, %v26_v38  ;;  %v270_v62 = vld.sshfl [vmem:[#allocation1] sm:$0xff pattern:$0x73625140]  ;;  %v238_v0 = vmul.f32 %v182_v55, %v27_v2  ;;  %v28_v18 = vunpack.c.l.bf16 %v18_v56 }
  0x1f   :  { %v271_v63 = vld.sshfl [vmem:[#allocation1 + $0x8] sm:$0xff pattern:$0x73625140]  ;;  %v272_v4 = vld.sshfl [vmem:[#allocation1 + $0x10] sm:$0xff pattern:$0x73625140]  ;;  %v29_v19 = vunpack.c.h.bf16 %v18_v56  ;;  %v183_v23 = vsel %vm168_vm0, %v72_v8, %v132_v3  ;;  %v184_v24 = vsel %vm170_vm1, %v133_v10, %v134_v57  ;;  %v186_v30 = vsel %vm168_vm0, %v76_v51, %v135_v58 }
  0x20   :  { %v273_v13 = vld.sshfl [vmem:[#allocation1 + $0x18] sm:$0xff pattern:$0x73625140]  ;;  %v274_v15 = vld.sshfl [vmem:[#allocation1 + $0x20] sm:$0xff pattern:$0x73625140]  ;;  %v187_v33 = vsel %vm170_vm1, %v136_v59, %v137_v60  ;;  %v185_v38 = vsel %vm172_vm2, %v183_v23, %v184_v24  ;;  %v30_v60 = vunpack.c.l.bf16 %v19_v50 }
  0x21   :  { %v275_v17 = vld.sshfl [vmem:[#allocation1 + $0x28] sm:$0xff pattern:$0x73625140]  ;;  %v276_v20 = vld.sshfl [vmem:[#allocation1 + $0x30] sm:$0xff pattern:$0x73625140]  ;;  %v188_v42 = vsel %vm172_vm2, %v186_v30, %v187_v33  ;;  %v239_v2 = vmul.f32 %v185_v38, %v28_v18 }
  0x22   :  { %v277_v22 = vld.sshfl [vmem:[#allocation1 + $0x38] sm:$0xff pattern:$0x73625140]  ;;  %v85_v12 = vperm.slane %v712_v1, 5  ;;  %278 = vst [vmem:[#allocation1] ss:$4 sm:$0xff] %v237_v61  ;;  %v31_v61 = vunpack.c.h.bf16 %v19_v50 }
  0x23   :  { %v412_v26 = vsel %vm168_vm0, %v270_v62, 0.0  ;;  %v413_v31 = vsel %vm168_vm0, %v271_v63, 0.0  ;;  %v415_v32 = vsel %vm168_vm0, %v272_v4, 0.0  ;;  %v86_v16 = vperm.slane %v712_v1, 6  ;;  %279 = vst [vmem:[#allocation1 + $0x20] ss:$4 sm:$0xff] %v238_v0 }
  0x24   :  { %v414_v27 = vadd.f32 %v413_v31, %v412_v26  ;;  %v87_v28 = vperm.slane %v712_v1, 7  ;;  %v417_v34 = vsel %vm168_vm0, %v273_v13, 0.0  ;;  %v88_v35 = vperm.slane %v751_v14, 0  ;;  %v780_v10 = vld [vmem:[%s895_s1 + $0x28] sm:$0xff] }
  0x25   :  { %v89_v36 = vperm.slane %v751_v14, 1  ;;  %v90_v37 = vperm.slane %v751_v14, 2  ;;  %v91_v40 = vperm.slane %v751_v14, 3  ;;  %v138_v41 = vrot.slane %v81_v52, 6 }
  0x26   :  { %v416_v39 = vadd.f32 %v415_v32, %v414_v27  ;;  %v419_v43 = vsel %vm168_vm0, %v274_v15, 0.0  ;;  %v139_v44 = vrot.slane %v82_v53, 4  ;;  %v140_v45 = vrot.slane %v83_v11, 2 }
  0x27   :  { %v141_v29 = vrot.slane %v85_v12, 6  ;;  %v142_v5 = vrot.slane %v86_v16, 4  ;;  %v143_v21 = vrot.slane %v87_v28, 2  ;;  %v421_v49 = vsel %vm168_vm0, %v275_v17, 0.0 }
  0x28   :  { %v418_v46 = vadd.f32 %v417_v34, %v416_v39  ;;  %v423_v52 = vsel %vm168_vm0, %v276_v20, 0.0  ;;  %v425_v53 = vsel %vm168_vm0, %v277_v22, 0.0  ;;  %v240_v11 = vmul.f32 %v188_v42, %v29_v19 }
  0x29   :  { %v280_v8 = vld.sshfl [vmem:[#allocation1] sm:$0xff pattern:$0x73625140]  ;;  %v281_v25 = vld.sshfl [vmem:[#allocation1 + $0x8] sm:$0xff pattern:$0x73625140]  ;;  %v189_v13 = vsel %vm168_vm0, %v80_v9, %v138_v41  ;;  %v190_v15 = vsel %vm170_vm1, %v139_v44, %v140_v45  ;;  %v192_v19 = vsel %vm168_vm0, %v84_v54, %v141_v29  ;;  %v193_v20 = vsel %vm170_vm1, %v142_v5, %v143_v21 }
  0x2a   :  { %v420_v51 = vadd.f32 %v419_v43, %v418_v46  ;;  %v282_v3 = vld.sshfl [vmem:[#allocation1 + $0x10] sm:$0xff pattern:$0x73625140]  ;;  %v283_v55 = vld.sshfl [vmem:[#allocation1 + $0x18] sm:$0xff pattern:$0x73625140]  ;;  %v191_v23 = vsel %vm172_vm2, %v189_v13, %v190_v15  ;;  %v194_v27 = vsel %vm172_vm2, %v192_v19, %v193_v20 }
  0x2b   :  { %v284_v56 = vld.sshfl [vmem:[#allocation1 + $0x20] sm:$0xff pattern:$0x73625140]  ;;  %v285_v58 = vld.sshfl [vmem:[#allocation1 + $0x28] sm:$0xff pattern:$0x73625140]  ;;  %v241_v38 = vmul.f32 %v191_v23, %v30_v60  ;;  %v242_v45 = vmul.f32 %v194_v27, %v31_v61 }
  0x2c   :  { %v422_v57 = vadd.f32 %v421_v49, %v420_v51  ;;  %v286_v59 = vld.sshfl [vmem:[#allocation1 + $0x30] sm:$0xff pattern:$0x73625140]  ;;  %v92_v62 = vperm.slane %v751_v14, 4  ;;  %288 = vst [vmem:[#allocation1] ss:$4 sm:$0xff] %v239_v2 }
  0x2d   :  { %v783_v63 = vld.sshfl [vmem:[#allocation1 + $0x38] sm:$0xff pattern:$0x73625140]  ;;  %v93_v4 = vperm.slane %v751_v14, 5  ;;  %v427_v17 = vsel %vm168_vm0, %v280_v8, 0.0  ;;  %v94_v18 = vperm.slane %v751_v14, 6 }
  0x2e   :  { %v424_v0 = vadd.f32 %v423_v52, %v422_v57  ;;  %289 = vst [vmem:[#allocation1 + $0x20] ss:$4 sm:$0xff] %v240_v11  ;;  %v95_v12 = vperm.slane %v751_v14, 7  ;;  %v97_v26 = vperm.slane %v780_v10, 1  ;;  %v98_v9 = vperm.slane %v780_v10, 2 }
  0x2f   :  { %v429_v31 = vsel %vm168_vm0, %v281_v25, 0.0  ;;  %v99_v32 = vperm.slane %v780_v10, 3  ;;  %v101_v16 = vperm.slane %v780_v10, 5  ;;  %v144_v24 = vrot.slane %v89_v36, 6 }
  0x30   :  { %v426_v22 = vadd.f32 %v425_v53, %v424_v0  ;;  %v145_v54 = vrot.slane %v90_v37, 4  ;;  %v431_v28 = vsel %vm168_vm0, %v282_v3, 0.0  ;;  %v146_v30 = vrot.slane %v91_v40, 2  ;;  %v20_v37 = vld [vmem:[%s894_s0 + $0x20] sm:$0xff] }
  0x31   :  { %v147_v33 = vrot.slane %v93_v4, 6  ;;  %v148_v34 = vrot.slane %v94_v18, 4  ;;  %v149_v41 = vrot.slane %v95_v12, 2  ;;  %v433_v43 = vsel %vm168_vm0, %v283_v55, 0.0 }
  0x32   :  { %v428_v1 = vadd.f32 %v427_v17, %v426_v22  ;;  %v435_v44 = vsel %vm168_vm0, %v284_v56, 0.0  ;;  %v437_v8 = vsel %vm168_vm0, %v285_v58, 0.0  ;;  %v102_v51 = vperm.slane %v780_v10, 6 }
  0x33   :  { %v290_v42 = vld.sshfl [vmem:[#allocation1] sm:$0xff pattern:$0x73625140]  ;;  %v291_v46 = vld.sshfl [vmem:[#allocation1 + $0x8] sm:$0xff pattern:$0x73625140]  ;;  %v195_v52 = vsel %vm168_vm0, %v88_v35, %v144_v24  ;;  %v196_v53 = vsel %vm170_vm1, %v145_v54, %v146_v30  ;;  %v198_v3 = vsel %vm168_vm0, %v92_v62, %v147_v33  ;;  %v199_v55 = vsel %vm170_vm1, %v148_v34, %v149_v41 }
  0x34   :  { %v430_v39 = vadd.f32 %v429_v31, %v428_v1  ;;  %v292_v29 = vld.sshfl [vmem:[#allocation1 + $0x10] sm:$0xff pattern:$0x73625140]  ;;  %v293_v5 = vld.sshfl [vmem:[#allocation1 + $0x18] sm:$0xff pattern:$0x73625140]  ;;  %v32_v57 = vunpack.c.l.bf16 %v20_v37  ;;  %v33_v58 = vunpack.c.h.bf16 %v20_v37  ;;  %v197_v0 = vsel %vm172_vm2, %v195_v52, %v196_v53 }
  0x35   :  { %v294_v40 = vld.sshfl [vmem:[#allocation1 + $0x20] sm:$0xff pattern:$0x73625140]  ;;  %v295_v21 = vld.sshfl [vmem:[#allocation1 + $0x28] sm:$0xff pattern:$0x73625140]  ;;  %v200_v62 = vsel %vm172_vm2, %v198_v3, %v199_v55 }
  0x36   :  { %v432_v36 = vadd.f32 %v431_v28, %v430_v39  ;;  %v810_v49 = vld.sshfl [vmem:[#allocation1 + $0x30] sm:$0xff pattern:$0x73625140]  ;;  %v297_v2 = vld.sshfl [vmem:[#allocation1 + $0x38] sm:$0xff pattern:$0x73625140]  ;;  %v243_v22 = vmul.f32 %v197_v0, %v32_v57  ;;  %v244_v31 = vmul.f32 %v200_v62, %v33_v58 }
  0x37   :  { %298 = vst [vmem:[#allocation1] ss:$4 sm:$0xff] %v241_v38  ;;  %v103_v25 = vperm.slane %v780_v10, 7  ;;  %v439_v56 = vsel %vm168_vm0, %v286_v59, 0.0  ;;  %v96_v60 = vperm.slane %v780_v10, 0  ;;  %v100_v14 = vperm.slane %v780_v10, 4 }
  0x38   :  { %v434_v50 = vadd.f32 %v433_v43, %v432_v36  ;;  %299 = vst [vmem:[#allocation1 + $0x20] ss:$4 sm:$0xff] %v242_v45  ;;  %v150_v35 = vrot.slane %v97_v26, 6  ;;  %v441_v4 = vsel %vm168_vm0, %v783_v63, 0.0  ;;  %v151_v13 = vrot.slane %v98_v9, 4 }
  0x39   :  { %v152_v15 = vrot.slane %v99_v32, 2  ;;  %v153_v18 = vrot.slane %v101_v16, 6  ;;  %v154_v59 = vrot.slane %v102_v51, 4  ;;  %v155_v19 = vrot.slane %v103_v25, 2  ;;  %v21_v16 = vld [vmem:[%s894_s0 + $0x28] sm:$0xff] }
  0x3a   :  { %v436_v11 = vadd.f32 %v435_v44, %v434_v50  ;;  %v443_v20 = vsel %vm168_vm0, %v290_v42, 0.0  ;;  %v445_v10 = vsel %vm168_vm0, %v291_v46, 0.0  ;;  %v447_v26 = vsel %vm168_vm0, %v292_v29, 0.0 }
  0x3b   :  { %v201_v33 = vsel %vm168_vm0, %v96_v60, %v150_v35  ;;  %v202_v34 = vsel %vm170_vm1, %v151_v13, %v152_v15  ;;  %v449_v39 = vsel %vm168_vm0, %v293_v5, 0.0  ;;  %v204_v41 = vsel %vm168_vm0, %v100_v14, %v153_v18 }
  0x3c   :  { %v438_v61 = vadd.f32 %v437_v8, %v436_v11  ;;  %v205_v38 = vsel %vm170_vm1, %v154_v59, %v155_v19  ;;  %v34_v44 = vunpack.c.l.bf16 %v21_v16  ;;  %v451_v45 = vsel %vm168_vm0, %v294_v40, 0.0 }
  0x3d   :  { %v35_v42 = vunpack.c.h.bf16 %v21_v16  ;;  %v203_v46 = vsel %vm172_vm2, %v201_v33, %v202_v34  ;;  %v206_v36 = vsel %vm172_vm2, %v204_v41, %v205_v38  ;;  %v453_v37 = vsel %vm168_vm0, %v295_v21, 0.0 }
  0x3e   :  { %v440_v17 = vadd.f32 %v439_v56, %v438_v61  ;;  %v300_v23 = vld.sshfl [vmem:[#allocation1] sm:$0xff pattern:$0x73625140]  ;;  %v301_v1 = vld.sshfl [vmem:[#allocation1 + $0x8] sm:$0xff pattern:$0x73625140]  ;;  %v245_v8 = vmul.f32 %v203_v46, %v34_v44 }
  0x3f   :  { %v302_v63 = vld.sshfl [vmem:[#allocation1 + $0x10] sm:$0xff pattern:$0x73625140]  ;;  %v303_v9 = vld.sshfl [vmem:[#allocation1 + $0x18] sm:$0xff pattern:$0x73625140]  ;;  %v246_v52 = vmul.f32 %v206_v36, %v35_v42 }
  0x40   :  { %v442_v12 = vadd.f32 %v441_v4, %v440_v17  ;;  %v304_v32 = vld.sshfl [vmem:[#allocation1 + $0x20] sm:$0xff pattern:$0x73625140]  ;;  %v305_v54 = vld.sshfl [vmem:[#allocation1 + $0x28] sm:$0xff pattern:$0x73625140] }
  0x41   :  { %v306_v27 = vld.sshfl [vmem:[#allocation1 + $0x30] sm:$0xff pattern:$0x73625140]  ;;  %v307_v28 = vld.sshfl [vmem:[#allocation1 + $0x38] sm:$0xff pattern:$0x73625140] }
  0x42   :  { %v444_v24 = vadd.f32 %v443_v20, %v442_v12  ;;  %308 = vst [vmem:[#allocation1] ss:$4 sm:$0xff] %v243_v22  ;;  %v455_v5 = vsel %vm168_vm0, %v810_v49, 0.0  ;;  %v457_v51 = vsel %vm168_vm0, %v297_v2, 0.0  ;;  %v459_v21 = vsel %vm168_vm0, %v300_v23, 0.0 }
  0x43   :  { %309 = vst [vmem:[#allocation1 + $0x20] ss:$4 sm:$0xff] %v244_v31  ;;  %v461_v49 = vsel %vm168_vm0, %v301_v1, 0.0  ;;  %v463_v2 = vsel %vm168_vm0, %v302_v63, 0.0  ;;  %v465_v0 = vsel %vm168_vm0, %v303_v9, 0.0  ;;  %v467_v13 = vsel %vm168_vm0, %v304_v32, 0.0 }
  0x44   :  { %v446_v30 = vadd.f32 %v445_v10, %v444_v24  ;;  %v469_v15 = vsel %vm168_vm0, %v305_v54, 0.0  ;;  %v471_v31 = vsel %vm168_vm0, %v306_v27, 0.0  ;;  %v473_v1 = vsel %vm168_vm0, %v307_v28, 0.0 }
  0x46   :  { %v448_v43 = vadd.f32 %v447_v26, %v446_v30 }
  0x48   :  { %v450_v29 = vadd.f32 %v449_v39, %v448_v43 }
  0x49   :  { %v310_v53 = vld.sshfl [vmem:[#allocation1] sm:$0xff pattern:$0x73625140]  ;;  %v311_v11 = vld.sshfl [vmem:[#allocation1 + $0x8] sm:$0xff pattern:$0x73625140] }
  0x4a   :  { %v452_v50 = vadd.f32 %v451_v45, %v450_v29  ;;  %v312_v25 = vld.sshfl [vmem:[#allocation1 + $0x10] sm:$0xff pattern:$0x73625140]  ;;  %v313_v3 = vld.sshfl [vmem:[#allocation1 + $0x18] sm:$0xff pattern:$0x73625140] }
  0x4b   :  { %v314_v55 = vld.sshfl [vmem:[#allocation1 + $0x20] sm:$0xff pattern:$0x73625140]  ;;  %v315_v56 = vld.sshfl [vmem:[#allocation1 + $0x28] sm:$0xff pattern:$0x73625140] }
  0x4c   :  { %v454_v40 = vadd.f32 %v453_v37, %v452_v50  ;;  %v316_v57 = vld.sshfl [vmem:[#allocation1 + $0x30] sm:$0xff pattern:$0x73625140]  ;;  %v317_v60 = vld.sshfl [vmem:[#allocation1 + $0x38] sm:$0xff pattern:$0x73625140] }
  0x4d   :  { %318 = vst [vmem:[#allocation1] ss:$4 sm:$0xff] %v245_v8  ;;  %v475_v9 = vsel %vm168_vm0, %v310_v53, 0.0  ;;  %v477_v24 = vsel %vm168_vm0, %v311_v11, 0.0  ;;  %v479_v54 = vsel %vm168_vm0, %v312_v25, 0.0  ;;  %v481_v28 = vsel %vm168_vm0, %v313_v3, 0.0 }
  0x4e   :  { %v456_v58 = vadd.f32 %v455_v5, %v454_v40  ;;  %319 = vst [vmem:[#allocation1 + $0x20] ss:$4 sm:$0xff] %v246_v52  ;;  %v483_v44 = vsel %vm168_vm0, %v314_v55, 0.0  ;;  %v485_v42 = vsel %vm168_vm0, %v315_v56, 0.0  ;;  %v487_v29 = vsel %vm168_vm0, %v316_v57, 0.0 }
  0x4f   :  { %v489_v37 = vsel %vm168_vm0, %v317_v60, 0.0 }
  0x50   :  { %v458_v61 = vadd.f32 %v457_v51, %v456_v58 }
  0x52   :  { %v460_v14 = vadd.f32 %v459_v21, %v458_v61 }
  0x54   :  { %v462_v35 = vadd.f32 %v461_v49, %v460_v14  ;;  %v320_v62 = vld.sshfl [vmem:[#allocation1] sm:$0xff pattern:$0x73625140]  ;;  %v321_v17 = vld.sshfl [vmem:[#allocation1 + $0x8] sm:$0xff pattern:$0x73625140] }
  0x55   :  { %v322_v18 = vld.sshfl [vmem:[#allocation1 + $0x10] sm:$0xff pattern:$0x73625140]  ;;  %v323_v59 = vld.sshfl [vmem:[#allocation1 + $0x18] sm:$0xff pattern:$0x73625140] }
  0x56   :  { %v464_v4 = vadd.f32 %v463_v2, %v462_v35  ;;  %v324_v19 = vld.sshfl [vmem:[#allocation1 + $0x20] sm:$0xff pattern:$0x73625140]  ;;  %v325_v22 = vld.sshfl [vmem:[#allocation1 + $0x28] sm:$0xff pattern:$0x73625140] }
  0x57   :  { %v326_v12 = vld.sshfl [vmem:[#allocation1 + $0x30] sm:$0xff pattern:$0x73625140]  ;;  %v327_v10 = vld.sshfl [vmem:[#allocation1 + $0x38] sm:$0xff pattern:$0x73625140] }
  0x58   :  { %v466_v20 = vadd.f32 %v465_v0, %v464_v4  ;;  %328 = vst [vmem:[#allocation1] ss:$4 sm:$0xff] %v717_v6  ;;  %v491_v8 = vsel %vm168_vm0, %v320_v62, 0.0  ;;  %v493_v5 = vsel %vm168_vm0, %v321_v17, 0.0  ;;  %v497_v53 = vsel %vm168_vm0, %v323_v59, 0.0 }
  0x59   :  { %329 = vst [vmem:[#allocation1 + $0x20] ss:$4 sm:$0xff] %v721_v47  ;;  %v499_v25 = vsel %vm168_vm0, %v324_v19, 0.0  ;;  %v501_v3 = vsel %vm168_vm0, %v325_v22, 0.0  ;;  %v503_v56 = vsel %vm168_vm0, %v326_v12, 0.0  ;;  %v505_v58 = vsel %vm168_vm0, %v327_v10, 0.0 }
  0x5a   :  { %v468_v26 = vadd.f32 %v467_v13, %v466_v20 }
  0x5c   :  { %v470_v23 = vadd.f32 %v469_v15, %v468_v26 }
  0x5e   :  { %v472_v63 = vadd.f32 %v471_v31, %v470_v23 }
  0x5f   :  { %v330_v16 = vld.sshfl [vmem:[#allocation1] sm:$0xff pattern:$0x73625140]  ;;  %v331_v30 = vld.sshfl [vmem:[#allocation1 + $0x8] sm:$0xff pattern:$0x73625140] }
  0x60   :  { %v474_v32 = vadd.f32 %v473_v1, %v472_v63  ;;  %v332_v33 = vld.sshfl [vmem:[#allocation1 + $0x10] sm:$0xff pattern:$0x73625140]  ;;  %v333_v34 = vld.sshfl [vmem:[#allocation1 + $0x18] sm:$0xff pattern:$0x73625140] }
  0x61   :  { %v334_v39 = vld.sshfl [vmem:[#allocation1 + $0x20] sm:$0xff pattern:$0x73625140]  ;;  %v335_v47 = vld.sshfl [vmem:[#allocation1 + $0x28] sm:$0xff pattern:$0x73625140] }
  0x62   :  { %v476_v6 = vadd.f32 %v475_v9, %v474_v32  ;;  %v336_v41 = vld.sshfl [vmem:[#allocation1 + $0x30] sm:$0xff pattern:$0x73625140]  ;;  %v337_v38 = vld.sshfl [vmem:[#allocation1 + $0x38] sm:$0xff pattern:$0x73625140] }
  0x63   :  { %338 = vst [vmem:[#allocation1] ss:$4 sm:$0xff] %v725_v48  ;;  %v507_v21 = vsel %vm168_vm0, %v330_v16, 0.0  ;;  %v509_v49 = vsel %vm168_vm0, %v331_v30, 0.0  ;;  %v511_v2 = vsel %vm168_vm0, %v332_v33, 0.0  ;;  %v513_v0 = vsel %vm168_vm0, %v333_v34, 0.0 }
  0x64   :  { %v478_v27 = vadd.f32 %v477_v24, %v476_v6  ;;  %339 = vst [vmem:[#allocation1 + $0x20] ss:$4 sm:$0xff] %v734_v7  ;;  %v495_v7 = vsel %vm168_vm0, %v322_v18, 0.0  ;;  %v515_v13 = vsel %vm168_vm0, %v334_v39, 0.0  ;;  %v517_v62 = vsel %vm168_vm0, %v335_v47, 0.0 }
  0x65   :  { %v519_v18 = vsel %vm168_vm0, %v336_v41, 0.0  ;;  %v521_v20 = vsel %vm168_vm0, %v337_v38, 0.0 }
  0x66   :  { %v480_v43 = vadd.f32 %v479_v54, %v478_v27 }
  0x68   :  { %v482_v45 = vadd.f32 %v481_v28, %v480_v43 }
  0x6a   :  { %v484_v46 = vadd.f32 %v483_v44, %v482_v45  ;;  %v340_v59 = vld.sshfl [vmem:[#allocation1] sm:$0xff pattern:$0x73625140]  ;;  %v341_v22 = vld.sshfl [vmem:[#allocation1 + $0x8] sm:$0xff pattern:$0x73625140] }
  0x6b   :  { %v523_v10 = vsel %vm168_vm0, %v340_v59, 0.0  ;;  %v342_v26 = vld.sshfl [vmem:[#allocation1 + $0x10] sm:$0xff pattern:$0x73625140]  ;;  %v525_v23 = vsel %vm168_vm0, %v341_v22, 0.0 }
  0x6c   :  { %v486_v36 = vadd.f32 %v485_v42, %v484_v46  ;;  %v343_v1 = vld.sshfl [vmem:[#allocation1 + $0x18] sm:$0xff pattern:$0x73625140]  ;;  %v527_v9 = vsel %vm168_vm0, %v342_v26, 0.0  ;;  %v570_v45 = vld [vmem:[#allocation2] ss:$0 sm:$0xff] }
  0x6d   :  { %v344_v32 = vld.sshfl [vmem:[#allocation1 + $0x20] sm:$0xff pattern:$0x73625140]  ;;  %v529_v54 = vsel %vm168_vm0, %v343_v1, 0.0 }
  0x6e   :  { %v488_v50 = vadd.f32 %v487_v29, %v486_v36  ;;  %v345_v16 = vld.sshfl [vmem:[#allocation1 + $0x28] sm:$0xff pattern:$0x73625140]  ;;  %v531_v33 = vsel %vm168_vm0, %v344_v32, 0.0 }
  0x6f   :  { %v346_v6 = vld.sshfl [vmem:[#allocation1 + $0x30] sm:$0xff pattern:$0x73625140]  ;;  %v533_v39 = vsel %vm168_vm0, %v345_v16, 0.0 }
  0x70   :  { %v490_v48 = vadd.f32 %v489_v37, %v488_v50  ;;  %v347_v47 = vld.sshfl [vmem:[#allocation1 + $0x38] sm:$0xff pattern:$0x73625140]  ;;  %v535_v27 = vsel %vm168_vm0, %v346_v6, 0.0 }
  0x71   :  { %v537_v28 = vsel %vm168_vm0, %v347_v47, 0.0 }
  0x72   :  { %v492_v51 = vadd.f32 %v491_v8, %v490_v48 }
  0x74   :  { %v494_v52 = vadd.f32 %v493_v5, %v492_v51 }
  0x76   :  { %v496_v11 = vadd.f32 %v495_v7, %v494_v52 }
  0x78   :  { %v498_v40 = vadd.f32 %v497_v53, %v496_v11 }
  0x7a   :  { %v500_v55 = vadd.f32 %v499_v25, %v498_v40 }
  0x7c   :  { %v502_v57 = vadd.f32 %v501_v3, %v500_v55 }
  0x7e   :  { %v504_v60 = vadd.f32 %v503_v56, %v502_v57 }
  0x80   :  { %v506_v61 = vadd.f32 %v505_v58, %v504_v60 }
  0x82   :  { %v508_v14 = vadd.f32 %v507_v21, %v506_v61 }
  0x84   :  { %v510_v35 = vadd.f32 %v509_v49, %v508_v14 }
  0x86   :  { %v512_v4 = vadd.f32 %v511_v2, %v510_v35 }
  0x88   :  { %v514_v15 = vadd.f32 %v513_v0, %v512_v4 }
  0x8a   :  { %v516_v17 = vadd.f32 %v515_v13, %v514_v15 }
  0x8c   :  { %v518_v19 = vadd.f32 %v517_v62, %v516_v17 }
  0x8e   :  { %v520_v12 = vadd.f32 %v519_v18, %v518_v19 }
  0x90   :  { %v522_v31 = vadd.f32 %v521_v20, %v520_v12 }
  0x92   :  { %v524_v63 = vadd.f32 %v523_v10, %v522_v31 }
  0x94   :  { %v526_v24 = vadd.f32 %v525_v23, %v524_v63 }
  0x96   :  { %v528_v30 = vadd.f32 %v527_v9, %v526_v24 }
  0x98   :  { %v530_v34 = vadd.f32 %v529_v54, %v528_v30 }
  0x9a   :  { %v532_v41 = vadd.f32 %v531_v33, %v530_v34 }
  0x9c   :  { %v534_v38 = vadd.f32 %v533_v39, %v532_v41 }
  0x9e   :  { %v536_v43 = vadd.f32 %v535_v27, %v534_v38 }
  0xa0   :  { %v538_v44 = vadd.f32 %v537_v28, %v536_v43 }
  0xa2   :  { %539 = vadd.xlane.f32.xlu0 %v538_v44 }
 0x115   :  { %v540_v42 = vpop.xlane.xlu0 %539 }
 0x116   :  { %v545_v46 = vadd.f32 %v570_v45, %v540_v42 }
 0x118   :  { %v546_v29 = vsub.f32 0.0, %v545_v46 }
 0x11a   :  { %v547_v36 = vmul.f32 1.442695, %v546_v29 }
 0x11c   :  { %571 = vpow2.f32 %v547_v36 }
 0x122   :  { %v572_v37 = vpop.eup %571 }
 0x123   :  { %v549_v50 = vadd.f32 1.0, %v572_v37 }
 0x125   :  { %573 = vrcp.f32 %v549_v50  ;;  %v561_v51 = vand.u32 2147483648, %v549_v50  ;;  %v559_v52 = vand.u32 2147483647, %v549_v50  ;;  %vm555_vm4 = vweird.f32 %v549_v50 }
 0x127   :  { %v562_v11 = vor.u32 1.1754944e-38, %v561_v51  ;;  %vm560_vm7 = vcmp.eq.f32.partialorder %v559_v52, 8.507059e+37 }
 0x12b   :  { %v574_v8 = vpop.eup %573 }
 0x12c   :  { %v551_v48 = vmul.f32 %v574_v8, %v549_v50  ;;  %vm556_vm3 = vweird.f32 %v574_v8 }
 0x12d   :  { %vm557_vm5 = vmor %vm555_vm4, %vm556_vm3 }
 0x12e   :  { %v552_v5 = vsub.f32 1.0, %v551_v48 }
 0x130   :  { %v553_v7 = vmul.f32 %v574_v8, %v552_v5 }
 0x132   :  { %v554_v53 = vadd.f32 %v574_v8, %v553_v7 }
 0x134   :  { %v558_v25 = vsel %vm557_vm5, %v574_v8, %v554_v53 }
 0x135   :  { %v563_v40 = vsel %vm560_vm7, %v562_v11, %v558_v25 }
 0x136   :  { %565 = vst.msk [vmem:[%s896_s3] sm:$0x3] %vm564_vm6, %v563_v40 }

</bundles_post_ra>
